<compile_context>
chip_gen: v6e
topology: v6e:2x2x1
jax: 0.10.0
libtpu: 0.0.40
codegen_flags: <defaults>
</compile_context>

<pallas_src>
import numpy as np

import jax
import jax.numpy as jnp
from jax.experimental import pallas as pl
from jax.experimental.pallas import tpu as pltpu


# ---------------------------------------------------------------------------
# Fused Pallas kernel: whole Encoder forward, single block, VMEM resident
# ---------------------------------------------------------------------------

def _encoder_fused_kernel(x_ref, w1_ref, b1_ref, w2_ref, b2_ref,
                          gamma_ref, beta_ref, cmap_ref, cmapT_ref,
                          w3_ref, b3_ref, lw1_ref, lb1_ref, lw2_ref, lb2_ref,
                          out_ref):
    f32 = jnp.float32

    x = x_ref[...]                                                   # (B, 784)

    # Conv2d(1, 8, 3, stride=2, padding=1) + ReLU   -> (B, 8*14*14)
    a1 = jnp.dot(x, w1_ref[...], preferred_element_type=f32) + b1_ref[...]
    a1 = jnp.maximum(a1, 0.0)

    # Conv2d(8, 16, 3, stride=2, padding=1)         -> (B, 16*7*7)
    z2 = jnp.dot(a1, w2_ref[...], preferred_element_type=f32) + b2_ref[...]

    # BatchNorm2d(16), training-mode batch stats over (N, H, W) per channel.
    # One pass: per-channel sum and sum-of-squares via the constant one-hot
    # channel map (columns of z2 are in NCHW order: channel = col // 49).
    cmap = cmap_ref[...]                                             # (784, 16)
    csum = jnp.sum(jnp.dot(z2, cmap, preferred_element_type=f32),
                   axis=0, keepdims=True)                            # (1, 16)
    csq = jnp.sum(jnp.dot(z2 * z2, cmap, preferred_element_type=f32),
                  axis=0, keepdims=True)                             # (1, 16)
    count = z2.shape[0] * (cmap.shape[0] // cmap.shape[1])           # B * 49
    inv_n = jnp.float32(1.0 / count)
    mean = csum * inv_n
    var = csq * inv_n - mean * mean          # biased variance (PyTorch BN)
    scale_c = gamma_ref[...] * jax.lax.rsqrt(var + 1e-5)             # (1, 16)
    shift_c = beta_ref[...] - mean * scale_c                         # (1, 16)
    # Broadcast per-channel scale/shift back to the 784 columns.
    scale_col = jnp.dot(scale_c, cmapT_ref[...], preferred_element_type=f32)
    shift_col = jnp.dot(shift_c, cmapT_ref[...], preferred_element_type=f32)
    a2 = jnp.maximum(z2 * scale_col + shift_col, 0.0)

    # Conv2d(16, 32, 3, stride=2, padding=0) + ReLU -> (B, 32*3*3)
    a3 = jnp.dot(a2, w3_ref[...], preferred_element_type=f32) + b3_ref[...]
    a3 = jnp.maximum(a3, 0.0)

    # Flatten(start_dim=1) is the identity here (columns already NCHW order).
    # Linear(288, 128) + ReLU
    h = jnp.dot(a3, lw1_ref[...], preferred_element_type=f32) + lb1_ref[...]
    h = jnp.maximum(h, 0.0)
    # Linear(128, encoded_space_dim)
    out_ref[...] = jnp.dot(h, lw2_ref[...], preferred_element_type=f32) + lb2_ref[...]


def fused_encoder(x2d, p):
    B = x2d.shape[0]
    d = p["lw2"].shape[1]
    args = (x2d, p["w1"], p["b1"], p["w2"], p["b2"], p["gamma"], p["beta"],
            p["cmap"], p["cmapT"], p["w3"], p["b3"],
            p["lw1"], p["lb1"], p["lw2"], p["lb2"])
    return pl.pallas_call(
        _encoder_fused_kernel,
        out_shape=jax.ShapeDtypeStruct((B, d), jnp.float32),
        in_specs=[pl.BlockSpec(a.shape) for a in args],
        out_specs=pl.BlockSpec((B, d)),
        compiler_params=pltpu.CompilerParams(
            # ~13 MiB of (padded) operands must be VMEM-resident; raise the
            # v5e 16 MiB scoped default (still within every generation's VMEM).
            vmem_limit_bytes=32 * 1024 * 1024),
    )(*args)


# ---------------------------------------------------------------------------
# One-time parameter preparation (weight transforms hoisted out of the forward)
# ---------------------------------------------------------------------------

def _conv_to_dense_matrix(w_oihw, cin, hin, win, stride, pad):
    """Unroll a conv into a dense (Cin*Hin*Win, Cout*Hout*Wout) matrix.

    Input/output vectors use per-sample NCHW flattening (c*H*W + h*W + w), so
    chained layers compose directly and the final flatten matches PyTorch.
    """
    cout = int(w_oihw.shape[0])
    k = int(w_oihw.shape[2])
    hout = (hin + 2 * pad - k) // stride + 1
    wout = (win + 2 * pad - k) // stride + 1
    co, oh, ow, ci, kh, kw = np.meshgrid(
        np.arange(cout), np.arange(hout), np.arange(wout),
        np.arange(cin), np.arange(k), np.arange(k), indexing="ij")
    ih = oh * stride + kh - pad
    iw = ow * stride + kw - pad
    valid = (ih >= 0) & (ih < hin) & (iw >= 0) & (iw < win)
    rows = (ci * hin * win + ih * win + iw)[valid]
    cols = (co * hout * wout + oh * wout + ow)[valid]
    vals = w_oihw[co[valid], ci[valid], kh[valid], kw[valid]].astype(jnp.float32)
    dense = jnp.zeros((cin * hin * win, cout * hout * wout), jnp.float32)
    dense = dense.at[rows, cols].add(vals)
    return dense, (hout, wout)


def prepare_params(params):
    d1, (h1, w1_) = _conv_to_dense_matrix(params["w1"], 1, 28, 28, 2, 1)     # (784, 1568)
    d2, (h2, w2_) = _conv_to_dense_matrix(params["w2"], 8, h1, w1_, 2, 1)    # (1568, 784)
    d3, (h3, w3_) = _conv_to_dense_matrix(params["w3"], 16, h2, w2_, 2, 0)   # (784, 288)

    c_bn = int(params["w2"].shape[0])     # 16 channels normalized by BatchNorm2d
    s_bn = h2 * w2_                       # 49 spatial positions per channel
    ch_of_col = np.arange(c_bn * s_bn) // s_bn
    cmap = np.zeros((c_bn * s_bn, c_bn), np.float32)
    cmap[np.arange(c_bn * s_bn), ch_of_col] = 1.0

    return {
        "w1": d1, "b1": jnp.repeat(params["b1"], h1 * w1_).reshape(1, -1),
        "w2": d2, "b2": jnp.repeat(params["b2"], s_bn).reshape(1, -1),
        "gamma": params["bn_gamma"].reshape(1, -1),
        "beta": params["bn_beta"].reshape(1, -1),
        "cmap": jnp.asarray(cmap), "cmapT": jnp.asarray(cmap.T),
        "w3": d3, "b3": jnp.repeat(params["b3"], h3 * w3_).reshape(1, -1),
        # NCHW flatten order is preserved end-to-end, so PyTorch's Flatten
        # needs no permutation: only pre-transpose the Linear weights.
        "lw1": jnp.transpose(params["lw1"]), "lb1": params["lb1"].reshape(1, -1),
        "lw2": jnp.transpose(params["lw2"]), "lb2": params["lb2"].reshape(1, -1),
    }


# ---------------------------------------------------------------------------
# Parameters (deterministic synthetic init, PyTorch-shaped)
# ---------------------------------------------------------------------------

def init_params(key, encoded_space_dim):
    ks = jax.random.split(key, 10)
    return {
        "w1": jax.random.normal(ks[0], (8, 1, 3, 3), jnp.float32) * 0.1,
        "b1": jax.random.normal(ks[1], (8,), jnp.float32) * 0.1,
        "w2": jax.random.normal(ks[2], (16, 8, 3, 3), jnp.float32) * 0.1,
        "b2": jax.random.normal(ks[3], (16,), jnp.float32) * 0.1,
        "bn_gamma": jnp.ones((16,), jnp.float32),
        "bn_beta": jnp.zeros((16,), jnp.float32),
        "w3": jax.random.normal(ks[4], (32, 16, 3, 3), jnp.float32) * 0.1,
        "b3": jax.random.normal(ks[5], (32,), jnp.float32) * 0.1,
        "lw1": jax.random.normal(ks[6], (128, 3 * 3 * 32), jnp.float32) * 0.05,
        "lb1": jax.random.normal(ks[7], (128,), jnp.float32) * 0.05,
        "lw2": jax.random.normal(ks[8], (encoded_space_dim, 128), jnp.float32) * 0.05,
        "lb2": jax.random.normal(ks[9], (encoded_space_dim,), jnp.float32) * 0.05,
    }


# ---------------------------------------------------------------------------
# Encoder forward: one reshape + one fused Pallas kernel
# ---------------------------------------------------------------------------

@jax.jit
def encoder_forward(x_nchw, prep):
    B = x_nchw.shape[0]
    x = x_nchw.reshape(B, -1).astype(jnp.float32)   # NCHW flatten (Cin=1): (B, 784)
    return fused_encoder(x, prep)


# ---------------------------------------------------------------------------

if __name__ == "__main__":
    encoded_space_dim = 4
    fc2_input_dim = 128  # unused by Encoder.forward (matches the PyTorch module)

    key = jax.random.PRNGKey(0)
    k_x, k_p = jax.random.split(key)
    x = jax.random.normal(k_x, (2, 1, 28, 28), jnp.float32)  # NCHW, MNIST-sized
    params = init_params(k_p, encoded_space_dim)
    prep = prepare_params(params)  # one-time weight transforms (not in hot path)

    out = encoder_forward(x, prep)
    out = jax.block_until_ready(out)
    assert out.shape == (2, encoded_space_dim), out.shape
    print("KERNEL_OK")
</pallas_src>

<mosaic_0001>
module attributes {stable_mosaic.version = 11 : i64} {
  func.func @_encoder_fused_kernel(%arg0: memref<2x784xf32, #tpu.memory_space<vmem>>, %arg1: memref<784x1568xf32, #tpu.memory_space<vmem>>, %arg2: memref<1x1568xf32, #tpu.memory_space<vmem>>, %arg3: memref<1568x784xf32, #tpu.memory_space<vmem>>, %arg4: memref<1x784xf32, #tpu.memory_space<vmem>>, %arg5: memref<1x16xf32, #tpu.memory_space<vmem>>, %arg6: memref<1x16xf32, #tpu.memory_space<vmem>>, %arg7: memref<784x16xf32, #tpu.memory_space<vmem>>, %arg8: memref<16x784xf32, #tpu.memory_space<vmem>>, %arg9: memref<784x288xf32, #tpu.memory_space<vmem>>, %arg10: memref<1x288xf32, #tpu.memory_space<vmem>>, %arg11: memref<288x128xf32, #tpu.memory_space<vmem>>, %arg12: memref<1x128xf32, #tpu.memory_space<vmem>>, %arg13: memref<128x4xf32, #tpu.memory_space<vmem>>, %arg14: memref<1x4xf32, #tpu.memory_space<vmem>>, %arg15: memref<2x4xf32, #tpu.memory_space<vmem>>) attributes {dimension_semantics = [], scalar_prefetch = 0 : i64, scratch_operands = 0 : i64, tpu.core_type = #tpu.core_type<tc>} {
    %c0 = arith.constant 0 : index
    %c0_0 = arith.constant 0 : index
    %0 = vector.load %arg0[%c0, %c0_0] : memref<2x784xf32, #tpu.memory_space<vmem>>, vector<2x784xf32>
    %c0_1 = arith.constant 0 : index
    %c0_2 = arith.constant 0 : index
    %1 = vector.load %arg1[%c0_1, %c0_2] : memref<784x1568xf32, #tpu.memory_space<vmem>>, vector<784x1568xf32>
    %cst = arith.constant dense<0.000000e+00> : vector<2x1568xf32>
    %2 = tpu.matmul %0, %1, %cst {dimension_numbers = #tpu.dot_dimension_numbers<[1], [0], [0], [1], [0, 0, 1, 1], [], []>} : vector<2x784xf32>, vector<784x1568xf32>, vector<2x1568xf32> -> vector<2x1568xf32>
    %c0_3 = arith.constant 0 : index
    %c0_4 = arith.constant 0 : index
    %3 = vector.load %arg2[%c0_3, %c0_4] : memref<1x1568xf32, #tpu.memory_space<vmem>>, vector<1x1568xf32>
    %4 = vector.broadcast %3 : vector<1x1568xf32> to vector<2x1568xf32>
    %5 = arith.addf %2, %4 : vector<2x1568xf32>
    %cst_5 = arith.constant 0.000000e+00 : f32
    %6 = vector.broadcast %cst_5 : f32 to vector<2x1568xf32>
    %7 = arith.maximumf %5, %6 : vector<2x1568xf32>
    %c0_6 = arith.constant 0 : index
    %c0_7 = arith.constant 0 : index
    %8 = vector.load %arg3[%c0_6, %c0_7] : memref<1568x784xf32, #tpu.memory_space<vmem>>, vector<1568x784xf32>
    %cst_8 = arith.constant dense<0.000000e+00> : vector<2x784xf32>
    %9 = tpu.matmul %7, %8, %cst_8 {dimension_numbers = #tpu.dot_dimension_numbers<[1], [0], [0], [1], [0, 0, 1, 1], [], []>} : vector<2x1568xf32>, vector<1568x784xf32>, vector<2x784xf32> -> vector<2x784xf32>
    %c0_9 = arith.constant 0 : index
    %c0_10 = arith.constant 0 : index
    %10 = vector.load %arg4[%c0_9, %c0_10] : memref<1x784xf32, #tpu.memory_space<vmem>>, vector<1x784xf32>
    %11 = vector.broadcast %10 : vector<1x784xf32> to vector<2x784xf32>
    %12 = arith.addf %9, %11 : vector<2x784xf32>
    %c0_11 = arith.constant 0 : index
    %c0_12 = arith.constant 0 : index
    %13 = vector.load %arg7[%c0_11, %c0_12] : memref<784x16xf32, #tpu.memory_space<vmem>>, vector<784x16xf32>
    %cst_13 = arith.constant dense<0.000000e+00> : vector<2x16xf32>
    %14 = tpu.matmul %12, %13, %cst_13 {dimension_numbers = #tpu.dot_dimension_numbers<[1], [0], [0], [1], [0, 0, 1, 1], [], []>} : vector<2x784xf32>, vector<784x16xf32>, vector<2x16xf32> -> vector<2x16xf32>
    %cst_14 = arith.constant dense<0.000000e+00> : vector<16xf32>
    %15 = vector.multi_reduction <add>, %14, %cst_14 [0] : vector<2x16xf32> to vector<16xf32>
    %16 = vector.shape_cast %15 : vector<16xf32> to vector<1x16xf32>
    %17 = arith.mulf %12, %12 : vector<2x784xf32>
    %cst_15 = arith.constant dense<0.000000e+00> : vector<2x16xf32>
    %18 = tpu.matmul %17, %13, %cst_15 {dimension_numbers = #tpu.dot_dimension_numbers<[1], [0], [0], [1], [0, 0, 1, 1], [], []>} : vector<2x784xf32>, vector<784x16xf32>, vector<2x16xf32> -> vector<2x16xf32>
    %cst_16 = arith.constant dense<0.000000e+00> : vector<16xf32>
    %19 = vector.multi_reduction <add>, %18, %cst_16 [0] : vector<2x16xf32> to vector<16xf32>
    %20 = vector.shape_cast %19 : vector<16xf32> to vector<1x16xf32>
    %cst_17 = arith.constant 0.0102040814 : f32
    %21 = vector.broadcast %cst_17 : f32 to vector<1x16xf32>
    %22 = arith.mulf %16, %21 : vector<1x16xf32>
    %cst_18 = arith.constant 0.0102040814 : f32
    %23 = vector.broadcast %cst_18 : f32 to vector<1x16xf32>
    %24 = arith.mulf %20, %23 : vector<1x16xf32>
    %25 = arith.mulf %22, %22 : vector<1x16xf32>
    %26 = arith.subf %24, %25 : vector<1x16xf32>
    %c0_19 = arith.constant 0 : index
    %c0_20 = arith.constant 0 : index
    %27 = vector.load %arg5[%c0_19, %c0_20] : memref<1x16xf32, #tpu.memory_space<vmem>>, vector<1x16xf32>
    %cst_21 = arith.constant 9.99999974E-6 : f32
    %28 = vector.broadcast %cst_21 : f32 to vector<1x16xf32>
    %29 = arith.addf %26, %28 : vector<1x16xf32>
    %30 = math.rsqrt %29 : vector<1x16xf32>
    %31 = arith.mulf %27, %30 : vector<1x16xf32>
    %c0_22 = arith.constant 0 : index
    %c0_23 = arith.constant 0 : index
    %32 = vector.load %arg6[%c0_22, %c0_23] : memref<1x16xf32, #tpu.memory_space<vmem>>, vector<1x16xf32>
    %33 = arith.mulf %22, %31 : vector<1x16xf32>
    %34 = arith.subf %32, %33 : vector<1x16xf32>
    %c0_24 = arith.constant 0 : index
    %c0_25 = arith.constant 0 : index
    %35 = vector.load %arg8[%c0_24, %c0_25] : memref<16x784xf32, #tpu.memory_space<vmem>>, vector<16x784xf32>
    %cst_26 = arith.constant dense<0.000000e+00> : vector<1x784xf32>
    %36 = tpu.matmul %31, %35, %cst_26 {dimension_numbers = #tpu.dot_dimension_numbers<[1], [0], [0], [1], [0, 0, 1, 1], [], []>} : vector<1x16xf32>, vector<16x784xf32>, vector<1x784xf32> -> vector<1x784xf32>
    %c0_27 = arith.constant 0 : index
    %c0_28 = arith.constant 0 : index
    %37 = vector.load %arg8[%c0_27, %c0_28] : memref<16x784xf32, #tpu.memory_space<vmem>>, vector<16x784xf32>
    %cst_29 = arith.constant dense<0.000000e+00> : vector<1x784xf32>
    %38 = tpu.matmul %34, %37, %cst_29 {dimension_numbers = #tpu.dot_dimension_numbers<[1], [0], [0], [1], [0, 0, 1, 1], [], []>} : vector<1x16xf32>, vector<16x784xf32>, vector<1x784xf32> -> vector<1x784xf32>
    %39 = vector.broadcast %36 : vector<1x784xf32> to vector<2x784xf32>
    %40 = arith.mulf %12, %39 : vector<2x784xf32>
    %41 = vector.broadcast %38 : vector<1x784xf32> to vector<2x784xf32>
    %42 = arith.addf %40, %41 : vector<2x784xf32>
    %cst_30 = arith.constant 0.000000e+00 : f32
    %43 = vector.broadcast %cst_30 : f32 to vector<2x784xf32>
    %44 = arith.maximumf %42, %43 : vector<2x784xf32>
    %c0_31 = arith.constant 0 : index
    %c0_32 = arith.constant 0 : index
    %45 = vector.load %arg9[%c0_31, %c0_32] : memref<784x288xf32, #tpu.memory_space<vmem>>, vector<784x288xf32>
    %cst_33 = arith.constant dense<0.000000e+00> : vector<2x288xf32>
    %46 = tpu.matmul %44, %45, %cst_33 {dimension_numbers = #tpu.dot_dimension_numbers<[1], [0], [0], [1], [0, 0, 1, 1], [], []>} : vector<2x784xf32>, vector<784x288xf32>, vector<2x288xf32> -> vector<2x288xf32>
    %c0_34 = arith.constant 0 : index
    %c0_35 = arith.constant 0 : index
    %47 = vector.load %arg10[%c0_34, %c0_35] : memref<1x288xf32, #tpu.memory_space<vmem>>, vector<1x288xf32>
    %48 = vector.broadcast %47 : vector<1x288xf32> to vector<2x288xf32>
    %49 = arith.addf %46, %48 : vector<2x288xf32>
    %cst_36 = arith.constant 0.000000e+00 : f32
    %50 = vector.broadcast %cst_36 : f32 to vector<2x288xf32>
    %51 = arith.maximumf %49, %50 : vector<2x288xf32>
    %c0_37 = arith.constant 0 : index
    %c0_38 = arith.constant 0 : index
    %52 = vector.load %arg11[%c0_37, %c0_38] : memref<288x128xf32, #tpu.memory_space<vmem>>, vector<288x128xf32>
    %cst_39 = arith.constant dense<0.000000e+00> : vector<2x128xf32>
    %53 = tpu.matmul %51, %52, %cst_39 {dimension_numbers = #tpu.dot_dimension_numbers<[1], [0], [0], [1], [0, 0, 1, 1], [], []>} : vector<2x288xf32>, vector<288x128xf32>, vector<2x128xf32> -> vector<2x128xf32>
    %c0_40 = arith.constant 0 : index
    %c0_41 = arith.constant 0 : index
    %54 = vector.load %arg12[%c0_40, %c0_41] : memref<1x128xf32, #tpu.memory_space<vmem>>, vector<1x128xf32>
    %55 = vector.broadcast %54 : vector<1x128xf32> to vector<2x128xf32>
    %56 = arith.addf %53, %55 : vector<2x128xf32>
    %cst_42 = arith.constant 0.000000e+00 : f32
    %57 = vector.broadcast %cst_42 : f32 to vector<2x128xf32>
    %58 = arith.maximumf %56, %57 : vector<2x128xf32>
    %c0_43 = arith.constant 0 : index
    %c0_44 = arith.constant 0 : index
    %59 = vector.load %arg13[%c0_43, %c0_44] : memref<128x4xf32, #tpu.memory_space<vmem>>, vector<128x4xf32>
    %cst_45 = arith.constant dense<0.000000e+00> : vector<2x4xf32>
    %60 = tpu.matmul %58, %59, %cst_45 {dimension_numbers = #tpu.dot_dimension_numbers<[1], [0], [0], [1], [0, 0, 1, 1], [], []>} : vector<2x128xf32>, vector<128x4xf32>, vector<2x4xf32> -> vector<2x4xf32>
    %c0_46 = arith.constant 0 : index
    %c0_47 = arith.constant 0 : index
    %61 = vector.load %arg14[%c0_46, %c0_47] : memref<1x4xf32, #tpu.memory_space<vmem>>, vector<1x4xf32>
    %62 = vector.broadcast %61 : vector<1x4xf32> to vector<2x4xf32>
    %63 = arith.addf %60, %62 : vector<2x4xf32>
    %c0_48 = arith.constant 0 : index
    %c0_49 = arith.constant 0 : index
    %64 = vector.load %arg15[%c0_48, %c0_49] : memref<2x4xf32, #tpu.memory_space<vmem>>, vector<2x4xf32>
    tpu.vector_store %arg15[%c0_48, %c0_49], %63 {strides = array<i32>} : memref<2x4xf32, #tpu.memory_space<vmem>>, vector<2x4xf32>,
    return
  }
}

</mosaic_0001>

<bundles_post_ra>
// kernel: encoder_forward.1
= control target key start
LH: loop header
LB: loop body
LE: loop exit
PB: predicated region body
PF: predicated region fallthrough
CT: control target
= control target key end

     0   :  { %vm1437_vm0 = vcmask 130048   ;;  %s20676_s0 = inlined_call_operand.vmem [shape: f32[2,784], index: 0, kind: input, shape index: {}]   ;;  %s20677_s1 = inlined_call_operand.vmem [shape: f32[784,1568], index: 1, kind: input, shape index: {}]   ;;  %s20678_s2 = inlined_call_operand.vmem [shape: f32[1,1568], index: 2, kind: input, shape index: {}]   ;;  %s20679_s3 = inlined_call_operand.vmem [shape: f32[1568,784], index: 3, kind: input, shape index: {}]   ;;  %s20680_s4 = inlined_call_operand.vmem [shape: f32[1,784], index: 4, kind: input, shape index: {}]   ;;  %s20681_s5 = inlined_call_operand.vmem [shape: f32[1,16], index: 5, kind: input, shape index: {}]   ;;  %s20682_s6 = inlined_call_operand.vmem [shape: f32[1,16], index: 6, kind: input, shape index: {}]   ;;  %s20683_s7 = inlined_call_operand.vmem [shape: f32[784,16], index: 7, kind: input, shape index: {}]   ;;  %s20684_s8 = inlined_call_operand.vmem [shape: f32[16,784], index: 8, kind: input, shape index: {}]   ;;  %s20685_s9 = inlined_call_operand.vmem [shape: f32[784,288], index: 9, kind: input, shape index: {}]   ;;  %s20686_s10 = inlined_call_operand.vmem [shape: f32[1,288], index: 10, kind: input, shape index: {}]   ;;  %s20687_s11 = inlined_call_operand.vmem [shape: f32[288,128], index: 11, kind: input, shape index: {}]   ;;  %s20688_s12 = inlined_call_operand.vmem [shape: f32[1,128], index: 12, kind: input, shape index: {}]   ;;  %s20689_s13 = inlined_call_operand.vmem [shape: f32[128,4], index: 13, kind: input, shape index: {}]   ;;  %s20690_s14 = inlined_call_operand.vmem [shape: f32[1,4], index: 14, kind: input, shape index: {}]   ;;  %s20691_s15 = inlined_call_operand.hbm [shape: f32[2,4], index: 15, kind: output, shape index: {}]  }
   0x1   :  { %v249_v0 = vld [vmem:[%s20677_s1 + $0x620] sm:$0xff]  ;;  %v248_v2 = vld [vmem:[%s20677_s1 + $0x618] sm:$0xff]  ;;  %v235_v6 = vld [vmem:[%s20677_s1 + $0x5b0] sm:$0xff] }
   0x2   :  { %v665_v1 = vld [vmem:[%s20677_s1 + $0x1320] sm:$0xff]  ;;  %1440 = vmatprep.subr.mxu0 %v249_v0  ;;  %v664_v3 = vld [vmem:[%s20677_s1 + $0x1318] sm:$0xff]  ;;  %v651_v7 = vld [vmem:[%s20677_s1 + $0x12b0] sm:$0xff] }
   0x3   :  { %1511 = vmatprep.subr.mxu1 %v665_v1  ;;  %v236_v4 = vld [vmem:[%s20677_s1 + $0x5b8] sm:$0xff]  ;;  %1441 = vmatpush1.msra.mxu0 %v248_v2  ;;  %v223_v8 = vld [vmem:[%s20677_s1 + $0x550] sm:$0xff]  ;;  %v222_v10 = vld [vmem:[%s20677_s1 + $0x548] sm:$0xff] }
   0x4   :  { %v652_v5 = vld [vmem:[%s20677_s1 + $0x12b8] sm:$0xff]  ;;  %1512 = vmatpush1.msra.mxu1 %v664_v3  ;;  %1442 = vmatprep.subr.mxu0 %v236_v4  ;;  %v639_v9 = vld [vmem:[%s20677_s1 + $0x1250] sm:$0xff]  ;;  %v638_v11 = vld [vmem:[%s20677_s1 + $0x1248] sm:$0xff] }
   0x5   :  { %1513 = vmatprep.subr.mxu1 %v652_v5  ;;  %1443 = vmatpush1.msra.mxu0 %v235_v6  ;;  %v210_v12 = vld [vmem:[%s20677_s1 + $0x4e8] sm:$0xff]  ;;  %v209_v14 = vld [vmem:[%s20677_s1 + $0x4e0] sm:$0xff]  ;;  %v196_v18 = vld [vmem:[%s20677_s1 + $0x478] sm:$0xff] }
   0x6   :  { %1514 = vmatpush1.msra.mxu1 %v651_v7  ;;  %v626_v13 = vld [vmem:[%s20677_s1 + $0x11e8] sm:$0xff]  ;;  %1444 = vmatprep.subr.mxu0 %v223_v8  ;;  %v625_v15 = vld [vmem:[%s20677_s1 + $0x11e0] sm:$0xff]  ;;  %v612_v19 = vld [vmem:[%s20677_s1 + $0x1178] sm:$0xff] }
   0x7   :  { %1515 = vmatprep.subr.mxu1 %v639_v9  ;;  %1445 = vmatpush1.msra.mxu0 %v222_v10  ;;  %v197_v16 = vld [vmem:[%s20677_s1 + $0x480] sm:$0xff]  ;;  %v184_v20 = vld [vmem:[%s20677_s1 + $0x418] sm:$0xff]  ;;  %v183_v22 = vld [vmem:[%s20677_s1 + $0x410] sm:$0xff] }
   0x8   :  { %1516 = vmatpush1.msra.mxu1 %v638_v11  ;;  %v613_v17 = vld [vmem:[%s20677_s1 + $0x1180] sm:$0xff]  ;;  %1446 = vmatprep.subr.mxu0 %v210_v12  ;;  %v600_v21 = vld [vmem:[%s20677_s1 + $0x1118] sm:$0xff]  ;;  %v599_v23 = vld [vmem:[%s20677_s1 + $0x1110] sm:$0xff] }
   0x9   :  { %1517 = vmatprep.subr.mxu1 %v626_v13  ;;  %1447 = vmatpush1.msra.mxu0 %v209_v14  ;;  %v171_v24 = vld [vmem:[%s20677_s1 + $0x3b0] sm:$0xff]  ;;  %v170_v26 = vld [vmem:[%s20677_s1 + $0x3a8] sm:$0xff]  ;;  %v157_v30 = vld [vmem:[%s20677_s1 + $0x340] sm:$0xff] }
   0xa   :  { %1518 = vmatpush1.msra.mxu1 %v625_v15  ;;  %1448 = vmatprep.subr.mxu0 %v197_v16  ;;  %v587_v25 = vld [vmem:[%s20677_s1 + $0x10b0] sm:$0xff]  ;;  %v586_v27 = vld [vmem:[%s20677_s1 + $0x10a8] sm:$0xff]  ;;  %v573_v31 = vld [vmem:[%s20677_s1 + $0x1040] sm:$0xff] }
   0xb   :  { %1519 = vmatprep.subr.mxu1 %v613_v17  ;;  %1449 = vmatpush1.msra.mxu0 %v196_v18  ;;  %v158_v28 = vld [vmem:[%s20677_s1 + $0x348] sm:$0xff]  ;;  %v145_v32 = vld [vmem:[%s20677_s1 + $0x2e0] sm:$0xff]  ;;  %v144_v34 = vld [vmem:[%s20677_s1 + $0x2d8] sm:$0xff] }
   0xc   :  { %1520 = vmatpush1.msra.mxu1 %v612_v19  ;;  %1450 = vmatprep.subr.mxu0 %v184_v20  ;;  %v574_v29 = vld [vmem:[%s20677_s1 + $0x1048] sm:$0xff]  ;;  %v561_v33 = vld [vmem:[%s20677_s1 + $0xfe0] sm:$0xff]  ;;  %v560_v35 = vld [vmem:[%s20677_s1 + $0xfd8] sm:$0xff] }
   0xd   :  { %1521 = vmatprep.subr.mxu1 %v600_v21  ;;  %1451 = vmatpush1.msra.mxu0 %v183_v22  ;;  %v132_v36 = vld [vmem:[%s20677_s1 + $0x278] sm:$0xff]  ;;  %v131_v38 = vld [vmem:[%s20677_s1 + $0x270] sm:$0xff]  ;;  %v118_v42 = vld [vmem:[%s20677_s1 + $0x208] sm:$0xff] }
   0xe   :  { %1522 = vmatpush1.msra.mxu1 %v599_v23  ;;  %1452 = vmatprep.subr.mxu0 %v171_v24  ;;  %v548_v37 = vld [vmem:[%s20677_s1 + $0xf78] sm:$0xff]  ;;  %v547_v39 = vld [vmem:[%s20677_s1 + $0xf70] sm:$0xff]  ;;  %v534_v43 = vld [vmem:[%s20677_s1 + $0xf08] sm:$0xff] }
   0xf   :  { %1523 = vmatprep.subr.mxu1 %v587_v25  ;;  %1453 = vmatpush1.msra.mxu0 %v170_v26  ;;  %v119_v40 = vld [vmem:[%s20677_s1 + $0x210] sm:$0xff]  ;;  %v106_v44 = vld [vmem:[%s20677_s1 + $0x1a8] sm:$0xff]  ;;  %v105_v46 = vld [vmem:[%s20677_s1 + $0x1a0] sm:$0xff] }
  0x10   :  { %1524 = vmatpush1.msra.mxu1 %v586_v27  ;;  %1454 = vmatprep.subr.mxu0 %v158_v28  ;;  %v535_v41 = vld [vmem:[%s20677_s1 + $0xf10] sm:$0xff]  ;;  %v522_v45 = vld [vmem:[%s20677_s1 + $0xea8] sm:$0xff]  ;;  %v521_v47 = vld [vmem:[%s20677_s1 + $0xea0] sm:$0xff] }
  0x11   :  { %1525 = vmatprep.subr.mxu1 %v574_v29  ;;  %1455 = vmatpush1.msra.mxu0 %v157_v30  ;;  %v93_v48 = vld [vmem:[%s20677_s1 + $0x140] sm:$0xff]  ;;  %v92_v50 = vld [vmem:[%s20677_s1 + $0x138] sm:$0xff]  ;;  %v79_v54 = vld [vmem:[%s20677_s1 + $0xd0] sm:$0xff]  ;;  %v1331_v30 = vlaneseq }
  0x12   :  { %1526 = vmatpush1.msra.mxu1 %v573_v31  ;;  %1456 = vmatprep.subr.mxu0 %v145_v32  ;;  %v509_v49 = vld [vmem:[%s20677_s1 + $0xe40] sm:$0xff]  ;;  %v508_v51 = vld [vmem:[%s20677_s1 + $0xe38] sm:$0xff]  ;;  %v495_v55 = vld [vmem:[%s20677_s1 + $0xdd0] sm:$0xff]  ;;  %v10238_v31 = vmov 1983009808  }
  0x13   :  { %1527 = vmatprep.subr.mxu1 %v561_v33  ;;  %1457 = vmatpush1.msra.mxu0 %v144_v34  ;;  %v80_v52 = vld [vmem:[%s20677_s1 + $0xd8] sm:$0xff]  ;;  %v67_v56 = vld [vmem:[%s20677_s1 + $0x70] sm:$0xff]  ;;  %v66_v58 = vld [vmem:[%s20677_s1 + $0x68] sm:$0xff]  ;;  %v1400_v32 = vunpack.c.l.s4 %v10238_v31 }
  0x14   :  { %1528 = vmatpush1.msra.mxu1 %v560_v35  ;;  %1458 = vmatprep.subr.mxu0 %v132_v36  ;;  %v496_v53 = vld [vmem:[%s20677_s1 + $0xdd8] sm:$0xff]  ;;  %v483_v57 = vld [vmem:[%s20677_s1 + $0xd70] sm:$0xff]  ;;  %v482_v59 = vld [vmem:[%s20677_s1 + $0xd68] sm:$0xff] }
  0x15   :  { %1529 = vmatprep.subr.mxu1 %v548_v37  ;;  %1459 = vmatpush1.msra.mxu0 %v131_v38  ;;  %v54_v60 = vld [vmem:[%s20677_s1 + $0x8] sm:$0xff]  ;;  %v53_v62 = vld [vmem:[%s20677_s1] sm:$0xff]  ;;  %v456_v2 = vld [vmem:[%s20677_s1 + $0xc98] sm:$0xff] }
  0x16   :  { %1530 = vmatpush1.msra.mxu1 %v547_v39  ;;  %1460 = vmatprep.subr.mxu0 %v119_v40  ;;  %v470_v61 = vld [vmem:[%s20677_s1 + $0xd08] sm:$0xff]  ;;  %v469_v63 = vld [vmem:[%s20677_s1 + $0xd00] sm:$0xff]  ;;  %v872_v3 = vld [vmem:[%s20677_s1 + $0x1998] sm:$0xff] }
  0x17   :  { %1531 = vmatprep.subr.mxu1 %v535_v41  ;;  %1461 = vmatpush1.msra.mxu0 %v118_v42  ;;  %v457_v0 = vld [vmem:[%s20677_s1 + $0xca0] sm:$0xff]  ;;  %v444_v4 = vld [vmem:[%s20677_s1 + $0xc38] sm:$0xff]  ;;  %v443_v6 = vld [vmem:[%s20677_s1 + $0xc30] sm:$0xff]  ;;  %v10628_v41 = vshrl.u32 %v1331_v30, 7  ;;  %v1401_v42 = vunpack.c.0.s8 %v1400_v32 }
  0x18   :  { %1532 = vmatpush1.msra.mxu1 %v534_v43  ;;  %1462 = vmatprep.subr.mxu0 %v106_v44  ;;  %v873_v1 = vld [vmem:[%s20677_s1 + $0x19a0] sm:$0xff]  ;;  %v860_v5 = vld [vmem:[%s20677_s1 + $0x1938] sm:$0xff]  ;;  %v859_v7 = vld [vmem:[%s20677_s1 + $0x1930] sm:$0xff] }
  0x19   :  { %1533 = vmatprep.subr.mxu1 %v522_v45  ;;  %1463 = vmatpush1.msra.mxu0 %v105_v46  ;;  %v431_v8 = vld [vmem:[%s20677_s1 + $0xbd0] sm:$0xff]  ;;  %v430_v10 = vld [vmem:[%s20677_s1 + $0xbc8] sm:$0xff]  ;;  %v417_v14 = vld [vmem:[%s20677_s1 + $0xb60] sm:$0xff] }
  0x1a   :  { %1534 = vmatpush1.msra.mxu1 %v521_v47  ;;  %1464 = vmatprep.subr.mxu0 %v93_v48  ;;  %v847_v9 = vld [vmem:[%s20677_s1 + $0x18d0] sm:$0xff]  ;;  %v846_v11 = vld [vmem:[%s20677_s1 + $0x18c8] sm:$0xff]  ;;  %v833_v15 = vld [vmem:[%s20677_s1 + $0x1860] sm:$0xff] }
  0x1b   :  { %1535 = vmatprep.subr.mxu1 %v509_v49  ;;  %1465 = vmatpush1.msra.mxu0 %v92_v50  ;;  %v418_v12 = vld [vmem:[%s20677_s1 + $0xb68] sm:$0xff]  ;;  %v405_v16 = vld [vmem:[%s20677_s1 + $0xb00] sm:$0xff]  ;;  %v404_v18 = vld [vmem:[%s20677_s1 + $0xaf8] sm:$0xff] }
  0x1c   :  { %1536 = vmatpush1.msra.mxu1 %v508_v51  ;;  %1466 = vmatprep.subr.mxu0 %v80_v52  ;;  %v834_v13 = vld [vmem:[%s20677_s1 + $0x1868] sm:$0xff]  ;;  %v821_v17 = vld [vmem:[%s20677_s1 + $0x1800] sm:$0xff]  ;;  %v820_v19 = vld [vmem:[%s20677_s1 + $0x17f8] sm:$0xff]  ;;  %v10658_v52 = vsub.s32 %v1401_v42, %v10628_v41 }
  0x1d   :  { %1537 = vmatprep.subr.mxu1 %v496_v53  ;;  %1467 = vmatpush1.msra.mxu0 %v79_v54  ;;  %v392_v20 = vld [vmem:[%s20677_s1 + $0xa98] sm:$0xff]  ;;  %v391_v22 = vld [vmem:[%s20677_s1 + $0xa90] sm:$0xff]  ;;  %v378_v26 = vld [vmem:[%s20677_s1 + $0xa28] sm:$0xff] }
  0x1e   :  { %1538 = vmatpush1.msra.mxu1 %v495_v55  ;;  %1468 = vmatprep.subr.mxu0 %v67_v56  ;;  %v808_v21 = vld [vmem:[%s20677_s1 + $0x1798] sm:$0xff]  ;;  %v807_v23 = vld [vmem:[%s20677_s1 + $0x1790] sm:$0xff]  ;;  %v794_v27 = vld [vmem:[%s20677_s1 + $0x1728] sm:$0xff] }
  0x1f   :  { %1539 = vmatprep.subr.mxu1 %v483_v57  ;;  %1469 = vmatpush1.msra.mxu0 %v66_v58  ;;  %v379_v24 = vld [vmem:[%s20677_s1 + $0xa30] sm:$0xff]  ;;  %v366_v28 = vld [vmem:[%s20677_s1 + $0x9c8] sm:$0xff]  ;;  %v365_v33 = vld [vmem:[%s20677_s1 + $0x9c0] sm:$0xff] }
  0x20   :  { %1540 = vmatpush1.msra.mxu1 %v482_v59  ;;  %1470 = vmatprep.subr.mxu0 %v54_v60  ;;  %v795_v25 = vld [vmem:[%s20677_s1 + $0x1730] sm:$0xff]  ;;  %v782_v29 = vld [vmem:[%s20677_s1 + $0x16c8] sm:$0xff]  ;;  %v781_v34 = vld [vmem:[%s20677_s1 + $0x16c0] sm:$0xff] }
  0x21   :  { %1541 = vmatprep.subr.mxu1 %v470_v61  ;;  %1471 = vmatpush1.msra.mxu0 %v53_v62  ;;  %v353_v35 = vld [vmem:[%s20677_s1 + $0x960] sm:$0xff]  ;;  %v352_v37 = vld [vmem:[%s20677_s1 + $0x958] sm:$0xff]  ;;  %v339_v43 = vld [vmem:[%s20677_s1 + $0x8f0] sm:$0xff] }
  0x22   :  { %1542 = vmatpush1.msra.mxu1 %v469_v63  ;;  %1472 = vmatprep.subr.mxu0 %v457_v0  ;;  %v769_v36 = vld [vmem:[%s20677_s1 + $0x1660] sm:$0xff]  ;;  %v768_v38 = vld [vmem:[%s20677_s1 + $0x1658] sm:$0xff]  ;;  %v755_v44 = vld [vmem:[%s20677_s1 + $0x15f0] sm:$0xff] }
  0x23   :  { %1543 = vmatprep.subr.mxu1 %v873_v1  ;;  %1473 = vmatpush2.msra.mxu0 %v456_v2  ;;  %v340_v39 = vld [vmem:[%s20677_s1 + $0x8f8] sm:$0xff]  ;;  %v327_v45 = vld [vmem:[%s20677_s1 + $0x890] sm:$0xff]  ;;  %v326_v47 = vld [vmem:[%s20677_s1 + $0x888] sm:$0xff] }
  0x24   :  { %1544 = vmatpush2.msra.mxu1 %v872_v3  ;;  %1474 = vmatprep.subr.mxu0 %v444_v4  ;;  %v756_v40 = vld [vmem:[%s20677_s1 + $0x15f8] sm:$0xff]  ;;  %v743_v46 = vld [vmem:[%s20677_s1 + $0x1590] sm:$0xff]  ;;  %v742_v48 = vld [vmem:[%s20677_s1 + $0x1588] sm:$0xff] }
  0x25   :  { %1545 = vmatprep.subr.mxu1 %v860_v5  ;;  %1475 = vmatpush2.msra.mxu0 %v443_v6  ;;  %v51_v49 = vld [vmem:[%s20676_s0] sm:$0xff]  ;;  %v314_v50 = vld [vmem:[%s20677_s1 + $0x828] sm:$0xff]  ;;  %v300_v58 = vld [vmem:[%s20677_s1 + $0x7b8] sm:$0xff] }
  0x26   :  { %1546 = vmatpush2.msra.mxu1 %v859_v7  ;;  %1476 = vmatprep.subr.mxu0 %v431_v8  ;;  %v730_v51 = vld [vmem:[%s20677_s1 + $0x1528] sm:$0xff]  ;;  %v313_v53 = vld [vmem:[%s20677_s1 + $0x820] sm:$0xff]  ;;  %v1398_v57 = vcombine.high %v51_v49, %v51_v49  ;;  %v716_v59 = vld [vmem:[%s20677_s1 + $0x14b8] sm:$0xff]  ;;  %v10685_v62 = vrot.slane %v51_v49, %v10658_v52 }
  0x27   :  { %1547 = vmatprep.subr.mxu1 %v847_v9  ;;  %1477 = vmatpush2.msra.mxu0 %v430_v10  ;;  %v729_v54 = vld [vmem:[%s20677_s1 + $0x1520] sm:$0xff]  ;;  %v288_v60 = vld [vmem:[%s20677_s1 + $0x758] sm:$0xff]  ;;  %v287_v63 = vld [vmem:[%s20677_s1 + $0x750] sm:$0xff] }
  0x28   :  { %1548 = vmatpush2.msra.mxu1 %v846_v11  ;;  %1478 = vmatprep.subr.mxu0 %v418_v12  ;;  %v301_v55 = vld [vmem:[%s20677_s1 + $0x7c0] sm:$0xff]  ;;  %v704_v61 = vld [vmem:[%s20677_s1 + $0x1458] sm:$0xff]  ;;  %v703_v0 = vld [vmem:[%s20677_s1 + $0x1450] sm:$0xff]  ;;  %v10700_v3 = vrot.slane %v1398_v57, %v10658_v52  ;;  %v10716_v8 = vcombine.high %v10685_v62, %v10685_v62 }
  0x29   :  { %1549 = vmatprep.subr.mxu1 %v834_v13  ;;  %1479 = vmatpush2.msra.mxu0 %v417_v14  ;;  %v717_v56 = vld [vmem:[%s20677_s1 + $0x14c0] sm:$0xff]  ;;  %v275_v1 = vld [vmem:[%s20677_s1 + $0x6f0] sm:$0xff]  ;;  %v274_v4 = vld [vmem:[%s20677_s1 + $0x6e8] sm:$0xff] }
  0x2a   :  { %1550 = vmatpush2.msra.mxu1 %v833_v15  ;;  %1480 = vmatprep.subr.mxu0 %v405_v16  ;;  %v691_v2 = vld [vmem:[%s20677_s1 + $0x13f0] sm:$0xff]  ;;  %v690_v5 = vld [vmem:[%s20677_s1 + $0x13e8] sm:$0xff]  ;;  %v261_v9 = vld [vmem:[%s20677_s1 + $0x680] sm:$0xff]  ;;  %v10726_v11 = vcombine.high %v10700_v3, %v10700_v3 }
  0x2b   :  { %1551 = vmatprep.subr.mxu1 %v821_v17  ;;  %1481 = vmatpush2.msra.mxu0 %v404_v18  ;;  %v262_v6 = vld [vmem:[%s20677_s1 + $0x688] sm:$0xff]  ;;  %v677_v10 = vld [vmem:[%s20677_s1 + $0x1380] sm:$0xff]  ;;  %v251_v13 = vld [vmem:[%s20677_s1 + $0x630] sm:$0xff] }
  0x2c   :  { %1552 = vmatpush2.msra.mxu1 %v820_v19  ;;  %1482 = vmatprep.subr.mxu0 %v392_v20  ;;  %v678_v7 = vld [vmem:[%s20677_s1 + $0x1388] sm:$0xff]  ;;  %v1081_v12 = vld [vmem:[%s20677_s1 + $0x2020] sm:$0xff]  ;;  %v1080_v14 = vld [vmem:[%s20677_s1 + $0x2018] sm:$0xff] }
  0x2d   :  { %1553 = vmatprep.subr.mxu1 %v808_v21  ;;  %1483 = vmatpush2.msra.mxu0 %v391_v22  ;;  %v250_v15 = vld [vmem:[%s20677_s1 + $0x628] sm:$0xff]  ;;  %v1068_v16 = vld [vmem:[%s20677_s1 + $0x1fb8] sm:$0xff]  ;;  %v1067_v18 = vld [vmem:[%s20677_s1 + $0x1fb0] sm:$0xff] }
  0x2e   :  { %1554 = vmatpush2.msra.mxu1 %v807_v23  ;;  %1484 = vmatprep.subr.mxu0 %v379_v24  ;;  %v238_v17 = vld [vmem:[%s20677_s1 + $0x5c8] sm:$0xff]  ;;  %v237_v19 = vld [vmem:[%s20677_s1 + $0x5c0] sm:$0xff]  ;;  %v1055_v20 = vld [vmem:[%s20677_s1 + $0x1f50] sm:$0xff] }
  0x2f   :  { %1555 = vmatprep.subr.mxu1 %v795_v25  ;;  %1485 = vmatpush2.msra.mxu0 %v378_v26  ;;  %v225_v21 = vld [vmem:[%s20677_s1 + $0x560] sm:$0xff]  ;;  %v1054_v22 = vld [vmem:[%s20677_s1 + $0x1f48] sm:$0xff]  ;;  %v224_v23 = vld [vmem:[%s20677_s1 + $0x558] sm:$0xff] }
  0x30   :  { %1556 = vmatpush2.msra.mxu1 %v794_v27  ;;  %1486 = vmatprep.subr.mxu0 %v366_v28  ;;  %v1042_v24 = vld [vmem:[%s20677_s1 + $0x1ee8] sm:$0xff]  ;;  %v212_v25 = vld [vmem:[%s20677_s1 + $0x4f8] sm:$0xff]  ;;  %v1041_v26 = vld [vmem:[%s20677_s1 + $0x1ee0] sm:$0xff] }
  0x31   :  { %1557 = vmatprep.subr.mxu1 %v782_v29  ;;  %1487 = vmatpush2.msra.mxu0 %v365_v33  ;;  %v211_v27 = vld [vmem:[%s20677_s1 + $0x4f0] sm:$0xff]  ;;  %v1029_v28 = vld [vmem:[%s20677_s1 + $0x1e80] sm:$0xff]  ;;  %v1028_v30 = vld [vmem:[%s20677_s1 + $0x1e78] sm:$0xff] }
  0x32   :  { %1558 = vmatpush2.msra.mxu1 %v781_v34  ;;  %1488 = vmatprep.subr.mxu0 %v353_v35  ;;  %v199_v29 = vld [vmem:[%s20677_s1 + $0x490] sm:$0xff]  ;;  %v198_v31 = vld [vmem:[%s20677_s1 + $0x488] sm:$0xff]  ;;  %v1016_v32 = vld [vmem:[%s20677_s1 + $0x1e18] sm:$0xff] }
  0x33   :  { %1559 = vmatprep.subr.mxu1 %v769_v36  ;;  %1489 = vmatpush2.msra.mxu0 %v352_v37  ;;  %v186_v33 = vld [vmem:[%s20677_s1 + $0x428] sm:$0xff]  ;;  %v1015_v34 = vld [vmem:[%s20677_s1 + $0x1e10] sm:$0xff]  ;;  %v185_v35 = vld [vmem:[%s20677_s1 + $0x420] sm:$0xff] }
  0x34   :  { %1560 = vmatpush2.msra.mxu1 %v768_v38  ;;  %1490 = vmatprep.subr.mxu0 %v340_v39  ;;  %v1003_v36 = vld [vmem:[%s20677_s1 + $0x1db0] sm:$0xff]  ;;  %v173_v37 = vld [vmem:[%s20677_s1 + $0x3c0] sm:$0xff]  ;;  %v1002_v38 = vld [vmem:[%s20677_s1 + $0x1da8] sm:$0xff] }
  0x35   :  { %1561 = vmatprep.subr.mxu1 %v756_v40  ;;  %1491 = vmatpush2.msra.mxu0 %v339_v43  ;;  %v172_v39 = vld [vmem:[%s20677_s1 + $0x3b8] sm:$0xff]  ;;  %v990_v40 = vld [vmem:[%s20677_s1 + $0x1d48] sm:$0xff]  ;;  %v989_v43 = vld [vmem:[%s20677_s1 + $0x1d40] sm:$0xff] }
  0x36   :  { %1562 = vmatpush2.msra.mxu1 %v755_v44  ;;  %1492 = vmatprep.subr.mxu0 %v327_v45  ;;  %v160_v42 = vld [vmem:[%s20677_s1 + $0x358] sm:$0xff]  ;;  %v159_v44 = vld [vmem:[%s20677_s1 + $0x350] sm:$0xff]  ;;  %v977_v45 = vld [vmem:[%s20677_s1 + $0x1ce0] sm:$0xff] }
  0x37   :  { %1563 = vmatprep.subr.mxu1 %v743_v46  ;;  %1493 = vmatpush2.msra.mxu0 %v326_v47  ;;  %v147_v46 = vld [vmem:[%s20677_s1 + $0x2f0] sm:$0xff]  ;;  %v976_v47 = vld [vmem:[%s20677_s1 + $0x1cd8] sm:$0xff] }
  0x38   :  { %1564 = vmatpush2.msra.mxu1 %v742_v48  ;;  %1494 = vmatprep.subr.mxu0 %v314_v50  ;;  %v146_v48 = vld [vmem:[%s20677_s1 + $0x2e8] sm:$0xff]  ;;  %v964_v49 = vld [vmem:[%s20677_s1 + $0x1c78] sm:$0xff] }
  0x39   :  { %1565 = vmatprep.subr.mxu1 %v730_v51  ;;  %1495 = vmatpush2.msra.mxu0 %v313_v53  ;;  %v134_v50 = vld [vmem:[%s20677_s1 + $0x288] sm:$0xff]  ;;  %v963_v51 = vld [vmem:[%s20677_s1 + $0x1c70] sm:$0xff]  ;;  %v133_v53 = vld [vmem:[%s20677_s1 + $0x280] sm:$0xff] }
  0x3a   :  { %1566 = vmatpush2.msra.mxu1 %v729_v54  ;;  %1496 = vmatprep.subr.mxu0 %v301_v55  ;;  %v951_v54 = vld [vmem:[%s20677_s1 + $0x1c10] sm:$0xff]  ;;  %v121_v55 = vld [vmem:[%s20677_s1 + $0x220] sm:$0xff]  ;;  %v120_v57 = vld [vmem:[%s20677_s1 + $0x218] sm:$0xff] }
  0x3b   :  { %1567 = vmatprep.subr.mxu1 %v717_v56  ;;  %1497 = vmatpush2.msra.mxu0 %v300_v58  ;;  %v950_v56 = vld [vmem:[%s20677_s1 + $0x1c08] sm:$0xff] }
  0x3c   :  { %1568 = vmatpush2.msra.mxu1 %v716_v59  ;;  %1498 = vmatprep.subr.mxu0 %v288_v60  ;;  %v938_v58 = vld [vmem:[%s20677_s1 + $0x1ba8] sm:$0xff]  ;;  %v108_v59 = vld [vmem:[%s20677_s1 + $0x1b8] sm:$0xff]  ;;  %v937_v60 = vld [vmem:[%s20677_s1 + $0x1ba0] sm:$0xff] }
  0x3d   :  { %1569 = vmatprep.subr.mxu1 %v704_v61  ;;  %1499 = vmatpush2.msra.mxu0 %v287_v63  ;;  %v107_v61 = vld [vmem:[%s20677_s1 + $0x1b0] sm:$0xff]  ;;  %v925_v63 = vld [vmem:[%s20677_s1 + $0x1b40] sm:$0xff] }
  0x3e   :  { %1570 = vmatpush2.msra.mxu1 %v703_v0  ;;  %1500 = vmatprep.subr.mxu0 %v275_v1  ;;  %v95_v0 = vld [vmem:[%s20677_s1 + $0x150] sm:$0xff]  ;;  %v924_v1 = vld [vmem:[%s20677_s1 + $0x1b38] sm:$0xff] }
  0x3f   :  { %1571 = vmatprep.subr.mxu1 %v691_v2  ;;  %1501 = vmatpush2.msra.mxu0 %v274_v4  ;;  %v94_v2 = vld [vmem:[%s20677_s1 + $0x148] sm:$0xff]  ;;  %v912_v4 = vld [vmem:[%s20677_s1 + $0x1ad8] sm:$0xff] }
  0x40   :  { %1572 = vmatpush2.msra.mxu1 %v690_v5  ;;  %1502 = vmatprep.subr.mxu0 %v262_v6  ;;  %v82_v5 = vld [vmem:[%s20677_s1 + $0xe8] sm:$0xff]  ;;  %v911_v6 = vld [vmem:[%s20677_s1 + $0x1ad0] sm:$0xff] }
  0x41   :  { %1573 = vmatprep.subr.mxu1 %v678_v7  ;;  %1503 = vmatpush2.msra.mxu0 %v261_v9  ;;  %v81_v7 = vld [vmem:[%s20677_s1 + $0xe0] sm:$0xff]  ;;  %v899_v9 = vld [vmem:[%s20677_s1 + $0x1a70] sm:$0xff] }
  0x42   :  { %1504 = vmatprep.mubr.f32.mxu0 %v10716_v8  ;;  %1574 = vmatpush2.msra.mxu1 %v677_v10  ;;  %v69_v10 = vld [vmem:[%s20677_s1 + $0x80] sm:$0xff] }
  0x43   :  { %1505 = vmatmul.mubr.f32.vlgmr.msra.gmra.mxu0 %v10685_v62  ;;  %1575 = vmatprep.mubr.f32.mxu1 %v10726_v11 }
  0x44   :  { %1582 = vmatprep.subr.mxu0 %v1081_v12  ;;  %1724 = vmatprep.subr.mxu1 %v251_v13  ;;  %v898_v12 = vld [vmem:[%s20677_s1 + $0x1a68] sm:$0xff]  ;;  %v68_v13 = vld [vmem:[%s20677_s1 + $0x78] sm:$0xff] }
  0x45   :  { %1576 = vmatmul.mubr.f32.vlgmr.msra.gmra.mxu1 %v10700_v3  ;;  %1583 = vmatpush1.msra.mxu0 %v1080_v14  ;;  %v886_v14 = vld [vmem:[%s20677_s1 + $0x1a08] sm:$0xff] }
  0x46   :  { %1725 = vmatpush1.msra.mxu1 %v250_v15  ;;  %1584 = vmatprep.subr.mxu0 %v1068_v16  ;;  %v56_v15 = vld [vmem:[%s20677_s1 + $0x18] sm:$0xff]  ;;  %v885_v16 = vld [vmem:[%s20677_s1 + $0x1a00] sm:$0xff] }
  0x47   :  { %1726 = vmatprep.subr.mxu1 %v238_v17  ;;  %1585 = vmatpush1.msra.mxu0 %v1067_v18  ;;  %v55_v17 = vld [vmem:[%s20677_s1 + $0x10] sm:$0xff]  ;;  %v1289_v18 = vld [vmem:[%s20677_s1 + $0x26a0] sm:$0xff] }
  0x48   :  { %1727 = vmatpush1.msra.mxu1 %v237_v19  ;;  %1586 = vmatprep.subr.mxu0 %v1055_v20  ;;  %v459_v19 = vld [vmem:[%s20677_s1 + $0xcb0] sm:$0xff]  ;;  %v1288_v20 = vld [vmem:[%s20677_s1 + $0x2698] sm:$0xff] }
  0x49   :  { %1728 = vmatprep.subr.mxu1 %v225_v21  ;;  %1587 = vmatpush1.msra.mxu0 %v1054_v22  ;;  %v458_v21 = vld [vmem:[%s20677_s1 + $0xca8] sm:$0xff]  ;;  %v1276_v22 = vld [vmem:[%s20677_s1 + $0x2638] sm:$0xff] }
  0x4a   :  { %1729 = vmatpush1.msra.mxu1 %v224_v23  ;;  %1588 = vmatprep.subr.mxu0 %v1042_v24  ;;  %v446_v23 = vld [vmem:[%s20677_s1 + $0xc48] sm:$0xff]  ;;  %v1275_v24 = vld [vmem:[%s20677_s1 + $0x2630] sm:$0xff] }
  0x4b   :  { %1730 = vmatprep.subr.mxu1 %v212_v25  ;;  %1589 = vmatpush1.msra.mxu0 %v1041_v26  ;;  %v445_v25 = vld [vmem:[%s20677_s1 + $0xc40] sm:$0xff]  ;;  %v1263_v26 = vld [vmem:[%s20677_s1 + $0x25d0] sm:$0xff] }
  0x4c   :  { %1731 = vmatpush1.msra.mxu1 %v211_v27  ;;  %1590 = vmatprep.subr.mxu0 %v1029_v28  ;;  %v433_v27 = vld [vmem:[%s20677_s1 + $0xbe0] sm:$0xff]  ;;  %v1262_v28 = vld [vmem:[%s20677_s1 + $0x25c8] sm:$0xff] }
  0x4d   :  { %1732 = vmatprep.subr.mxu1 %v199_v29  ;;  %1591 = vmatpush1.msra.mxu0 %v1028_v30  ;;  %v432_v29 = vld [vmem:[%s20677_s1 + $0xbd8] sm:$0xff]  ;;  %v1250_v30 = vld [vmem:[%s20677_s1 + $0x2568] sm:$0xff] }
  0x4e   :  { %1733 = vmatpush1.msra.mxu1 %v198_v31  ;;  %1592 = vmatprep.subr.mxu0 %v1016_v32  ;;  %v420_v31 = vld [vmem:[%s20677_s1 + $0xb78] sm:$0xff]  ;;  %v1249_v32 = vld [vmem:[%s20677_s1 + $0x2560] sm:$0xff] }
  0x4f   :  { %1734 = vmatprep.subr.mxu1 %v186_v33  ;;  %1593 = vmatpush1.msra.mxu0 %v1015_v34  ;;  %v419_v33 = vld [vmem:[%s20677_s1 + $0xb70] sm:$0xff]  ;;  %v1237_v34 = vld [vmem:[%s20677_s1 + $0x2500] sm:$0xff] }
  0x50   :  { %1735 = vmatpush1.msra.mxu1 %v185_v35  ;;  %1594 = vmatprep.subr.mxu0 %v1003_v36  ;;  %v407_v35 = vld [vmem:[%s20677_s1 + $0xb10] sm:$0xff]  ;;  %v1236_v36 = vld [vmem:[%s20677_s1 + $0x24f8] sm:$0xff] }
  0x51   :  { %1736 = vmatprep.subr.mxu1 %v173_v37  ;;  %1595 = vmatpush1.msra.mxu0 %v1002_v38  ;;  %v406_v37 = vld [vmem:[%s20677_s1 + $0xb08] sm:$0xff]  ;;  %v1224_v38 = vld [vmem:[%s20677_s1 + $0x2498] sm:$0xff] }
  0x52   :  { %1737 = vmatpush1.msra.mxu1 %v172_v39  ;;  %1596 = vmatprep.subr.mxu0 %v990_v40  ;;  %v394_v39 = vld [vmem:[%s20677_s1 + $0xaa8] sm:$0xff]  ;;  %v1223_v40 = vld [vmem:[%s20677_s1 + $0x2490] sm:$0xff] }
  0x53   :  { %1738 = vmatprep.subr.mxu1 %v160_v42  ;;  %1597 = vmatpush1.msra.mxu0 %v989_v43  ;;  %v393_v42 = vld [vmem:[%s20677_s1 + $0xaa0] sm:$0xff]  ;;  %v1211_v43 = vld [vmem:[%s20677_s1 + $0x2430] sm:$0xff] }
  0x54   :  { %1739 = vmatpush1.msra.mxu1 %v159_v44  ;;  %1598 = vmatprep.subr.mxu0 %v977_v45  ;;  %v381_v44 = vld [vmem:[%s20677_s1 + $0xa40] sm:$0xff]  ;;  %v1210_v45 = vld [vmem:[%s20677_s1 + $0x2428] sm:$0xff] }
  0x55   :  { %1740 = vmatprep.subr.mxu1 %v147_v46  ;;  %1599 = vmatpush1.msra.mxu0 %v976_v47  ;;  %v380_v46 = vld [vmem:[%s20677_s1 + $0xa38] sm:$0xff]  ;;  %v1198_v47 = vld [vmem:[%s20677_s1 + $0x23c8] sm:$0xff] }
  0x56   :  { %1741 = vmatpush1.msra.mxu1 %v146_v48  ;;  %1600 = vmatprep.subr.mxu0 %v964_v49  ;;  %v368_v48 = vld [vmem:[%s20677_s1 + $0x9d8] sm:$0xff]  ;;  %v1197_v49 = vld [vmem:[%s20677_s1 + $0x23c0] sm:$0xff] }
  0x57   :  { %1742 = vmatprep.subr.mxu1 %v134_v50  ;;  %1601 = vmatpush1.msra.mxu0 %v963_v51  ;;  %v367_v50 = vld [vmem:[%s20677_s1 + $0x9d0] sm:$0xff]  ;;  %v1185_v51 = vld [vmem:[%s20677_s1 + $0x2360] sm:$0xff] }
  0x58   :  { %1743 = vmatpush1.msra.mxu1 %v133_v53  ;;  %1602 = vmatprep.subr.mxu0 %v951_v54  ;;  %v355_v53 = vld [vmem:[%s20677_s1 + $0x970] sm:$0xff]  ;;  %v1184_v54 = vld [vmem:[%s20677_s1 + $0x2358] sm:$0xff] }
  0x59   :  { %1744 = vmatprep.subr.mxu1 %v121_v55  ;;  %1603 = vmatpush1.msra.mxu0 %v950_v56  ;;  %v354_v55 = vld [vmem:[%s20677_s1 + $0x968] sm:$0xff]  ;;  %v1172_v56 = vld [vmem:[%s20677_s1 + $0x22f8] sm:$0xff] }
  0x5a   :  { %1745 = vmatpush1.msra.mxu1 %v120_v57  ;;  %1604 = vmatprep.subr.mxu0 %v938_v58  ;;  %v342_v57 = vld [vmem:[%s20677_s1 + $0x908] sm:$0xff]  ;;  %v1171_v58 = vld [vmem:[%s20677_s1 + $0x22f0] sm:$0xff] }
  0x5b   :  { %1746 = vmatprep.subr.mxu1 %v108_v59  ;;  %1605 = vmatpush1.msra.mxu0 %v937_v60  ;;  %v341_v59 = vld [vmem:[%s20677_s1 + $0x900] sm:$0xff]  ;;  %v1159_v60 = vld [vmem:[%s20677_s1 + $0x2290] sm:$0xff] }
  0x5c   :  { %1747 = vmatpush1.msra.mxu1 %v107_v61  ;;  %1606 = vmatprep.subr.mxu0 %v925_v63  ;;  %v329_v61 = vld [vmem:[%s20677_s1 + $0x8a0] sm:$0xff]  ;;  %v1158_v63 = vld [vmem:[%s20677_s1 + $0x2288] sm:$0xff] }
  0x5d   :  { %1748 = vmatprep.subr.mxu1 %v95_v0  ;;  %1607 = vmatpush1.msra.mxu0 %v924_v1  ;;  %v328_v0 = vld [vmem:[%s20677_s1 + $0x898] sm:$0xff]  ;;  %v1146_v1 = vld [vmem:[%s20677_s1 + $0x2228] sm:$0xff] }
  0x5e   :  { %1749 = vmatpush1.msra.mxu1 %v94_v2  ;;  %1608 = vmatprep.subr.mxu0 %v912_v4  ;;  %v316_v2 = vld [vmem:[%s20677_s1 + $0x838] sm:$0xff]  ;;  %v1145_v4 = vld [vmem:[%s20677_s1 + $0x2220] sm:$0xff] }
  0x5f   :  { %1750 = vmatprep.subr.mxu1 %v82_v5  ;;  %1609 = vmatpush1.msra.mxu0 %v911_v6  ;;  %v315_v5 = vld [vmem:[%s20677_s1 + $0x830] sm:$0xff]  ;;  %v52_v6 = vld [vmem:[%s20676_s0 + $0x8] sm:$0x3f] }
  0x60   :  { %1751 = vmatpush1.msra.mxu1 %v81_v7  ;;  %1610 = vmatprep.subr.mxu0 %v899_v9  ;;  %v1133_v7 = vld [vmem:[%s20677_s1 + $0x21c0] sm:$0xff]  ;;  %v303_v9 = vld [vmem:[%s20677_s1 + $0x7d0] sm:$0xff] }
  0x61   :  { %1752 = vmatprep.subr.mxu1 %v69_v10  ;;  %1611 = vmatpush1.msra.mxu0 %v898_v12  ;;  %v1132_v10 = vld [vmem:[%s20677_s1 + $0x21b8] sm:$0xff]  ;;  %v302_v12 = vld [vmem:[%s20677_s1 + $0x7c8] sm:$0xff] }
  0x62   :  { %1753 = vmatpush1.msra.mxu1 %v68_v13  ;;  %1612 = vmatprep.subr.mxu0 %v886_v14  ;;  %v1120_v13 = vld [vmem:[%s20677_s1 + $0x2158] sm:$0xff]  ;;  %v290_v14 = vld [vmem:[%s20677_s1 + $0x768] sm:$0xff] }
  0x63   :  { %1754 = vmatprep.subr.mxu1 %v56_v15  ;;  %1613 = vmatpush1.msra.mxu0 %v885_v16  ;;  %v11090_v15 = vrot.slane %v52_v6, %v10658_v52  ;;  %v1119_v16 = vld [vmem:[%s20677_s1 + $0x2150] sm:$0xff] }
  0x64   :  { %1755 = vmatpush1.msra.mxu1 %v55_v17  ;;  %1614 = vmatprep.subr.mxu0 %v1289_v18  ;;  %v289_v17 = vld [vmem:[%s20677_s1 + $0x760] sm:$0xff]  ;;  %v1107_v18 = vld [vmem:[%s20677_s1 + $0x20f0] sm:$0xff] }
  0x65   :  { %1756 = vmatprep.subr.mxu1 %v459_v19  ;;  %1615 = vmatpush2.msra.mxu0 %v1288_v20  ;;  %v277_v19 = vld [vmem:[%s20677_s1 + $0x700] sm:$0xff]  ;;  %v1106_v20 = vld [vmem:[%s20677_s1 + $0x20e8] sm:$0xff] }
  0x66   :  { %1757 = vmatpush2.msra.mxu1 %v458_v21  ;;  %1616 = vmatprep.subr.mxu0 %v1276_v22  ;;  %v276_v21 = vld [vmem:[%s20677_s1 + $0x6f8] sm:$0xff]  ;;  %v1094_v22 = vld [vmem:[%s20677_s1 + $0x2088] sm:$0xff] }
  0x67   :  { %1758 = vmatprep.subr.mxu1 %v446_v23  ;;  %1617 = vmatpush2.msra.mxu0 %v1275_v24  ;;  %v264_v23 = vld [vmem:[%s20677_s1 + $0x698] sm:$0xff]  ;;  %v11118_v24 = vcombine.high %v11090_v15, %v11090_v15 }
  0x68   :  { %1759 = vmatpush2.msra.mxu1 %v445_v25  ;;  %1618 = vmatprep.subr.mxu0 %v1263_v26  ;;  %v1093_v25 = vld [vmem:[%s20677_s1 + $0x2080] sm:$0xff]  ;;  %v263_v26 = vld [vmem:[%s20677_s1 + $0x690] sm:$0xff] }
  0x69   :  { %1760 = vmatprep.subr.mxu1 %v433_v27  ;;  %1619 = vmatpush2.msra.mxu0 %v1262_v28  ;;  %v1315_v27 = vld [vmem:[%s20677_s1 + $0x2770] sm:$0xff]  ;;  %v1415_v28 = vcombine.high %v52_v6, %v52_v6  ;;  %v966_v6 = vld [vmem:[%s20677_s1 + $0x1c88] sm:$0xff] }
  0x6a   :  { %1761 = vmatpush2.msra.mxu1 %v432_v29  ;;  %1620 = vmatprep.subr.mxu0 %v1250_v30  ;;  %v1083_v29 = vld [vmem:[%s20677_s1 + $0x2030] sm:$0xff]  ;;  %v1314_v30 = vld [vmem:[%s20677_s1 + $0x2768] sm:$0xff] }
  0x6b   :  { %1762 = vmatprep.subr.mxu1 %v420_v31  ;;  %1621 = vmatpush2.msra.mxu0 %v1249_v32  ;;  %v1302_v31 = vld [vmem:[%s20677_s1 + $0x2708] sm:$0xff] }
  0x6c   :  { %1763 = vmatpush2.msra.mxu1 %v419_v33  ;;  %1622 = vmatprep.subr.mxu0 %v1237_v34  ;;  %v1082_v32 = vld [vmem:[%s20677_s1 + $0x2028] sm:$0xff]  ;;  %v1301_v33 = vld [vmem:[%s20677_s1 + $0x2700] sm:$0xff] }
  0x6d   :  { %1764 = vmatprep.subr.mxu1 %v407_v35  ;;  %1623 = vmatpush2.msra.mxu0 %v1236_v36  ;;  %v1070_v34 = vld [vmem:[%s20677_s1 + $0x1fc8] sm:$0xff]  ;;  %v11151_v35 = vrot.slane %v1415_v28, %v10658_v52  ;;  %v1069_v36 = vld [vmem:[%s20677_s1 + $0x1fc0] sm:$0xff]  ;;  %v20694_v52 = vmov 0.0  }
  0x6e   :  { %1765 = vmatpush2.msra.mxu1 %v406_v37  ;;  %1624 = vmatprep.subr.mxu0 %v1224_v38  ;;  %v667_v37 = vld [vmem:[%s20677_s1 + $0x1330] sm:$0xff]  ;;  %v1057_v38 = vld [vmem:[%s20677_s1 + $0x1f60] sm:$0xff] }
  0x6f   :  { %1766 = vmatprep.subr.mxu1 %v394_v39  ;;  %1625 = vmatpush2.msra.mxu0 %v1223_v40  ;;  %v666_v39 = vld [vmem:[%s20677_s1 + $0x1328] sm:$0xff]  ;;  %v1056_v40 = vld [vmem:[%s20677_s1 + $0x1f58] sm:$0xff]  ;;  %v913_v28 = vld [vmem:[%s20677_s1 + $0x1ae0] sm:$0xff] }
  0x70   :  { %1767 = vmatpush2.msra.mxu1 %v393_v42  ;;  %1626 = vmatprep.subr.mxu0 %v1211_v43  ;;  %v654_v42 = vld [vmem:[%s20677_s1 + $0x12c8] sm:$0xff]  ;;  %v1044_v43 = vld [vmem:[%s20677_s1 + $0x1ef8] sm:$0xff] }
  0x71   :  { %1768 = vmatprep.subr.mxu1 %v381_v44  ;;  %1627 = vmatpush2.msra.mxu0 %v1210_v45  ;;  %v653_v44 = vld [vmem:[%s20677_s1 + $0x12c0] sm:$0xff]  ;;  %v1043_v45 = vld [vmem:[%s20677_s1 + $0x1ef0] sm:$0xff] }
  0x72   :  { %1769 = vmatpush2.msra.mxu1 %v380_v46  ;;  %1628 = vmatprep.subr.mxu0 %v1198_v47  ;;  %v641_v46 = vld [vmem:[%s20677_s1 + $0x1260] sm:$0xff]  ;;  %v1031_v47 = vld [vmem:[%s20677_s1 + $0x1e90] sm:$0xff] }
  0x73   :  { %1770 = vmatprep.subr.mxu1 %v368_v48  ;;  %1629 = vmatpush2.msra.mxu0 %v1197_v49  ;;  %v640_v48 = vld [vmem:[%s20677_s1 + $0x1258] sm:$0xff]  ;;  %v1030_v49 = vld [vmem:[%s20677_s1 + $0x1e88] sm:$0xff] }
  0x74   :  { %1771 = vmatpush2.msra.mxu1 %v367_v50  ;;  %1630 = vmatprep.subr.mxu0 %v1185_v51  ;;  %v628_v50 = vld [vmem:[%s20677_s1 + $0x11f8] sm:$0xff]  ;;  %v1018_v51 = vld [vmem:[%s20677_s1 + $0x1e28] sm:$0xff] }
  0x75   :  { %1772 = vmatprep.subr.mxu1 %v355_v53  ;;  %1631 = vmatpush2.msra.mxu0 %v1184_v54  ;;  %v627_v53 = vld [vmem:[%s20677_s1 + $0x11f0] sm:$0xff]  ;;  %v1017_v54 = vld [vmem:[%s20677_s1 + $0x1e20] sm:$0xff] }
  0x76   :  { %1773 = vmatpush2.msra.mxu1 %v354_v55  ;;  %1632 = vmatprep.subr.mxu0 %v1172_v56  ;;  %v615_v55 = vld [vmem:[%s20677_s1 + $0x1190] sm:$0xff]  ;;  %v1005_v56 = vld [vmem:[%s20677_s1 + $0x1dc0] sm:$0xff] }
  0x77   :  { %1774 = vmatprep.subr.mxu1 %v342_v57  ;;  %1633 = vmatpush2.msra.mxu0 %v1171_v58  ;;  %v614_v57 = vld [vmem:[%s20677_s1 + $0x1188] sm:$0xff]  ;;  %v1004_v58 = vld [vmem:[%s20677_s1 + $0x1db8] sm:$0xff] }
  0x78   :  { %1775 = vmatpush2.msra.mxu1 %v341_v59  ;;  %1634 = vmatprep.subr.mxu0 %v1159_v60  ;;  %v602_v59 = vld [vmem:[%s20677_s1 + $0x1128] sm:$0xff]  ;;  %v992_v60 = vld [vmem:[%s20677_s1 + $0x1d58] sm:$0xff] }
  0x79   :  { %1776 = vmatprep.subr.mxu1 %v329_v61  ;;  %1635 = vmatpush2.msra.mxu0 %v1158_v63  ;;  %v601_v61 = vld [vmem:[%s20677_s1 + $0x1120] sm:$0xff]  ;;  %v991_v63 = vld [vmem:[%s20677_s1 + $0x1d50] sm:$0xff] }
  0x7a   :  { %1777 = vmatpush2.msra.mxu1 %v328_v0  ;;  %1636 = vmatprep.subr.mxu0 %v1146_v1  ;;  %v589_v0 = vld [vmem:[%s20677_s1 + $0x10c0] sm:$0xff]  ;;  %v979_v1 = vld [vmem:[%s20677_s1 + $0x1cf0] sm:$0xff] }
  0x7b   :  { %1778 = vmatprep.subr.mxu1 %v316_v2  ;;  %1637 = vmatpush2.msra.mxu0 %v1145_v4  ;;  %v588_v2 = vld [vmem:[%s20677_s1 + $0x10b8] sm:$0xff]  ;;  %v978_v4 = vld [vmem:[%s20677_s1 + $0x1ce8] sm:$0xff] }
  0x7c   :  { %1779 = vmatpush2.msra.mxu1 %v315_v5  ;;  %1638 = vmatprep.subr.mxu0 %v1133_v7  ;;  %v576_v5 = vld [vmem:[%s20677_s1 + $0x1058] sm:$0xff]  ;;  %v575_v7 = vld [vmem:[%s20677_s1 + $0x1050] sm:$0xff] }
  0x7d   :  { %1780 = vmatprep.subr.mxu1 %v303_v9  ;;  %1639 = vmatpush2.msra.mxu0 %v1132_v10  ;;  %v965_v9 = vld [vmem:[%s20677_s1 + $0x1c80] sm:$0xff]  ;;  %v563_v10 = vld [vmem:[%s20677_s1 + $0xff0] sm:$0xff] }
  0x7e   :  { %1781 = vmatpush2.msra.mxu1 %v302_v12  ;;  %1640 = vmatprep.subr.mxu0 %v1120_v13  ;;  %v953_v12 = vld [vmem:[%s20677_s1 + $0x1c20] sm:$0xff]  ;;  %v562_v13 = vld [vmem:[%s20677_s1 + $0xfe8] sm:$0xff] }
  0x7f   :  { %1782 = vmatprep.subr.mxu1 %v290_v14  ;;  %1641 = vmatpush2.msra.mxu0 %v1119_v16  ;;  %v952_v14 = vld [vmem:[%s20677_s1 + $0x1c18] sm:$0xff]  ;;  %v550_v16 = vld [vmem:[%s20677_s1 + $0xf88] sm:$0xff] }
  0x80   :  { %1783 = vmatpush2.msra.mxu1 %v289_v17  ;;  %1642 = vmatprep.subr.mxu0 %v1107_v18  ;;  %v940_v17 = vld [vmem:[%s20677_s1 + $0x1bb8] sm:$0xff]  ;;  %v549_v18 = vld [vmem:[%s20677_s1 + $0xf80] sm:$0xff] }
  0x81   :  { %1784 = vmatprep.subr.mxu1 %v277_v19  ;;  %1643 = vmatpush2.msra.mxu0 %v1106_v20  ;;  %v939_v19 = vld [vmem:[%s20677_s1 + $0x1bb0] sm:$0xff]  ;;  %v537_v20 = vld [vmem:[%s20677_s1 + $0xf20] sm:$0xff] }
  0x82   :  { %1785 = vmatpush2.msra.mxu1 %v276_v21  ;;  %1644 = vmatprep.subr.mxu0 %v1094_v22  ;;  %v927_v21 = vld [vmem:[%s20677_s1 + $0x1b50] sm:$0xff]  ;;  %v536_v22 = vld [vmem:[%s20677_s1 + $0xf18] sm:$0xff] }
  0x83   :  { %1786 = vmatprep.subr.mxu1 %v264_v23  ;;  %1645 = vmatpush2.msra.mxu0 %v1093_v25  ;;  %v926_v23 = vld [vmem:[%s20677_s1 + $0x1b48] sm:$0xff]  ;;  %v524_v25 = vld [vmem:[%s20677_s1 + $0xeb8] sm:$0xff] }
  0x84   :  { %1646 = vmatprep.mubr.f32.mxu0 %v11118_v24  ;;  %1787 = vmatpush2.msra.mxu1 %v263_v26  ;;  %v914_v26 = vld [vmem:[%s20677_s1 + $0x1ae8] sm:$0xff] }
  0x85   :  { %1647 = vmatmul.mubr.f32.vlgmr.msra.gmra.mxu0 %v11090_v15  ;;  %1681 = vmatprep.subr.mxu0 %v1315_v27  ;;  %v523_v27 = vld [vmem:[%s20677_s1 + $0xeb0] sm:$0xff] }
  0x86   :  { %1788 = vmatprep.mubr.f32.mxu1 %v10716_v8  ;;  %1866 = vmatprep.subr.mxu1 %v1083_v29  ;;  %v511_v29 = vld [vmem:[%s20677_s1 + $0xe50] sm:$0xff] }
  0x87   :  { %1682 = vmatpush1.msra.mxu0 %v1314_v30  ;;  %1789 = vmatmul.mubr.f32.vlgmr.msra.gmra.mxu1 %v10685_v62  ;;  %v901_v30 = vld [vmem:[%s20677_s1 + $0x1a80] sm:$0xff] }
  0x88   :  { %1683 = vmatprep.subr.mxu0 %v1302_v31  ;;  %1867 = vmatpush1.msra.mxu1 %v1082_v32  ;;  %v510_v31 = vld [vmem:[%s20677_s1 + $0xe48] sm:$0xff]  ;;  %v900_v32 = vld [vmem:[%s20677_s1 + $0x1a78] sm:$0xff] }
  0x89   :  { %1684 = vmatpush1.msra.mxu0 %v1301_v33  ;;  %1868 = vmatprep.subr.mxu1 %v1070_v34  ;;  %v498_v33 = vld [vmem:[%s20677_s1 + $0xde8] sm:$0xff]  ;;  %v888_v34 = vld [vmem:[%s20677_s1 + $0x1a18] sm:$0xff] }
  0x8a   :  { %1717 = vmatprep.mubr.f32.mxu0 %v20694_v52  ;;  %1869 = vmatpush1.msra.mxu1 %v1069_v36  ;;  %v497_v36 = vld [vmem:[%s20677_s1 + $0xde0] sm:$0xff] }
  0x8b   :  { %9368 = vmatmul.mubr.msk.f32.vlgmr.msra.gmra.mxu0 %vm1437_vm0, %v11151_v35  ;;  %1795 = vmatprep.subr.mxu0 %v667_v37  ;;  %v887_v37 = vld [vmem:[%s20677_s1 + $0x1a10] sm:$0xff] }
  0x8c   :  { %1870 = vmatprep.subr.mxu1 %v1057_v38  ;;  %1796 = vmatpush1.msra.mxu0 %v666_v39  ;;  %v485_v38 = vld [vmem:[%s20677_s1 + $0xd80] sm:$0xff]  ;;  %v1291_v39 = vld [vmem:[%s20677_s1 + $0x26b0] sm:$0xff] }
  0x8d   :  { %1871 = vmatpush1.msra.mxu1 %v1056_v40  ;;  %1797 = vmatprep.subr.mxu0 %v654_v42  ;;  %v484_v40 = vld [vmem:[%s20677_s1 + $0xd78] sm:$0xff]  ;;  %v1290_v42 = vld [vmem:[%s20677_s1 + $0x26a8] sm:$0xff] }
  0x8e   :  { %1872 = vmatprep.subr.mxu1 %v1044_v43  ;;  %1798 = vmatpush1.msra.mxu0 %v653_v44  ;;  %v472_v43 = vld [vmem:[%s20677_s1 + $0xd18] sm:$0xff]  ;;  %v1278_v44 = vld [vmem:[%s20677_s1 + $0x2648] sm:$0xff] }
  0x8f   :  { %1873 = vmatpush1.msra.mxu1 %v1043_v45  ;;  %1799 = vmatprep.subr.mxu0 %v641_v46  ;;  %v471_v45 = vld [vmem:[%s20677_s1 + $0xd10] sm:$0xff]  ;;  %v1277_v46 = vld [vmem:[%s20677_s1 + $0x2640] sm:$0xff] }
  0x90   :  { %1874 = vmatprep.subr.mxu1 %v1031_v47  ;;  %1800 = vmatpush1.msra.mxu0 %v640_v48  ;;  %v875_v47 = vld [vmem:[%s20677_s1 + $0x19b0] sm:$0xff]  ;;  %v1265_v48 = vld [vmem:[%s20677_s1 + $0x25e0] sm:$0xff] }
  0x91   :  { %1875 = vmatpush1.msra.mxu1 %v1030_v49  ;;  %1801 = vmatprep.subr.mxu0 %v628_v50  ;;  %v874_v49 = vld [vmem:[%s20677_s1 + $0x19a8] sm:$0xff]  ;;  %v1264_v50 = vld [vmem:[%s20677_s1 + $0x25d8] sm:$0xff] }
  0x92   :  { %1876 = vmatprep.subr.mxu1 %v1018_v51  ;;  %1802 = vmatpush1.msra.mxu0 %v627_v53  ;;  %v862_v51 = vld [vmem:[%s20677_s1 + $0x1948] sm:$0xff]  ;;  %v1252_v53 = vld [vmem:[%s20677_s1 + $0x2578] sm:$0xff] }
  0x93   :  { %1877 = vmatpush1.msra.mxu1 %v1017_v54  ;;  %1803 = vmatprep.subr.mxu0 %v615_v55  ;;  %v861_v54 = vld [vmem:[%s20677_s1 + $0x1940] sm:$0xff]  ;;  %v1251_v55 = vld [vmem:[%s20677_s1 + $0x2570] sm:$0xff] }
  0x94   :  { %1878 = vmatprep.subr.mxu1 %v1005_v56  ;;  %1804 = vmatpush1.msra.mxu0 %v614_v57  ;;  %v849_v56 = vld [vmem:[%s20677_s1 + $0x18e0] sm:$0xff]  ;;  %v1239_v57 = vld [vmem:[%s20677_s1 + $0x2510] sm:$0xff] }
  0x95   :  { %1879 = vmatpush1.msra.mxu1 %v1004_v58  ;;  %1805 = vmatprep.subr.mxu0 %v602_v59  ;;  %v848_v58 = vld [vmem:[%s20677_s1 + $0x18d8] sm:$0xff]  ;;  %v1238_v59 = vld [vmem:[%s20677_s1 + $0x2508] sm:$0xff] }
  0x96   :  { %1880 = vmatprep.subr.mxu1 %v992_v60  ;;  %1806 = vmatpush1.msra.mxu0 %v601_v61  ;;  %v836_v60 = vld [vmem:[%s20677_s1 + $0x1878] sm:$0xff]  ;;  %v1226_v61 = vld [vmem:[%s20677_s1 + $0x24a8] sm:$0xff] }
  0x97   :  { %1881 = vmatpush1.msra.mxu1 %v991_v63  ;;  %1807 = vmatprep.subr.mxu0 %v589_v0  ;;  %v835_v63 = vld [vmem:[%s20677_s1 + $0x1870] sm:$0xff]  ;;  %v1225_v0 = vld [vmem:[%s20677_s1 + $0x24a0] sm:$0xff] }
  0x98   :  { %1882 = vmatprep.subr.mxu1 %v979_v1  ;;  %1808 = vmatpush1.msra.mxu0 %v588_v2  ;;  %v823_v1 = vld [vmem:[%s20677_s1 + $0x1810] sm:$0xff]  ;;  %v1213_v2 = vld [vmem:[%s20677_s1 + $0x2440] sm:$0xff] }
  0x99   :  { %1883 = vmatpush1.msra.mxu1 %v978_v4  ;;  %1809 = vmatprep.subr.mxu0 %v576_v5  ;;  %v822_v4 = vld [vmem:[%s20677_s1 + $0x1808] sm:$0xff]  ;;  %v1212_v5 = vld [vmem:[%s20677_s1 + $0x2438] sm:$0xff] }
  0x9a   :  { %1884 = vmatprep.subr.mxu1 %v966_v6  ;;  %1810 = vmatpush1.msra.mxu0 %v575_v7  ;;  %v810_v6 = vld [vmem:[%s20677_s1 + $0x17a8] sm:$0xff]  ;;  %v1200_v7 = vld [vmem:[%s20677_s1 + $0x23d8] sm:$0xff] }
  0x9b   :  { %1885 = vmatpush1.msra.mxu1 %v965_v9  ;;  %1811 = vmatprep.subr.mxu0 %v563_v10  ;;  %v809_v9 = vld [vmem:[%s20677_s1 + $0x17a0] sm:$0xff]  ;;  %v1199_v10 = vld [vmem:[%s20677_s1 + $0x23d0] sm:$0xff] }
  0x9c   :  { %1886 = vmatprep.subr.mxu1 %v953_v12  ;;  %1812 = vmatpush1.msra.mxu0 %v562_v13  ;;  %v797_v12 = vld [vmem:[%s20677_s1 + $0x1740] sm:$0xff]  ;;  %v1187_v13 = vld [vmem:[%s20677_s1 + $0x2370] sm:$0xff] }
  0x9d   :  { %1887 = vmatpush1.msra.mxu1 %v952_v14  ;;  %1813 = vmatprep.subr.mxu0 %v550_v16  ;;  %v796_v14 = vld [vmem:[%s20677_s1 + $0x1738] sm:$0xff]  ;;  %v1186_v16 = vld [vmem:[%s20677_s1 + $0x2368] sm:$0xff] }
  0x9e   :  { %1888 = vmatprep.subr.mxu1 %v940_v17  ;;  %1814 = vmatpush1.msra.mxu0 %v549_v18  ;;  %v784_v17 = vld [vmem:[%s20677_s1 + $0x16d8] sm:$0xff]  ;;  %v1174_v18 = vld [vmem:[%s20677_s1 + $0x2308] sm:$0xff] }
  0x9f   :  { %1889 = vmatpush1.msra.mxu1 %v939_v19  ;;  %1815 = vmatprep.subr.mxu0 %v537_v20  ;;  %v783_v19 = vld [vmem:[%s20677_s1 + $0x16d0] sm:$0xff]  ;;  %v1173_v20 = vld [vmem:[%s20677_s1 + $0x2300] sm:$0xff] }
  0xa0   :  { %1890 = vmatprep.subr.mxu1 %v927_v21  ;;  %1816 = vmatpush1.msra.mxu0 %v536_v22  ;;  %v771_v21 = vld [vmem:[%s20677_s1 + $0x1670] sm:$0xff]  ;;  %v1161_v22 = vld [vmem:[%s20677_s1 + $0x22a0] sm:$0xff] }
  0xa1   :  { %1891 = vmatpush1.msra.mxu1 %v926_v23  ;;  %1817 = vmatprep.subr.mxu0 %v524_v25  ;;  %v770_v23 = vld [vmem:[%s20677_s1 + $0x1668] sm:$0xff]  ;;  %v1160_v25 = vld [vmem:[%s20677_s1 + $0x2298] sm:$0xff] }
  0xa2   :  { %1892 = vmatprep.subr.mxu1 %v914_v26  ;;  %1818 = vmatpush1.msra.mxu0 %v523_v27  ;;  %v758_v26 = vld [vmem:[%s20677_s1 + $0x1608] sm:$0xff]  ;;  %v1148_v27 = vld [vmem:[%s20677_s1 + $0x2238] sm:$0xff] }
  0xa3   :  { %1893 = vmatpush1.msra.mxu1 %v913_v28  ;;  %1819 = vmatprep.subr.mxu0 %v511_v29  ;;  %v757_v28 = vld [vmem:[%s20677_s1 + $0x1600] sm:$0xff]  ;;  %v1147_v29 = vld [vmem:[%s20677_s1 + $0x2230] sm:$0xff] }
  0xa4   :  { %1894 = vmatprep.subr.mxu1 %v901_v30  ;;  %1820 = vmatpush1.msra.mxu0 %v510_v31  ;;  %v745_v30 = vld [vmem:[%s20677_s1 + $0x15a0] sm:$0xff]  ;;  %v1135_v31 = vld [vmem:[%s20677_s1 + $0x21d0] sm:$0xff] }
  0xa5   :  { %1895 = vmatpush1.msra.mxu1 %v900_v32  ;;  %1821 = vmatprep.subr.mxu0 %v498_v33  ;;  %v744_v32 = vld [vmem:[%s20677_s1 + $0x1598] sm:$0xff]  ;;  %v1134_v33 = vld [vmem:[%s20677_s1 + $0x21c8] sm:$0xff] }
  0xa6   :  { %1896 = vmatprep.subr.mxu1 %v888_v34  ;;  %1822 = vmatpush1.msra.mxu0 %v497_v36  ;;  %v732_v34 = vld [vmem:[%s20677_s1 + $0x1538] sm:$0xff]  ;;  %v1122_v36 = vld [vmem:[%s20677_s1 + $0x2168] sm:$0xff] }
  0xa7   :  { %1897 = vmatpush1.msra.mxu1 %v887_v37  ;;  %1823 = vmatprep.subr.mxu0 %v485_v38  ;;  %v731_v37 = vld [vmem:[%s20677_s1 + $0x1530] sm:$0xff]  ;;  %v1121_v38 = vld [vmem:[%s20677_s1 + $0x2160] sm:$0xff] }
  0xa8   :  { %1898 = vmatprep.subr.mxu1 %v1291_v39  ;;  %1824 = vmatpush1.msra.mxu0 %v484_v40  ;;  %v719_v39 = vld [vmem:[%s20677_s1 + $0x14d0] sm:$0xff]  ;;  %v1109_v40 = vld [vmem:[%s20677_s1 + $0x2100] sm:$0xff] }
  0xa9   :  { %1899 = vmatpush2.msra.mxu1 %v1290_v42  ;;  %1825 = vmatprep.subr.mxu0 %v472_v43  ;;  %v718_v42 = vld [vmem:[%s20677_s1 + $0x14c8] sm:$0xff]  ;;  %v1108_v43 = vld [vmem:[%s20677_s1 + $0x20f8] sm:$0xff] }
  0xaa   :  { %1900 = vmatprep.subr.mxu1 %v1278_v44  ;;  %1826 = vmatpush1.msra.mxu0 %v471_v45  ;;  %v706_v44 = vld [vmem:[%s20677_s1 + $0x1468] sm:$0xff]  ;;  %v1096_v45 = vld [vmem:[%s20677_s1 + $0x2098] sm:$0xff] }
  0xab   :  { %1901 = vmatpush2.msra.mxu1 %v1277_v46  ;;  %1827 = vmatprep.subr.mxu0 %v875_v47  ;;  %v705_v46 = vld [vmem:[%s20677_s1 + $0x1460] sm:$0xff]  ;;  %v1095_v47 = vld [vmem:[%s20677_s1 + $0x2090] sm:$0xff] }
  0xac   :  { %1902 = vmatprep.subr.mxu1 %v1265_v48  ;;  %1828 = vmatpush2.msra.mxu0 %v874_v49  ;;  %v693_v48 = vld [vmem:[%s20677_s1 + $0x1400] sm:$0xff] }
  0xad   :  { %1903 = vmatpush2.msra.mxu1 %v1264_v50  ;;  %1829 = vmatprep.subr.mxu0 %v862_v51  ;;  %v669_v49 = vld [vmem:[%s20677_s1 + $0x1340] sm:$0xff]  ;;  %v692_v50 = vld [vmem:[%s20677_s1 + $0x13f8] sm:$0xff] }
  0xae   :  { %1904 = vmatprep.subr.mxu1 %v1252_v53  ;;  %1830 = vmatpush2.msra.mxu0 %v861_v54  ;;  %v680_v51 = vld [vmem:[%s20677_s1 + $0x1398] sm:$0xff]  ;;  %v679_v54 = vld [vmem:[%s20677_s1 + $0x1390] sm:$0xff] }
  0xaf   :  { %1905 = vmatpush2.msra.mxu1 %v1251_v55  ;;  %1831 = vmatprep.subr.mxu0 %v849_v56  ;;  %v668_v53 = vld [vmem:[%s20677_s1 + $0x1338] sm:$0xff]  ;;  %v655_v56 = vld [vmem:[%s20677_s1 + $0x12d0] sm:$0xff] }
  0xb0   :  { %1906 = vmatprep.subr.mxu1 %v1239_v57  ;;  %1832 = vmatpush2.msra.mxu0 %v848_v58  ;;  %v656_v55 = vld [vmem:[%s20677_s1 + $0x12d8] sm:$0xff]  ;;  %v1317_v57 = vld [vmem:[%s20677_s1 + $0x2780] sm:$0xff]  ;;  %v643_v58 = vld [vmem:[%s20677_s1 + $0x1270] sm:$0xff] }
  0xb1   :  { %1907 = vmatpush2.msra.mxu1 %v1238_v59  ;;  %1833 = vmatprep.subr.mxu0 %v836_v60  ;;  %v1316_v59 = vld [vmem:[%s20677_s1 + $0x2778] sm:$0xff]  ;;  %v642_v60 = vld [vmem:[%s20677_s1 + $0x1268] sm:$0xff] }
  0xb2   :  { %1908 = vmatprep.subr.mxu1 %v1226_v61  ;;  %1834 = vmatpush2.msra.mxu0 %v835_v63  ;;  %v1304_v61 = vld [vmem:[%s20677_s1 + $0x2718] sm:$0xff]  ;;  %v630_v63 = vld [vmem:[%s20677_s1 + $0x1208] sm:$0xff] }
  0xb3   :  { %1909 = vmatpush2.msra.mxu1 %v1225_v0  ;;  %1835 = vmatprep.subr.mxu0 %v823_v1  ;;  %v1303_v0 = vld [vmem:[%s20677_s1 + $0x2710] sm:$0xff]  ;;  %v629_v1 = vld [vmem:[%s20677_s1 + $0x1200] sm:$0xff] }
  0xb4   :  { %1910 = vmatprep.subr.mxu1 %v1213_v2  ;;  %1836 = vmatpush2.msra.mxu0 %v822_v4  ;;  %v253_v2 = vld [vmem:[%s20677_s1 + $0x640] sm:$0xff] }
  0xb5   :  { %1911 = vmatpush2.msra.mxu1 %v1212_v5  ;;  %1837 = vmatprep.subr.mxu0 %v810_v6  ;;  %v617_v4 = vld [vmem:[%s20677_s1 + $0x11a0] sm:$0xff]  ;;  %v252_v5 = vld [vmem:[%s20677_s1 + $0x638] sm:$0xff] }
  0xb6   :  { %1912 = vmatprep.subr.mxu1 %v1200_v7  ;;  %1838 = vmatpush2.msra.mxu0 %v809_v9  ;;  %v616_v6 = vld [vmem:[%s20677_s1 + $0x1198] sm:$0xff] }
  0xb7   :  { %1913 = vmatpush2.msra.mxu1 %v1199_v10  ;;  %1839 = vmatprep.subr.mxu0 %v797_v12  ;;  %v240_v7 = vld [vmem:[%s20677_s1 + $0x5d8] sm:$0xff]  ;;  %v239_v10 = vld [vmem:[%s20677_s1 + $0x5d0] sm:$0xff] }
  0xb8   :  { %1914 = vmatprep.subr.mxu1 %v1187_v13  ;;  %1840 = vmatpush2.msra.mxu0 %v796_v14  ;;  %v604_v9 = vld [vmem:[%s20677_s1 + $0x1138] sm:$0xff]  ;;  %v603_v12 = vld [vmem:[%s20677_s1 + $0x1130] sm:$0xff] }
  0xb9   :  { %1915 = vmatpush2.msra.mxu1 %v1186_v16  ;;  %1841 = vmatprep.subr.mxu0 %v784_v17  ;;  %v227_v13 = vld [vmem:[%s20677_s1 + $0x570] sm:$0xff]  ;;  %v226_v16 = vld [vmem:[%s20677_s1 + $0x568] sm:$0xff] }
  0xba   :  { %1916 = vmatprep.subr.mxu1 %v1174_v18  ;;  %1842 = vmatpush2.msra.mxu0 %v783_v19  ;;  %v591_v14 = vld [vmem:[%s20677_s1 + $0x10d0] sm:$0xff]  ;;  %v590_v17 = vld [vmem:[%s20677_s1 + $0x10c8] sm:$0xff] }
  0xbb   :  { %1917 = vmatpush2.msra.mxu1 %v1173_v20  ;;  %1843 = vmatprep.subr.mxu0 %v771_v21  ;;  %v214_v18 = vld [vmem:[%s20677_s1 + $0x508] sm:$0xff]  ;;  %v213_v20 = vld [vmem:[%s20677_s1 + $0x500] sm:$0xff] }
  0xbc   :  { %1918 = vmatprep.subr.mxu1 %v1161_v22  ;;  %1844 = vmatpush2.msra.mxu0 %v770_v23  ;;  %v578_v19 = vld [vmem:[%s20677_s1 + $0x1068] sm:$0xff]  ;;  %v577_v21 = vld [vmem:[%s20677_s1 + $0x1060] sm:$0xff] }
  0xbd   :  { %1919 = vmatpush2.msra.mxu1 %v1160_v25  ;;  %1845 = vmatprep.subr.mxu0 %v758_v26  ;;  %v201_v22 = vld [vmem:[%s20677_s1 + $0x4a0] sm:$0xff]  ;;  %v200_v25 = vld [vmem:[%s20677_s1 + $0x498] sm:$0xff] }
  0xbe   :  { %1920 = vmatprep.subr.mxu1 %v1148_v27  ;;  %1846 = vmatpush2.msra.mxu0 %v757_v28  ;;  %v565_v23 = vld [vmem:[%s20677_s1 + $0x1000] sm:$0xff]  ;;  %v564_v26 = vld [vmem:[%s20677_s1 + $0xff8] sm:$0xff] }
  0xbf   :  { %1921 = vmatpush2.msra.mxu1 %v1147_v29  ;;  %1847 = vmatprep.subr.mxu0 %v745_v30  ;;  %v188_v27 = vld [vmem:[%s20677_s1 + $0x438] sm:$0xff]  ;;  %v187_v29 = vld [vmem:[%s20677_s1 + $0x430] sm:$0xff] }
  0xc0   :  { %1922 = vmatprep.subr.mxu1 %v1135_v31  ;;  %1848 = vmatpush2.msra.mxu0 %v744_v32  ;;  %v552_v28 = vld [vmem:[%s20677_s1 + $0xf98] sm:$0xff]  ;;  %v551_v30 = vld [vmem:[%s20677_s1 + $0xf90] sm:$0xff] }
  0xc1   :  { %1923 = vmatpush2.msra.mxu1 %v1134_v33  ;;  %1849 = vmatprep.subr.mxu0 %v732_v34  ;;  %v175_v31 = vld [vmem:[%s20677_s1 + $0x3d0] sm:$0xff]  ;;  %v174_v33 = vld [vmem:[%s20677_s1 + $0x3c8] sm:$0xff] }
  0xc2   :  { %1924 = vmatprep.subr.mxu1 %v1122_v36  ;;  %1850 = vmatpush2.msra.mxu0 %v731_v37  ;;  %v539_v32 = vld [vmem:[%s20677_s1 + $0xf30] sm:$0xff]  ;;  %v538_v34 = vld [vmem:[%s20677_s1 + $0xf28] sm:$0xff] }
  0xc3   :  { %1925 = vmatpush2.msra.mxu1 %v1121_v38  ;;  %1851 = vmatprep.subr.mxu0 %v719_v39  ;;  %v162_v36 = vld [vmem:[%s20677_s1 + $0x368] sm:$0xff]  ;;  %v161_v38 = vld [vmem:[%s20677_s1 + $0x360] sm:$0xff] }
  0xc4   :  { %1926 = vmatprep.subr.mxu1 %v1109_v40  ;;  %1852 = vmatpush2.msra.mxu0 %v718_v42  ;;  %v526_v37 = vld [vmem:[%s20677_s1 + $0xec8] sm:$0xff]  ;;  %v525_v39 = vld [vmem:[%s20677_s1 + $0xec0] sm:$0xff] }
  0xc5   :  { %1927 = vmatpush2.msra.mxu1 %v1108_v43  ;;  %1853 = vmatprep.subr.mxu0 %v706_v44  ;;  %v149_v40 = vld [vmem:[%s20677_s1 + $0x300] sm:$0xff]  ;;  %v148_v43 = vld [vmem:[%s20677_s1 + $0x2f8] sm:$0xff] }
  0xc6   :  { %1928 = vmatprep.subr.mxu1 %v1096_v45  ;;  %1854 = vmatpush2.msra.mxu0 %v705_v46  ;;  %v513_v42 = vld [vmem:[%s20677_s1 + $0xe60] sm:$0xff]  ;;  %v512_v44 = vld [vmem:[%s20677_s1 + $0xe58] sm:$0xff] }
  0xc7   :  { %1929 = vmatpush2.msra.mxu1 %v1095_v47  ;;  %1855 = vmatprep.subr.mxu0 %v693_v48  ;;  %v136_v45 = vld [vmem:[%s20677_s1 + $0x298] sm:$0xff]  ;;  %v135_v47 = vld [vmem:[%s20677_s1 + $0x290] sm:$0xff] }
  0xc8   :  { %1930 = vmatprep.mubr.f32.mxu1 %v11118_v24  ;;  %2079 = vmatprep.subr.mxu1 %v669_v49  ;;  %v500_v46 = vld [vmem:[%s20677_s1 + $0xdf8] sm:$0xff]  ;;  %v499_v48 = vld [vmem:[%s20677_s1 + $0xdf0] sm:$0xff] }
  0xc9   :  { %1856 = vmatpush2.msra.mxu0 %v692_v50  ;;  %1931 = vmatmul.mubr.f32.vlgmr.msra.gmra.mxu1 %v11090_v15  ;;  %v123_v49 = vld [vmem:[%s20677_s1 + $0x230] sm:$0xff] }
  0xca   :  { %1857 = vmatprep.subr.mxu0 %v680_v51  ;;  %2080 = vmatpush1.msra.mxu1 %v668_v53  ;;  %v487_v50 = vld [vmem:[%s20677_s1 + $0xd90] sm:$0xff]  ;;  %v122_v51 = vld [vmem:[%s20677_s1 + $0x228] sm:$0xff] }
  0xcb   :  { %1858 = vmatpush2.msra.mxu0 %v679_v54  ;;  %2081 = vmatprep.subr.mxu1 %v656_v55  ;;  %v486_v53 = vld [vmem:[%s20677_s1 + $0xd88] sm:$0xff] }
  0xcc   :  { %1859 = vmatprep.mubr.f32.mxu0 %v10726_v11  ;;  %2082 = vmatpush1.msra.mxu1 %v655_v56  ;;  %v110_v54 = vld [vmem:[%s20677_s1 + $0x1c8] sm:$0xff]  ;;  %v109_v56 = vld [vmem:[%s20677_s1 + $0x1c0] sm:$0xff] }
  0xcd   :  { %1860 = vmatmul.mubr.f32.vlgmr.msra.gmra.mxu0 %v10700_v3  ;;  %1965 = vmatprep.subr.mxu0 %v1317_v57  ;;  %v474_v55 = vld [vmem:[%s20677_s1 + $0xd28] sm:$0xff]  ;;  %v473_v57 = vld [vmem:[%s20677_s1 + $0xd20] sm:$0xff] }
  0xce   :  { %2083 = vmatprep.subr.mxu1 %v643_v58  ;;  %1966 = vmatpush1.msra.mxu0 %v1316_v59  ;;  %v97_v58 = vld [vmem:[%s20677_s1 + $0x160] sm:$0xff] }
  0xcf   :  { %2084 = vmatpush1.msra.mxu1 %v642_v60  ;;  %1967 = vmatprep.subr.mxu0 %v1304_v61  ;;  %v877_v59 = vld [vmem:[%s20677_s1 + $0x19c0] sm:$0xff]  ;;  %v96_v60 = vld [vmem:[%s20677_s1 + $0x158] sm:$0xff] }
  0xd0   :  { %2085 = vmatprep.subr.mxu1 %v630_v63  ;;  %1968 = vmatpush1.msra.mxu0 %v1303_v0  ;;  %v876_v61 = vld [vmem:[%s20677_s1 + $0x19b8] sm:$0xff] }
  0xd1   :  { %2001 = vmatprep.mubr.f32.mxu0 %v20694_v52  ;;  %2086 = vmatpush1.msra.mxu1 %v629_v1  ;;  %v84_v63 = vld [vmem:[%s20677_s1 + $0xf8] sm:$0xff]  ;;  %v83_v1 = vld [vmem:[%s20677_s1 + $0xf0] sm:$0xff] }
  0xd2   :  { %9369 = vmatmul.mubr.msk.f32.vlgmr.msra.gmra.mxu0 %vm1437_vm0, %v11151_v35  ;;  %2008 = vmatprep.subr.mxu0 %v253_v2  ;;  %v864_v0 = vld [vmem:[%s20677_s1 + $0x1958] sm:$0xff]  ;;  %v863_v2 = vld [vmem:[%s20677_s1 + $0x1950] sm:$0xff] }
  0xd3   :  { %2087 = vmatprep.subr.mxu1 %v617_v4  ;;  %2009 = vmatpush1.msra.mxu0 %v252_v5 }
  0xd4   :  { %2088 = vmatpush1.msra.mxu1 %v616_v6  ;;  %2010 = vmatprep.subr.mxu0 %v240_v7 }
  0xd5   :  { %2089 = vmatprep.subr.mxu1 %v604_v9  ;;  %2011 = vmatpush1.msra.mxu0 %v239_v10 }
  0xd6   :  { %2090 = vmatpush1.msra.mxu1 %v603_v12  ;;  %2012 = vmatprep.subr.mxu0 %v227_v13 }
  0xd7   :  { %2091 = vmatprep.subr.mxu1 %v591_v14  ;;  %2013 = vmatpush1.msra.mxu0 %v226_v16 }
  0xd8   :  { %2092 = vmatpush1.msra.mxu1 %v590_v17  ;;  %2014 = vmatprep.subr.mxu0 %v214_v18 }
  0xd9   :  { %2093 = vmatprep.subr.mxu1 %v578_v19  ;;  %2015 = vmatpush1.msra.mxu0 %v213_v20 }
  0xda   :  { %2094 = vmatpush1.msra.mxu1 %v577_v21  ;;  %2016 = vmatprep.subr.mxu0 %v201_v22 }
  0xdb   :  { %2095 = vmatprep.subr.mxu1 %v565_v23  ;;  %2017 = vmatpush1.msra.mxu0 %v200_v25 }
  0xdc   :  { %2096 = vmatpush1.msra.mxu1 %v564_v26  ;;  %2018 = vmatprep.subr.mxu0 %v188_v27 }
  0xdd   :  { %2097 = vmatprep.subr.mxu1 %v552_v28  ;;  %2019 = vmatpush1.msra.mxu0 %v187_v29 }
  0xde   :  { %2098 = vmatpush1.msra.mxu1 %v551_v30  ;;  %2020 = vmatprep.subr.mxu0 %v175_v31 }
  0xdf   :  { %2099 = vmatprep.subr.mxu1 %v539_v32  ;;  %2021 = vmatpush1.msra.mxu0 %v174_v33 }
  0xe0   :  { %2100 = vmatpush1.msra.mxu1 %v538_v34  ;;  %2022 = vmatprep.subr.mxu0 %v162_v36 }
  0xe1   :  { %2101 = vmatprep.subr.mxu1 %v526_v37  ;;  %2023 = vmatpush1.msra.mxu0 %v161_v38 }
  0xe2   :  { %2102 = vmatpush1.msra.mxu1 %v525_v39  ;;  %2024 = vmatprep.subr.mxu0 %v149_v40 }
  0xe3   :  { %2103 = vmatprep.subr.mxu1 %v513_v42  ;;  %2025 = vmatpush1.msra.mxu0 %v148_v43 }
  0xe4   :  { %2104 = vmatpush1.msra.mxu1 %v512_v44  ;;  %2026 = vmatprep.subr.mxu0 %v136_v45 }
  0xe5   :  { %2105 = vmatprep.subr.mxu1 %v500_v46  ;;  %2027 = vmatpush1.msra.mxu0 %v135_v47 }
  0xe6   :  { %2106 = vmatpush1.msra.mxu1 %v499_v48  ;;  %2028 = vmatprep.subr.mxu0 %v123_v49 }
  0xe7   :  { %2107 = vmatprep.subr.mxu1 %v487_v50  ;;  %2029 = vmatpush1.msra.mxu0 %v122_v51 }
  0xe8   :  { %2108 = vmatpush1.msra.mxu1 %v486_v53  ;;  %2030 = vmatprep.subr.mxu0 %v110_v54 }
  0xe9   :  { %2109 = vmatprep.subr.mxu1 %v474_v55  ;;  %2031 = vmatpush1.msra.mxu0 %v109_v56 }
  0xea   :  { %2110 = vmatpush1.msra.mxu1 %v473_v57  ;;  %2032 = vmatprep.subr.mxu0 %v97_v58 }
  0xeb   :  { %2111 = vmatprep.subr.mxu1 %v877_v59 }
  0xec   :  { %20 = vsyncpa [#allocation3], 0  ;;  %2033 = vmatpush1.msra.mxu0 %v96_v60  ;;  %2112 = vmatpush2.msra.mxu1 %v876_v61  ;;  %v71_v4 = vld [vmem:[%s20677_s1 + $0x90] sm:$0xff]  ;;  %v70_v6 = vld [vmem:[%s20677_s1 + $0x88] sm:$0xff]  ;;  %v11846_v44 = vsub.s32 0, %v10628_v41  ;;  %vm10240_vm1 = vmmov 0  }
  0xed   :  { %v851_v5 = vld [vmem:[%s20677_s1 + $0x18f0] sm:$0xff]  ;;  %2034 = vmatprep.subr.mxu0 %v84_v63  ;;  %2113 = vmatprep.subr.mxu1 %v864_v0  ;;  %v850_v7 = vld [vmem:[%s20677_s1 + $0x18e8] sm:$0xff]  ;;  %v57_v12 = vld [vmem:[%s20677_s1 + $0x20] sm:$0xff]  ;;  %vm4846_vm2 = vcmask 261120   ;;  %vm7212_vm3 = vcmask 123904   ;;  %vm9352_vm4 = vcmask 25600  }
  0xee   :  { %2035 = vmatpush1.msra.mxu0 %v83_v1  ;;  %2114 = vmatpush2.msra.mxu1 %v863_v2  ;;  %v58_v9 = vld [vmem:[%s20677_s1 + $0x28] sm:$0xff]  ;;  %v837_v13 = vld [vmem:[%s20677_s1 + $0x1880] sm:$0xff]  ;;  %v460_v17 = vld [vmem:[%s20677_s1 + $0xcb8] sm:$0xff]  ;;  %20768 = vst [vmem:[#allocation5_spill] sm:$0xff] %v11846_v44 }
  0xef   :  { %v838_v10 = vld [vmem:[%s20677_s1 + $0x1888] sm:$0xff]  ;;  %2036 = vmatprep.subr.mxu0 %v71_v4  ;;  %2115 = vmatprep.subr.mxu1 %v851_v5  ;;  %v461_v14 = vld [vmem:[%s20677_s1 + $0xcc0] sm:$0xff]  ;;  %v824_v18 = vld [vmem:[%s20677_s1 + $0x1818] sm:$0xff] }
  0xf0   :  { %2037 = vmatpush1.msra.mxu0 %v70_v6  ;;  %2116 = vmatpush2.msra.mxu1 %v850_v7  ;;  %v825_v16 = vld [vmem:[%s20677_s1 + $0x1820] sm:$0xff]  ;;  %v448_v19 = vld [vmem:[%s20677_s1 + $0xc58] sm:$0xff]  ;;  %v447_v21 = vld [vmem:[%s20677_s1 + $0xc50] sm:$0xff] }
  0xf1   :  { %2038 = vmatprep.subr.mxu0 %v58_v9  ;;  %2117 = vmatprep.subr.mxu1 %v838_v10  ;;  %v812_v20 = vld [vmem:[%s20677_s1 + $0x17b8] sm:$0xff]  ;;  %v811_v22 = vld [vmem:[%s20677_s1 + $0x17b0] sm:$0xff]  ;;  %v434_v26 = vld [vmem:[%s20677_s1 + $0xbe8] sm:$0xff] }
  0xf2   :  { %2039 = vmatpush1.msra.mxu0 %v57_v12  ;;  %2118 = vmatpush2.msra.mxu1 %v837_v13  ;;  %v435_v23 = vld [vmem:[%s20677_s1 + $0xbf0] sm:$0xff]  ;;  %v798_v27 = vld [vmem:[%s20677_s1 + $0x1748] sm:$0xff]  ;;  %v421_v30 = vld [vmem:[%s20677_s1 + $0xb80] sm:$0xff] }
  0xf3   :  { %2040 = vmatprep.subr.mxu0 %v461_v14  ;;  %2119 = vmatprep.subr.mxu1 %v825_v16  ;;  %v799_v25 = vld [vmem:[%s20677_s1 + $0x1750] sm:$0xff]  ;;  %v422_v28 = vld [vmem:[%s20677_s1 + $0xb88] sm:$0xff]  ;;  %v785_v31 = vld [vmem:[%s20677_s1 + $0x16e0] sm:$0xff] }
  0xf4   :  { %2041 = vmatpush2.msra.mxu0 %v460_v17  ;;  %2120 = vmatpush2.msra.mxu1 %v824_v18  ;;  %v786_v29 = vld [vmem:[%s20677_s1 + $0x16e8] sm:$0xff]  ;;  %v409_v32 = vld [vmem:[%s20677_s1 + $0xb20] sm:$0xff]  ;;  %v408_v34 = vld [vmem:[%s20677_s1 + $0xb18] sm:$0xff] }
  0xf5   :  { %2042 = vmatprep.subr.mxu0 %v448_v19  ;;  %2121 = vmatprep.subr.mxu1 %v812_v20  ;;  %v773_v33 = vld [vmem:[%s20677_s1 + $0x1680] sm:$0xff]  ;;  %v772_v36 = vld [vmem:[%s20677_s1 + $0x1678] sm:$0xff]  ;;  %v395_v39 = vld [vmem:[%s20677_s1 + $0xab0] sm:$0xff] }
  0xf6   :  { %2043 = vmatpush2.msra.mxu0 %v447_v21  ;;  %2122 = vmatpush2.msra.mxu1 %v811_v22  ;;  %v396_v37 = vld [vmem:[%s20677_s1 + $0xab8] sm:$0xff]  ;;  %v759_v40 = vld [vmem:[%s20677_s1 + $0x1610] sm:$0xff]  ;;  %v382_v45 = vld [vmem:[%s20677_s1 + $0xa48] sm:$0xff] }
  0xf7   :  { %2044 = vmatprep.subr.mxu0 %v435_v23  ;;  %2123 = vmatprep.subr.mxu1 %v799_v25  ;;  %v760_v38 = vld [vmem:[%s20677_s1 + $0x1618] sm:$0xff]  ;;  %v383_v42 = vld [vmem:[%s20677_s1 + $0xa50] sm:$0xff]  ;;  %v746_v46 = vld [vmem:[%s20677_s1 + $0x15a8] sm:$0xff] }
  0xf8   :  { %2045 = vmatpush2.msra.mxu0 %v434_v26  ;;  %2124 = vmatpush2.msra.mxu1 %v798_v27  ;;  %v747_v43 = vld [vmem:[%s20677_s1 + $0x15b0] sm:$0xff]  ;;  %v1327_v47 = vld [vmem:[%s20678_s2] sm:$0xff]  ;;  %v370_v48 = vld [vmem:[%s20677_s1 + $0x9e8] sm:$0xff] }
  0xf9   :  { %2046 = vmatprep.subr.mxu0 %v422_v28  ;;  %2125 = vmatprep.subr.mxu1 %v786_v29  ;;  %v734_v49 = vld [vmem:[%s20677_s1 + $0x1548] sm:$0xff]  ;;  %v369_v50 = vld [vmem:[%s20677_s1 + $0x9e0] sm:$0xff]  ;;  %v1334_v55 = vrot.slane %v1327_v47, %v11846_v44  ;;  %v356_v56 = vld [vmem:[%s20677_s1 + $0x978] sm:$0xff] }
  0xfa   :  { %2047 = vmatpush2.msra.mxu0 %v421_v30  ;;  %2126 = vmatpush2.msra.mxu1 %v785_v31  ;;  %v733_v51 = vld [vmem:[%s20677_s1 + $0x1540] sm:$0xff]  ;;  %v720_v57 = vld [vmem:[%s20677_s1 + $0x14d8] sm:$0xff]  ;;  %v343_v60 = vld [vmem:[%s20677_s1 + $0x910] sm:$0xff] }
  0xfb   :  { %2048 = vmatprep.subr.mxu0 %v409_v32  ;;  %2127 = vmatprep.subr.mxu1 %v773_v33  ;;  %v357_v53 = vld [vmem:[%s20677_s1 + $0x980] sm:$0xff]  ;;  %v344_v58 = vld [vmem:[%s20677_s1 + $0x918] sm:$0xff]  ;;  %v707_v61 = vld [vmem:[%s20677_s1 + $0x1470] sm:$0xff] }
  0xfc   :  { %2049 = vmatpush2.msra.mxu0 %v408_v34  ;;  %2128 = vmatpush2.msra.mxu1 %v772_v36  ;;  %v721_v54 = vld [vmem:[%s20677_s1 + $0x14e0] sm:$0xff]  ;;  %v708_v59 = vld [vmem:[%s20677_s1 + $0x1478] sm:$0xff]  ;;  %v331_v0 = vld [vmem:[%s20677_s1 + $0x8b0] sm:$0xff] }
  0xfd   :  { %2050 = vmatprep.subr.mxu0 %v396_v37  ;;  %2129 = vmatprep.subr.mxu1 %v760_v38  ;;  %v695_v1 = vld [vmem:[%s20677_s1 + $0x1410] sm:$0xff]  ;;  %v330_v4 = vld [vmem:[%s20677_s1 + $0x8a8] sm:$0xff]  ;;  %v317_v12 = vld [vmem:[%s20677_s1 + $0x840] sm:$0xff] }
  0xfe   :  { %2051 = vmatpush2.msra.mxu0 %v395_v39  ;;  %2130 = vmatpush2.msra.mxu1 %v759_v40  ;;  %v694_v5 = vld [vmem:[%s20677_s1 + $0x1408] sm:$0xff]  ;;  %v681_v13 = vld [vmem:[%s20677_s1 + $0x13a0] sm:$0xff]  ;;  %v1319_v16 = vld [vmem:[%s20677_s1 + $0x2790] sm:$0xff] }
  0xff   :  { %2052 = vmatprep.subr.mxu0 %v383_v42  ;;  %2131 = vmatprep.subr.mxu1 %v747_v43  ;;  %v318_v7 = vld [vmem:[%s20677_s1 + $0x848] sm:$0xff]  ;;  %v305_v14 = vld [vmem:[%s20677_s1 + $0x7e0] sm:$0xff]  ;;  %v304_v17 = vld [vmem:[%s20677_s1 + $0x7d8] sm:$0xff] }
 0x100   :  { %2053 = vmatpush2.msra.mxu0 %v382_v45  ;;  %2132 = vmatpush2.msra.mxu1 %v746_v46  ;;  %v682_v9 = vld [vmem:[%s20677_s1 + $0x13a8] sm:$0xff]  ;;  %v292_v18 = vld [vmem:[%s20677_s1 + $0x778] sm:$0xff]  ;;  %v291_v20 = vld [vmem:[%s20677_s1 + $0x770] sm:$0xff] }
 0x101   :  { %2054 = vmatprep.subr.mxu0 %v370_v48  ;;  %2133 = vmatprep.subr.mxu1 %v734_v49  ;;  %v1318_v19 = vld [vmem:[%s20677_s1 + $0x2788] sm:$0xff]  ;;  %v279_v22 = vld [vmem:[%s20677_s1 + $0x710] sm:$0xff]  ;;  %v1305_v23 = vld [vmem:[%s20677_s1 + $0x2720] sm:$0xff] }
 0x102   :  { %2055 = vmatpush2.msra.mxu0 %v369_v50  ;;  %2134 = vmatpush2.msra.mxu1 %v733_v51  ;;  %v1306_v21 = vld [vmem:[%s20677_s1 + $0x2728] sm:$0xff]  ;;  %v255_v25 = vld [vmem:[%s20677_s1 + $0x650] sm:$0xff]  ;;  %v265_v29 = vld [vmem:[%s20677_s1 + $0x6a0] sm:$0xff] }
 0x103   :  { %2056 = vmatprep.subr.mxu0 %v357_v53  ;;  %2135 = vmatprep.subr.mxu1 %v721_v54  ;;  %v1506_v63 = vpop.f32.mrf.mxu0  ;;  %v278_v26 = vld [vmem:[%s20677_s1 + $0x708] sm:$0xff]  ;;  %v241_v31 = vld [vmem:[%s20677_s1 + $0x5e0] sm:$0xff]  ;;  %v1084_v34 = vld [vmem:[%s20677_s1 + $0x2038] sm:$0xff] }
 0x104   :  { %2057 = vmatpush2.msra.mxu0 %v356_v56  ;;  %2136 = vmatpush2.msra.mxu1 %v720_v57  ;;  %v1507_v2 = vadd.f32 %v1506_v63, %v1334_v55  ;;  %v266_v27 = vld [vmem:[%s20677_s1 + $0x6a8] sm:$0xff]  ;;  %v1085_v32 = vld [vmem:[%s20677_s1 + $0x2040] sm:$0xff]  ;;  %v228_v36 = vld [vmem:[%s20677_s1 + $0x578] sm:$0xff] }
 0x105   :  { %2058 = vmatprep.subr.mxu0 %v344_v58  ;;  %2137 = vmatprep.subr.mxu1 %v708_v59  ;;  %v1577_v6 = vpop.f32.mrf.mxu1  ;;  %v254_v28 = vld [vmem:[%s20677_s1 + $0x648] sm:$0xff]  ;;  %v229_v33 = vld [vmem:[%s20677_s1 + $0x580] sm:$0xff]  ;;  %v1072_v37 = vld [vmem:[%s20677_s1 + $0x1fd8] sm:$0xff] }
 0x106   :  { %2059 = vmatpush2.msra.mxu0 %v343_v60  ;;  %2138 = vmatpush2.msra.mxu1 %v707_v61  ;;  %v11912_v10 = vadd.f32 %v1577_v6, %v1507_v2  ;;  %v242_v30 = vld [vmem:[%s20677_s1 + $0x5e8] sm:$0xff]  ;;  %v216_v38 = vld [vmem:[%s20677_s1 + $0x518] sm:$0xff]  ;;  %v1071_v39 = vld [vmem:[%s20677_s1 + $0x1fd0] sm:$0xff] }
 0x107   :  { %2060 = vmatprep.subr.mxu0 %v331_v0  ;;  %2139 = vmatprep.subr.mxu1 %v695_v1  ;;  %v215_v40 = vld [vmem:[%s20677_s1 + $0x510] sm:$0xff]  ;;  %v1058_v45 = vld [vmem:[%s20677_s1 + $0x1f68] sm:$0xff]  ;;  %v1045_v49 = vld [vmem:[%s20677_s1 + $0x1f00] sm:$0xff] }
 0x108   :  { %2061 = vmatpush2.msra.mxu0 %v330_v4  ;;  %2140 = vmatpush2.msra.mxu1 %v694_v5  ;;  %v1059_v42 = vld [vmem:[%s20677_s1 + $0x1f70] sm:$0xff]  ;;  %v202_v46 = vld [vmem:[%s20677_s1 + $0x4a8] sm:$0xff]  ;;  %v189_v50 = vld [vmem:[%s20677_s1 + $0x440] sm:$0xff] }
 0x109   :  { %2062 = vmatprep.subr.mxu0 %v318_v7  ;;  %2141 = vmatprep.subr.mxu1 %v682_v9  ;;  %v203_v43 = vld [vmem:[%s20677_s1 + $0x4b0] sm:$0xff]  ;;  %v1046_v47 = vld [vmem:[%s20677_s1 + $0x1f08] sm:$0xff]  ;;  %v1033_v51 = vld [vmem:[%s20677_s1 + $0x1ea0] sm:$0xff] }
 0x10a   :  { %2063 = vmatpush2.msra.mxu0 %v317_v12  ;;  %2142 = vmatpush2.msra.mxu1 %v681_v13  ;;  %v190_v48 = vld [vmem:[%s20677_s1 + $0x448] sm:$0xff]  ;;  %v177_v53 = vld [vmem:[%s20677_s1 + $0x3e0] sm:$0xff]  ;;  %v1032_v54 = vld [vmem:[%s20677_s1 + $0x1e98] sm:$0xff] }
 0x10b   :  { %2064 = vmatprep.subr.mxu0 %v305_v14  ;;  %2143 = vmatprep.mubr.f32.mxu1 %v10726_v11  ;;  %v176_v55 = vld [vmem:[%s20677_s1 + $0x3d8] sm:$0xff]  ;;  %v1019_v58 = vld [vmem:[%s20677_s1 + $0x1e30] sm:$0xff]  ;;  %v1006_v63 = vld [vmem:[%s20677_s1 + $0x1dc8] sm:$0xff] }
 0x10c   :  { %2249 = vmatprep.subr.mxu1 %v1319_v16  ;;  %2065 = vmatpush2.msra.mxu0 %v304_v17  ;;  %v1020_v56 = vld [vmem:[%s20677_s1 + $0x1e38] sm:$0xff]  ;;  %v163_v59 = vld [vmem:[%s20677_s1 + $0x370] sm:$0xff]  ;;  %v150_v0 = vld [vmem:[%s20677_s1 + $0x308] sm:$0xff] }
 0x10d   :  { %2144 = vmatmul.mubr.f32.vlgmr.msra.gmra.mxu1 %v10700_v3  ;;  %2066 = vmatprep.subr.mxu0 %v292_v18  ;;  %v164_v57 = vld [vmem:[%s20677_s1 + $0x378] sm:$0xff]  ;;  %v1007_v60 = vld [vmem:[%s20677_s1 + $0x1dd0] sm:$0xff]  ;;  %v994_v1 = vld [vmem:[%s20677_s1 + $0x1d68] sm:$0xff] }
 0x10e   :  { %2250 = vmatpush1.msra.mxu1 %v1318_v19  ;;  %2067 = vmatpush2.msra.mxu0 %v291_v20  ;;  %v151_v61 = vld [vmem:[%s20677_s1 + $0x310] sm:$0xff]  ;;  %v138_v2 = vld [vmem:[%s20677_s1 + $0x2a8] sm:$0xff]  ;;  %v993_v4 = vld [vmem:[%s20677_s1 + $0x1d60] sm:$0xff] }
 0x10f   :  { %2251 = vmatprep.subr.mxu1 %v1306_v21  ;;  %2068 = vmatprep.subr.mxu0 %v279_v22  ;;  %v137_v5 = vld [vmem:[%s20677_s1 + $0x2a0] sm:$0xff]  ;;  %v980_v9 = vld [vmem:[%s20677_s1 + $0x1cf8] sm:$0xff]  ;;  %v967_v16 = vld [vmem:[%s20677_s1 + $0x1c90] sm:$0xff] }
 0x110   :  { %2252 = vmatpush1.msra.mxu1 %v1305_v23  ;;  %2285 = vmatprep.mubr.f32.mxu1 %v20694_v52  ;;  %v981_v6 = vld [vmem:[%s20677_s1 + $0x1d00] sm:$0xff]  ;;  %v124_v12 = vld [vmem:[%s20677_s1 + $0x238] sm:$0xff]  ;;  %v111_v17 = vld [vmem:[%s20677_s1 + $0x1d0] sm:$0xff] }
 0x111   :  { %2292 = vmatprep.subr.mxu1 %v255_v25  ;;  %2069 = vmatpush2.msra.mxu0 %v278_v26  ;;  %v125_v7 = vld [vmem:[%s20677_s1 + $0x240] sm:$0xff]  ;;  %v968_v13 = vld [vmem:[%s20677_s1 + $0x1c98] sm:$0xff]  ;;  %v955_v18 = vld [vmem:[%s20677_s1 + $0x1c30] sm:$0xff] }
 0x112   :  { %9370 = vmatmul.mubr.msk.f32.vlgmr.msra.gmra.mxu1 %vm1437_vm0, %v11151_v35  ;;  %2070 = vmatprep.subr.mxu0 %v266_v27  ;;  %v112_v14 = vld [vmem:[%s20677_s1 + $0x1d8] sm:$0xff]  ;;  %v99_v19 = vld [vmem:[%s20677_s1 + $0x170] sm:$0xff]  ;;  %v954_v20 = vld [vmem:[%s20677_s1 + $0x1c28] sm:$0xff] }
 0x113   :  { %2293 = vmatpush1.msra.mxu1 %v254_v28  ;;  %2071 = vmatpush2.msra.mxu0 %v265_v29  ;;  %v98_v21 = vld [vmem:[%s20677_s1 + $0x168] sm:$0xff]  ;;  %v941_v25 = vld [vmem:[%s20677_s1 + $0x1bc0] sm:$0xff]  ;;  %v928_v29 = vld [vmem:[%s20677_s1 + $0x1b58] sm:$0xff] }
 0x114   :  { %2294 = vmatprep.subr.mxu1 %v242_v30  ;;  %2072 = vmatprep.mubr.f32.mxu0 %v10716_v8  ;;  %v942_v22 = vld [vmem:[%s20677_s1 + $0x1bc8] sm:$0xff]  ;;  %v85_v26 = vld [vmem:[%s20677_s1 + $0x100] sm:$0xff]  ;;  %v72_v30 = vld [vmem:[%s20677_s1 + $0x98] sm:$0xff] }
 0x115   :  { %2295 = vmatpush1.msra.mxu1 %v241_v31  ;;  %2073 = vmatmul.mubr.f32.vlgmr.msra.gmra.mxu0 %v10685_v62  ;;  %v86_v23 = vld [vmem:[%s20677_s1 + $0x108] sm:$0xff]  ;;  %v929_v27 = vld [vmem:[%s20677_s1 + $0x1b60] sm:$0xff]  ;;  %v916_v31 = vld [vmem:[%s20677_s1 + $0x1af8] sm:$0xff] }
 0x116   :  { %2150 = vmatprep.subr.mxu0 %v1085_v32  ;;  %2296 = vmatprep.subr.mxu1 %v229_v33  ;;  %v73_v28 = vld [vmem:[%s20677_s1 + $0xa0] sm:$0xff]  ;;  %v60_v32 = vld [vmem:[%s20677_s1 + $0x38] sm:$0xff]  ;;  %v915_v33 = vld [vmem:[%s20677_s1 + $0x1af0] sm:$0xff] }
 0x117   :  { %2151 = vmatpush1.msra.mxu0 %v1084_v34  ;;  %2297 = vmatpush1.msra.mxu1 %v228_v36  ;;  %v59_v34 = vld [vmem:[%s20677_s1 + $0x30] sm:$0xff] }
 0x118   :  { %2152 = vmatprep.subr.mxu0 %v1072_v37  ;;  %2298 = vmatprep.subr.mxu1 %v216_v38  ;;  %v903_v36 = vld [vmem:[%s20677_s1 + $0x1a90] sm:$0xff]  ;;  %v902_v38 = vld [vmem:[%s20677_s1 + $0x1a88] sm:$0xff] }
 0x119   :  { %2153 = vmatpush1.msra.mxu0 %v1071_v39  ;;  %2299 = vmatpush1.msra.mxu1 %v215_v40  ;;  %v463_v37 = vld [vmem:[%s20677_s1 + $0xcd0] sm:$0xff]  ;;  %v462_v39 = vld [vmem:[%s20677_s1 + $0xcc8] sm:$0xff] }
 0x11a   :  { %2154 = vmatprep.subr.mxu0 %v1059_v42  ;;  %2300 = vmatprep.subr.mxu1 %v203_v43  ;;  %v890_v40 = vld [vmem:[%s20677_s1 + $0x1a28] sm:$0xff]  ;;  %v889_v43 = vld [vmem:[%s20677_s1 + $0x1a20] sm:$0xff] }
 0x11b   :  { %2155 = vmatpush1.msra.mxu0 %v1058_v45  ;;  %2301 = vmatpush1.msra.mxu1 %v202_v46  ;;  %v450_v42 = vld [vmem:[%s20677_s1 + $0xc68] sm:$0xff]  ;;  %v449_v45 = vld [vmem:[%s20677_s1 + $0xc60] sm:$0xff] }
 0x11c   :  { %2156 = vmatprep.subr.mxu0 %v1046_v47  ;;  %2302 = vmatprep.subr.mxu1 %v190_v48  ;;  %v1293_v46 = vld [vmem:[%s20677_s1 + $0x26c0] sm:$0xff]  ;;  %v1292_v48 = vld [vmem:[%s20677_s1 + $0x26b8] sm:$0xff] }
 0x11d   :  { %2157 = vmatpush1.msra.mxu0 %v1045_v49  ;;  %2303 = vmatpush1.msra.mxu1 %v189_v50  ;;  %v437_v47 = vld [vmem:[%s20677_s1 + $0xc00] sm:$0xff]  ;;  %v436_v49 = vld [vmem:[%s20677_s1 + $0xbf8] sm:$0xff] }
 0x11e   :  { %2158 = vmatprep.subr.mxu0 %v1033_v51  ;;  %2304 = vmatprep.subr.mxu1 %v177_v53  ;;  %v1280_v50 = vld [vmem:[%s20677_s1 + $0x2658] sm:$0xff]  ;;  %v1279_v53 = vld [vmem:[%s20677_s1 + $0x2650] sm:$0xff] }
 0x11f   :  { %2159 = vmatpush1.msra.mxu0 %v1032_v54  ;;  %2305 = vmatpush1.msra.mxu1 %v176_v55  ;;  %v424_v51 = vld [vmem:[%s20677_s1 + $0xb98] sm:$0xff]  ;;  %v423_v54 = vld [vmem:[%s20677_s1 + $0xb90] sm:$0xff] }
 0x120   :  { %2160 = vmatprep.subr.mxu0 %v1020_v56  ;;  %2306 = vmatprep.subr.mxu1 %v164_v57  ;;  %v1267_v55 = vld [vmem:[%s20677_s1 + $0x25f0] sm:$0xff]  ;;  %v1266_v57 = vld [vmem:[%s20677_s1 + $0x25e8] sm:$0xff] }
 0x121   :  { %2161 = vmatpush1.msra.mxu0 %v1019_v58  ;;  %2307 = vmatpush1.msra.mxu1 %v163_v59  ;;  %v411_v56 = vld [vmem:[%s20677_s1 + $0xb30] sm:$0xff]  ;;  %v410_v58 = vld [vmem:[%s20677_s1 + $0xb28] sm:$0xff] }
 0x122   :  { %2162 = vmatprep.subr.mxu0 %v1007_v60  ;;  %2308 = vmatprep.subr.mxu1 %v151_v61  ;;  %v1254_v59 = vld [vmem:[%s20677_s1 + $0x2588] sm:$0xff]  ;;  %v1253_v61 = vld [vmem:[%s20677_s1 + $0x2580] sm:$0xff] }
 0x123   :  { %2163 = vmatpush1.msra.mxu0 %v1006_v63  ;;  %2309 = vmatpush1.msra.mxu1 %v150_v0  ;;  %v398_v60 = vld [vmem:[%s20677_s1 + $0xac8] sm:$0xff]  ;;  %v397_v63 = vld [vmem:[%s20677_s1 + $0xac0] sm:$0xff] }
 0x124   :  { %2164 = vmatprep.subr.mxu0 %v994_v1  ;;  %2310 = vmatprep.subr.mxu1 %v138_v2  ;;  %v1241_v0 = vld [vmem:[%s20677_s1 + $0x2520] sm:$0xff]  ;;  %v1240_v2 = vld [vmem:[%s20677_s1 + $0x2518] sm:$0xff] }
 0x125   :  { %2165 = vmatpush1.msra.mxu0 %v993_v4  ;;  %2311 = vmatpush1.msra.mxu1 %v137_v5  ;;  %v385_v1 = vld [vmem:[%s20677_s1 + $0xa60] sm:$0xff]  ;;  %v384_v4 = vld [vmem:[%s20677_s1 + $0xa58] sm:$0xff] }
 0x126   :  { %2166 = vmatprep.subr.mxu0 %v981_v6  ;;  %2312 = vmatprep.subr.mxu1 %v125_v7  ;;  %v1228_v5 = vld [vmem:[%s20677_s1 + $0x24b8] sm:$0xff]  ;;  %v1227_v7 = vld [vmem:[%s20677_s1 + $0x24b0] sm:$0xff] }
 0x127   :  { %2167 = vmatpush1.msra.mxu0 %v980_v9  ;;  %2313 = vmatpush1.msra.mxu1 %v124_v12  ;;  %v372_v6 = vld [vmem:[%s20677_s1 + $0x9f8] sm:$0xff]  ;;  %v371_v9 = vld [vmem:[%s20677_s1 + $0x9f0] sm:$0xff] }
 0x128   :  { %2168 = vmatprep.subr.mxu0 %v968_v13  ;;  %2314 = vmatprep.subr.mxu1 %v112_v14  ;;  %v1215_v12 = vld [vmem:[%s20677_s1 + $0x2450] sm:$0xff]  ;;  %v1214_v14 = vld [vmem:[%s20677_s1 + $0x2448] sm:$0xff] }
 0x129   :  { %2169 = vmatpush1.msra.mxu0 %v967_v16  ;;  %2315 = vmatpush1.msra.mxu1 %v111_v17  ;;  %v359_v13 = vld [vmem:[%s20677_s1 + $0x990] sm:$0xff]  ;;  %v358_v16 = vld [vmem:[%s20677_s1 + $0x988] sm:$0xff] }
 0x12a   :  { %2170 = vmatprep.subr.mxu0 %v955_v18  ;;  %2316 = vmatprep.subr.mxu1 %v99_v19  ;;  %v1202_v17 = vld [vmem:[%s20677_s1 + $0x23e8] sm:$0xff]  ;;  %v1201_v19 = vld [vmem:[%s20677_s1 + $0x23e0] sm:$0xff] }
 0x12b   :  { %2171 = vmatpush1.msra.mxu0 %v954_v20  ;;  %2317 = vmatpush1.msra.mxu1 %v98_v21  ;;  %v346_v18 = vld [vmem:[%s20677_s1 + $0x928] sm:$0xff]  ;;  %v345_v20 = vld [vmem:[%s20677_s1 + $0x920] sm:$0xff]  ;;  %v12263_v21 = vpop.f32.mrf.mxu0 }
 0x12c   :  { %2172 = vmatprep.subr.mxu0 %v942_v22  ;;  %2318 = vmatprep.subr.mxu1 %v86_v23  ;;  %v1189_v22 = vld [vmem:[%s20677_s1 + $0x2380] sm:$0xff] }
 0x12d   :  { %2173 = vmatpush1.msra.mxu0 %v941_v25  ;;  %2319 = vmatpush1.msra.mxu1 %v85_v26  ;;  %v333_v23 = vld [vmem:[%s20677_s1 + $0x8c0] sm:$0xff]  ;;  %v1188_v25 = vld [vmem:[%s20677_s1 + $0x2378] sm:$0xff] }
 0x12e   :  { %2174 = vmatprep.subr.mxu0 %v929_v27  ;;  %2320 = vmatprep.subr.mxu1 %v73_v28  ;;  %v332_v26 = vld [vmem:[%s20677_s1 + $0x8b8] sm:$0xff] }
 0x12f   :  { %2175 = vmatpush1.msra.mxu0 %v928_v29  ;;  %2321 = vmatpush1.msra.mxu1 %v72_v30  ;;  %v1176_v27 = vld [vmem:[%s20677_s1 + $0x2318] sm:$0xff]  ;;  %v1175_v30 = vld [vmem:[%s20677_s1 + $0x2310] sm:$0xff] }
 0x130   :  { %2176 = vmatprep.subr.mxu0 %v916_v31  ;;  %2322 = vmatprep.subr.mxu1 %v60_v32  ;;  %v320_v28 = vld [vmem:[%s20677_s1 + $0x858] sm:$0xff]  ;;  %v319_v31 = vld [vmem:[%s20677_s1 + $0x850] sm:$0xff] }
 0x131   :  { %2177 = vmatpush1.msra.mxu0 %v915_v33  ;;  %2323 = vmatpush1.msra.mxu1 %v59_v34  ;;  %v1163_v33 = vld [vmem:[%s20677_s1 + $0x22b0] sm:$0xff] }
 0x132   :  { %2178 = vmatprep.subr.mxu0 %v903_v36  ;;  %2324 = vmatprep.subr.mxu1 %v463_v37  ;;  %v307_v34 = vld [vmem:[%s20677_s1 + $0x7f0] sm:$0xff]  ;;  %v1162_v37 = vld [vmem:[%s20677_s1 + $0x22a8] sm:$0xff] }
 0x133   :  { %2179 = vmatpush1.msra.mxu0 %v902_v38  ;;  %2325 = vmatpush2.msra.mxu1 %v462_v39  ;;  %v1150_v38 = vld [vmem:[%s20677_s1 + $0x2248] sm:$0xff] }
 0x134   :  { %2180 = vmatprep.subr.mxu0 %v890_v40  ;;  %2326 = vmatprep.subr.mxu1 %v450_v42  ;;  %v294_v39 = vld [vmem:[%s20677_s1 + $0x788] sm:$0xff]  ;;  %v1149_v40 = vld [vmem:[%s20677_s1 + $0x2240] sm:$0xff] }
 0x135   :  { %2181 = vmatpush1.msra.mxu0 %v889_v43  ;;  %2327 = vmatpush2.msra.mxu1 %v449_v45  ;;  %v293_v42 = vld [vmem:[%s20677_s1 + $0x780] sm:$0xff] }
 0x136   :  { %2182 = vmatprep.subr.mxu0 %v1293_v46  ;;  %2328 = vmatprep.subr.mxu1 %v437_v47  ;;  %v1137_v43 = vld [vmem:[%s20677_s1 + $0x21e0] sm:$0xff]  ;;  %v1136_v47 = vld [vmem:[%s20677_s1 + $0x21d8] sm:$0xff] }
 0x137   :  { %2183 = vmatpush2.msra.mxu0 %v1292_v48  ;;  %2329 = vmatpush2.msra.mxu1 %v436_v49  ;;  %v281_v45 = vld [vmem:[%s20677_s1 + $0x720] sm:$0xff]  ;;  %v280_v48 = vld [vmem:[%s20677_s1 + $0x718] sm:$0xff] }
 0x138   :  { %2184 = vmatprep.subr.mxu0 %v1280_v50  ;;  %2330 = vmatprep.subr.mxu1 %v424_v51  ;;  %v1124_v50 = vld [vmem:[%s20677_s1 + $0x2178] sm:$0xff] }
 0x139   :  { %2185 = vmatpush2.msra.mxu0 %v1279_v53  ;;  %2331 = vmatpush2.msra.mxu1 %v423_v54  ;;  %v268_v51 = vld [vmem:[%s20677_s1 + $0x6b8] sm:$0xff]  ;;  %v1123_v53 = vld [vmem:[%s20677_s1 + $0x2170] sm:$0xff] }
 0x13a   :  { %2186 = vmatprep.subr.mxu0 %v1267_v55  ;;  %2332 = vmatprep.subr.mxu1 %v411_v56  ;;  %v267_v54 = vld [vmem:[%s20677_s1 + $0x6b0] sm:$0xff] }
 0x13b   :  { %2187 = vmatpush2.msra.mxu0 %v1266_v57  ;;  %2333 = vmatpush2.msra.mxu1 %v410_v58  ;;  %v1111_v55 = vld [vmem:[%s20677_s1 + $0x2110] sm:$0xff]  ;;  %v1110_v57 = vld [vmem:[%s20677_s1 + $0x2108] sm:$0xff] }
 0x13c   :  { %2188 = vmatprep.subr.mxu0 %v1254_v59  ;;  %2334 = vmatprep.subr.mxu1 %v398_v60  ;;  %v1087_v56 = vld [vmem:[%s20677_s1 + $0x2050] sm:$0xff]  ;;  %v1098_v58 = vld [vmem:[%s20677_s1 + $0x20a8] sm:$0xff]  ;;  %v1097_v60 = vld [vmem:[%s20677_s1 + $0x20a0] sm:$0xff] }
 0x13d   :  { %2189 = vmatpush2.msra.mxu0 %v1253_v61  ;;  %2335 = vmatpush2.msra.mxu1 %v397_v63  ;;  %v1086_v59 = vld [vmem:[%s20677_s1 + $0x2048] sm:$0xff]  ;;  %v1073_v63 = vld [vmem:[%s20677_s1 + $0x1fe0] sm:$0xff] }
 0x13e   :  { %2190 = vmatprep.subr.mxu0 %v1241_v0  ;;  %2336 = vmatprep.subr.mxu1 %v385_v1  ;;  %v1074_v61 = vld [vmem:[%s20677_s1 + $0x1fe8] sm:$0xff]  ;;  %v671_v0 = vld [vmem:[%s20677_s1 + $0x1350] sm:$0xff]  ;;  %v1061_v1 = vld [vmem:[%s20677_s1 + $0x1f80] sm:$0xff] }
 0x13f   :  { %2191 = vmatpush2.msra.mxu0 %v1240_v2  ;;  %2337 = vmatpush2.msra.mxu1 %v384_v4  ;;  %v670_v2 = vld [vmem:[%s20677_s1 + $0x1348] sm:$0xff]  ;;  %v1060_v4 = vld [vmem:[%s20677_s1 + $0x1f78] sm:$0xff] }
 0x140   :  { %2192 = vmatprep.subr.mxu0 %v1228_v5  ;;  %2338 = vmatprep.subr.mxu1 %v372_v6  ;;  %v658_v5 = vld [vmem:[%s20677_s1 + $0x12e8] sm:$0xff]  ;;  %v1048_v6 = vld [vmem:[%s20677_s1 + $0x1f18] sm:$0xff] }
 0x141   :  { %2193 = vmatpush2.msra.mxu0 %v1227_v7  ;;  %2339 = vmatpush2.msra.mxu1 %v371_v9  ;;  %v657_v7 = vld [vmem:[%s20677_s1 + $0x12e0] sm:$0xff]  ;;  %v1047_v9 = vld [vmem:[%s20677_s1 + $0x1f10] sm:$0xff] }
 0x142   :  { %2194 = vmatprep.subr.mxu0 %v1215_v12  ;;  %2340 = vmatprep.subr.mxu1 %v359_v13  ;;  %v645_v12 = vld [vmem:[%s20677_s1 + $0x1280] sm:$0xff]  ;;  %v1035_v13 = vld [vmem:[%s20677_s1 + $0x1eb0] sm:$0xff] }
 0x143   :  { %2195 = vmatpush2.msra.mxu0 %v1214_v14  ;;  %2341 = vmatpush2.msra.mxu1 %v358_v16  ;;  %v644_v14 = vld [vmem:[%s20677_s1 + $0x1278] sm:$0xff]  ;;  %v1034_v16 = vld [vmem:[%s20677_s1 + $0x1ea8] sm:$0xff] }
 0x144   :  { %2196 = vmatprep.subr.mxu0 %v1202_v17  ;;  %2342 = vmatprep.subr.mxu1 %v346_v18  ;;  %v632_v17 = vld [vmem:[%s20677_s1 + $0x1218] sm:$0xff]  ;;  %v1022_v18 = vld [vmem:[%s20677_s1 + $0x1e48] sm:$0xff] }
 0x145   :  { %2197 = vmatpush2.msra.mxu0 %v1201_v19  ;;  %2343 = vmatpush2.msra.mxu1 %v345_v20  ;;  %v1648_v29 = vpop.f32.mrf.mxu0  ;;  %v631_v19 = vld [vmem:[%s20677_s1 + $0x1210] sm:$0xff]  ;;  %v1021_v20 = vld [vmem:[%s20677_s1 + $0x1e40] sm:$0xff] }
 0x146   :  { %2198 = vmatprep.subr.mxu0 %v1189_v22  ;;  %2344 = vmatprep.subr.mxu1 %v333_v23  ;;  %v1649_v32 = vadd.f32 %v1648_v29, %v11912_v10  ;;  %v306_v10 = vld [vmem:[%s20677_s1 + $0x7e8] sm:$0xff]  ;;  %v619_v22 = vld [vmem:[%s20677_s1 + $0x11b0] sm:$0xff]  ;;  %v1009_v23 = vld [vmem:[%s20677_s1 + $0x1de0] sm:$0xff] }
 0x147   :  { %2199 = vmatpush2.msra.mxu0 %v1188_v25  ;;  %2345 = vmatpush2.msra.mxu1 %v332_v26  ;;  %v12296_v36 = vpop.f32.mrf.mxu0  ;;  %v618_v25 = vld [vmem:[%s20677_s1 + $0x11a8] sm:$0xff]  ;;  %v1008_v26 = vld [vmem:[%s20677_s1 + $0x1dd8] sm:$0xff]  ;;  %v605_v29 = vld [vmem:[%s20677_s1 + $0x1140] sm:$0xff] }
 0x148   :  { %2200 = vmatprep.subr.mxu0 %v1176_v27  ;;  %2346 = vmatprep.subr.mxu1 %v320_v28  ;;  %v606_v27 = vld [vmem:[%s20677_s1 + $0x1148] sm:$0xff]  ;;  %v996_v28 = vld [vmem:[%s20677_s1 + $0x1d78] sm:$0xff] }
 0x149   :  { %2201 = vmatpush2.msra.mxu0 %v1175_v30  ;;  %2347 = vmatpush2.msra.mxu1 %v319_v31  ;;  %v995_v30 = vld [vmem:[%s20677_s1 + $0x1d70] sm:$0xff]  ;;  %v593_v31 = vld [vmem:[%s20677_s1 + $0x10e0] sm:$0xff] }
 0x14a   :  { %2202 = vmatprep.subr.mxu0 %v1163_v33  ;;  %2348 = vmatprep.subr.mxu1 %v307_v34  ;;  %v592_v33 = vld [vmem:[%s20677_s1 + $0x10d8] sm:$0xff]  ;;  %v982_v34 = vld [vmem:[%s20677_s1 + $0x1d08] sm:$0xff] }
 0x14b   :  { %2203 = vmatpush2.msra.mxu0 %v1162_v37  ;;  %2349 = vmatpush2.msra.mxu1 %v306_v10  ;;  %v1719_v46 = vpop.f32.mrf.mxu0  ;;  %v580_v37 = vld [vmem:[%s20677_s1 + $0x1078] sm:$0xff]  ;;  %v970_v10 = vld [vmem:[%s20677_s1 + $0x1ca8] sm:$0xff] }
 0x14c   :  { %2204 = vmatprep.subr.mxu0 %v1150_v38  ;;  %2350 = vmatprep.subr.mxu1 %v294_v39  ;;  %v12328_v49 = vadd.f32 %v1719_v46, %v1649_v32  ;;  %v983_v32 = vld [vmem:[%s20677_s1 + $0x1d10] sm:$0xff]  ;;  %v969_v39 = vld [vmem:[%s20677_s1 + $0x1ca0] sm:$0xff]  ;;  %v554_v46 = vld [vmem:[%s20677_s1 + $0xfa8] sm:$0xff] }
 0x14d   :  { %2205 = vmatpush2.msra.mxu0 %v1149_v40  ;;  %2351 = vmatpush2.msra.mxu1 %v293_v42  ;;  %v579_v38 = vld [vmem:[%s20677_s1 + $0x1070] sm:$0xff]  ;;  %v957_v42 = vld [vmem:[%s20677_s1 + $0x1c40] sm:$0xff] }
 0x14e   :  { %2206 = vmatprep.subr.mxu0 %v1137_v43  ;;  %2352 = vmatprep.subr.mxu1 %v281_v45  ;;  %v567_v40 = vld [vmem:[%s20677_s1 + $0x1010] sm:$0xff]  ;;  %v566_v43 = vld [vmem:[%s20677_s1 + $0x1008] sm:$0xff]  ;;  %v956_v45 = vld [vmem:[%s20677_s1 + $0x1c38] sm:$0xff] }
 0x14f   :  { %2207 = vmatpush2.msra.mxu0 %v1136_v47  ;;  %2353 = vmatpush2.msra.mxu1 %v280_v48  ;;  %v944_v47 = vld [vmem:[%s20677_s1 + $0x1bd8] sm:$0xff]  ;;  %v553_v48 = vld [vmem:[%s20677_s1 + $0xfa0] sm:$0xff] }
 0x150   :  { %2208 = vmatprep.subr.mxu0 %v1124_v50  ;;  %2354 = vmatprep.subr.mxu1 %v268_v51  ;;  %v943_v50 = vld [vmem:[%s20677_s1 + $0x1bd0] sm:$0xff]  ;;  %v541_v51 = vld [vmem:[%s20677_s1 + $0xf40] sm:$0xff] }
 0x151   :  { %2209 = vmatpush2.msra.mxu0 %v1123_v53  ;;  %2355 = vmatpush2.msra.mxu1 %v267_v54  ;;  %v931_v53 = vld [vmem:[%s20677_s1 + $0x1b70] sm:$0xff]  ;;  %v540_v54 = vld [vmem:[%s20677_s1 + $0xf38] sm:$0xff] }
 0x152   :  { %2210 = vmatprep.subr.mxu0 %v1111_v55  ;;  %2356 = vmatprep.mubr.f32.mxu1 %v10716_v8  ;;  %v930_v55 = vld [vmem:[%s20677_s1 + $0x1b68] sm:$0xff] }
 0x153   :  { %2434 = vmatprep.subr.mxu1 %v1087_v56  ;;  %2211 = vmatpush2.msra.mxu0 %v1110_v57  ;;  %v528_v56 = vld [vmem:[%s20677_s1 + $0xed8] sm:$0xff]  ;;  %v918_v57 = vld [vmem:[%s20677_s1 + $0x1b08] sm:$0xff] }
 0x154   :  { %2357 = vmatmul.mubr.f32.vlgmr.msra.gmra.mxu1 %v10685_v62  ;;  %2212 = vmatprep.subr.mxu0 %v1098_v58  ;;  %v527_v58 = vld [vmem:[%s20677_s1 + $0xed0] sm:$0xff] }
 0x155   :  { %2435 = vmatpush1.msra.mxu1 %v1086_v59  ;;  %2213 = vmatpush2.msra.mxu0 %v1097_v60  ;;  %v917_v59 = vld [vmem:[%s20677_s1 + $0x1b00] sm:$0xff]  ;;  %v515_v60 = vld [vmem:[%s20677_s1 + $0xe70] sm:$0xff] }
 0x156   :  { %2436 = vmatprep.subr.mxu1 %v1074_v61  ;;  %2214 = vmatprep.mubr.f32.mxu0 %v11118_v24  ;;  %v905_v61 = vld [vmem:[%s20677_s1 + $0x1aa0] sm:$0xff] }
 0x157   :  { %2437 = vmatpush1.msra.mxu1 %v1073_v63  ;;  %2215 = vmatmul.mubr.f32.vlgmr.msra.gmra.mxu0 %v11090_v15  ;;  %v514_v63 = vld [vmem:[%s20677_s1 + $0xe68] sm:$0xff] }
 0x158   :  { %2363 = vmatprep.subr.mxu0 %v671_v0  ;;  %2438 = vmatprep.subr.mxu1 %v1061_v1  ;;  %v904_v0 = vld [vmem:[%s20677_s1 + $0x1a98] sm:$0xff]  ;;  %v502_v1 = vld [vmem:[%s20677_s1 + $0xe08] sm:$0xff] }
 0x159   :  { %2364 = vmatpush1.msra.mxu0 %v670_v2  ;;  %2439 = vmatpush1.msra.mxu1 %v1060_v4  ;;  %v892_v2 = vld [vmem:[%s20677_s1 + $0x1a38] sm:$0xff]  ;;  %v501_v4 = vld [vmem:[%s20677_s1 + $0xe00] sm:$0xff] }
 0x15a   :  { %2365 = vmatprep.subr.mxu0 %v658_v5  ;;  %2440 = vmatprep.subr.mxu1 %v1048_v6  ;;  %v891_v5 = vld [vmem:[%s20677_s1 + $0x1a30] sm:$0xff]  ;;  %v489_v6 = vld [vmem:[%s20677_s1 + $0xda0] sm:$0xff] }
 0x15b   :  { %2366 = vmatpush1.msra.mxu0 %v657_v7  ;;  %2441 = vmatpush1.msra.mxu1 %v1047_v9  ;;  %v1295_v7 = vld [vmem:[%s20677_s1 + $0x26d0] sm:$0xff]  ;;  %v488_v9 = vld [vmem:[%s20677_s1 + $0xd98] sm:$0xff] }
 0x15c   :  { %2367 = vmatprep.subr.mxu0 %v645_v12  ;;  %2442 = vmatprep.subr.mxu1 %v1035_v13  ;;  %v1294_v12 = vld [vmem:[%s20677_s1 + $0x26c8] sm:$0xff]  ;;  %v476_v13 = vld [vmem:[%s20677_s1 + $0xd38] sm:$0xff] }
 0x15d   :  { %2368 = vmatpush1.msra.mxu0 %v644_v14  ;;  %2443 = vmatpush1.msra.mxu1 %v1034_v16  ;;  %v1282_v14 = vld [vmem:[%s20677_s1 + $0x2668] sm:$0xff]  ;;  %v475_v16 = vld [vmem:[%s20677_s1 + $0xd30] sm:$0xff] }
 0x15e   :  { %2369 = vmatprep.subr.mxu0 %v632_v17  ;;  %2444 = vmatprep.subr.mxu1 %v1022_v18  ;;  %v1281_v17 = vld [vmem:[%s20677_s1 + $0x2660] sm:$0xff]  ;;  %v879_v18 = vld [vmem:[%s20677_s1 + $0x19d0] sm:$0xff] }
 0x15f   :  { %2370 = vmatpush1.msra.mxu0 %v631_v19  ;;  %2445 = vmatpush1.msra.mxu1 %v1021_v20  ;;  %v1269_v19 = vld [vmem:[%s20677_s1 + $0x2600] sm:$0xff]  ;;  %v878_v20 = vld [vmem:[%s20677_s1 + $0x19c8] sm:$0xff] }
 0x160   :  { %2371 = vmatprep.subr.mxu0 %v619_v22  ;;  %2446 = vmatprep.subr.mxu1 %v1009_v23  ;;  %v1268_v22 = vld [vmem:[%s20677_s1 + $0x25f8] sm:$0xff]  ;;  %v866_v23 = vld [vmem:[%s20677_s1 + $0x1968] sm:$0xff] }
 0x161   :  { %2372 = vmatpush1.msra.mxu0 %v618_v25  ;;  %2447 = vmatpush1.msra.mxu1 %v1008_v26  ;;  %v1256_v25 = vld [vmem:[%s20677_s1 + $0x2598] sm:$0xff]  ;;  %v865_v26 = vld [vmem:[%s20677_s1 + $0x1960] sm:$0xff] }
 0x162   :  { %2373 = vmatprep.subr.mxu0 %v606_v27  ;;  %2448 = vmatprep.subr.mxu1 %v996_v28  ;;  %v1255_v27 = vld [vmem:[%s20677_s1 + $0x2590] sm:$0xff]  ;;  %v853_v28 = vld [vmem:[%s20677_s1 + $0x1900] sm:$0xff] }
 0x163   :  { %2374 = vmatpush1.msra.mxu0 %v605_v29  ;;  %2449 = vmatpush1.msra.mxu1 %v995_v30  ;;  %v1243_v29 = vld [vmem:[%s20677_s1 + $0x2530] sm:$0xff]  ;;  %v852_v30 = vld [vmem:[%s20677_s1 + $0x18f8] sm:$0xff] }
 0x164   :  { %2375 = vmatprep.subr.mxu0 %v593_v31  ;;  %2450 = vmatprep.subr.mxu1 %v983_v32  ;;  %v1242_v31 = vld [vmem:[%s20677_s1 + $0x2528] sm:$0xff]  ;;  %v840_v32 = vld [vmem:[%s20677_s1 + $0x1898] sm:$0xff] }
 0x165   :  { %2376 = vmatpush1.msra.mxu0 %v592_v33  ;;  %2451 = vmatpush1.msra.mxu1 %v982_v34  ;;  %v1230_v33 = vld [vmem:[%s20677_s1 + $0x24c8] sm:$0xff]  ;;  %v839_v34 = vld [vmem:[%s20677_s1 + $0x1890] sm:$0xff] }
 0x166   :  { %2377 = vmatprep.subr.mxu0 %v580_v37  ;;  %2452 = vmatprep.subr.mxu1 %v970_v10  ;;  %v1229_v37 = vld [vmem:[%s20677_s1 + $0x24c0] sm:$0xff]  ;;  %v827_v10 = vld [vmem:[%s20677_s1 + $0x1830] sm:$0xff] }
 0x167   :  { %2378 = vmatpush1.msra.mxu0 %v579_v38  ;;  %2453 = vmatpush1.msra.mxu1 %v969_v39  ;;  %v1217_v38 = vld [vmem:[%s20677_s1 + $0x2460] sm:$0xff]  ;;  %v826_v39 = vld [vmem:[%s20677_s1 + $0x1828] sm:$0xff] }
 0x168   :  { %2379 = vmatprep.subr.mxu0 %v567_v40  ;;  %2454 = vmatprep.subr.mxu1 %v957_v42  ;;  %v1216_v40 = vld [vmem:[%s20677_s1 + $0x2458] sm:$0xff]  ;;  %v814_v42 = vld [vmem:[%s20677_s1 + $0x17c8] sm:$0xff] }
 0x169   :  { %2380 = vmatpush1.msra.mxu0 %v566_v43  ;;  %2455 = vmatpush1.msra.mxu1 %v956_v45  ;;  %v1204_v43 = vld [vmem:[%s20677_s1 + $0x23f8] sm:$0xff]  ;;  %v813_v45 = vld [vmem:[%s20677_s1 + $0x17c0] sm:$0xff] }
 0x16a   :  { %2381 = vmatprep.subr.mxu0 %v554_v46  ;;  %2456 = vmatprep.subr.mxu1 %v944_v47  ;;  %v1203_v46 = vld [vmem:[%s20677_s1 + $0x23f0] sm:$0xff]  ;;  %v801_v47 = vld [vmem:[%s20677_s1 + $0x1760] sm:$0xff] }
 0x16b   :  { %2382 = vmatpush1.msra.mxu0 %v553_v48  ;;  %2457 = vmatpush1.msra.mxu1 %v943_v50  ;;  %v1191_v48 = vld [vmem:[%s20677_s1 + $0x2390] sm:$0xff]  ;;  %v800_v50 = vld [vmem:[%s20677_s1 + $0x1758] sm:$0xff] }
 0x16c   :  { %2383 = vmatprep.subr.mxu0 %v541_v51  ;;  %2458 = vmatprep.subr.mxu1 %v931_v53  ;;  %v1190_v51 = vld [vmem:[%s20677_s1 + $0x2388] sm:$0xff]  ;;  %v788_v53 = vld [vmem:[%s20677_s1 + $0x16f8] sm:$0xff] }
 0x16d   :  { %2384 = vmatpush1.msra.mxu0 %v540_v54  ;;  %2459 = vmatpush1.msra.mxu1 %v930_v55  ;;  %v1178_v54 = vld [vmem:[%s20677_s1 + $0x2328] sm:$0xff]  ;;  %v12653_v55 = vsub.s32 2, %v10628_v41 }
 0x16e   :  { %2385 = vmatprep.subr.mxu0 %v528_v56  ;;  %2460 = vmatprep.subr.mxu1 %v918_v57  ;;  %v787_v56 = vld [vmem:[%s20677_s1 + $0x16f0] sm:$0xff]  ;;  %v1177_v57 = vld [vmem:[%s20677_s1 + $0x2320] sm:$0xff] }
 0x16f   :  { %2386 = vmatpush1.msra.mxu0 %v527_v58  ;;  %2461 = vmatpush1.msra.mxu1 %v917_v59  ;;  %20769 = vst [vmem:[#allocation6_spill] sm:$0xff] %v12653_v55  ;;  %v12661_v58 = vpop.f32.mrf.mxu1  ;;  %v775_v59 = vld [vmem:[%s20677_s1 + $0x1690] sm:$0xff] }
 0x170   :  { %2387 = vmatprep.subr.mxu0 %v515_v60  ;;  %2462 = vmatprep.subr.mxu1 %v905_v61  ;;  %v1165_v60 = vld [vmem:[%s20677_s1 + $0x22c0] sm:$0xff]  ;;  %v774_v61 = vld [vmem:[%s20677_s1 + $0x1688] sm:$0xff] }
 0x171   :  { %2388 = vmatpush1.msra.mxu0 %v514_v63  ;;  %2463 = vmatpush1.msra.mxu1 %v904_v0  ;;  %v1164_v63 = vld [vmem:[%s20677_s1 + $0x22b8] sm:$0xff]  ;;  %v1790_v0 = vpop.f32.mrf.mxu1 }
 0x172   :  { %2389 = vmatprep.subr.mxu0 %v502_v1  ;;  %2464 = vmatprep.subr.mxu1 %v892_v2  ;;  %v762_v1 = vld [vmem:[%s20677_s1 + $0x1628] sm:$0xff]  ;;  %v1152_v2 = vld [vmem:[%s20677_s1 + $0x2258] sm:$0xff] }
 0x173   :  { %2390 = vmatpush1.msra.mxu0 %v501_v4  ;;  %2465 = vmatpush1.msra.mxu1 %v891_v5  ;;  %v12684_v4 = vld [vmem:[%s20678_s2] sm:$0xff] }
 0x174   :  { %2391 = vmatprep.subr.mxu0 %v489_v6  ;;  %2466 = vmatprep.subr.mxu1 %v1295_v7  ;;  %v1342_v5 = vrot.slane %v12684_v4, %v12653_v55  ;;  %v761_v6 = vld [vmem:[%s20677_s1 + $0x1620] sm:$0xff]  ;;  %v1151_v7 = vld [vmem:[%s20677_s1 + $0x2250] sm:$0xff] }
 0x175   :  { %2392 = vmatpush1.msra.mxu0 %v488_v9  ;;  %2467 = vmatpush2.msra.mxu1 %v1294_v12  ;;  %v749_v9 = vld [vmem:[%s20677_s1 + $0x15c0] sm:$0xff]  ;;  %v1139_v12 = vld [vmem:[%s20677_s1 + $0x21f0] sm:$0xff] }
 0x176   :  { %2393 = vmatprep.subr.mxu0 %v476_v13  ;;  %2468 = vmatprep.subr.mxu1 %v1282_v14  ;;  %v748_v13 = vld [vmem:[%s20677_s1 + $0x15b8] sm:$0xff]  ;;  %v1138_v14 = vld [vmem:[%s20677_s1 + $0x21e8] sm:$0xff] }
 0x177   :  { %2394 = vmatpush1.msra.mxu0 %v475_v16  ;;  %2469 = vmatpush2.msra.mxu1 %v1281_v17  ;;  %v12706_v16 = vpop.f32.mrf.mxu0  ;;  %v12708_v17 = vpop.f32.mrf.mxu1 }
 0x178   :  { %2395 = vmatprep.subr.mxu0 %v879_v18  ;;  %2470 = vmatprep.subr.mxu1 %v1269_v19  ;;  %v736_v18 = vld [vmem:[%s20677_s1 + $0x1558] sm:$0xff]  ;;  %v1126_v19 = vld [vmem:[%s20677_s1 + $0x2188] sm:$0xff] }
 0x179   :  { %2396 = vmatpush2.msra.mxu0 %v878_v20  ;;  %2471 = vmatpush2.msra.mxu1 %v1268_v22  ;;  %v1791_v20 = vadd.f32 %v1790_v0, %v1342_v5  ;;  %v735_v22 = vld [vmem:[%s20677_s1 + $0x1550] sm:$0xff]  ;;  %v257_v0 = vld [vmem:[%s20677_s1 + $0x660] sm:$0xff]  ;;  %v620_v5 = vld [vmem:[%s20677_s1 + $0x11b8] sm:$0xff] }
 0x17a   :  { %2397 = vmatprep.subr.mxu0 %v866_v23  ;;  %2472 = vmatprep.subr.mxu1 %v1256_v25  ;;  %v1125_v23 = vld [vmem:[%s20677_s1 + $0x2180] sm:$0xff]  ;;  %v723_v25 = vld [vmem:[%s20677_s1 + $0x14f0] sm:$0xff] }
 0x17b   :  { %2398 = vmatpush2.msra.mxu0 %v865_v26  ;;  %2473 = vmatpush2.msra.mxu1 %v1255_v27  ;;  %v1113_v26 = vld [vmem:[%s20677_s1 + $0x2120] sm:$0xff] }
 0x17c   :  { %2399 = vmatprep.subr.mxu0 %v853_v28  ;;  %2474 = vmatprep.subr.mxu1 %v1243_v29  ;;  %v722_v29 = vld [vmem:[%s20677_s1 + $0x14e8] sm:$0xff] }
 0x17d   :  { %2400 = vmatpush2.msra.mxu0 %v852_v30  ;;  %2475 = vmatpush2.msra.mxu1 %v1242_v31  ;;  %v1112_v30 = vld [vmem:[%s20677_s1 + $0x2118] sm:$0xff] }
 0x17e   :  { %2401 = vmatprep.subr.mxu0 %v840_v32  ;;  %2476 = vmatprep.subr.mxu1 %v1230_v33  ;;  %v710_v32 = vld [vmem:[%s20677_s1 + $0x1488] sm:$0xff]  ;;  %v1100_v33 = vld [vmem:[%s20677_s1 + $0x20b8] sm:$0xff] }
 0x17f   :  { %2402 = vmatpush2.msra.mxu0 %v839_v34  ;;  %2477 = vmatpush2.msra.mxu1 %v1229_v37  ;;  %v709_v37 = vld [vmem:[%s20677_s1 + $0x1480] sm:$0xff] }
 0x180   :  { %2403 = vmatprep.subr.mxu0 %v827_v10  ;;  %2478 = vmatprep.subr.mxu1 %v1217_v38  ;;  %v1099_v10 = vld [vmem:[%s20677_s1 + $0x20b0] sm:$0xff] }
 0x181   :  { %2404 = vmatpush2.msra.mxu0 %v826_v39  ;;  %2479 = vmatpush2.msra.mxu1 %v1216_v40  ;;  %v697_v39 = vld [vmem:[%s20677_s1 + $0x1420] sm:$0xff] }
 0x182   :  { %2405 = vmatprep.subr.mxu0 %v814_v42  ;;  %2480 = vmatprep.subr.mxu1 %v1204_v43  ;;  %v673_v40 = vld [vmem:[%s20677_s1 + $0x1360] sm:$0xff]  ;;  %v696_v42 = vld [vmem:[%s20677_s1 + $0x1418] sm:$0xff] }
 0x183   :  { %2406 = vmatpush2.msra.mxu0 %v813_v45  ;;  %2481 = vmatpush2.msra.mxu1 %v1203_v46  ;;  %v684_v45 = vld [vmem:[%s20677_s1 + $0x13b8] sm:$0xff] }
 0x184   :  { %2407 = vmatprep.subr.mxu0 %v801_v47  ;;  %2482 = vmatprep.subr.mxu1 %v1191_v48  ;;  %v672_v47 = vld [vmem:[%s20677_s1 + $0x1358] sm:$0xff]  ;;  %v683_v48 = vld [vmem:[%s20677_s1 + $0x13b0] sm:$0xff] }
 0x185   :  { %2408 = vmatpush2.msra.mxu0 %v800_v50  ;;  %2483 = vmatpush2.msra.mxu1 %v1190_v51  ;;  %v660_v50 = vld [vmem:[%s20677_s1 + $0x12f8] sm:$0xff]  ;;  %v659_v51 = vld [vmem:[%s20677_s1 + $0x12f0] sm:$0xff] }
 0x186   :  { %2409 = vmatprep.subr.mxu0 %v788_v53  ;;  %2484 = vmatprep.subr.mxu1 %v1178_v54  ;;  %v1321_v53 = vld [vmem:[%s20677_s1 + $0x27a0] sm:$0xff]  ;;  %v647_v54 = vld [vmem:[%s20677_s1 + $0x1290] sm:$0xff] }
 0x187   :  { %2410 = vmatpush2.msra.mxu0 %v787_v56  ;;  %2485 = vmatpush2.msra.mxu1 %v1177_v57  ;;  %v1320_v56 = vld [vmem:[%s20677_s1 + $0x2798] sm:$0xff]  ;;  %v646_v57 = vld [vmem:[%s20677_s1 + $0x1288] sm:$0xff] }
 0x188   :  { %2411 = vmatprep.subr.mxu0 %v775_v59  ;;  %2486 = vmatprep.subr.mxu1 %v1165_v60  ;;  %v1308_v59 = vld [vmem:[%s20677_s1 + $0x2738] sm:$0xff]  ;;  %v634_v60 = vld [vmem:[%s20677_s1 + $0x1228] sm:$0xff] }
 0x189   :  { %2412 = vmatpush2.msra.mxu0 %v774_v61  ;;  %2487 = vmatpush2.msra.mxu1 %v1164_v63  ;;  %v1932_v28 = vpop.f32.mrf.mxu1  ;;  %v1307_v61 = vld [vmem:[%s20677_s1 + $0x2730] sm:$0xff]  ;;  %v633_v63 = vld [vmem:[%s20677_s1 + $0x1220] sm:$0xff] }
 0x18a   :  { %2413 = vmatprep.subr.mxu0 %v762_v1  ;;  %2488 = vmatprep.subr.mxu1 %v1152_v2  ;;  %v621_v1 = vld [vmem:[%s20677_s1 + $0x11c0] sm:$0xff]  ;;  %v256_v2 = vld [vmem:[%s20677_s1 + $0x658] sm:$0xff] }
 0x18b   :  { %2414 = vmatpush2.msra.mxu0 %v761_v6  ;;  %2489 = vmatpush2.msra.mxu1 %v1151_v7  ;;  %v244_v6 = vld [vmem:[%s20677_s1 + $0x5f8] sm:$0xff] }
 0x18c   :  { %2415 = vmatprep.subr.mxu0 %v749_v9  ;;  %2490 = vmatprep.subr.mxu1 %v1139_v12  ;;  %v608_v7 = vld [vmem:[%s20677_s1 + $0x1158] sm:$0xff]  ;;  %v243_v9 = vld [vmem:[%s20677_s1 + $0x5f0] sm:$0xff] }
 0x18d   :  { %2416 = vmatpush2.msra.mxu0 %v748_v13  ;;  %2491 = vmatpush2.msra.mxu1 %v1138_v14  ;;  %v1861_v27 = vpop.f32.mrf.mxu0  ;;  %v607_v12 = vld [vmem:[%s20677_s1 + $0x1150] sm:$0xff] }
 0x18e   :  { %2417 = vmatprep.subr.mxu0 %v736_v18  ;;  %2492 = vmatprep.subr.mxu1 %v1126_v19  ;;  %v1862_v31 = vadd.f32 %v1861_v27, %v1791_v20  ;;  %v231_v13 = vld [vmem:[%s20677_s1 + $0x590] sm:$0xff]  ;;  %v230_v18 = vld [vmem:[%s20677_s1 + $0x588] sm:$0xff]  ;;  %v569_v27 = vld [vmem:[%s20677_s1 + $0x1020] sm:$0xff] }
 0x18f   :  { %2418 = vmatpush2.msra.mxu0 %v735_v22  ;;  %2493 = vmatpush2.msra.mxu1 %v1125_v23  ;;  %v12740_v34 = vpop.f32.mrf.mxu0  ;;  %v595_v14 = vld [vmem:[%s20677_s1 + $0x10f0] sm:$0xff]  ;;  %v594_v19 = vld [vmem:[%s20677_s1 + $0x10e8] sm:$0xff]  ;;  %v217_v23 = vld [vmem:[%s20677_s1 + $0x520] sm:$0xff] }
 0x190   :  { %2419 = vmatprep.subr.mxu0 %v723_v25  ;;  %2494 = vmatprep.subr.mxu1 %v1113_v26  ;;  %v1933_v38 = vadd.f32 %v1932_v28, %v1862_v31  ;;  %v218_v20 = vld [vmem:[%s20677_s1 + $0x528] sm:$0xff]  ;;  %v581_v25 = vld [vmem:[%s20677_s1 + $0x1080] sm:$0xff]  ;;  %v204_v28 = vld [vmem:[%s20677_s1 + $0x4b8] sm:$0xff] }
 0x191   :  { %2420 = vmatpush2.msra.mxu0 %v722_v29  ;;  %2495 = vmatpush2.msra.mxu1 %v1112_v30  ;;  %v582_v22 = vld [vmem:[%s20677_s1 + $0x1088] sm:$0xff]  ;;  %v205_v26 = vld [vmem:[%s20677_s1 + $0x4c0] sm:$0xff]  ;;  %v568_v29 = vld [vmem:[%s20677_s1 + $0x1018] sm:$0xff] }
 0x192   :  { %2421 = vmatprep.subr.mxu0 %v710_v32  ;;  %2496 = vmatprep.subr.mxu1 %v1100_v33  ;;  %v2003_v43 = vpop.f32.mrf.mxu0  ;;  %v192_v30 = vld [vmem:[%s20677_s1 + $0x458] sm:$0xff]  ;;  %v191_v32 = vld [vmem:[%s20677_s1 + $0x450] sm:$0xff] }
 0x193   :  { %2422 = vmatpush2.msra.mxu0 %v709_v37  ;;  %2497 = vmatpush2.msra.mxu1 %v1099_v10  ;;  %v12760_v46 = vadd.f32 %v2003_v43, %v1933_v38  ;;  %v556_v31 = vld [vmem:[%s20677_s1 + $0xfb8] sm:$0xff]  ;;  %v555_v33 = vld [vmem:[%s20677_s1 + $0xfb0] sm:$0xff]  ;;  %v178_v38 = vld [vmem:[%s20677_s1 + $0x3e8] sm:$0xff] }
 0x194   :  { %2423 = vmatprep.subr.mxu0 %v697_v39  ;;  %2498 = vmatprep.mubr.f32.mxu1 %v11118_v24  ;;  %v179_v37 = vld [vmem:[%s20677_s1 + $0x3f0] sm:$0xff]  ;;  %v542_v39 = vld [vmem:[%s20677_s1 + $0xf48] sm:$0xff]  ;;  %v165_v43 = vld [vmem:[%s20677_s1 + $0x380] sm:$0xff] }
 0x195   :  { %2647 = vmatprep.subr.mxu1 %v673_v40  ;;  %2424 = vmatpush2.msra.mxu0 %v696_v42  ;;  %v543_v10 = vld [vmem:[%s20677_s1 + $0xf50] sm:$0xff]  ;;  %v166_v40 = vld [vmem:[%s20677_s1 + $0x388] sm:$0xff] }
 0x196   :  { %2499 = vmatmul.mubr.f32.vlgmr.msra.gmra.mxu1 %v11090_v15  ;;  %2425 = vmatprep.subr.mxu0 %v684_v45  ;;  %v530_v42 = vld [vmem:[%s20677_s1 + $0xee8] sm:$0xff]  ;;  %v529_v45 = vld [vmem:[%s20677_s1 + $0xee0] sm:$0xff] }
 0x197   :  { %2648 = vmatpush1.msra.mxu1 %v672_v47  ;;  %2426 = vmatpush2.msra.mxu0 %v683_v48  ;;  %v153_v47 = vld [vmem:[%s20677_s1 + $0x320] sm:$0xff] }
 0x198   :  { %2649 = vmatprep.subr.mxu1 %v660_v50  ;;  %2427 = vmatprep.mubr.f32.mxu0 %v10726_v11  ;;  %v517_v48 = vld [vmem:[%s20677_s1 + $0xe80] sm:$0xff]  ;;  %v152_v50 = vld [vmem:[%s20677_s1 + $0x318] sm:$0xff] }
 0x199   :  { %2650 = vmatpush1.msra.mxu1 %v659_v51  ;;  %2428 = vmatmul.mubr.f32.vlgmr.msra.gmra.mxu0 %v10700_v3  ;;  %v516_v51 = vld [vmem:[%s20677_s1 + $0xe78] sm:$0xff] }
 0x19a   :  { %2533 = vmatprep.subr.mxu0 %v1321_v53  ;;  %2651 = vmatprep.subr.mxu1 %v647_v54  ;;  %v140_v53 = vld [vmem:[%s20677_s1 + $0x2b8] sm:$0xff] }
 0x19b   :  { %2534 = vmatpush1.msra.mxu0 %v1320_v56  ;;  %2652 = vmatpush1.msra.mxu1 %v646_v57  ;;  %v504_v54 = vld [vmem:[%s20677_s1 + $0xe18] sm:$0xff]  ;;  %v139_v56 = vld [vmem:[%s20677_s1 + $0x2b0] sm:$0xff] }
 0x19c   :  { %2535 = vmatprep.subr.mxu0 %v1308_v59  ;;  %2653 = vmatprep.subr.mxu1 %v634_v60  ;;  %v503_v57 = vld [vmem:[%s20677_s1 + $0xe10] sm:$0xff] }
 0x19d   :  { %2536 = vmatpush1.msra.mxu0 %v1307_v61  ;;  %2569 = vmatprep.mubr.f32.mxu0 %v20694_v52  ;;  %v127_v59 = vld [vmem:[%s20677_s1 + $0x250] sm:$0xff]  ;;  %v126_v61 = vld [vmem:[%s20677_s1 + $0x248] sm:$0xff] }
 0x19e   :  { %2654 = vmatpush1.msra.mxu1 %v633_v63  ;;  %9371 = vmatmul.mubr.msk.f32.vlgmr.msra.gmra.mxu0 %vm1437_vm0, %v11151_v35  ;;  %v491_v60 = vld [vmem:[%s20677_s1 + $0xdb0] sm:$0xff]  ;;  %v490_v63 = vld [vmem:[%s20677_s1 + $0xda8] sm:$0xff] }
 0x19f   :  { %2576 = vmatprep.subr.mxu0 %v257_v0  ;;  %2655 = vmatprep.subr.mxu1 %v621_v1  ;;  %v114_v0 = vld [vmem:[%s20677_s1 + $0x1e8] sm:$0xff] }
 0x1a0   :  { %2577 = vmatpush1.msra.mxu0 %v256_v2  ;;  %2656 = vmatpush1.msra.mxu1 %v620_v5  ;;  %v478_v1 = vld [vmem:[%s20677_s1 + $0xd48] sm:$0xff]  ;;  %v113_v2 = vld [vmem:[%s20677_s1 + $0x1e0] sm:$0xff] }
 0x1a1   :  { %2578 = vmatprep.subr.mxu0 %v244_v6  ;;  %2657 = vmatprep.subr.mxu1 %v608_v7  ;;  %v477_v5 = vld [vmem:[%s20677_s1 + $0xd40] sm:$0xff] }
 0x1a2   :  { %2579 = vmatpush1.msra.mxu0 %v243_v9  ;;  %2658 = vmatpush1.msra.mxu1 %v607_v12  ;;  %v101_v6 = vld [vmem:[%s20677_s1 + $0x180] sm:$0xff]  ;;  %v100_v9 = vld [vmem:[%s20677_s1 + $0x178] sm:$0xff] }
 0x1a3   :  { %2580 = vmatprep.subr.mxu0 %v231_v13  ;;  %2659 = vmatprep.subr.mxu1 %v595_v14  ;;  %v881_v7 = vld [vmem:[%s20677_s1 + $0x19e0] sm:$0xff]  ;;  %v880_v12 = vld [vmem:[%s20677_s1 + $0x19d8] sm:$0xff] }
 0x1a4   :  { %2581 = vmatpush1.msra.mxu0 %v230_v18  ;;  %2660 = vmatpush1.msra.mxu1 %v594_v19  ;;  %v88_v13 = vld [vmem:[%s20677_s1 + $0x118] sm:$0xff]  ;;  %v87_v18 = vld [vmem:[%s20677_s1 + $0x110] sm:$0xff] }
 0x1a5   :  { %2582 = vmatprep.subr.mxu0 %v218_v20  ;;  %2661 = vmatprep.subr.mxu1 %v582_v22  ;;  %v868_v14 = vld [vmem:[%s20677_s1 + $0x1978] sm:$0xff]  ;;  %v867_v19 = vld [vmem:[%s20677_s1 + $0x1970] sm:$0xff] }
 0x1a6   :  { %2583 = vmatpush1.msra.mxu0 %v217_v23  ;;  %2662 = vmatpush1.msra.mxu1 %v581_v25  ;;  %v75_v20 = vld [vmem:[%s20677_s1 + $0xb0] sm:$0xff]  ;;  %v74_v23 = vld [vmem:[%s20677_s1 + $0xa8] sm:$0xff] }
 0x1a7   :  { %2584 = vmatprep.subr.mxu0 %v205_v26  ;;  %2663 = vmatprep.subr.mxu1 %v569_v27  ;;  %v855_v22 = vld [vmem:[%s20677_s1 + $0x1910] sm:$0xff]  ;;  %v854_v25 = vld [vmem:[%s20677_s1 + $0x1908] sm:$0xff] }
 0x1a8   :  { %2585 = vmatpush1.msra.mxu0 %v204_v28  ;;  %2664 = vmatpush1.msra.mxu1 %v568_v29  ;;  %v62_v26 = vld [vmem:[%s20677_s1 + $0x48] sm:$0xff]  ;;  %v61_v28 = vld [vmem:[%s20677_s1 + $0x40] sm:$0xff] }
 0x1a9   :  { %2586 = vmatprep.subr.mxu0 %v192_v30  ;;  %2665 = vmatprep.subr.mxu1 %v556_v31  ;;  %v842_v27 = vld [vmem:[%s20677_s1 + $0x18a8] sm:$0xff]  ;;  %v841_v29 = vld [vmem:[%s20677_s1 + $0x18a0] sm:$0xff] }
 0x1aa   :  { %2587 = vmatpush1.msra.mxu0 %v191_v32  ;;  %2666 = vmatpush1.msra.mxu1 %v555_v33  ;;  %v465_v30 = vld [vmem:[%s20677_s1 + $0xce0] sm:$0xff]  ;;  %v464_v32 = vld [vmem:[%s20677_s1 + $0xcd8] sm:$0xff] }
 0x1ab   :  { %2588 = vmatprep.subr.mxu0 %v179_v37  ;;  %2667 = vmatprep.subr.mxu1 %v543_v10  ;;  %v829_v31 = vld [vmem:[%s20677_s1 + $0x1840] sm:$0xff]  ;;  %v828_v33 = vld [vmem:[%s20677_s1 + $0x1838] sm:$0xff] }
 0x1ac   :  { %2589 = vmatpush1.msra.mxu0 %v178_v38  ;;  %2668 = vmatpush1.msra.mxu1 %v542_v39  ;;  %v452_v37 = vld [vmem:[%s20677_s1 + $0xc78] sm:$0xff]  ;;  %v451_v38 = vld [vmem:[%s20677_s1 + $0xc70] sm:$0xff] }
 0x1ad   :  { %2590 = vmatprep.subr.mxu0 %v166_v40  ;;  %2669 = vmatprep.subr.mxu1 %v530_v42  ;;  %v816_v10 = vld [vmem:[%s20677_s1 + $0x17d8] sm:$0xff]  ;;  %v815_v39 = vld [vmem:[%s20677_s1 + $0x17d0] sm:$0xff] }
 0x1ae   :  { %2591 = vmatpush1.msra.mxu0 %v165_v43  ;;  %2670 = vmatpush1.msra.mxu1 %v529_v45  ;;  %v439_v40 = vld [vmem:[%s20677_s1 + $0xc10] sm:$0xff]  ;;  %v438_v43 = vld [vmem:[%s20677_s1 + $0xc08] sm:$0xff] }
 0x1af   :  { %2592 = vmatprep.subr.mxu0 %v153_v47  ;;  %2671 = vmatprep.subr.mxu1 %v517_v48  ;;  %v803_v42 = vld [vmem:[%s20677_s1 + $0x1770] sm:$0xff]  ;;  %v802_v45 = vld [vmem:[%s20677_s1 + $0x1768] sm:$0xff] }
 0x1b0   :  { %2593 = vmatpush1.msra.mxu0 %v152_v50  ;;  %2672 = vmatpush1.msra.mxu1 %v516_v51  ;;  %v426_v47 = vld [vmem:[%s20677_s1 + $0xba8] sm:$0xff]  ;;  %v425_v50 = vld [vmem:[%s20677_s1 + $0xba0] sm:$0xff] }
 0x1b1   :  { %2594 = vmatprep.subr.mxu0 %v140_v53  ;;  %2673 = vmatprep.subr.mxu1 %v504_v54  ;;  %v790_v48 = vld [vmem:[%s20677_s1 + $0x1708] sm:$0xff]  ;;  %v789_v51 = vld [vmem:[%s20677_s1 + $0x1700] sm:$0xff] }
 0x1b2   :  { %2595 = vmatpush1.msra.mxu0 %v139_v56  ;;  %2674 = vmatpush1.msra.mxu1 %v503_v57  ;;  %v413_v53 = vld [vmem:[%s20677_s1 + $0xb40] sm:$0xff]  ;;  %v412_v56 = vld [vmem:[%s20677_s1 + $0xb38] sm:$0xff] }
 0x1b3   :  { %2596 = vmatprep.subr.mxu0 %v127_v59  ;;  %2675 = vmatprep.subr.mxu1 %v491_v60  ;;  %v777_v54 = vld [vmem:[%s20677_s1 + $0x16a0] sm:$0xff]  ;;  %v776_v57 = vld [vmem:[%s20677_s1 + $0x1698] sm:$0xff] }
 0x1b4   :  { %2597 = vmatpush1.msra.mxu0 %v126_v61  ;;  %2676 = vmatpush1.msra.mxu1 %v490_v63  ;;  %v400_v59 = vld [vmem:[%s20677_s1 + $0xad8] sm:$0xff]  ;;  %v399_v61 = vld [vmem:[%s20677_s1 + $0xad0] sm:$0xff] }
 0x1b5   :  { %2598 = vmatprep.subr.mxu0 %v114_v0  ;;  %2677 = vmatprep.subr.mxu1 %v478_v1  ;;  %v764_v60 = vld [vmem:[%s20677_s1 + $0x1638] sm:$0xff]  ;;  %v763_v63 = vld [vmem:[%s20677_s1 + $0x1630] sm:$0xff] }
 0x1b6   :  { %2599 = vmatpush1.msra.mxu0 %v113_v2  ;;  %2678 = vmatpush1.msra.mxu1 %v477_v5  ;;  %v387_v0 = vld [vmem:[%s20677_s1 + $0xa70] sm:$0xff]  ;;  %v386_v2 = vld [vmem:[%s20677_s1 + $0xa68] sm:$0xff] }
 0x1b7   :  { %2600 = vmatprep.subr.mxu0 %v101_v6  ;;  %2679 = vmatprep.subr.mxu1 %v881_v7  ;;  %v751_v1 = vld [vmem:[%s20677_s1 + $0x15d0] sm:$0xff]  ;;  %v750_v5 = vld [vmem:[%s20677_s1 + $0x15c8] sm:$0xff] }
 0x1b8   :  { %2601 = vmatpush1.msra.mxu0 %v100_v9  ;;  %2680 = vmatpush2.msra.mxu1 %v880_v12  ;;  %v374_v6 = vld [vmem:[%s20677_s1 + $0xa08] sm:$0xff]  ;;  %v373_v9 = vld [vmem:[%s20677_s1 + $0xa00] sm:$0xff] }
 0x1b9   :  { %2602 = vmatprep.subr.mxu0 %v88_v13  ;;  %2681 = vmatprep.subr.mxu1 %v868_v14  ;;  %v738_v7 = vld [vmem:[%s20677_s1 + $0x1568] sm:$0xff]  ;;  %v737_v12 = vld [vmem:[%s20677_s1 + $0x1560] sm:$0xff] }
 0x1ba   :  { %2603 = vmatpush1.msra.mxu0 %v87_v18  ;;  %2682 = vmatpush2.msra.mxu1 %v867_v19  ;;  %v361_v13 = vld [vmem:[%s20677_s1 + $0x9a0] sm:$0xff]  ;;  %v360_v18 = vld [vmem:[%s20677_s1 + $0x998] sm:$0xff] }
 0x1bb   :  { %2604 = vmatprep.subr.mxu0 %v75_v20  ;;  %2683 = vmatprep.subr.mxu1 %v855_v22  ;;  %v725_v14 = vld [vmem:[%s20677_s1 + $0x1500] sm:$0xff]  ;;  %v724_v19 = vld [vmem:[%s20677_s1 + $0x14f8] sm:$0xff] }
 0x1bc   :  { %2605 = vmatpush1.msra.mxu0 %v74_v23  ;;  %2684 = vmatpush2.msra.mxu1 %v854_v25  ;;  %v348_v20 = vld [vmem:[%s20677_s1 + $0x938] sm:$0xff]  ;;  %v13112_v23 = vsub.s32 4, %v10628_v41  ;;  %v347_v25 = vld [vmem:[%s20677_s1 + $0x930] sm:$0xff] }
 0x1bd   :  { %2606 = vmatprep.subr.mxu0 %v62_v26  ;;  %2685 = vmatprep.subr.mxu1 %v842_v27  ;;  %v712_v22 = vld [vmem:[%s20677_s1 + $0x1498] sm:$0xff]  ;;  %v711_v26 = vld [vmem:[%s20677_s1 + $0x1490] sm:$0xff] }
 0x1be   :  { %2607 = vmatpush1.msra.mxu0 %v61_v28  ;;  %2686 = vmatpush2.msra.mxu1 %v841_v29  ;;  %v335_v27 = vld [vmem:[%s20677_s1 + $0x8d0] sm:$0xff]  ;;  %v334_v29 = vld [vmem:[%s20677_s1 + $0x8c8] sm:$0xff] }
 0x1bf   :  { %2608 = vmatprep.subr.mxu0 %v465_v30  ;;  %2687 = vmatprep.subr.mxu1 %v829_v31  ;;  %v699_v28 = vld [vmem:[%s20677_s1 + $0x1430] sm:$0xff]  ;;  %v698_v30 = vld [vmem:[%s20677_s1 + $0x1428] sm:$0xff] }
 0x1c0   :  { %2609 = vmatpush2.msra.mxu0 %v464_v32  ;;  %2688 = vmatpush2.msra.mxu1 %v828_v33  ;;  %v322_v31 = vld [vmem:[%s20677_s1 + $0x868] sm:$0xff]  ;;  %v1350_v33 = vrot.slane %v12684_v4, %v13112_v23  ;;  %v309_v4 = vld [vmem:[%s20677_s1 + $0x800] sm:$0xff] }
 0x1c1   :  { %2610 = vmatprep.subr.mxu0 %v452_v37  ;;  %2689 = vmatprep.subr.mxu1 %v816_v10  ;;  %v686_v32 = vld [vmem:[%s20677_s1 + $0x13c8] sm:$0xff]  ;;  %v13140_v37 = vpop.f32.mrf.mxu1  ;;  %v13142_v10 = vpop.f32.mrf.mxu0 }
 0x1c2   :  { %2611 = vmatpush2.msra.mxu0 %v451_v38  ;;  %2690 = vmatpush2.msra.mxu1 %v815_v39  ;;  %v321_v38 = vld [vmem:[%s20677_s1 + $0x860] sm:$0xff] }
 0x1c3   :  { %2612 = vmatprep.subr.mxu0 %v439_v40  ;;  %2691 = vmatprep.subr.mxu1 %v803_v42  ;;  %v685_v39 = vld [vmem:[%s20677_s1 + $0x13c0] sm:$0xff]  ;;  %v1323_v40 = vld [vmem:[%s20677_s1 + $0x27b0] sm:$0xff]  ;;  %v308_v42 = vld [vmem:[%s20677_s1 + $0x7f8] sm:$0xff] }
 0x1c4   :  { %2613 = vmatpush2.msra.mxu0 %v438_v43  ;;  %2692 = vmatpush2.msra.mxu1 %v802_v45 }
 0x1c5   :  { %2614 = vmatprep.subr.mxu0 %v426_v47  ;;  %2693 = vmatprep.subr.mxu1 %v790_v48  ;;  %v296_v47 = vld [vmem:[%s20677_s1 + $0x798] sm:$0xff] }
 0x1c6   :  { %2615 = vmatpush2.msra.mxu0 %v425_v50  ;;  %2694 = vmatpush2.msra.mxu1 %v789_v51  ;;  %v1322_v50 = vld [vmem:[%s20677_s1 + $0x27a8] sm:$0xff]  ;;  %v295_v51 = vld [vmem:[%s20677_s1 + $0x790] sm:$0xff] }
 0x1c7   :  { %2616 = vmatprep.subr.mxu0 %v413_v53  ;;  %2695 = vmatprep.subr.mxu1 %v777_v54  ;;  %v1310_v53 = vld [vmem:[%s20677_s1 + $0x2748] sm:$0xff]  ;;  %v283_v54 = vld [vmem:[%s20677_s1 + $0x730] sm:$0xff] }
 0x1c8   :  { %2617 = vmatpush2.msra.mxu0 %v412_v56  ;;  %2696 = vmatpush2.msra.mxu1 %v776_v57  ;;  %v1309_v57 = vld [vmem:[%s20677_s1 + $0x2740] sm:$0xff] }
 0x1c9   :  { %2618 = vmatprep.subr.mxu0 %v400_v59  ;;  %2697 = vmatprep.subr.mxu1 %v764_v60  ;;  %v259_v59 = vld [vmem:[%s20677_s1 + $0x670] sm:$0xff]  ;;  %v282_v60 = vld [vmem:[%s20677_s1 + $0x728] sm:$0xff] }
 0x1ca   :  { %2619 = vmatpush2.msra.mxu0 %v399_v61  ;;  %2698 = vmatpush2.msra.mxu1 %v763_v63  ;;  %v270_v61 = vld [vmem:[%s20677_s1 + $0x6c8] sm:$0xff] }
 0x1cb   :  { %2620 = vmatprep.subr.mxu0 %v387_v0  ;;  %2699 = vmatprep.subr.mxu1 %v751_v1  ;;  %v258_v63 = vld [vmem:[%s20677_s1 + $0x668] sm:$0xff]  ;;  %v269_v0 = vld [vmem:[%s20677_s1 + $0x6c0] sm:$0xff] }
 0x1cc   :  { %2621 = vmatpush2.msra.mxu0 %v386_v2  ;;  %2700 = vmatpush2.msra.mxu1 %v750_v5  ;;  %v246_v1 = vld [vmem:[%s20677_s1 + $0x608] sm:$0xff]  ;;  %v245_v2 = vld [vmem:[%s20677_s1 + $0x600] sm:$0xff] }
 0x1cd   :  { %2622 = vmatprep.subr.mxu0 %v374_v6  ;;  %2701 = vmatprep.subr.mxu1 %v738_v7  ;;  %v2145_v45 = vpop.f32.mrf.mxu1  ;;  %v1089_v5 = vld [vmem:[%s20677_s1 + $0x2060] sm:$0xff]  ;;  %v1088_v7 = vld [vmem:[%s20677_s1 + $0x2058] sm:$0xff] }
 0x1ce   :  { %2623 = vmatpush2.msra.mxu0 %v373_v9  ;;  %2702 = vmatpush2.msra.mxu1 %v737_v12  ;;  %v233_v6 = vld [vmem:[%s20677_s1 + $0x5a0] sm:$0xff]  ;;  %v232_v9 = vld [vmem:[%s20677_s1 + $0x598] sm:$0xff] }
 0x1cf   :  { %2624 = vmatprep.subr.mxu0 %v361_v13  ;;  %2703 = vmatprep.subr.mxu1 %v725_v14  ;;  %v1076_v12 = vld [vmem:[%s20677_s1 + $0x1ff8] sm:$0xff]  ;;  %v1075_v14 = vld [vmem:[%s20677_s1 + $0x1ff0] sm:$0xff] }
 0x1d0   :  { %2625 = vmatpush2.msra.mxu0 %v360_v18  ;;  %2704 = vmatpush2.msra.mxu1 %v724_v19  ;;  %v220_v13 = vld [vmem:[%s20677_s1 + $0x538] sm:$0xff]  ;;  %v219_v18 = vld [vmem:[%s20677_s1 + $0x530] sm:$0xff] }
 0x1d1   :  { %2626 = vmatprep.subr.mxu0 %v348_v20  ;;  %2705 = vmatprep.subr.mxu1 %v712_v22  ;;  %v1063_v19 = vld [vmem:[%s20677_s1 + $0x1f90] sm:$0xff]  ;;  %v1062_v22 = vld [vmem:[%s20677_s1 + $0x1f88] sm:$0xff] }
 0x1d2   :  { %2627 = vmatpush2.msra.mxu0 %v347_v25  ;;  %2706 = vmatpush2.msra.mxu1 %v711_v26  ;;  %v207_v20 = vld [vmem:[%s20677_s1 + $0x4d0] sm:$0xff]  ;;  %v206_v25 = vld [vmem:[%s20677_s1 + $0x4c8] sm:$0xff] }
 0x1d3   :  { %2628 = vmatprep.subr.mxu0 %v335_v27  ;;  %2707 = vmatprep.subr.mxu1 %v699_v28  ;;  %v1050_v26 = vld [vmem:[%s20677_s1 + $0x1f28] sm:$0xff]  ;;  %v1049_v28 = vld [vmem:[%s20677_s1 + $0x1f20] sm:$0xff] }
 0x1d4   :  { %2629 = vmatpush2.msra.mxu0 %v334_v29  ;;  %2708 = vmatpush2.msra.mxu1 %v698_v30  ;;  %v194_v27 = vld [vmem:[%s20677_s1 + $0x468] sm:$0xff]  ;;  %v193_v29 = vld [vmem:[%s20677_s1 + $0x460] sm:$0xff] }
 0x1d5   :  { %2630 = vmatprep.subr.mxu0 %v322_v31  ;;  %2709 = vmatprep.subr.mxu1 %v686_v32  ;;  %v2074_v43 = vpop.f32.mrf.mxu0  ;;  %v1037_v30 = vld [vmem:[%s20677_s1 + $0x1ec0] sm:$0xff]  ;;  %v1036_v32 = vld [vmem:[%s20677_s1 + $0x1eb8] sm:$0xff] }
 0x1d6   :  { %2631 = vmatpush2.msra.mxu0 %v321_v38  ;;  %2710 = vmatpush2.msra.mxu1 %v685_v39  ;;  %v2075_v48 = vadd.f32 %v2074_v43, %v1350_v33  ;;  %v181_v31 = vld [vmem:[%s20677_s1 + $0x400] sm:$0xff]  ;;  %v180_v33 = vld [vmem:[%s20677_s1 + $0x3f8] sm:$0xff]  ;;  %v155_v43 = vld [vmem:[%s20677_s1 + $0x330] sm:$0xff] }
 0x1d7   :  { %2632 = vmatprep.subr.mxu0 %v309_v4  ;;  %2711 = vmatprep.mubr.f32.mxu1 %v10726_v11  ;;  %v1024_v38 = vld [vmem:[%s20677_s1 + $0x1e58] sm:$0xff]  ;;  %v1023_v4 = vld [vmem:[%s20677_s1 + $0x1e50] sm:$0xff] }
 0x1d8   :  { %2817 = vmatprep.subr.mxu1 %v1323_v40  ;;  %2633 = vmatpush2.msra.mxu0 %v308_v42  ;;  %v13175_v56 = vadd.f32 %v2145_v45, %v2075_v48  ;;  %v168_v39 = vld [vmem:[%s20677_s1 + $0x398] sm:$0xff]  ;;  %v167_v40 = vld [vmem:[%s20677_s1 + $0x390] sm:$0xff]  ;;  %v1010_v45 = vld [vmem:[%s20677_s1 + $0x1de8] sm:$0xff] }
 0x1d9   :  { %2712 = vmatmul.mubr.f32.vlgmr.msra.gmra.mxu1 %v10700_v3  ;;  %2634 = vmatprep.subr.mxu0 %v296_v47  ;;  %v1011_v42 = vld [vmem:[%s20677_s1 + $0x1df0] sm:$0xff]  ;;  %v154_v47 = vld [vmem:[%s20677_s1 + $0x328] sm:$0xff] }
 0x1da   :  { %2818 = vmatpush1.msra.mxu1 %v1322_v50  ;;  %2635 = vmatpush2.msra.mxu0 %v295_v51  ;;  %v998_v48 = vld [vmem:[%s20677_s1 + $0x1d88] sm:$0xff]  ;;  %v997_v51 = vld [vmem:[%s20677_s1 + $0x1d80] sm:$0xff] }
 0x1db   :  { %2819 = vmatprep.subr.mxu1 %v1310_v53  ;;  %2636 = vmatprep.subr.mxu0 %v283_v54  ;;  %v142_v50 = vld [vmem:[%s20677_s1 + $0x2c8] sm:$0xff]  ;;  %v141_v53 = vld [vmem:[%s20677_s1 + $0x2c0] sm:$0xff] }
 0x1dc   :  { %2820 = vmatpush1.msra.mxu1 %v1309_v57  ;;  %2853 = vmatprep.mubr.f32.mxu1 %v20694_v52  ;;  %v985_v54 = vld [vmem:[%s20677_s1 + $0x1d20] sm:$0xff] }
 0x1dd   :  { %2860 = vmatprep.subr.mxu1 %v259_v59  ;;  %2637 = vmatpush2.msra.mxu0 %v282_v60  ;;  %v129_v57 = vld [vmem:[%s20677_s1 + $0x260] sm:$0xff]  ;;  %v984_v59 = vld [vmem:[%s20677_s1 + $0x1d18] sm:$0xff] }
 0x1de   :  { %9372 = vmatmul.mubr.msk.f32.vlgmr.msra.gmra.mxu1 %vm1437_vm0, %v11151_v35  ;;  %2638 = vmatprep.subr.mxu0 %v270_v61  ;;  %v128_v60 = vld [vmem:[%s20677_s1 + $0x258] sm:$0xff] }
 0x1df   :  { %2861 = vmatpush1.msra.mxu1 %v258_v63  ;;  %2639 = vmatpush2.msra.mxu0 %v269_v0  ;;  %v972_v61 = vld [vmem:[%s20677_s1 + $0x1cb8] sm:$0xff]  ;;  %v971_v0 = vld [vmem:[%s20677_s1 + $0x1cb0] sm:$0xff] }
 0x1e0   :  { %2862 = vmatprep.subr.mxu1 %v246_v1  ;;  %2640 = vmatprep.mubr.f32.mxu0 %v10716_v8  ;;  %v116_v63 = vld [vmem:[%s20677_s1 + $0x1f8] sm:$0xff]  ;;  %v115_v1 = vld [vmem:[%s20677_s1 + $0x1f0] sm:$0xff] }
 0x1e1   :  { %2863 = vmatpush1.msra.mxu1 %v245_v2  ;;  %2641 = vmatmul.mubr.f32.vlgmr.msra.gmra.mxu0 %v10685_v62  ;;  %v959_v2 = vld [vmem:[%s20677_s1 + $0x1c50] sm:$0xff] }
 0x1e2   :  { %2718 = vmatprep.subr.mxu0 %v1089_v5  ;;  %2864 = vmatprep.subr.mxu1 %v233_v6  ;;  %v103_v5 = vld [vmem:[%s20677_s1 + $0x190] sm:$0xff]  ;;  %v958_v6 = vld [vmem:[%s20677_s1 + $0x1c48] sm:$0xff] }
 0x1e3   :  { %2719 = vmatpush1.msra.mxu0 %v1088_v7  ;;  %2865 = vmatpush1.msra.mxu1 %v232_v9  ;;  %v102_v7 = vld [vmem:[%s20677_s1 + $0x188] sm:$0xff] }
 0x1e4   :  { %2720 = vmatprep.subr.mxu0 %v1076_v12  ;;  %2866 = vmatprep.subr.mxu1 %v220_v13  ;;  %v946_v9 = vld [vmem:[%s20677_s1 + $0x1be8] sm:$0xff]  ;;  %v945_v13 = vld [vmem:[%s20677_s1 + $0x1be0] sm:$0xff] }
 0x1e5   :  { %2721 = vmatpush1.msra.mxu0 %v1075_v14  ;;  %2867 = vmatpush1.msra.mxu1 %v219_v18  ;;  %v90_v12 = vld [vmem:[%s20677_s1 + $0x128] sm:$0xff]  ;;  %v89_v14 = vld [vmem:[%s20677_s1 + $0x120] sm:$0xff] }
 0x1e6   :  { %2722 = vmatprep.subr.mxu0 %v1063_v19  ;;  %2868 = vmatprep.subr.mxu1 %v207_v20  ;;  %v933_v18 = vld [vmem:[%s20677_s1 + $0x1b80] sm:$0xff]  ;;  %v932_v20 = vld [vmem:[%s20677_s1 + $0x1b78] sm:$0xff] }
 0x1e7   :  { %2723 = vmatpush1.msra.mxu0 %v1062_v22  ;;  %2869 = vmatpush1.msra.mxu1 %v206_v25  ;;  %v77_v19 = vld [vmem:[%s20677_s1 + $0xc0] sm:$0xff]  ;;  %v76_v22 = vld [vmem:[%s20677_s1 + $0xb8] sm:$0xff] }
 0x1e8   :  { %2724 = vmatprep.subr.mxu0 %v1050_v26  ;;  %2870 = vmatprep.subr.mxu1 %v194_v27  ;;  %v920_v25 = vld [vmem:[%s20677_s1 + $0x1b18] sm:$0xff]  ;;  %v919_v27 = vld [vmem:[%s20677_s1 + $0x1b10] sm:$0xff] }
 0x1e9   :  { %2725 = vmatpush1.msra.mxu0 %v1049_v28  ;;  %2871 = vmatpush1.msra.mxu1 %v193_v29  ;;  %v64_v26 = vld [vmem:[%s20677_s1 + $0x58] sm:$0xff]  ;;  %v63_v28 = vld [vmem:[%s20677_s1 + $0x50] sm:$0xff] }
 0x1ea   :  { %2726 = vmatprep.subr.mxu0 %v1037_v30  ;;  %2872 = vmatprep.subr.mxu1 %v181_v31  ;;  %v907_v29 = vld [vmem:[%s20677_s1 + $0x1ab0] sm:$0xff]  ;;  %v906_v31 = vld [vmem:[%s20677_s1 + $0x1aa8] sm:$0xff] }
 0x1eb   :  { %2727 = vmatpush1.msra.mxu0 %v1036_v32  ;;  %2873 = vmatpush1.msra.mxu1 %v180_v33  ;;  %v467_v30 = vld [vmem:[%s20677_s1 + $0xcf0] sm:$0xff]  ;;  %v466_v32 = vld [vmem:[%s20677_s1 + $0xce8] sm:$0xff] }
 0x1ec   :  { %2728 = vmatprep.subr.mxu0 %v1024_v38  ;;  %2874 = vmatprep.subr.mxu1 %v168_v39  ;;  %v894_v33 = vld [vmem:[%s20677_s1 + $0x1a48] sm:$0xff]  ;;  %v893_v39 = vld [vmem:[%s20677_s1 + $0x1a40] sm:$0xff] }
 0x1ed   :  { %2729 = vmatpush1.msra.mxu0 %v1023_v4  ;;  %2875 = vmatpush1.msra.mxu1 %v167_v40  ;;  %v454_v38 = vld [vmem:[%s20677_s1 + $0xc88] sm:$0xff]  ;;  %v453_v4 = vld [vmem:[%s20677_s1 + $0xc80] sm:$0xff] }
 0x1ee   :  { %2730 = vmatprep.subr.mxu0 %v1011_v42  ;;  %2876 = vmatprep.subr.mxu1 %v155_v43  ;;  %v1297_v40 = vld [vmem:[%s20677_s1 + $0x26e0] sm:$0xff]  ;;  %v1296_v43 = vld [vmem:[%s20677_s1 + $0x26d8] sm:$0xff] }
 0x1ef   :  { %2731 = vmatpush1.msra.mxu0 %v1010_v45  ;;  %2877 = vmatpush1.msra.mxu1 %v154_v47  ;;  %v441_v42 = vld [vmem:[%s20677_s1 + $0xc20] sm:$0xff]  ;;  %v440_v45 = vld [vmem:[%s20677_s1 + $0xc18] sm:$0xff] }
 0x1f0   :  { %2732 = vmatprep.subr.mxu0 %v998_v48  ;;  %2878 = vmatprep.subr.mxu1 %v142_v50  ;;  %v1284_v47 = vld [vmem:[%s20677_s1 + $0x2678] sm:$0xff]  ;;  %v1283_v50 = vld [vmem:[%s20677_s1 + $0x2670] sm:$0xff] }
 0x1f1   :  { %2733 = vmatpush1.msra.mxu0 %v997_v51  ;;  %2879 = vmatpush1.msra.mxu1 %v141_v53  ;;  %v428_v48 = vld [vmem:[%s20677_s1 + $0xbb8] sm:$0xff]  ;;  %v427_v51 = vld [vmem:[%s20677_s1 + $0xbb0] sm:$0xff] }
 0x1f2   :  { %2734 = vmatprep.subr.mxu0 %v985_v54  ;;  %2880 = vmatprep.subr.mxu1 %v129_v57  ;;  %v1271_v53 = vld [vmem:[%s20677_s1 + $0x2610] sm:$0xff]  ;;  %v1270_v57 = vld [vmem:[%s20677_s1 + $0x2608] sm:$0xff] }
 0x1f3   :  { %2735 = vmatpush1.msra.mxu0 %v984_v59  ;;  %2881 = vmatpush1.msra.mxu1 %v128_v60  ;;  %v415_v54 = vld [vmem:[%s20677_s1 + $0xb50] sm:$0xff]  ;;  %v414_v59 = vld [vmem:[%s20677_s1 + $0xb48] sm:$0xff] }
 0x1f4   :  { %2736 = vmatprep.subr.mxu0 %v972_v61  ;;  %2882 = vmatprep.subr.mxu1 %v116_v63  ;;  %v1258_v60 = vld [vmem:[%s20677_s1 + $0x25a8] sm:$0xff]  ;;  %v1257_v63 = vld [vmem:[%s20677_s1 + $0x25a0] sm:$0xff] }
 0x1f5   :  { %2737 = vmatpush1.msra.mxu0 %v971_v0  ;;  %2883 = vmatpush1.msra.mxu1 %v115_v1  ;;  %v402_v61 = vld [vmem:[%s20677_s1 + $0xae8] sm:$0xff]  ;;  %v401_v0 = vld [vmem:[%s20677_s1 + $0xae0] sm:$0xff] }
 0x1f6   :  { %2738 = vmatprep.subr.mxu0 %v959_v2  ;;  %2884 = vmatprep.subr.mxu1 %v103_v5  ;;  %v1245_v1 = vld [vmem:[%s20677_s1 + $0x2540] sm:$0xff]  ;;  %v1244_v5 = vld [vmem:[%s20677_s1 + $0x2538] sm:$0xff] }
 0x1f7   :  { %2739 = vmatpush1.msra.mxu0 %v958_v6  ;;  %2885 = vmatpush1.msra.mxu1 %v102_v7  ;;  %v389_v2 = vld [vmem:[%s20677_s1 + $0xa80] sm:$0xff]  ;;  %v388_v6 = vld [vmem:[%s20677_s1 + $0xa78] sm:$0xff] }
 0x1f8   :  { %2740 = vmatprep.subr.mxu0 %v946_v9  ;;  %2886 = vmatprep.subr.mxu1 %v90_v12  ;;  %v1232_v7 = vld [vmem:[%s20677_s1 + $0x24d8] sm:$0xff]  ;;  %v1231_v12 = vld [vmem:[%s20677_s1 + $0x24d0] sm:$0xff] }
 0x1f9   :  { %2741 = vmatpush1.msra.mxu0 %v945_v13  ;;  %2887 = vmatpush1.msra.mxu1 %v89_v14  ;;  %v376_v9 = vld [vmem:[%s20677_s1 + $0xa18] sm:$0xff]  ;;  %v375_v13 = vld [vmem:[%s20677_s1 + $0xa10] sm:$0xff] }
 0x1fa   :  { %2742 = vmatprep.subr.mxu0 %v933_v18  ;;  %2888 = vmatprep.subr.mxu1 %v77_v19  ;;  %v1219_v14 = vld [vmem:[%s20677_s1 + $0x2470] sm:$0xff]  ;;  %v1218_v19 = vld [vmem:[%s20677_s1 + $0x2468] sm:$0xff] }
 0x1fb   :  { %2743 = vmatpush1.msra.mxu0 %v932_v20  ;;  %2889 = vmatpush1.msra.mxu1 %v76_v22  ;;  %v363_v18 = vld [vmem:[%s20677_s1 + $0x9b0] sm:$0xff]  ;;  %v362_v20 = vld [vmem:[%s20677_s1 + $0x9a8] sm:$0xff] }
 0x1fc   :  { %2744 = vmatprep.subr.mxu0 %v920_v25  ;;  %2890 = vmatprep.subr.mxu1 %v64_v26  ;;  %v1206_v22 = vld [vmem:[%s20677_s1 + $0x2408] sm:$0xff]  ;;  %v1205_v26 = vld [vmem:[%s20677_s1 + $0x2400] sm:$0xff] }
 0x1fd   :  { %2745 = vmatpush1.msra.mxu0 %v919_v27  ;;  %2891 = vmatpush1.msra.mxu1 %v63_v28  ;;  %v350_v25 = vld [vmem:[%s20677_s1 + $0x948] sm:$0xff]  ;;  %v349_v27 = vld [vmem:[%s20677_s1 + $0x940] sm:$0xff] }
 0x1fe   :  { %2746 = vmatprep.subr.mxu0 %v907_v29  ;;  %2892 = vmatprep.subr.mxu1 %v467_v30  ;;  %v1193_v28 = vld [vmem:[%s20677_s1 + $0x23a0] sm:$0xff]  ;;  %v1192_v30 = vld [vmem:[%s20677_s1 + $0x2398] sm:$0xff] }
 0x1ff   :  { %2747 = vmatpush1.msra.mxu0 %v906_v31  ;;  %2893 = vmatpush2.msra.mxu1 %v466_v32  ;;  %v337_v29 = vld [vmem:[%s20677_s1 + $0x8e0] sm:$0xff]  ;;  %v336_v31 = vld [vmem:[%s20677_s1 + $0x8d8] sm:$0xff] }
 0x200   :  { %2748 = vmatprep.subr.mxu0 %v894_v33  ;;  %2894 = vmatprep.subr.mxu1 %v454_v38  ;;  %v1180_v32 = vld [vmem:[%s20677_s1 + $0x2338] sm:$0xff]  ;;  %v1179_v38 = vld [vmem:[%s20677_s1 + $0x2330] sm:$0xff] }
 0x201   :  { %2749 = vmatpush1.msra.mxu0 %v893_v39  ;;  %2895 = vmatpush2.msra.mxu1 %v453_v4  ;;  %v324_v33 = vld [vmem:[%s20677_s1 + $0x878] sm:$0xff]  ;;  %v323_v39 = vld [vmem:[%s20677_s1 + $0x870] sm:$0xff] }
 0x202   :  { %2750 = vmatprep.subr.mxu0 %v1297_v40  ;;  %2896 = vmatprep.subr.mxu1 %v441_v42  ;;  %v1167_v4 = vld [vmem:[%s20677_s1 + $0x22d0] sm:$0xff]  ;;  %v1166_v42 = vld [vmem:[%s20677_s1 + $0x22c8] sm:$0xff] }
 0x203   :  { %2751 = vmatpush2.msra.mxu0 %v1296_v43  ;;  %2897 = vmatpush2.msra.mxu1 %v440_v45  ;;  %v311_v40 = vld [vmem:[%s20677_s1 + $0x810] sm:$0xff]  ;;  %v310_v43 = vld [vmem:[%s20677_s1 + $0x808] sm:$0xff]  ;;  %v13531_v45 = vpop.f32.mrf.mxu0 }
 0x204   :  { %2752 = vmatprep.subr.mxu0 %v1284_v47  ;;  %2898 = vmatprep.subr.mxu1 %v428_v48  ;;  %v1154_v47 = vld [vmem:[%s20677_s1 + $0x2268] sm:$0xff] }
 0x205   :  { %2753 = vmatpush2.msra.mxu0 %v1283_v50  ;;  %2899 = vmatpush2.msra.mxu1 %v427_v51  ;;  %v298_v48 = vld [vmem:[%s20677_s1 + $0x7a8] sm:$0xff]  ;;  %v1153_v50 = vld [vmem:[%s20677_s1 + $0x2260] sm:$0xff] }
 0x206   :  { %2754 = vmatprep.subr.mxu0 %v1271_v53  ;;  %2900 = vmatprep.subr.mxu1 %v415_v54  ;;  %v297_v51 = vld [vmem:[%s20677_s1 + $0x7a0] sm:$0xff] }
 0x207   :  { %2755 = vmatpush2.msra.mxu0 %v1270_v57  ;;  %2901 = vmatpush2.msra.mxu1 %v414_v59  ;;  %v1141_v53 = vld [vmem:[%s20677_s1 + $0x2200] sm:$0xff]  ;;  %v1140_v59 = vld [vmem:[%s20677_s1 + $0x21f8] sm:$0xff] }
 0x208   :  { %2756 = vmatprep.subr.mxu0 %v1258_v60  ;;  %2902 = vmatprep.subr.mxu1 %v402_v61  ;;  %v285_v54 = vld [vmem:[%s20677_s1 + $0x740] sm:$0xff]  ;;  %v284_v60 = vld [vmem:[%s20677_s1 + $0x738] sm:$0xff] }
 0x209   :  { %2757 = vmatpush2.msra.mxu0 %v1257_v63  ;;  %2903 = vmatpush2.msra.mxu1 %v401_v0  ;;  %v1128_v63 = vld [vmem:[%s20677_s1 + $0x2198] sm:$0xff] }
 0x20a   :  { %2758 = vmatprep.subr.mxu0 %v1245_v1  ;;  %2904 = vmatprep.subr.mxu1 %v389_v2  ;;  %v272_v0 = vld [vmem:[%s20677_s1 + $0x6d8] sm:$0xff]  ;;  %v1127_v1 = vld [vmem:[%s20677_s1 + $0x2190] sm:$0xff] }
 0x20b   :  { %2759 = vmatpush2.msra.mxu0 %v1244_v5  ;;  %2905 = vmatpush2.msra.mxu1 %v388_v6  ;;  %v1115_v2 = vld [vmem:[%s20677_s1 + $0x2130] sm:$0xff]  ;;  %v1114_v6 = vld [vmem:[%s20677_s1 + $0x2128] sm:$0xff] }
 0x20c   :  { %2760 = vmatprep.subr.mxu0 %v1232_v7  ;;  %2906 = vmatprep.subr.mxu1 %v376_v9  ;;  %v1091_v5 = vld [vmem:[%s20677_s1 + $0x2070] sm:$0xff]  ;;  %v1102_v7 = vld [vmem:[%s20677_s1 + $0x20c8] sm:$0xff] }
 0x20d   :  { %2761 = vmatpush2.msra.mxu0 %v1231_v12  ;;  %2907 = vmatpush2.msra.mxu1 %v375_v13  ;;  %v1090_v9 = vld [vmem:[%s20677_s1 + $0x2068] sm:$0xff]  ;;  %v1101_v12 = vld [vmem:[%s20677_s1 + $0x20c0] sm:$0xff] }
 0x20e   :  { %2762 = vmatprep.subr.mxu0 %v1219_v14  ;;  %2908 = vmatprep.subr.mxu1 %v363_v18  ;;  %v1078_v13 = vld [vmem:[%s20677_s1 + $0x2008] sm:$0xff]  ;;  %v1077_v14 = vld [vmem:[%s20677_s1 + $0x2000] sm:$0xff]  ;;  %v675_v18 = vld [vmem:[%s20677_s1 + $0x1370] sm:$0xff] }
 0x20f   :  { %2763 = vmatpush2.msra.mxu0 %v1218_v19  ;;  %2909 = vmatpush2.msra.mxu1 %v362_v20  ;;  %v1065_v19 = vld [vmem:[%s20677_s1 + $0x1fa0] sm:$0xff]  ;;  %v674_v20 = vld [vmem:[%s20677_s1 + $0x1368] sm:$0xff] }
 0x210   :  { %2764 = vmatprep.subr.mxu0 %v1206_v22  ;;  %2910 = vmatprep.subr.mxu1 %v350_v25  ;;  %v1064_v22 = vld [vmem:[%s20677_s1 + $0x1f98] sm:$0xff]  ;;  %v662_v25 = vld [vmem:[%s20677_s1 + $0x1308] sm:$0xff] }
 0x211   :  { %2765 = vmatpush2.msra.mxu0 %v1205_v26  ;;  %2911 = vmatpush2.msra.mxu1 %v349_v27  ;;  %v1052_v26 = vld [vmem:[%s20677_s1 + $0x1f38] sm:$0xff]  ;;  %v661_v27 = vld [vmem:[%s20677_s1 + $0x1300] sm:$0xff] }
 0x212   :  { %2766 = vmatprep.subr.mxu0 %v1193_v28  ;;  %2912 = vmatprep.subr.mxu1 %v337_v29  ;;  %v1051_v28 = vld [vmem:[%s20677_s1 + $0x1f30] sm:$0xff]  ;;  %v649_v29 = vld [vmem:[%s20677_s1 + $0x12a0] sm:$0xff] }
 0x213   :  { %2767 = vmatpush2.msra.mxu0 %v1192_v30  ;;  %2913 = vmatpush2.msra.mxu1 %v336_v31  ;;  %v1039_v30 = vld [vmem:[%s20677_s1 + $0x1ed0] sm:$0xff]  ;;  %v648_v31 = vld [vmem:[%s20677_s1 + $0x1298] sm:$0xff] }
 0x214   :  { %2768 = vmatprep.subr.mxu0 %v1180_v32  ;;  %2914 = vmatprep.subr.mxu1 %v324_v33  ;;  %v1038_v32 = vld [vmem:[%s20677_s1 + $0x1ec8] sm:$0xff]  ;;  %v636_v33 = vld [vmem:[%s20677_s1 + $0x1238] sm:$0xff] }
 0x215   :  { %2769 = vmatpush2.msra.mxu0 %v1179_v38  ;;  %2915 = vmatpush2.msra.mxu1 %v323_v39  ;;  %v1026_v38 = vld [vmem:[%s20677_s1 + $0x1e68] sm:$0xff]  ;;  %v635_v39 = vld [vmem:[%s20677_s1 + $0x1230] sm:$0xff] }
 0x216   :  { %2770 = vmatprep.subr.mxu0 %v1167_v4  ;;  %2916 = vmatprep.subr.mxu1 %v311_v40  ;;  %v1025_v4 = vld [vmem:[%s20677_s1 + $0x1e60] sm:$0xff]  ;;  %v623_v40 = vld [vmem:[%s20677_s1 + $0x11d0] sm:$0xff] }
 0x217   :  { %2771 = vmatpush2.msra.mxu0 %v1166_v42  ;;  %2917 = vmatpush2.msra.mxu1 %v310_v43  ;;  %v2216_v57 = vpop.f32.mrf.mxu0  ;;  %v1013_v42 = vld [vmem:[%s20677_s1 + $0x1e00] sm:$0xff]  ;;  %v622_v43 = vld [vmem:[%s20677_s1 + $0x11c8] sm:$0xff] }
 0x218   :  { %2772 = vmatprep.subr.mxu0 %v1154_v47  ;;  %2918 = vmatprep.subr.mxu1 %v298_v48  ;;  %v13558_v61 = vadd.f32 %v2216_v57, %v13175_v56  ;;  %v271_v56 = vld [vmem:[%s20677_s1 + $0x6d0] sm:$0xff]  ;;  %v1012_v47 = vld [vmem:[%s20677_s1 + $0x1df8] sm:$0xff]  ;;  %v610_v48 = vld [vmem:[%s20677_s1 + $0x1168] sm:$0xff] }
 0x219   :  { %2773 = vmatpush2.msra.mxu0 %v1153_v50  ;;  %2919 = vmatpush2.msra.mxu1 %v297_v51  ;;  %v1000_v50 = vld [vmem:[%s20677_s1 + $0x1d98] sm:$0xff]  ;;  %v609_v51 = vld [vmem:[%s20677_s1 + $0x1160] sm:$0xff]  ;;  %v987_v57 = vld [vmem:[%s20677_s1 + $0x1d30] sm:$0xff] }
 0x21a   :  { %2774 = vmatprep.subr.mxu0 %v1141_v53  ;;  %2920 = vmatprep.subr.mxu1 %v285_v54  ;;  %v999_v53 = vld [vmem:[%s20677_s1 + $0x1d90] sm:$0xff]  ;;  %v597_v54 = vld [vmem:[%s20677_s1 + $0x1100] sm:$0xff] }
 0x21b   :  { %2775 = vmatpush2.msra.mxu0 %v1140_v59  ;;  %2921 = vmatpush2.msra.mxu1 %v284_v60  ;;  %v596_v59 = vld [vmem:[%s20677_s1 + $0x10f8] sm:$0xff]  ;;  %v986_v60 = vld [vmem:[%s20677_s1 + $0x1d28] sm:$0xff] }
 0x21c   :  { %2776 = vmatprep.subr.mxu0 %v1128_v63  ;;  %2922 = vmatprep.subr.mxu1 %v272_v0  ;;  %v584_v63 = vld [vmem:[%s20677_s1 + $0x1098] sm:$0xff]  ;;  %v974_v0 = vld [vmem:[%s20677_s1 + $0x1cc8] sm:$0xff] }
 0x21d   :  { %2777 = vmatpush2.msra.mxu0 %v1127_v1  ;;  %2923 = vmatpush2.msra.mxu1 %v271_v56  ;;  %v583_v1 = vld [vmem:[%s20677_s1 + $0x1090] sm:$0xff]  ;;  %v973_v56 = vld [vmem:[%s20677_s1 + $0x1cc0] sm:$0xff] }
 0x21e   :  { %2778 = vmatprep.subr.mxu0 %v1115_v2  ;;  %2924 = vmatprep.mubr.f32.mxu1 %v10716_v8  ;;  %v571_v2 = vld [vmem:[%s20677_s1 + $0x1030] sm:$0xff] }
 0x21f   :  { %3002 = vmatprep.subr.mxu1 %v1091_v5  ;;  %2779 = vmatpush2.msra.mxu0 %v1114_v6  ;;  %v961_v5 = vld [vmem:[%s20677_s1 + $0x1c60] sm:$0xff]  ;;  %v570_v6 = vld [vmem:[%s20677_s1 + $0x1028] sm:$0xff] }
 0x220   :  { %2925 = vmatmul.mubr.f32.vlgmr.msra.gmra.mxu1 %v10685_v62  ;;  %2780 = vmatprep.subr.mxu0 %v1102_v7  ;;  %v960_v7 = vld [vmem:[%s20677_s1 + $0x1c58] sm:$0xff] }
 0x221   :  { %3003 = vmatpush1.msra.mxu1 %v1090_v9  ;;  %2781 = vmatpush2.msra.mxu0 %v1101_v12  ;;  %v558_v9 = vld [vmem:[%s20677_s1 + $0xfc8] sm:$0xff]  ;;  %v948_v12 = vld [vmem:[%s20677_s1 + $0x1bf8] sm:$0xff] }
 0x222   :  { %3004 = vmatprep.subr.mxu1 %v1078_v13  ;;  %2782 = vmatprep.mubr.f32.mxu0 %v11118_v24  ;;  %v557_v13 = vld [vmem:[%s20677_s1 + $0xfc0] sm:$0xff] }
 0x223   :  { %3005 = vmatpush1.msra.mxu1 %v1077_v14  ;;  %2783 = vmatmul.mubr.f32.vlgmr.msra.gmra.mxu0 %v11090_v15  ;;  %v947_v14 = vld [vmem:[%s20677_s1 + $0x1bf0] sm:$0xff] }
 0x224   :  { %2931 = vmatprep.subr.mxu0 %v675_v18  ;;  %3006 = vmatprep.subr.mxu1 %v1065_v19  ;;  %v545_v18 = vld [vmem:[%s20677_s1 + $0xf60] sm:$0xff]  ;;  %v935_v19 = vld [vmem:[%s20677_s1 + $0x1b90] sm:$0xff] }
 0x225   :  { %2932 = vmatpush1.msra.mxu0 %v674_v20  ;;  %3007 = vmatpush1.msra.mxu1 %v1064_v22  ;;  %v544_v20 = vld [vmem:[%s20677_s1 + $0xf58] sm:$0xff]  ;;  %v934_v22 = vld [vmem:[%s20677_s1 + $0x1b88] sm:$0xff] }
 0x226   :  { %2933 = vmatprep.subr.mxu0 %v662_v25  ;;  %3008 = vmatprep.subr.mxu1 %v1052_v26  ;;  %v532_v25 = vld [vmem:[%s20677_s1 + $0xef8] sm:$0xff]  ;;  %v922_v26 = vld [vmem:[%s20677_s1 + $0x1b28] sm:$0xff] }
 0x227   :  { %2934 = vmatpush1.msra.mxu0 %v661_v27  ;;  %3009 = vmatpush1.msra.mxu1 %v1051_v28  ;;  %v531_v27 = vld [vmem:[%s20677_s1 + $0xef0] sm:$0xff]  ;;  %v921_v28 = vld [vmem:[%s20677_s1 + $0x1b20] sm:$0xff] }
 0x228   :  { %2935 = vmatprep.subr.mxu0 %v649_v29  ;;  %3010 = vmatprep.subr.mxu1 %v1039_v30  ;;  %v519_v29 = vld [vmem:[%s20677_s1 + $0xe90] sm:$0xff]  ;;  %v909_v30 = vld [vmem:[%s20677_s1 + $0x1ac0] sm:$0xff] }
 0x229   :  { %2936 = vmatpush1.msra.mxu0 %v648_v31  ;;  %3011 = vmatpush1.msra.mxu1 %v1038_v32  ;;  %v518_v31 = vld [vmem:[%s20677_s1 + $0xe88] sm:$0xff]  ;;  %v908_v32 = vld [vmem:[%s20677_s1 + $0x1ab8] sm:$0xff] }
 0x22a   :  { %2937 = vmatprep.subr.mxu0 %v636_v33  ;;  %3012 = vmatprep.subr.mxu1 %v1026_v38  ;;  %v506_v33 = vld [vmem:[%s20677_s1 + $0xe28] sm:$0xff]  ;;  %v896_v38 = vld [vmem:[%s20677_s1 + $0x1a58] sm:$0xff] }
 0x22b   :  { %2938 = vmatpush1.msra.mxu0 %v635_v39  ;;  %3013 = vmatpush1.msra.mxu1 %v1025_v4  ;;  %v505_v39 = vld [vmem:[%s20677_s1 + $0xe20] sm:$0xff]  ;;  %v895_v4 = vld [vmem:[%s20677_s1 + $0x1a50] sm:$0xff] }
 0x22c   :  { %2939 = vmatprep.subr.mxu0 %v623_v40  ;;  %3014 = vmatprep.subr.mxu1 %v1013_v42  ;;  %v493_v40 = vld [vmem:[%s20677_s1 + $0xdc0] sm:$0xff]  ;;  %v1299_v42 = vld [vmem:[%s20677_s1 + $0x26f0] sm:$0xff] }
 0x22d   :  { %2940 = vmatpush1.msra.mxu0 %v622_v43  ;;  %3015 = vmatpush1.msra.mxu1 %v1012_v47  ;;  %v492_v43 = vld [vmem:[%s20677_s1 + $0xdb8] sm:$0xff]  ;;  %v1298_v47 = vld [vmem:[%s20677_s1 + $0x26e8] sm:$0xff] }
 0x22e   :  { %2941 = vmatprep.subr.mxu0 %v610_v48  ;;  %3016 = vmatprep.subr.mxu1 %v1000_v50  ;;  %v480_v48 = vld [vmem:[%s20677_s1 + $0xd58] sm:$0xff]  ;;  %v1286_v50 = vld [vmem:[%s20677_s1 + $0x2688] sm:$0xff] }
 0x22f   :  { %2942 = vmatpush1.msra.mxu0 %v609_v51  ;;  %3017 = vmatpush1.msra.mxu1 %v999_v53  ;;  %v479_v51 = vld [vmem:[%s20677_s1 + $0xd50] sm:$0xff]  ;;  %v1285_v53 = vld [vmem:[%s20677_s1 + $0x2680] sm:$0xff] }
 0x230   :  { %2943 = vmatprep.subr.mxu0 %v597_v54  ;;  %3018 = vmatprep.subr.mxu1 %v987_v57  ;;  %v883_v54 = vld [vmem:[%s20677_s1 + $0x19f0] sm:$0xff]  ;;  %v1273_v57 = vld [vmem:[%s20677_s1 + $0x2620] sm:$0xff] }
 0x231   :  { %2944 = vmatpush1.msra.mxu0 %v596_v59  ;;  %3019 = vmatpush1.msra.mxu1 %v986_v60  ;;  %v882_v59 = vld [vmem:[%s20677_s1 + $0x19e8] sm:$0xff]  ;;  %v1272_v60 = vld [vmem:[%s20677_s1 + $0x2618] sm:$0xff] }
 0x232   :  { %2945 = vmatprep.subr.mxu0 %v584_v63  ;;  %3020 = vmatprep.subr.mxu1 %v974_v0  ;;  %v870_v63 = vld [vmem:[%s20677_s1 + $0x1988] sm:$0xff]  ;;  %v1260_v0 = vld [vmem:[%s20677_s1 + $0x25b8] sm:$0xff] }
 0x233   :  { %2946 = vmatpush1.msra.mxu0 %v583_v1  ;;  %3021 = vmatpush1.msra.mxu1 %v973_v56  ;;  %v869_v1 = vld [vmem:[%s20677_s1 + $0x1980] sm:$0xff]  ;;  %v1259_v56 = vld [vmem:[%s20677_s1 + $0x25b0] sm:$0xff] }
 0x234   :  { %2947 = vmatprep.subr.mxu0 %v571_v2  ;;  %3022 = vmatprep.subr.mxu1 %v961_v5  ;;  %v857_v2 = vld [vmem:[%s20677_s1 + $0x1920] sm:$0xff]  ;;  %v1247_v5 = vld [vmem:[%s20677_s1 + $0x2550] sm:$0xff] }
 0x235   :  { %2948 = vmatpush1.msra.mxu0 %v570_v6  ;;  %3023 = vmatpush1.msra.mxu1 %v960_v7  ;;  %v856_v6 = vld [vmem:[%s20677_s1 + $0x1918] sm:$0xff]  ;;  %v1246_v7 = vld [vmem:[%s20677_s1 + $0x2548] sm:$0xff] }
 0x236   :  { %2949 = vmatprep.subr.mxu0 %v558_v9  ;;  %3024 = vmatprep.subr.mxu1 %v948_v12  ;;  %v844_v9 = vld [vmem:[%s20677_s1 + $0x18b8] sm:$0xff]  ;;  %v1234_v12 = vld [vmem:[%s20677_s1 + $0x24e8] sm:$0xff] }
 0x237   :  { %2950 = vmatpush1.msra.mxu0 %v557_v13  ;;  %3025 = vmatpush1.msra.mxu1 %v947_v14  ;;  %v843_v13 = vld [vmem:[%s20677_s1 + $0x18b0] sm:$0xff]  ;;  %v1233_v14 = vld [vmem:[%s20677_s1 + $0x24e0] sm:$0xff] }
 0x238   :  { %2951 = vmatprep.subr.mxu0 %v545_v18  ;;  %3026 = vmatprep.subr.mxu1 %v935_v19  ;;  %v831_v18 = vld [vmem:[%s20677_s1 + $0x1850] sm:$0xff]  ;;  %v1221_v19 = vld [vmem:[%s20677_s1 + $0x2480] sm:$0xff] }
 0x239   :  { %2952 = vmatpush1.msra.mxu0 %v544_v20  ;;  %3027 = vmatpush1.msra.mxu1 %v934_v22  ;;  %v830_v20 = vld [vmem:[%s20677_s1 + $0x1848] sm:$0xff]  ;;  %v1220_v22 = vld [vmem:[%s20677_s1 + $0x2478] sm:$0xff] }
 0x23a   :  { %2953 = vmatprep.subr.mxu0 %v532_v25  ;;  %3028 = vmatprep.subr.mxu1 %v922_v26  ;;  %v13852_v25 = vpop.f32.mrf.mxu1  ;;  %v818_v26 = vld [vmem:[%s20677_s1 + $0x17e8] sm:$0xff] }
 0x23b   :  { %2954 = vmatpush1.msra.mxu0 %v531_v27  ;;  %3029 = vmatpush1.msra.mxu1 %v921_v28  ;;  %v1208_v27 = vld [vmem:[%s20677_s1 + $0x2418] sm:$0xff]  ;;  %v817_v28 = vld [vmem:[%s20677_s1 + $0x17e0] sm:$0xff] }
 0x23c   :  { %2955 = vmatprep.subr.mxu0 %v519_v29  ;;  %3030 = vmatprep.subr.mxu1 %v909_v30  ;;  %v1207_v29 = vld [vmem:[%s20677_s1 + $0x2410] sm:$0xff]  ;;  %v13866_v30 = vpop.f32.mrf.mxu1 }
 0x23d   :  { %2956 = vmatpush1.msra.mxu0 %v518_v31  ;;  %3031 = vmatpush1.msra.mxu1 %v908_v32  ;;  %v805_v31 = vld [vmem:[%s20677_s1 + $0x1780] sm:$0xff]  ;;  %v1195_v32 = vld [vmem:[%s20677_s1 + $0x23b0] sm:$0xff] }
 0x23e   :  { %2957 = vmatprep.subr.mxu0 %v506_v33  ;;  %3032 = vmatprep.subr.mxu1 %v896_v38  ;;  %v804_v33 = vld [vmem:[%s20677_s1 + $0x1778] sm:$0xff]  ;;  %v1194_v38 = vld [vmem:[%s20677_s1 + $0x23a8] sm:$0xff] }
 0x23f   :  { %2958 = vmatpush1.msra.mxu0 %v505_v39  ;;  %3033 = vmatpush1.msra.mxu1 %v895_v4  ;;  %v792_v39 = vld [vmem:[%s20677_s1 + $0x1718] sm:$0xff]  ;;  %v1182_v4 = vld [vmem:[%s20677_s1 + $0x2348] sm:$0xff] }
 0x240   :  { %2959 = vmatprep.subr.mxu0 %v493_v40  ;;  %3034 = vmatprep.subr.mxu1 %v1299_v42  ;;  %v20692_v40 = vsub.s32 6, %v10628_v41  ;;  %v791_v42 = vld [vmem:[%s20677_s1 + $0x1710] sm:$0xff] }
 0x241   :  { %2960 = vmatpush1.msra.mxu0 %v492_v43  ;;  %3035 = vmatpush2.msra.mxu1 %v1298_v47  ;;  %v1181_v43 = vld [vmem:[%s20677_s1 + $0x2340] sm:$0xff]  ;;  %v13893_v47 = vpop.f32.mrf.mxu1 }
 0x242   :  { %2961 = vmatprep.subr.mxu0 %v480_v48  ;;  %3036 = vmatprep.subr.mxu1 %v1286_v50  ;;  %v779_v48 = vld [vmem:[%s20677_s1 + $0x16b0] sm:$0xff]  ;;  %v1169_v50 = vld [vmem:[%s20677_s1 + $0x22e0] sm:$0xff] }
 0x243   :  { %2962 = vmatpush1.msra.mxu0 %v479_v51  ;;  %3037 = vmatpush2.msra.mxu1 %v1285_v53  ;;  %v778_v51 = vld [vmem:[%s20677_s1 + $0x16a8] sm:$0xff]  ;;  %v1168_v53 = vld [vmem:[%s20677_s1 + $0x22d8] sm:$0xff] }
 0x244   :  { %2963 = vmatprep.subr.mxu0 %v883_v54  ;;  %3038 = vmatprep.subr.mxu1 %v1273_v57  ;;  %v2358_v54 = vpop.f32.mrf.mxu1  ;;  %v766_v57 = vld [vmem:[%s20677_s1 + $0x1648] sm:$0xff] }
 0x245   :  { %2964 = vmatpush2.msra.mxu0 %v882_v59  ;;  %3039 = vmatpush2.msra.mxu1 %v1272_v60  ;;  %v1156_v59 = vld [vmem:[%s20677_s1 + $0x2278] sm:$0xff]  ;;  %v13916_v60 = vld [vmem:[%s20678_s2] sm:$0xff] }
 0x246   :  { %2965 = vmatprep.subr.mxu0 %v870_v63  ;;  %3040 = vmatprep.subr.mxu1 %v1260_v0  ;;  %v1358_v63 = vrot.slane %v13916_v60, %v20692_v40  ;;  %v765_v0 = vld [vmem:[%s20677_s1 + $0x1640] sm:$0xff]  ;;  %v19013_v40 = vld [vmem:[%s20683_s7 + $0x30] sm:$0xff] }
 0x247   :  { %2966 = vmatpush2.msra.mxu0 %v869_v1  ;;  %3041 = vmatpush2.msra.mxu1 %v1259_v56  ;;  %v1155_v1 = vld [vmem:[%s20677_s1 + $0x2270] sm:$0xff]  ;;  %v753_v56 = vld [vmem:[%s20677_s1 + $0x15e0] sm:$0xff]  ;;  %20792 = vst [vmem:[#allocation29_spill] sm:$0xff] %v19013_v40 }
 0x248   :  { %2967 = vmatprep.subr.mxu0 %v857_v2  ;;  %3042 = vmatprep.subr.mxu1 %v1247_v5  ;;  %v1143_v2 = vld [vmem:[%s20677_s1 + $0x2210] sm:$0xff]  ;;  %v752_v5 = vld [vmem:[%s20677_s1 + $0x15d8] sm:$0xff] }
 0x249   :  { %2968 = vmatpush2.msra.mxu0 %v856_v6  ;;  %3043 = vmatpush2.msra.mxu1 %v1246_v7  ;;  %v1142_v6 = vld [vmem:[%s20677_s1 + $0x2208] sm:$0xff]  ;;  %v13939_v7 = vpop.f32.mrf.mxu0 }
 0x24a   :  { %2969 = vmatprep.subr.mxu0 %v844_v9  ;;  %3044 = vmatprep.subr.mxu1 %v1234_v12  ;;  %v13941_v9 = vpop.f32.mrf.mxu1  ;;  %v740_v12 = vld [vmem:[%s20677_s1 + $0x1578] sm:$0xff] }
 0x24b   :  { %2970 = vmatpush2.msra.mxu0 %v843_v13  ;;  %3045 = vmatpush2.msra.mxu1 %v1233_v14  ;;  %v1130_v13 = vld [vmem:[%s20677_s1 + $0x21a8] sm:$0xff]  ;;  %v2359_v14 = vadd.f32 %v2358_v54, %v1358_v63  ;;  %v871_v63 = vld [vmem:[%s20677_s1 + $0x1990] sm:$0xff] }
 0x24c   :  { %2971 = vmatprep.subr.mxu0 %v831_v18  ;;  %3046 = vmatprep.subr.mxu1 %v1221_v19  ;;  %v739_v18 = vld [vmem:[%s20677_s1 + $0x1570] sm:$0xff]  ;;  %v1129_v19 = vld [vmem:[%s20677_s1 + $0x21a0] sm:$0xff] }
 0x24d   :  { %2972 = vmatpush2.msra.mxu0 %v830_v20  ;;  %3047 = vmatpush2.msra.mxu1 %v1220_v22  ;;  %v727_v20 = vld [vmem:[%s20677_s1 + $0x1510] sm:$0xff]  ;;  %v1117_v22 = vld [vmem:[%s20677_s1 + $0x2140] sm:$0xff] }
 0x24e   :  { %2973 = vmatprep.subr.mxu0 %v818_v26  ;;  %3048 = vmatprep.subr.mxu1 %v1208_v27 }
 0x24f   :  { %2974 = vmatpush2.msra.mxu0 %v817_v28  ;;  %3049 = vmatpush2.msra.mxu1 %v1207_v29  ;;  %v726_v28 = vld [vmem:[%s20677_s1 + $0x1508] sm:$0xff]  ;;  %v1116_v29 = vld [vmem:[%s20677_s1 + $0x2138] sm:$0xff] }
 0x250   :  { %2975 = vmatprep.subr.mxu0 %v805_v31  ;;  %3050 = vmatprep.subr.mxu1 %v1195_v32  ;;  %v714_v32 = vld [vmem:[%s20677_s1 + $0x14a8] sm:$0xff] }
 0x251   :  { %2976 = vmatpush2.msra.mxu0 %v804_v33  ;;  %3051 = vmatpush2.msra.mxu1 %v1194_v38  ;;  %v1104_v33 = vld [vmem:[%s20677_s1 + $0x20d8] sm:$0xff] }
 0x252   :  { %2977 = vmatprep.subr.mxu0 %v792_v39  ;;  %3052 = vmatprep.subr.mxu1 %v1182_v4  ;;  %v713_v39 = vld [vmem:[%s20677_s1 + $0x14a0] sm:$0xff]  ;;  %v1103_v4 = vld [vmem:[%s20677_s1 + $0x20d0] sm:$0xff] }
 0x253   :  { %2978 = vmatpush2.msra.mxu0 %v791_v42  ;;  %3053 = vmatpush2.msra.mxu1 %v1181_v43  ;;  %v701_v43 = vld [vmem:[%s20677_s1 + $0x1440] sm:$0xff] }
 0x254   :  { %2979 = vmatprep.subr.mxu0 %v779_v48  ;;  %3054 = vmatprep.subr.mxu1 %v1169_v50  ;;  %v884_v48 = vld [vmem:[%s20677_s1 + $0x19f8] sm:$0xff] }
 0x255   :  { %2980 = vmatpush2.msra.mxu0 %v778_v51  ;;  %3055 = vmatpush2.msra.mxu1 %v1168_v53  ;;  %v700_v50 = vld [vmem:[%s20677_s1 + $0x1438] sm:$0xff] }
 0x256   :  { %2981 = vmatprep.subr.mxu0 %v766_v57  ;;  %3056 = vmatprep.subr.mxu1 %v1156_v59  ;;  %v2500_v27 = vpop.f32.mrf.mxu1  ;;  %v688_v53 = vld [vmem:[%s20677_s1 + $0x13d8] sm:$0xff]  ;;  %v687_v59 = vld [vmem:[%s20677_s1 + $0x13d0] sm:$0xff] }
 0x257   :  { %2982 = vmatpush2.msra.mxu0 %v765_v0  ;;  %3057 = vmatpush2.msra.mxu1 %v1155_v1  ;;  %v676_v57 = vld [vmem:[%s20677_s1 + $0x1378] sm:$0xff]  ;;  %v663_v0 = vld [vmem:[%s20677_s1 + $0x1310] sm:$0xff]  ;;  %v1325_v1 = vld [vmem:[%s20677_s1 + $0x27c0] sm:$0xff] }
 0x258   :  { %2983 = vmatprep.subr.mxu0 %v753_v56  ;;  %3058 = vmatprep.subr.mxu1 %v1143_v2  ;;  %v858_v56 = vld [vmem:[%s20677_s1 + $0x1928] sm:$0xff]  ;;  %v1324_v2 = vld [vmem:[%s20677_s1 + $0x27b8] sm:$0xff] }
 0x259   :  { %2984 = vmatpush2.msra.mxu0 %v752_v5  ;;  %3059 = vmatpush2.msra.mxu1 %v1142_v6  ;;  %v2429_v26 = vpop.f32.mrf.mxu0  ;;  %v650_v5 = vld [vmem:[%s20677_s1 + $0x12a8] sm:$0xff]  ;;  %v1312_v6 = vld [vmem:[%s20677_s1 + $0x2758] sm:$0xff] }
 0x25a   :  { %2985 = vmatprep.subr.mxu0 %v740_v12  ;;  %3060 = vmatprep.subr.mxu1 %v1130_v13  ;;  %v2430_v31 = vadd.f32 %v2429_v26, %v2359_v14  ;;  %v845_v12 = vld [vmem:[%s20677_s1 + $0x18c0] sm:$0xff]  ;;  %v1311_v13 = vld [vmem:[%s20677_s1 + $0x2750] sm:$0xff] }
 0x25b   :  { %2986 = vmatpush2.msra.mxu0 %v739_v18  ;;  %3061 = vmatpush2.msra.mxu1 %v1129_v19  ;;  %v13973_v38 = vpop.f32.mrf.mxu0  ;;  %v637_v14 = vld [vmem:[%s20677_s1 + $0x1240] sm:$0xff]  ;;  %v468_v18 = vld [vmem:[%s20677_s1 + $0xcf8] sm:$0xff]  ;;  %v455_v26 = vld [vmem:[%s20677_s1 + $0xc90] sm:$0xff] }
 0x25c   :  { %2987 = vmatprep.subr.mxu0 %v727_v20  ;;  %3062 = vmatprep.subr.mxu1 %v1117_v22  ;;  %v2501_v42 = vadd.f32 %v2500_v27, %v2430_v31  ;;  %v832_v19 = vld [vmem:[%s20677_s1 + $0x1858] sm:$0xff]  ;;  %v819_v27 = vld [vmem:[%s20677_s1 + $0x17f0] sm:$0xff]  ;;  %v442_v31 = vld [vmem:[%s20677_s1 + $0xc28] sm:$0xff] }
 0x25d   :  { %2988 = vmatpush2.msra.mxu0 %v726_v28  ;;  %3063 = vmatpush2.msra.mxu1 %v1116_v29  ;;  %v260_v20 = vld [vmem:[%s20677_s1 + $0x678] sm:$0xff]  ;;  %v247_v28 = vld [vmem:[%s20677_s1 + $0x610] sm:$0xff] }
 0x25e   :  { %2989 = vmatprep.subr.mxu0 %v714_v32  ;;  %3064 = vmatprep.subr.mxu1 %v1104_v33  ;;  %v2571_v51 = vpop.f32.mrf.mxu0  ;;  %v624_v22 = vld [vmem:[%s20677_s1 + $0x11d8] sm:$0xff]  ;;  %v611_v29 = vld [vmem:[%s20677_s1 + $0x1170] sm:$0xff]  ;;  %v806_v32 = vld [vmem:[%s20677_s1 + $0x1788] sm:$0xff] }
 0x25f   :  { %2990 = vmatpush2.msra.mxu0 %v713_v39  ;;  %3065 = vmatpush2.msra.mxu1 %v1103_v4  ;;  %v13993_v54 = vadd.f32 %v2571_v51, %v2501_v42  ;;  %v234_v33 = vld [vmem:[%s20677_s1 + $0x5a8] sm:$0xff]  ;;  %v429_v4 = vld [vmem:[%s20677_s1 + $0xbc0] sm:$0xff]  ;;  %v780_v51 = vld [vmem:[%s20677_s1 + $0x16b8] sm:$0xff] }
 0x260   :  { %2991 = vmatprep.subr.mxu0 %v701_v43  ;;  %3066 = vmatprep.mubr.f32.mxu1 %v11118_v24  ;;  %v598_v39 = vld [vmem:[%s20677_s1 + $0x1108] sm:$0xff]  ;;  %v793_v42 = vld [vmem:[%s20677_s1 + $0x1720] sm:$0xff] }
 0x261   :  { %9429 = vmatprep.subr.mxu1 %v884_v48  ;;  %2992 = vmatpush2.msra.mxu0 %v700_v50  ;;  %v221_v43 = vld [vmem:[%s20677_s1 + $0x540] sm:$0xff]  ;;  %v416_v50 = vld [vmem:[%s20677_s1 + $0xb58] sm:$0xff] }
 0x262   :  { %3067 = vmatmul.mubr.f32.vlgmr.msra.gmra.mxu1 %v11090_v15  ;;  %2993 = vmatprep.subr.mxu0 %v688_v53  ;;  %v585_v48 = vld [vmem:[%s20677_s1 + $0x10a0] sm:$0xff]  ;;  %v208_v53 = vld [vmem:[%s20677_s1 + $0x4d8] sm:$0xff] }
 0x263   :  { %9430 = vmatpush3.msra.mxu1 %v676_v57  ;;  %2994 = vmatpush2.msra.mxu0 %v687_v59  ;;  %v572_v57 = vld [vmem:[%s20677_s1 + $0x1038] sm:$0xff]  ;;  %v403_v59 = vld [vmem:[%s20677_s1 + $0xaf0] sm:$0xff] }
 0x264   :  { %9431 = vmatprep.subr.mxu1 %v871_v63  ;;  %2995 = vmatprep.mubr.f32.mxu0 %v10726_v11  ;;  %v767_v63 = vld [vmem:[%s20677_s1 + $0x1650] sm:$0xff] }
 0x265   :  { %9432 = vmatpush3.msra.mxu1 %v663_v0  ;;  %2996 = vmatmul.mubr.f32.vlgmr.msra.gmra.mxu0 %v10700_v3  ;;  %v195_v0 = vld [vmem:[%s20677_s1 + $0x470] sm:$0xff] }
 0x266   :  { %3101 = vmatprep.subr.mxu0 %v1325_v1  ;;  %9433 = vmatprep.subr.mxu1 %v858_v56  ;;  %v559_v1 = vld [vmem:[%s20677_s1 + $0xfd0] sm:$0xff]  ;;  %v390_v56 = vld [vmem:[%s20677_s1 + $0xa88] sm:$0xff] }
 0x267   :  { %3102 = vmatpush1.msra.mxu0 %v1324_v2  ;;  %9434 = vmatpush3.msra.mxu1 %v650_v5  ;;  %v754_v2 = vld [vmem:[%s20677_s1 + $0x15e8] sm:$0xff]  ;;  %v14117_v5 = vsub.s32 1, %v10628_v41 }
 0x268   :  { %3103 = vmatprep.subr.mxu0 %v1312_v6  ;;  %9435 = vmatprep.subr.mxu1 %v845_v12  ;;  %v182_v6 = vld [vmem:[%s20677_s1 + $0x408] sm:$0xff] }
 0x269   :  { %3104 = vmatpush1.msra.mxu0 %v1311_v13  ;;  %3137 = vmatprep.mubr.f32.mxu0 %v20694_v52  ;;  %20770 = vst [vmem:[#allocation7_spill] sm:$0xff] %v14117_v5  ;;  %v546_v12 = vld [vmem:[%s20677_s1 + $0xf68] sm:$0xff]  ;;  %v377_v13 = vld [vmem:[%s20677_s1 + $0xa20] sm:$0xff] }
 0x26a   :  { %9436 = vmatpush3.msra.mxu1 %v637_v14  ;;  %9373 = vmatmul.mubr.msk.f32.vlgmr.msra.gmra.mxu0 %vm1437_vm0, %v11151_v35  ;;  %v741_v14 = vld [vmem:[%s20677_s1 + $0x1580] sm:$0xff] }
 0x26b   :  { %9394 = vmatprep.subr.mxu0 %v468_v18  ;;  %9437 = vmatprep.subr.mxu1 %v832_v19  ;;  %v169_v18 = vld [vmem:[%s20677_s1 + $0x3a0] sm:$0xff] }
 0x26c   :  { %9395 = vmatpush3.msra.mxu0 %v260_v20  ;;  %9438 = vmatpush3.msra.mxu1 %v624_v22  ;;  %v533_v19 = vld [vmem:[%s20677_s1 + $0xf00] sm:$0xff]  ;;  %v364_v20 = vld [vmem:[%s20677_s1 + $0x9b8] sm:$0xff] }
 0x26d   :  { %9396 = vmatprep.subr.mxu0 %v455_v26  ;;  %9439 = vmatprep.subr.mxu1 %v819_v27  ;;  %v728_v22 = vld [vmem:[%s20677_s1 + $0x1518] sm:$0xff]  ;;  %v1338_v26 = vrot.slane %v13916_v60, %v14117_v5 }
 0x26e   :  { %9397 = vmatpush3.msra.mxu0 %v247_v28  ;;  %9440 = vmatpush3.msra.mxu1 %v611_v29  ;;  %v156_v27 = vld [vmem:[%s20677_s1 + $0x338] sm:$0xff]  ;;  %v351_v29 = vld [vmem:[%s20677_s1 + $0x950] sm:$0xff] }
 0x26f   :  { %9398 = vmatprep.subr.mxu0 %v442_v31  ;;  %9441 = vmatprep.subr.mxu1 %v806_v32  ;;  %v520_v28 = vld [vmem:[%s20677_s1 + $0xe98] sm:$0xff]  ;;  %v715_v31 = vld [vmem:[%s20677_s1 + $0x14b0] sm:$0xff] }
 0x270   :  { %9399 = vmatpush3.msra.mxu0 %v234_v33  ;;  %9442 = vmatpush3.msra.mxu1 %v598_v39  ;;  %v143_v32 = vld [vmem:[%s20677_s1 + $0x2d0] sm:$0xff]  ;;  %v338_v39 = vld [vmem:[%s20677_s1 + $0x8e8] sm:$0xff] }
 0x271   :  { %9400 = vmatprep.subr.mxu0 %v429_v4  ;;  %9443 = vmatprep.subr.mxu1 %v793_v42  ;;  %v507_v33 = vld [vmem:[%s20677_s1 + $0xe30] sm:$0xff]  ;;  %v702_v4 = vld [vmem:[%s20677_s1 + $0x1448] sm:$0xff]  ;;  %v1509_v42 = vadd.f32 %v12263_v21, %v1338_v26  ;;  %v689_v21 = vld [vmem:[%s20677_s1 + $0x13e0] sm:$0xff] }
 0x272   :  { %9401 = vmatpush3.msra.mxu0 %v221_v43  ;;  %9444 = vmatpush3.msra.mxu1 %v585_v48  ;;  %v130_v43 = vld [vmem:[%s20677_s1 + $0x268] sm:$0xff]  ;;  %v3528_v26 = vld [vmem:[%s20679_s3 + $0x2d8] sm:$0xff] }
 0x273   :  { %9402 = vmatprep.subr.mxu0 %v416_v50  ;;  %9445 = vmatprep.subr.mxu1 %v780_v51  ;;  %v494_v48 = vld [vmem:[%s20677_s1 + $0xdc8] sm:$0xff]  ;;  %v325_v50 = vld [vmem:[%s20677_s1 + $0x880] sm:$0xff] }
 0x274   :  { %9403 = vmatpush3.msra.mxu0 %v208_v53  ;;  %9446 = vmatpush3.msra.mxu1 %v572_v57  ;;  %v117_v51 = vld [vmem:[%s20677_s1 + $0x200] sm:$0xff]  ;;  %v312_v57 = vld [vmem:[%s20677_s1 + $0x818] sm:$0xff] }
 0x275   :  { %9404 = vmatprep.subr.mxu0 %v403_v59  ;;  %9447 = vmatprep.subr.mxu1 %v767_v63  ;;  %v481_v53 = vld [vmem:[%s20677_s1 + $0xd60] sm:$0xff]  ;;  %v1580_v59 = vadd.f32 %v12661_v58, %v1509_v42  ;;  %v104_v63 = vld [vmem:[%s20677_s1 + $0x198] sm:$0xff]  ;;  %v299_v58 = vld [vmem:[%s20677_s1 + $0x7b0] sm:$0xff] }
 0x276   :  { %9405 = vmatpush3.msra.mxu0 %v195_v0  ;;  %9448 = vmatpush3.msra.mxu1 %v559_v1  ;;  %v1326_v0 = vld [vmem:[%s20677_s1 + $0x27c8] sm:$0xff]  ;;  %v1053_v42 = vld [vmem:[%s20677_s1 + $0x1f40] sm:$0xff] }
 0x277   :  { %9406 = vmatprep.subr.mxu0 %v390_v56  ;;  %9449 = vmatprep.subr.mxu1 %v754_v2  ;;  %v1651_v1 = vadd.f32 %v12296_v36, %v1580_v59  ;;  %v91_v56 = vld [vmem:[%s20677_s1 + $0x130] sm:$0xff]  ;;  %v1313_v2 = vld [vmem:[%s20677_s1 + $0x2760] sm:$0xff] }
 0x278   :  { %9407 = vmatpush3.msra.mxu0 %v182_v6  ;;  %9450 = vmatpush3.msra.mxu1 %v546_v12  ;;  %v78_v6 = vld [vmem:[%s20677_s1 + $0xc8] sm:$0xff]  ;;  %v273_v12 = vld [vmem:[%s20677_s1 + $0x6e0] sm:$0xff]  ;;  %v1027_v59 = vld [vmem:[%s20677_s1 + $0x1e70] sm:$0xff] }
 0x279   :  { %9408 = vmatprep.subr.mxu0 %v377_v13  ;;  %9451 = vmatprep.subr.mxu1 %v741_v14  ;;  %v1722_v36 = vadd.f32 %v12706_v16, %v1651_v1  ;;  %v3542_v16 = vld [vmem:[%s20679_s3 + $0x348] sm:$0xff]  ;;  %v3536_v14 = vld [vmem:[%s20679_s3 + $0x318] sm:$0xff]  ;;  %v3487_v1 = vld [vmem:[%s20679_s3 + $0x190] sm:$0xff] }
 0x27a   :  { %9409 = vmatpush3.msra.mxu0 %v169_v18  ;;  %9452 = vmatpush3.msra.mxu1 %v533_v19  ;;  %v65_v18 = vld [vmem:[%s20677_s1 + $0x60] sm:$0xff]  ;;  %v3535_v19 = vld [vmem:[%s20679_s3 + $0x310] sm:$0xff] }
 0x27b   :  { %9410 = vmatprep.subr.mxu0 %v364_v20  ;;  %9453 = vmatprep.subr.mxu1 %v728_v22  ;;  %v14230_v13 = vmax.f32 %v1722_v36, 0.0  ;;  %v3529_v20 = vld [vmem:[%s20679_s3 + $0x2e0] sm:$0xff]  ;;  %v1092_v22 = vld [vmem:[%s20677_s1 + $0x2078] sm:$0xff] }
 0x27c   :  { %9411 = vmatpush3.msra.mxu0 %v156_v27  ;;  %9454 = vmatpush3.msra.mxu1 %v520_v28  ;;  %v1287_v27 = vld [vmem:[%s20677_s1 + $0x2690] sm:$0xff]  ;;  %v3522_v28 = vld [vmem:[%s20679_s3 + $0x2a8] sm:$0xff]  ;;  %v1209_v36 = vld [vmem:[%s20677_s1 + $0x2420] sm:$0xff] }
 0x27d   :  { %9412 = vmatprep.subr.mxu0 %v351_v29  ;;  %9455 = vmatprep.subr.mxu1 %v715_v31  ;;  %v3521_v29 = vld [vmem:[%s20679_s3 + $0x2a0] sm:$0xff]  ;;  %v1274_v31 = vld [vmem:[%s20677_s1 + $0x2628] sm:$0xff] }
 0x27e   :  { %9413 = vmatpush3.msra.mxu0 %v143_v32  ;;  %9456 = vmatpush3.msra.mxu1 %v507_v33  ;;  %v1066_v32 = vld [vmem:[%s20677_s1 + $0x1fa8] sm:$0xff] }
 0x27f   :  { %9414 = vmatprep.subr.mxu0 %v338_v39  ;;  %9457 = vmatprep.subr.mxu1 %v702_v4  ;;  %v3514_v33 = vld [vmem:[%s20679_s3 + $0x268] sm:$0xff]  ;;  %v1261_v39 = vld [vmem:[%s20677_s1 + $0x25c0] sm:$0xff]  ;;  %v3508_v4 = vld [vmem:[%s20679_s3 + $0x238] sm:$0xff] }
 0x280   :  { %9415 = vmatpush3.msra.mxu0 %v130_v43  ;;  %9458 = vmatpush3.msra.mxu1 %v494_v48  ;;  %v3507_v43 = vld [vmem:[%s20679_s3 + $0x230] sm:$0xff]  ;;  %v1248_v48 = vld [vmem:[%s20677_s1 + $0x2558] sm:$0xff] }
 0x281   :  { %9416 = vmatprep.subr.mxu0 %v325_v50  ;;  %9459 = vmatprep.subr.mxu1 %v689_v21  ;;  %v3501_v50 = vld [vmem:[%s20679_s3 + $0x200] sm:$0xff]  ;;  %v1040_v21 = vld [vmem:[%s20677_s1 + $0x1ed8] sm:$0xff] }
 0x282   :  { %9417 = vmatpush3.msra.mxu0 %v117_v51  ;;  %9460 = vmatpush3.msra.mxu1 %v481_v53  ;;  %v3500_v51 = vld [vmem:[%s20679_s3 + $0x1f8] sm:$0xff]  ;;  %v1235_v53 = vld [vmem:[%s20677_s1 + $0x24f0] sm:$0xff] }
 0x283   :  { %3278 = vmatprep.mubr.f32.mxu1 %v10726_v11  ;;  %9418 = vmatprep.subr.mxu0 %v312_v57  ;;  %v286_v11 = vld [vmem:[%s20677_s1 + $0x748] sm:$0xff] }
 0x284   :  { %3279 = vmatmul.mubr.f32.vlgmr.msra.gmra.mxu1 %v10700_v3  ;;  %10104 = vmatprep.subr.mxu1 %v20694_v52  ;;  %v3543_v3 = vld [vmem:[%s20679_s3 + $0x350] sm:$0xff]  ;;  %v3494_v57 = vld [vmem:[%s20679_s3 + $0x1c8] sm:$0xff] }
 0x285   :  { %9419 = vmatpush3.msra.mxu0 %v104_v63  ;;  %10105 = vmatpush3.msra.mxu1 %v1326_v0  ;;  %v3493_v63 = vld [vmem:[%s20679_s3 + $0x1c0] sm:$0xff]  ;;  %v1222_v0 = vld [vmem:[%s20677_s1 + $0x2488] sm:$0xff] }
 0x286   :  { %9420 = vmatprep.subr.mxu0 %v299_v58  ;;  %10106 = vmatprep.subr.mxu1 %v20694_v52  ;;  %v1014_v58 = vld [vmem:[%s20677_s1 + $0x1e08] sm:$0xff] }
 0x287   :  { %9421 = vmatpush3.msra.mxu0 %v91_v56  ;;  %10107 = vmatpush3.msra.mxu1 %v1313_v2  ;;  %v14328_v56 = vsub.s32 3, %v10628_v41  ;;  %v3486_v2 = vld [vmem:[%s20679_s3 + $0x188] sm:$0xff] }
 0x288   :  { %10108 = vmatprep.mubr.msk.f32.mxu1 %vm10240_vm1, %v20694_v52  ;;  %9422 = vmatprep.subr.mxu0 %v286_v11  ;;  %v3480_v11 = vld [vmem:[%s20679_s3 + $0x158] sm:$0xff] }
 0x289   :  { %10109 = vmatmul.mubr.msk.f32.vlgmr.msra.gmra.mxu1 %vm1437_vm0, %v11151_v35  ;;  %4850 = vmatprep.subr.mxu1 %v3543_v3  ;;  %v1300_v35 = vld [vmem:[%s20677_s1 + $0x26f8] sm:$0xff]  ;;  %v1001_v3 = vld [vmem:[%s20677_s1 + $0x1da0] sm:$0xff] }
 0x28a   :  { %9423 = vmatpush3.msra.mxu0 %v78_v6  ;;  %4851 = vmatpush1.msra.mxu1 %v3542_v16  ;;  %v3479_v6 = vld [vmem:[%s20679_s3 + $0x150] sm:$0xff]  ;;  %v1196_v16 = vld [vmem:[%s20677_s1 + $0x23b8] sm:$0xff] }
 0x28b   :  { %4914 = vmatprep.mubr.f32.mxu1 %v14230_v13  ;;  %9424 = vmatprep.subr.mxu0 %v273_v12  ;;  %v14351_v12 = vld [vmem:[%s20678_s2 + $0x8] sm:$0x1f] }
 0x28c   :  { %4852 = vmatprep.subr.mxu1 %v3536_v14  ;;  %9425 = vmatpush3.msra.mxu0 %v65_v18  ;;  %v3473_v14 = vld [vmem:[%s20679_s3 + $0x120] sm:$0xff]  ;;  %v988_v18 = vld [vmem:[%s20677_s1 + $0x1d38] sm:$0xff] }
 0x28d   :  { %3208 = vmatprep.mubr.f32.mxu0 %v10716_v8  ;;  %4853 = vmatpush1.msra.mxu1 %v3535_v19  ;;  %v1079_v8 = vld [vmem:[%s20677_s1 + $0x2010] sm:$0xff]  ;;  %v1346_v19 = vrot.slane %v13916_v60, %v14328_v56 }
 0x28e   :  { %3209 = vmatmul.mubr.f32.vlgmr.msra.gmra.mxu0 %v10685_v62  ;;  %9464 = vmatprep.subr.mxu0 %v1300_v35  ;;  %v3515_v62 = vld [vmem:[%s20679_s3 + $0x270] sm:$0xff]  ;;  %v3472_v35 = vld [vmem:[%s20679_s3 + $0x118] sm:$0xff] }
 0x28f   :  { %4854 = vmatprep.subr.mxu1 %v3529_v20  ;;  %9465 = vmatpush3.msra.mxu0 %v1092_v22  ;;  %v1183_v20 = vld [vmem:[%s20677_s1 + $0x2350] sm:$0xff]  ;;  %v3466_v22 = vld [vmem:[%s20679_s3 + $0xe8] sm:$0xff] }
 0x290   :  { %4855 = vmatpush1.msra.mxu1 %v3528_v26  ;;  %9466 = vmatprep.subr.mxu0 %v1287_v27  ;;  %v975_v26 = vld [vmem:[%s20677_s1 + $0x1cd0] sm:$0xff]  ;;  %v1366_v27 = vrot.slane %v14351_v12, %v11846_v44 }
 0x291   :  { %4856 = vmatprep.subr.mxu1 %v3522_v28  ;;  %9467 = vmatpush3.msra.mxu0 %v1079_v8  ;;  %v14375_v28 = vpop.f32.mrf.mxu1  ;;  %v14377_v8 = vpop.f32.mrf.mxu0 }
 0x292   :  { %4857 = vmatpush1.msra.mxu1 %v3521_v29  ;;  %9468 = vmatprep.subr.mxu0 %v1274_v31  ;;  %v3465_v29 = vld [vmem:[%s20679_s3 + $0xe0] sm:$0xff]  ;;  %v1170_v31 = vld [vmem:[%s20677_s1 + $0x22e8] sm:$0xff] }
 0x293   :  { %4858 = vmatprep.subr.mxu1 %v3515_v62  ;;  %9469 = vmatpush3.msra.mxu0 %v1066_v32  ;;  %v3459_v62 = vld [vmem:[%s20679_s3 + $0xb0] sm:$0xff]  ;;  %v962_v32 = vld [vmem:[%s20677_s1 + $0x1c68] sm:$0xff] }
 0x294   :  { %4859 = vmatpush1.msra.mxu1 %v3514_v33  ;;  %9470 = vmatprep.subr.mxu0 %v1261_v39  ;;  %v1793_v33 = vadd.f32 %v12708_v17, %v1346_v19  ;;  %v3458_v39 = vld [vmem:[%s20679_s3 + $0xa8] sm:$0xff]  ;;  %v949_v17 = vld [vmem:[%s20677_s1 + $0x1c00] sm:$0xff] }
 0x295   :  { %4860 = vmatprep.subr.mxu1 %v3508_v4  ;;  %9471 = vmatpush3.msra.mxu0 %v1053_v42  ;;  %v1157_v4 = vld [vmem:[%s20677_s1 + $0x2280] sm:$0xff] }
 0x296   :  { %4861 = vmatpush1.msra.mxu1 %v3507_v43  ;;  %9472 = vmatprep.subr.mxu0 %v1248_v48  ;;  %v3452_v48 = vld [vmem:[%s20679_s3 + $0x78] sm:$0xff] }
 0x297   :  { %4862 = vmatprep.subr.mxu1 %v3501_v50  ;;  %9473 = vmatpush3.msra.mxu0 %v1040_v21  ;;  %v1864_v21 = vadd.f32 %v12740_v34, %v1793_v33  ;;  %v936_v34 = vld [vmem:[%s20677_s1 + $0x1b98] sm:$0xff]  ;;  %v3626_v33 = vld [vmem:[%s20679_s3 + $0x5e8] sm:$0xff] }
 0x298   :  { %4863 = vmatpush1.msra.mxu1 %v3500_v51  ;;  %9474 = vmatprep.subr.mxu0 %v1235_v53  ;;  %v3451_v51 = vld [vmem:[%s20679_s3 + $0x70] sm:$0xff]  ;;  %v1144_v53 = vld [vmem:[%s20677_s1 + $0x2218] sm:$0xff] }
 0x299   :  { %4864 = vmatprep.subr.mxu1 %v3494_v57  ;;  %9475 = vmatpush3.msra.mxu0 %v1027_v59  ;;  %v2713_v43 = vpop.f32.mrf.mxu1  ;;  %v3445_v57 = vld [vmem:[%s20679_s3 + $0x40] sm:$0xff] }
 0x29a   :  { %4865 = vmatpush1.msra.mxu1 %v3493_v63  ;;  %9476 = vmatprep.subr.mxu0 %v1222_v0  ;;  %v3444_v63 = vld [vmem:[%s20679_s3 + $0x38] sm:$0xff]  ;;  %v1131_v0 = vld [vmem:[%s20677_s1 + $0x21b0] sm:$0xff] }
 0x29b   :  { %4866 = vmatprep.subr.mxu1 %v3487_v1  ;;  %9477 = vmatpush3.msra.mxu0 %v1014_v58  ;;  %v3438_v1 = vld [vmem:[%s20679_s3 + $0x8] sm:$0xff]  ;;  %v923_v58 = vld [vmem:[%s20677_s1 + $0x1b30] sm:$0xff] }
 0x29c   :  { %4867 = vmatpush1.msra.mxu1 %v3486_v2  ;;  %9478 = vmatprep.subr.mxu0 %v1209_v36  ;;  %v1935_v2 = vadd.f32 %v13140_v37, %v1864_v21  ;;  %v3437_v36 = vld [vmem:[%s20679_s3] sm:$0xff]  ;;  %v910_v37 = vld [vmem:[%s20677_s1 + $0x1ac8] sm:$0xff]  ;;  %v20693_v21 = vsub.s32 5, %v10628_v41 }
 0x29d   :  { %4868 = vmatprep.subr.mxu1 %v3480_v11  ;;  %9479 = vmatpush3.msra.mxu0 %v1001_v3  ;;  %v1118_v11 = vld [vmem:[%s20677_s1 + $0x2148] sm:$0xff]  ;;  %v3655_v3 = vld [vmem:[%s20679_s3 + $0x6d0] sm:$0xff] }
 0x29e   :  { %4869 = vmatpush1.msra.mxu1 %v3479_v6  ;;  %9480 = vmatprep.subr.mxu0 %v1196_v16  ;;  %v3654_v6 = vld [vmem:[%s20679_s3 + $0x6c8] sm:$0xff]  ;;  %v1105_v16 = vld [vmem:[%s20677_s1 + $0x20e0] sm:$0xff]  ;;  %v2006_v19 = vadd.f32 %v13142_v10, %v1935_v2  ;;  %v3640_v10 = vld [vmem:[%s20679_s3 + $0x658] sm:$0xff]  ;;  %v1354_v2 = vrot.slane %v13916_v60, %v20693_v21 }
 0x29f   :  { %4870 = vmatprep.subr.mxu1 %v3473_v14  ;;  %9481 = vmatpush3.msra.mxu0 %v988_v18  ;;  %v3648_v14 = vld [vmem:[%s20679_s3 + $0x698] sm:$0xff]  ;;  %v897_v18 = vld [vmem:[%s20677_s1 + $0x1a60] sm:$0xff]  ;;  %v3718_v60 = vld [vmem:[%s20679_s3 + $0x8c8] sm:$0xff]  ;;  %s10241_s1 = smov [#allocation2]  }
 0x2a0   :  { %4871 = vmatpush1.msra.mxu1 %v3472_v35  ;;  %9482 = vmatprep.subr.mxu0 %v1183_v20  ;;  %v3647_v35 = vld [vmem:[%s20679_s3 + $0x690] sm:$0xff]  ;;  %v3641_v20 = vld [vmem:[%s20679_s3 + $0x660] sm:$0xff]  ;;  %v19019_v21 = vld [vmem:[%s20683_s7 + $0xa8] sm:$0xff] }
 0x2a1   :  { %4872 = vmatprep.subr.mxu1 %v3466_v22  ;;  %9483 = vmatpush3.msra.mxu0 %v975_v26  ;;  %v2642_v42 = vpop.f32.mrf.mxu0  ;;  %v3767_v22 = vld [vmem:[%s20679_s3 + $0xa50] sm:$0xff]  ;;  %v3766_v26 = vld [vmem:[%s20679_s3 + $0xa48] sm:$0xff]  ;;  %20793 = vst [vmem:[#allocation30_spill] sm:$0xff] %v19019_v21 }
 0x2a2   :  { %4873 = vmatpush1.msra.mxu1 %v3465_v29  ;;  %9484 = vmatprep.subr.mxu0 %v1170_v31  ;;  %v2643_v50 = vadd.f32 %v2642_v42, %v1366_v27  ;;  %v14473_v27 = vmax.f32 %v2006_v19, 0.0  ;;  %v3634_v29 = vld [vmem:[%s20679_s3 + $0x628] sm:$0xff]  ;;  %v3760_v31 = vld [vmem:[%s20679_s3 + $0xa18] sm:$0xff] }
 0x2a3   :  { %4874 = vmatprep.subr.mxu1 %v3459_v62  ;;  %9485 = vmatpush3.msra.mxu0 %v962_v32  ;;  %v3759_v62 = vld [vmem:[%s20679_s3 + $0xa10] sm:$0xff]  ;;  %v3753_v32 = vld [vmem:[%s20679_s3 + $0x9e0] sm:$0xff]  ;;  %v3746_v42 = vld [vmem:[%s20679_s3 + $0x9a8] sm:$0xff] }
 0x2a4   :  { %4875 = vmatpush1.msra.mxu1 %v3458_v39  ;;  %9486 = vmatprep.subr.mxu0 %v1157_v4  ;;  %v14417_v59 = vadd.f32 %v2713_v43, %v2643_v50  ;;  %v3752_v39 = vld [vmem:[%s20679_s3 + $0x9d8] sm:$0xff]  ;;  %v3619_v43 = vld [vmem:[%s20679_s3 + $0x5b0] sm:$0xff] }
 0x2a5   :  { %4876 = vmatprep.subr.mxu1 %v3452_v48  ;;  %9487 = vmatpush3.msra.mxu0 %v949_v17  ;;  %v3620_v4 = vld [vmem:[%s20679_s3 + $0x5b8] sm:$0xff]  ;;  %v3745_v48 = vld [vmem:[%s20679_s3 + $0x9a0] sm:$0xff]  ;;  %v3739_v50 = vld [vmem:[%s20679_s3 + $0x970] sm:$0xff] }
 0x2a6   :  { %4877 = vmatpush1.msra.mxu1 %v3451_v51  ;;  %9488 = vmatprep.subr.mxu0 %v1144_v53  ;;  %v3613_v17 = vld [vmem:[%s20679_s3 + $0x580] sm:$0xff]  ;;  %v3612_v51 = vld [vmem:[%s20679_s3 + $0x578] sm:$0xff]  ;;  %v3738_v53 = vld [vmem:[%s20679_s3 + $0x968] sm:$0xff] }
 0x2a7   :  { %4878 = vmatprep.subr.mxu1 %v3445_v57  ;;  %9489 = vmatpush3.msra.mxu0 %v936_v34  ;;  %v3606_v57 = vld [vmem:[%s20679_s3 + $0x548] sm:$0xff]  ;;  %v3732_v34 = vld [vmem:[%s20679_s3 + $0x938] sm:$0xff] }
 0x2a8   :  { %4879 = vmatpush1.msra.mxu1 %v3444_v63  ;;  %9490 = vmatprep.subr.mxu0 %v1131_v0  ;;  %v3605_v63 = vld [vmem:[%s20679_s3 + $0x540] sm:$0xff]  ;;  %v3731_v0 = vld [vmem:[%s20679_s3 + $0x930] sm:$0xff]  ;;  %v3584_v19 = vld [vmem:[%s20679_s3 + $0x498] sm:$0xff] }
 0x2a9   :  { %4880 = vmatprep.subr.mxu1 %v3438_v1  ;;  %9491 = vmatpush3.msra.mxu0 %v923_v58  ;;  %v3599_v1 = vld [vmem:[%s20679_s3 + $0x510] sm:$0xff]  ;;  %v3725_v58 = vld [vmem:[%s20679_s3 + $0x900] sm:$0xff] }
 0x2aa   :  { %4881 = vmatpush1.msra.mxu1 %v3437_v36  ;;  %9492 = vmatprep.subr.mxu0 %v1118_v11  ;;  %v3598_v36 = vld [vmem:[%s20679_s3 + $0x508] sm:$0xff]  ;;  %v3724_v11 = vld [vmem:[%s20679_s3 + $0x8f8] sm:$0xff] }
 0x2ab   :  { %4882 = vmatprep.subr.mxu1 %v3655_v3  ;;  %9493 = vmatpush3.msra.mxu0 %v910_v37  ;;  %v3592_v3 = vld [vmem:[%s20679_s3 + $0x4d8] sm:$0xff]  ;;  %v3591_v37 = vld [vmem:[%s20679_s3 + $0x4d0] sm:$0xff] }
 0x2ac   :  { %4883 = vmatpush2.msra.mxu1 %v3654_v6  ;;  %9494 = vmatprep.subr.mxu0 %v1105_v16  ;;  %v3717_v6 = vld [vmem:[%s20679_s3 + $0x8c0] sm:$0xff] }
 0x2ad   :  { %4884 = vmatprep.subr.mxu1 %v3648_v14  ;;  %9495 = vmatpush3.msra.mxu0 %v897_v18  ;;  %v3585_v16 = vld [vmem:[%s20679_s3 + $0x4a0] sm:$0xff]  ;;  %v3711_v14 = vld [vmem:[%s20679_s3 + $0x890] sm:$0xff]  ;;  %v2077_v18 = vadd.f32 %v13531_v45, %v1354_v2  ;;  %v3704_v45 = vld [vmem:[%s20679_s3 + $0x858] sm:$0xff] }
 0x2ae   :  { %3348 = vmatprep.mubr.f32.mxu0 %v11118_v24  ;;  %4885 = vmatpush2.msra.mxu1 %v3647_v35  ;;  %v3633_v24 = vld [vmem:[%s20679_s3 + $0x620] sm:$0xff]  ;;  %v3710_v35 = vld [vmem:[%s20679_s3 + $0x888] sm:$0xff] }
 0x2af   :  { %3349 = vmatmul.mubr.f32.vlgmr.msra.gmra.mxu0 %v11090_v15  ;;  %4886 = vmatprep.subr.mxu1 %v3641_v20  ;;  %v3627_v15 = vld [vmem:[%s20679_s3 + $0x5f0] sm:$0xff]  ;;  %v3578_v20 = vld [vmem:[%s20679_s3 + $0x468] sm:$0xff]  ;;  %v3661_v2 = vld [vmem:[%s20679_s3 + $0x700] sm:$0xff] }
 0x2b0   :  { %4921 = vmatprep.subr.mxu0 %v3767_v22  ;;  %4887 = vmatpush2.msra.mxu1 %v3640_v10  ;;  %v3577_v22 = vld [vmem:[%s20679_s3 + $0x460] sm:$0xff]  ;;  %v3703_v10 = vld [vmem:[%s20679_s3 + $0x850] sm:$0xff] }
 0x2b1   :  { %4922 = vmatpush1.msra.mxu0 %v3766_v26  ;;  %4985 = vmatprep.mubr.f32.mxu0 %v14473_v27  ;;  %v3571_v26 = vld [vmem:[%s20679_s3 + $0x430] sm:$0xff] }
 0x2b2   :  { %4888 = vmatprep.subr.mxu1 %v3634_v29  ;;  %4923 = vmatprep.subr.mxu0 %v3760_v31  ;;  %v3697_v29 = vld [vmem:[%s20679_s3 + $0x820] sm:$0xff]  ;;  %v2148_v31 = vadd.f32 %v13852_v25, %v2077_v18  ;;  %v3690_v25 = vld [vmem:[%s20679_s3 + $0x7e8] sm:$0xff] }
 0x2b3   :  { %4889 = vmatpush2.msra.mxu1 %v3633_v24  ;;  %4924 = vmatpush1.msra.mxu0 %v3759_v62  ;;  %v3570_v24 = vld [vmem:[%s20679_s3 + $0x428] sm:$0xff]  ;;  %v3696_v62 = vld [vmem:[%s20679_s3 + $0x818] sm:$0xff]  ;;  %v3969_v18 = vld [vmem:[%s20679_s3 + $0x10a0] sm:$0xff] }
 0x2b4   :  { %4890 = vmatprep.subr.mxu1 %v3627_v15  ;;  %4925 = vmatprep.subr.mxu0 %v3753_v32  ;;  %v3564_v15 = vld [vmem:[%s20679_s3 + $0x3f8] sm:$0xff]  ;;  %v2219_v32 = vadd.f32 %v13939_v7, %v2148_v31  ;;  %v3683_v7 = vld [vmem:[%s20679_s3 + $0x7b0] sm:$0xff] }
 0x2b5   :  { %4891 = vmatpush2.msra.mxu1 %v3626_v33  ;;  %4926 = vmatpush1.msra.mxu0 %v3752_v39  ;;  %v3563_v33 = vld [vmem:[%s20679_s3 + $0x3f0] sm:$0xff]  ;;  %v3689_v39 = vld [vmem:[%s20679_s3 + $0x7e0] sm:$0xff] }
 0x2b6   :  { %4892 = vmatprep.subr.mxu1 %v3620_v4  ;;  %4927 = vmatprep.subr.mxu0 %v3746_v42  ;;  %v3557_v4 = vld [vmem:[%s20679_s3 + $0x3c0] sm:$0xff]  ;;  %v3556_v42 = vld [vmem:[%s20679_s3 + $0x3b8] sm:$0xff]  ;;  %v3851_v31 = vld [vmem:[%s20679_s3 + $0xcf0] sm:$0xff] }
 0x2b7   :  { %4893 = vmatpush2.msra.mxu1 %v3619_v43  ;;  %4928 = vmatpush1.msra.mxu0 %v3745_v48  ;;  %v3682_v43 = vld [vmem:[%s20679_s3 + $0x7a8] sm:$0xff] }
 0x2b8   :  { %4894 = vmatprep.subr.mxu1 %v3613_v17  ;;  %4929 = vmatprep.subr.mxu0 %v3739_v50  ;;  %v3550_v48 = vld [vmem:[%s20679_s3 + $0x388] sm:$0xff]  ;;  %v3676_v17 = vld [vmem:[%s20679_s3 + $0x778] sm:$0xff]  ;;  %v2290_v50 = vadd.f32 %v13893_v47, %v2219_v32  ;;  %v3991_v47 = vld [vmem:[%s20679_s3 + $0x1150] sm:$0xff] }
 0x2b9   :  { %4895 = vmatpush2.msra.mxu1 %v3612_v51  ;;  %4930 = vmatpush1.msra.mxu0 %v3738_v53  ;;  %v3549_v51 = vld [vmem:[%s20679_s3 + $0x380] sm:$0xff]  ;;  %v3675_v53 = vld [vmem:[%s20679_s3 + $0x770] sm:$0xff]  ;;  %v3942_v32 = vld [vmem:[%s20679_s3 + $0xfc8] sm:$0xff] }
 0x2ba   :  { %4896 = vmatprep.subr.mxu1 %v3606_v57  ;;  %4931 = vmatprep.subr.mxu0 %v3732_v34  ;;  %v3669_v57 = vld [vmem:[%s20679_s3 + $0x740] sm:$0xff]  ;;  %v14645_v34 = vmax.f32 %v12328_v49, 0.0  ;;  %v3662_v49 = vld [vmem:[%s20679_s3 + $0x708] sm:$0xff] }
 0x2bb   :  { %4897 = vmatpush2.msra.mxu1 %v3605_v63  ;;  %4932 = vmatpush1.msra.mxu0 %v3731_v0  ;;  %v3668_v63 = vld [vmem:[%s20679_s3 + $0x738] sm:$0xff]  ;;  %v3990_v0 = vld [vmem:[%s20679_s3 + $0x1148] sm:$0xff] }
 0x2bc   :  { %4898 = vmatprep.subr.mxu1 %v3599_v1  ;;  %4933 = vmatprep.subr.mxu0 %v3725_v58  ;;  %v14656_v1 = vmax.f32 %v2290_v50, 0.0  ;;  %v3984_v58 = vld [vmem:[%s20679_s3 + $0x1118] sm:$0xff] }
 0x2bd   :  { %4899 = vmatpush2.msra.mxu1 %v3598_v36  ;;  %4934 = vmatpush1.msra.mxu0 %v3724_v11  ;;  %v3983_v36 = vld [vmem:[%s20679_s3 + $0x1110] sm:$0xff]  ;;  %v3928_v50 = vld [vmem:[%s20679_s3 + $0xf58] sm:$0xff] }
 0x2be   :  { %4900 = vmatprep.subr.mxu1 %v3592_v3  ;;  %4935 = vmatprep.subr.mxu0 %v3718_v60  ;;  %v3879_v11 = vld [vmem:[%s20679_s3 + $0xdd0] sm:$0xff]  ;;  %v3977_v3 = vld [vmem:[%s20679_s3 + $0x10e0] sm:$0xff]  ;;  %v3878_v60 = vld [vmem:[%s20679_s3 + $0xdc8] sm:$0xff] }
 0x2bf   :  { %4901 = vmatpush2.msra.mxu1 %v3591_v37  ;;  %4936 = vmatpush1.msra.mxu0 %v3717_v6  ;;  %v3976_v37 = vld [vmem:[%s20679_s3 + $0x10d8] sm:$0xff] }
 0x2c0   :  { %4902 = vmatprep.subr.mxu1 %v3585_v16  ;;  %4937 = vmatprep.subr.mxu0 %v3711_v14  ;;  %v3872_v6 = vld [vmem:[%s20679_s3 + $0xd98] sm:$0xff]  ;;  %v3970_v16 = vld [vmem:[%s20679_s3 + $0x10a8] sm:$0xff]  ;;  %v3871_v14 = vld [vmem:[%s20679_s3 + $0xd90] sm:$0xff] }
 0x2c1   :  { %4903 = vmatpush2.msra.mxu1 %v3584_v19  ;;  %4938 = vmatpush1.msra.mxu0 %v3710_v35  ;;  %v3865_v19 = vld [vmem:[%s20679_s3 + $0xd60] sm:$0xff]  ;;  %v3963_v35 = vld [vmem:[%s20679_s3 + $0x1070] sm:$0xff] }
 0x2c2   :  { %4904 = vmatprep.subr.mxu1 %v3578_v20  ;;  %4939 = vmatprep.subr.mxu0 %v3704_v45  ;;  %v3864_v20 = vld [vmem:[%s20679_s3 + $0xd58] sm:$0xff]  ;;  %v3962_v45 = vld [vmem:[%s20679_s3 + $0x1068] sm:$0xff] }
 0x2c3   :  { %4905 = vmatpush2.msra.mxu1 %v3577_v22  ;;  %4940 = vmatpush1.msra.mxu0 %v3703_v10  ;;  %v3858_v22 = vld [vmem:[%s20679_s3 + $0xd28] sm:$0xff]  ;;  %v3956_v10 = vld [vmem:[%s20679_s3 + $0x1038] sm:$0xff] }
 0x2c4   :  { %4906 = vmatprep.subr.mxu1 %v3571_v26  ;;  %4941 = vmatprep.subr.mxu0 %v3697_v29  ;;  %v3857_v26 = vld [vmem:[%s20679_s3 + $0xd20] sm:$0xff]  ;;  %v3955_v29 = vld [vmem:[%s20679_s3 + $0x1030] sm:$0xff] }
 0x2c5   :  { %4907 = vmatpush2.msra.mxu1 %v3570_v24  ;;  %4942 = vmatpush1.msra.mxu0 %v3696_v62  ;;  %v3949_v24 = vld [vmem:[%s20679_s3 + $0x1000] sm:$0xff]  ;;  %v3850_v62 = vld [vmem:[%s20679_s3 + $0xce8] sm:$0xff] }
 0x2c6   :  { %4908 = vmatprep.subr.mxu1 %v3564_v15  ;;  %4943 = vmatprep.subr.mxu0 %v3690_v25  ;;  %v3948_v15 = vld [vmem:[%s20679_s3 + $0xff8] sm:$0xff] }
 0x2c7   :  { %4909 = vmatpush2.msra.mxu1 %v3563_v33  ;;  %4944 = vmatpush1.msra.mxu0 %v3689_v39  ;;  %v3844_v25 = vld [vmem:[%s20679_s3 + $0xcb8] sm:$0xff]  ;;  %v3843_v33 = vld [vmem:[%s20679_s3 + $0xcb0] sm:$0xff]  ;;  %v3941_v39 = vld [vmem:[%s20679_s3 + $0xfc0] sm:$0xff] }
 0x2c8   :  { %4910 = vmatprep.subr.mxu1 %v3557_v4  ;;  %4945 = vmatprep.subr.mxu0 %v3683_v7  ;;  %v3837_v4 = vld [vmem:[%s20679_s3 + $0xc80] sm:$0xff]  ;;  %v3935_v7 = vld [vmem:[%s20679_s3 + $0xf90] sm:$0xff] }
 0x2c9   :  { %4911 = vmatpush2.msra.mxu1 %v3556_v42  ;;  %4946 = vmatpush1.msra.mxu0 %v3682_v43  ;;  %v1361_v42 = vsub.s32 7, %v10628_v41  ;;  %v3836_v43 = vld [vmem:[%s20679_s3 + $0xc78] sm:$0xff] }
 0x2ca   :  { %4912 = vmatprep.subr.mxu1 %v3550_v48  ;;  %4947 = vmatprep.subr.mxu0 %v3676_v17  ;;  %v3934_v48 = vld [vmem:[%s20679_s3 + $0xf88] sm:$0xff] }
 0x2cb   :  { %4913 = vmatpush2.msra.mxu1 %v3549_v51  ;;  %4948 = vmatpush1.msra.mxu0 %v3675_v53  ;;  %v3830_v17 = vld [vmem:[%s20679_s3 + $0xc48] sm:$0xff]  ;;  %v3829_v51 = vld [vmem:[%s20679_s3 + $0xc40] sm:$0xff]  ;;  %v3927_v53 = vld [vmem:[%s20679_s3 + $0xf50] sm:$0xff] }
 0x2cc   :  { %4915 = vmatmul.mubr.f32.vlgmr.msra.gmra.mxu1 %v14645_v34  ;;  %4949 = vmatprep.subr.mxu0 %v3669_v57  ;;  %v3823_v57 = vld [vmem:[%s20679_s3 + $0xc10] sm:$0xff] }
 0x2cd   :  { %4992 = vmatprep.subr.mxu1 %v3991_v47  ;;  %4950 = vmatpush1.msra.mxu0 %v3668_v63  ;;  %v3921_v47 = vld [vmem:[%s20679_s3 + $0xf20] sm:$0xff] }
 0x2ce   :  { %4993 = vmatpush1.msra.mxu1 %v3990_v0  ;;  %5056 = vmatprep.mubr.f32.mxu1 %v14656_v1  ;;  %v10213_v63 = vld [vmem:[%s20678_s2] sm:$0xff] }
 0x2cf   :  { %4951 = vmatprep.subr.mxu0 %v3662_v49  ;;  %4994 = vmatprep.subr.mxu1 %v3984_v58  ;;  %v1362_v0 = vrot.slane %v10213_v63, %v1361_v42  ;;  %v3822_v49 = vld [vmem:[%s20679_s3 + $0xc08] sm:$0xff]  ;;  %v3920_v58 = vld [vmem:[%s20679_s3 + $0xf18] sm:$0xff]  ;;  %v4081_v63 = vld [vmem:[%s20679_s3 + $0x1420] sm:$0xff] }
 0x2d0   :  { %4952 = vmatpush1.msra.mxu0 %v3661_v2  ;;  %4995 = vmatpush1.msra.mxu1 %v3983_v36  ;;  %v3816_v2 = vld [vmem:[%s20679_s3 + $0xbd8] sm:$0xff]  ;;  %v3914_v36 = vld [vmem:[%s20679_s3 + $0xee8] sm:$0xff] }
 0x2d1   :  { %4953 = vmatprep.subr.mxu0 %v3879_v11  ;;  %4996 = vmatprep.subr.mxu1 %v3977_v3  ;;  %v14790_v11 = vpop.f32.mrf.mxu0  ;;  %v3815_v3 = vld [vmem:[%s20679_s3 + $0xbd0] sm:$0xff] }
 0x2d2   :  { %4954 = vmatpush2.msra.mxu0 %v3878_v60  ;;  %4997 = vmatpush1.msra.mxu1 %v3976_v37  ;;  %v3913_v60 = vld [vmem:[%s20679_s3 + $0xee0] sm:$0xff] }
 0x2d3   :  { %4955 = vmatprep.subr.mxu0 %v3872_v6  ;;  %4998 = vmatprep.subr.mxu1 %v3970_v16  ;;  %v3809_v37 = vld [vmem:[%s20679_s3 + $0xba0] sm:$0xff]  ;;  %v3907_v6 = vld [vmem:[%s20679_s3 + $0xeb0] sm:$0xff]  ;;  %v2361_v16 = vadd.f32 %v13941_v9, %v1362_v0  ;;  %v3900_v9 = vld [vmem:[%s20679_s3 + $0xe78] sm:$0xff] }
 0x2d4   :  { %4956 = vmatpush2.msra.mxu0 %v3871_v14  ;;  %4999 = vmatpush1.msra.mxu1 %v3969_v18  ;;  %v3808_v14 = vld [vmem:[%s20679_s3 + $0xb98] sm:$0xff]  ;;  %v3906_v18 = vld [vmem:[%s20679_s3 + $0xea8] sm:$0xff]  ;;  %v4207_v0 = vld [vmem:[%s20679_s3 + $0x1810] sm:$0xff] }
 0x2d5   :  { %4957 = vmatprep.subr.mxu0 %v3865_v19  ;;  %5000 = vmatprep.subr.mxu1 %v3963_v35  ;;  %v3802_v35 = vld [vmem:[%s20679_s3 + $0xb68] sm:$0xff] }
 0x2d6   :  { %4958 = vmatpush2.msra.mxu0 %v3864_v20  ;;  %5001 = vmatpush1.msra.mxu1 %v3962_v45  ;;  %v2432_v45 = vadd.f32 %v13973_v38, %v2361_v16  ;;  %v3893_v38 = vld [vmem:[%s20679_s3 + $0xe40] sm:$0xff] }
 0x2d7   :  { %4959 = vmatprep.subr.mxu0 %v3858_v22  ;;  %5002 = vmatprep.subr.mxu1 %v3956_v10  ;;  %v3801_v22 = vld [vmem:[%s20679_s3 + $0xb60] sm:$0xff]  ;;  %v3899_v10 = vld [vmem:[%s20679_s3 + $0xe70] sm:$0xff] }
 0x2d8   :  { %4960 = vmatpush2.msra.mxu0 %v3857_v26  ;;  %5003 = vmatpush1.msra.mxu1 %v3955_v29  ;;  %v3795_v26 = vld [vmem:[%s20679_s3 + $0xb30] sm:$0xff]  ;;  %v3892_v29 = vld [vmem:[%s20679_s3 + $0xe38] sm:$0xff]  ;;  %v4061_v16 = vld [vmem:[%s20679_s3 + $0x1380] sm:$0xff] }
 0x2d9   :  { %4961 = vmatprep.subr.mxu0 %v3851_v31  ;;  %5004 = vmatprep.subr.mxu1 %v3949_v24  ;;  %v3788_v31 = vld [vmem:[%s20679_s3 + $0xaf8] sm:$0xff]  ;;  %v3886_v24 = vld [vmem:[%s20679_s3 + $0xe08] sm:$0xff] }
 0x2da   :  { %4962 = vmatpush2.msra.mxu0 %v3850_v62  ;;  %5005 = vmatpush1.msra.mxu1 %v3948_v15  ;;  %v2503_v62 = vadd.f32 %v14375_v28, %v2432_v45  ;;  %v3787_v15 = vld [vmem:[%s20679_s3 + $0xaf0] sm:$0xff]  ;;  %v4053_v45 = vld [vmem:[%s20679_s3 + $0x1340] sm:$0xff] }
 0x2db   :  { %4963 = vmatprep.subr.mxu0 %v3844_v25  ;;  %5006 = vmatprep.subr.mxu1 %v3942_v32  ;;  %v3885_v25 = vld [vmem:[%s20679_s3 + $0xe00] sm:$0xff]  ;;  %v4103_v28 = vld [vmem:[%s20679_s3 + $0x14d0] sm:$0xff] }
 0x2dc   :  { %4964 = vmatpush2.msra.mxu0 %v3843_v33  ;;  %5007 = vmatpush1.msra.mxu1 %v3941_v39  ;;  %v3781_v32 = vld [vmem:[%s20679_s3 + $0xac0] sm:$0xff]  ;;  %v3780_v33 = vld [vmem:[%s20679_s3 + $0xab8] sm:$0xff]  ;;  %v4102_v39 = vld [vmem:[%s20679_s3 + $0x14c8] sm:$0xff]  ;;  %v2574_v42 = vadd.f32 %v14377_v8, %v2503_v62 }
 0x2dd   :  { %4965 = vmatprep.subr.mxu0 %v3837_v4  ;;  %5008 = vmatprep.subr.mxu1 %v3935_v7  ;;  %v3774_v4 = vld [vmem:[%s20679_s3 + $0xa88] sm:$0xff]  ;;  %v4096_v7 = vld [vmem:[%s20679_s3 + $0x1498] sm:$0xff]  ;;  %v4215_v8 = vld [vmem:[%s20679_s3 + $0x1850] sm:$0xff] }
 0x2de   :  { %4966 = vmatpush2.msra.mxu0 %v3836_v43  ;;  %5009 = vmatpush1.msra.mxu1 %v3934_v48  ;;  %v3773_v43 = vld [vmem:[%s20679_s3 + $0xa80] sm:$0xff]  ;;  %v4095_v48 = vld [vmem:[%s20679_s3 + $0x1490] sm:$0xff] }
 0x2df   :  { %4967 = vmatprep.subr.mxu0 %v3830_v17  ;;  %5010 = vmatprep.subr.mxu1 %v3928_v50  ;;  %v4089_v17 = vld [vmem:[%s20679_s3 + $0x1460] sm:$0xff]  ;;  %v14881_v50 = vmax.f32 %v12760_v46, 0.0  ;;  %v4082_v46 = vld [vmem:[%s20679_s3 + $0x1428] sm:$0xff] }
 0x2e0   :  { %4968 = vmatpush2.msra.mxu0 %v3829_v51  ;;  %5011 = vmatpush1.msra.mxu1 %v3927_v53  ;;  %v4088_v51 = vld [vmem:[%s20679_s3 + $0x1458] sm:$0xff]  ;;  %v4214_v53 = vld [vmem:[%s20679_s3 + $0x1848] sm:$0xff]  ;;  %v4165_v62 = vld [vmem:[%s20679_s3 + $0x16c0] sm:$0xff] }
 0x2e1   :  { %4969 = vmatprep.subr.mxu0 %v3823_v57  ;;  %5012 = vmatprep.subr.mxu1 %v3921_v47  ;;  %v14892_v57 = vmax.f32 %v2574_v42, 0.0  ;;  %v4208_v47 = vld [vmem:[%s20679_s3 + $0x1818] sm:$0xff]  ;;  %v4151_v42 = vld [vmem:[%s20679_s3 + $0x1650] sm:$0xff] }
 0x2e2   :  { %4970 = vmatpush2.msra.mxu0 %v3822_v49  ;;  %5013 = vmatpush1.msra.mxu1 %v3920_v58  ;;  %v4075_v49 = vld [vmem:[%s20679_s3 + $0x13f0] sm:$0xff]  ;;  %v4201_v58 = vld [vmem:[%s20679_s3 + $0x17e0] sm:$0xff] }
 0x2e3   :  { %4971 = vmatprep.subr.mxu0 %v3816_v2  ;;  %5014 = vmatprep.subr.mxu1 %v3914_v36  ;;  %v2784_v19 = vpop.f32.mrf.mxu0  ;;  %v4074_v2 = vld [vmem:[%s20679_s3 + $0x13e8] sm:$0xff]  ;;  %v4200_v36 = vld [vmem:[%s20679_s3 + $0x17d8] sm:$0xff] }
 0x2e4   :  { %4972 = vmatpush2.msra.mxu0 %v3815_v3  ;;  %5015 = vmatpush1.msra.mxu1 %v3913_v60  ;;  %v14818_v20 = vadd.f32 %v2784_v19, %v14417_v59  ;;  %v3794_v59 = vld [vmem:[%s20679_s3 + $0xb28] sm:$0xff]  ;;  %v4068_v3 = vld [vmem:[%s20679_s3 + $0x13b8] sm:$0xff] }
 0x2e5   :  { %4973 = vmatprep.subr.mxu0 %v3809_v37  ;;  %5016 = vmatprep.subr.mxu1 %v3907_v6  ;;  %v4194_v60 = vld [vmem:[%s20679_s3 + $0x17a8] sm:$0xff]  ;;  %v4067_v37 = vld [vmem:[%s20679_s3 + $0x13b0] sm:$0xff]  ;;  %v4193_v6 = vld [vmem:[%s20679_s3 + $0x17a0] sm:$0xff] }
 0x2e6   :  { %4974 = vmatpush2.msra.mxu0 %v3808_v14  ;;  %5017 = vmatpush1.msra.mxu1 %v3906_v18  ;;  %v4187_v14 = vld [vmem:[%s20679_s3 + $0x1770] sm:$0xff]  ;;  %v4060_v18 = vld [vmem:[%s20679_s3 + $0x1378] sm:$0xff]  ;;  %v4186_v19 = vld [vmem:[%s20679_s3 + $0x1768] sm:$0xff] }
 0x2e7   :  { %4975 = vmatprep.subr.mxu0 %v3802_v35  ;;  %5018 = vmatprep.subr.mxu1 %v3900_v9  ;;  %v4054_v35 = vld [vmem:[%s20679_s3 + $0x1348] sm:$0xff]  ;;  %v4180_v9 = vld [vmem:[%s20679_s3 + $0x1738] sm:$0xff] }
 0x2e8   :  { %4976 = vmatpush2.msra.mxu0 %v3801_v22  ;;  %5019 = vmatpush1.msra.mxu1 %v3899_v10  ;;  %v4179_v22 = vld [vmem:[%s20679_s3 + $0x1730] sm:$0xff] }
 0x2e9   :  { %4977 = vmatprep.subr.mxu0 %v3795_v26  ;;  %5020 = vmatprep.subr.mxu1 %v3893_v38  ;;  %v4047_v10 = vld [vmem:[%s20679_s3 + $0x1310] sm:$0xff]  ;;  %v4173_v26 = vld [vmem:[%s20679_s3 + $0x1700] sm:$0xff]  ;;  %v1370_v38 = vrot.slane %v14351_v12, %v14117_v5  ;;  %v4166_v12 = vld [vmem:[%s20679_s3 + $0x16c8] sm:$0xff] }
 0x2ea   :  { %4978 = vmatpush2.msra.mxu0 %v3794_v59  ;;  %5021 = vmatpush1.msra.mxu1 %v3892_v29  ;;  %v4046_v59 = vld [vmem:[%s20679_s3 + $0x1308] sm:$0xff]  ;;  %v4172_v29 = vld [vmem:[%s20679_s3 + $0x16f8] sm:$0xff] }
 0x2eb   :  { %4979 = vmatprep.subr.mxu0 %v3788_v31  ;;  %5022 = vmatprep.subr.mxu1 %v3886_v24  ;;  %v4040_v31 = vld [vmem:[%s20679_s3 + $0x12d8] sm:$0xff]  ;;  %v4039_v24 = vld [vmem:[%s20679_s3 + $0x12d0] sm:$0xff] }
 0x2ec   :  { %4980 = vmatpush2.msra.mxu0 %v3787_v15  ;;  %5023 = vmatpush1.msra.mxu1 %v3885_v25  ;;  %v4033_v15 = vld [vmem:[%s20679_s3 + $0x12a0] sm:$0xff]  ;;  %v4159_v25 = vld [vmem:[%s20679_s3 + $0x1690] sm:$0xff] }
 0x2ed   :  { %4981 = vmatprep.subr.mxu0 %v3781_v32  ;;  %5024 = vmatprep.subr.mxu1 %v4103_v28  ;;  %v2645_v32 = vadd.f32 %v14790_v11, %v1370_v38  ;;  %v4032_v28 = vld [vmem:[%s20679_s3 + $0x1298] sm:$0xff] }
 0x2ee   :  { %4982 = vmatpush2.msra.mxu0 %v3780_v33  ;;  %5025 = vmatpush2.msra.mxu1 %v4102_v39  ;;  %v4158_v33 = vld [vmem:[%s20679_s3 + $0x1688] sm:$0xff]  ;;  %v2715_v39 = vpop.f32.mrf.mxu1  ;;  %v4152_v11 = vld [vmem:[%s20679_s3 + $0x1658] sm:$0xff] }
 0x2ef   :  { %4983 = vmatprep.subr.mxu0 %v3774_v4  ;;  %5026 = vmatprep.subr.mxu1 %v4096_v7  ;;  %v4026_v4 = vld [vmem:[%s20679_s3 + $0x1268] sm:$0xff]  ;;  %v4025_v7 = vld [vmem:[%s20679_s3 + $0x1260] sm:$0xff]  ;;  %v4432_v38 = vld [vmem:[%s20679_s3 + $0x1f18] sm:$0xff] }
 0x2f0   :  { %4984 = vmatpush2.msra.mxu0 %v3773_v43  ;;  %5027 = vmatpush2.msra.mxu1 %v4095_v48  ;;  %v2786_v43 = vpop.f32.mrf.mxu0  ;;  %v4019_v48 = vld [vmem:[%s20679_s3 + $0x1230] sm:$0xff] }
 0x2f1   :  { %4986 = vmatmul.mubr.f32.vlgmr.msra.gmra.mxu0 %v14881_v50  ;;  %5028 = vmatprep.subr.mxu1 %v4089_v17  ;;  %v4145_v17 = vld [vmem:[%s20679_s3 + $0x1620] sm:$0xff] }
 0x2f2   :  { %5063 = vmatprep.subr.mxu0 %v4215_v8  ;;  %5029 = vmatpush2.msra.mxu1 %v4088_v51  ;;  %v2716_v8 = vadd.f32 %v2715_v39, %v2645_v32  ;;  %v4018_v51 = vld [vmem:[%s20679_s3 + $0x1228] sm:$0xff]  ;;  %v4319_v32 = vld [vmem:[%s20679_s3 + $0x1b90] sm:$0xff] }
 0x2f3   :  { %5064 = vmatpush1.msra.mxu0 %v4214_v53  ;;  %5127 = vmatprep.mubr.f32.mxu0 %v14892_v57  ;;  %v4144_v53 = vld [vmem:[%s20679_s3 + $0x1618] sm:$0xff]  ;;  %v4411_v39 = vld [vmem:[%s20679_s3 + $0x1e70] sm:$0xff] }
 0x2f4   :  { %5030 = vmatprep.subr.mxu1 %v4082_v46  ;;  %5065 = vmatprep.subr.mxu0 %v4208_v47  ;;  %v15019_v46 = vpop.f32.mrf.mxu1  ;;  %v4012_v47 = vld [vmem:[%s20679_s3 + $0x11f8] sm:$0xff] }
 0x2f5   :  { %5031 = vmatpush2.msra.mxu1 %v4081_v63  ;;  %5066 = vmatpush1.msra.mxu0 %v4207_v0  ;;  %v4138_v63 = vld [vmem:[%s20679_s3 + $0x15e8] sm:$0xff]  ;;  %v2787_v0 = vadd.f32 %v2786_v43, %v2716_v8  ;;  %v4305_v43 = vld [vmem:[%s20679_s3 + $0x1b20] sm:$0xff] }
 0x2f6   :  { %5032 = vmatprep.subr.mxu1 %v4075_v49  ;;  %5067 = vmatprep.subr.mxu0 %v4201_v58  ;;  %v4011_v49 = vld [vmem:[%s20679_s3 + $0x11f0] sm:$0xff]  ;;  %v4137_v58 = vld [vmem:[%s20679_s3 + $0x15e0] sm:$0xff] }
 0x2f7   :  { %5033 = vmatpush2.msra.mxu1 %v4074_v2  ;;  %5068 = vmatpush1.msra.mxu0 %v4200_v36  ;;  %v4005_v2 = vld [vmem:[%s20679_s3 + $0x11c0] sm:$0xff]  ;;  %v4131_v36 = vld [vmem:[%s20679_s3 + $0x15b0] sm:$0xff] }
 0x2f8   :  { %5034 = vmatprep.subr.mxu1 %v4068_v3  ;;  %5069 = vmatprep.subr.mxu0 %v4194_v60  ;;  %v2288_v3 = vadd.f32 %v13866_v30, %v13558_v61  ;;  %v4004_v60 = vld [vmem:[%s20679_s3 + $0x11b8] sm:$0xff]  ;;  %v4397_v8 = vld [vmem:[%s20679_s3 + $0x1e00] sm:$0xff] }
 0x2f9   :  { %5035 = vmatpush2.msra.mxu1 %v4067_v37  ;;  %5070 = vmatpush1.msra.mxu0 %v4193_v6  ;;  %v4130_v37 = vld [vmem:[%s20679_s3 + $0x15a8] sm:$0xff]  ;;  %v2857_v6 = vpop.f32.mrf.mxu1  ;;  %v4124_v61 = vld [vmem:[%s20679_s3 + $0x1578] sm:$0xff] }
 0x2fa   :  { %5036 = vmatprep.subr.mxu1 %v4061_v16  ;;  %5071 = vmatprep.subr.mxu0 %v4187_v14  ;;  %v3998_v16 = vld [vmem:[%s20679_s3 + $0x1188] sm:$0xff]  ;;  %v2858_v30 = vadd.f32 %v2857_v6, %v2787_v0  ;;  %v3997_v14 = vld [vmem:[%s20679_s3 + $0x1180] sm:$0xff]  ;;  %v4291_v0 = vld [vmem:[%s20679_s3 + $0x1ab0] sm:$0xff] }
 0x2fb   :  { %5037 = vmatpush2.msra.mxu1 %v4060_v18  ;;  %5072 = vmatpush1.msra.mxu0 %v4186_v19  ;;  %v4123_v18 = vld [vmem:[%s20679_s3 + $0x1570] sm:$0xff]  ;;  %v4117_v19 = vld [vmem:[%s20679_s3 + $0x1540] sm:$0xff] }
 0x2fc   :  { %5038 = vmatprep.subr.mxu1 %v4054_v35  ;;  %5073 = vmatprep.subr.mxu0 %v4180_v9  ;;  %v15062_v35 = vmax.f32 %v2288_v3, 0.0  ;;  %v4439_v9 = vld [vmem:[%s20679_s3 + $0x1f50] sm:$0xff]  ;;  %v4382_v3 = vld [vmem:[%s20679_s3 + $0x1d88] sm:$0xff]  ;;  %v4277_v6 = vld [vmem:[%s20679_s3 + $0x1a40] sm:$0xff] }
 0x2fd   :  { %5039 = vmatpush2.msra.mxu1 %v4053_v45  ;;  %5074 = vmatpush1.msra.mxu0 %v4179_v22  ;;  %v4116_v45 = vld [vmem:[%s20679_s3 + $0x1538] sm:$0xff]  ;;  %v4438_v22 = vld [vmem:[%s20679_s3 + $0x1f48] sm:$0xff] }
 0x2fe   :  { %5040 = vmatprep.subr.mxu1 %v4047_v10  ;;  %5075 = vmatprep.subr.mxu0 %v4173_v26  ;;  %v15073_v10 = vmax.f32 %v2858_v30, 0.0  ;;  %v4110_v26 = vld [vmem:[%s20679_s3 + $0x1508] sm:$0xff]  ;;  %v4369_v30 = vld [vmem:[%s20679_s3 + $0x1d20] sm:$0xff] }
 0x2ff   :  { %5041 = vmatpush2.msra.mxu1 %v4046_v59  ;;  %5076 = vmatpush1.msra.mxu0 %v4172_v29  ;;  %v4109_v59 = vld [vmem:[%s20679_s3 + $0x1500] sm:$0xff]  ;;  %v4431_v29 = vld [vmem:[%s20679_s3 + $0x1f10] sm:$0xff] }
 0x300   :  { %5042 = vmatprep.subr.mxu1 %v4040_v31  ;;  %5077 = vmatprep.subr.mxu0 %v4166_v12  ;;  %v4327_v31 = vld [vmem:[%s20679_s3 + $0x1bd0] sm:$0xff]  ;;  %v4425_v12 = vld [vmem:[%s20679_s3 + $0x1ee0] sm:$0xff] }
 0x301   :  { %5043 = vmatpush2.msra.mxu1 %v4039_v24  ;;  %5078 = vmatpush1.msra.mxu0 %v4165_v62  ;;  %v4326_v24 = vld [vmem:[%s20679_s3 + $0x1bc8] sm:$0xff]  ;;  %v4424_v62 = vld [vmem:[%s20679_s3 + $0x1ed8] sm:$0xff] }
 0x302   :  { %5044 = vmatprep.subr.mxu1 %v4033_v15  ;;  %5079 = vmatprep.subr.mxu0 %v4159_v25  ;;  %v4320_v15 = vld [vmem:[%s20679_s3 + $0x1b98] sm:$0xff]  ;;  %v4418_v25 = vld [vmem:[%s20679_s3 + $0x1ea8] sm:$0xff] }
 0x303   :  { %5045 = vmatpush2.msra.mxu1 %v4032_v28  ;;  %5080 = vmatpush1.msra.mxu0 %v4158_v33  ;;  %v4417_v28 = vld [vmem:[%s20679_s3 + $0x1ea0] sm:$0xff] }
 0x304   :  { %5046 = vmatprep.subr.mxu1 %v4026_v4  ;;  %5081 = vmatprep.subr.mxu0 %v4152_v11  ;;  %v4313_v33 = vld [vmem:[%s20679_s3 + $0x1b60] sm:$0xff]  ;;  %v4312_v4 = vld [vmem:[%s20679_s3 + $0x1b58] sm:$0xff]  ;;  %v4410_v11 = vld [vmem:[%s20679_s3 + $0x1e68] sm:$0xff] }
 0x305   :  { %5047 = vmatpush2.msra.mxu1 %v4025_v7  ;;  %5082 = vmatpush1.msra.mxu0 %v4151_v42  ;;  %v4306_v7 = vld [vmem:[%s20679_s3 + $0x1b28] sm:$0xff]  ;;  %v4404_v42 = vld [vmem:[%s20679_s3 + $0x1e38] sm:$0xff] }
 0x306   :  { %5048 = vmatprep.subr.mxu1 %v4019_v48  ;;  %5083 = vmatprep.subr.mxu0 %v4145_v17  ;;  %v4403_v48 = vld [vmem:[%s20679_s3 + $0x1e30] sm:$0xff] }
 0x307   :  { %5049 = vmatpush2.msra.mxu1 %v4018_v51  ;;  %5084 = vmatpush1.msra.mxu0 %v4144_v53  ;;  %v4299_v17 = vld [vmem:[%s20679_s3 + $0x1af0] sm:$0xff]  ;;  %v4298_v51 = vld [vmem:[%s20679_s3 + $0x1ae8] sm:$0xff]  ;;  %v4396_v53 = vld [vmem:[%s20679_s3 + $0x1df8] sm:$0xff] }
 0x308   :  { %5050 = vmatprep.subr.mxu1 %v4012_v47  ;;  %5085 = vmatprep.subr.mxu0 %v4138_v63  ;;  %v4292_v47 = vld [vmem:[%s20679_s3 + $0x1ab8] sm:$0xff]  ;;  %v4390_v63 = vld [vmem:[%s20679_s3 + $0x1dc8] sm:$0xff] }
 0x309   :  { %5051 = vmatpush2.msra.mxu1 %v4011_v49  ;;  %5086 = vmatpush1.msra.mxu0 %v4137_v58  ;;  %v4389_v49 = vld [vmem:[%s20679_s3 + $0x1dc0] sm:$0xff] }
 0x30a   :  { %5052 = vmatprep.subr.mxu1 %v4005_v2  ;;  %5087 = vmatprep.subr.mxu0 %v4131_v36  ;;  %v4285_v58 = vld [vmem:[%s20679_s3 + $0x1a80] sm:$0xff]  ;;  %v4383_v2 = vld [vmem:[%s20679_s3 + $0x1d90] sm:$0xff]  ;;  %v4284_v36 = vld [vmem:[%s20679_s3 + $0x1a78] sm:$0xff] }
 0x30b   :  { %5053 = vmatpush2.msra.mxu1 %v4004_v60  ;;  %5088 = vmatpush1.msra.mxu0 %v4130_v37  ;;  %v4278_v60 = vld [vmem:[%s20679_s3 + $0x1a48] sm:$0xff]  ;;  %v4376_v37 = vld [vmem:[%s20679_s3 + $0x1d58] sm:$0xff] }
 0x30c   :  { %5054 = vmatprep.subr.mxu1 %v3998_v16  ;;  %5089 = vmatprep.subr.mxu0 %v4124_v61  ;;  %v4375_v16 = vld [vmem:[%s20679_s3 + $0x1d50] sm:$0xff] }
 0x30d   :  { %5055 = vmatpush2.msra.mxu1 %v3997_v14  ;;  %5090 = vmatpush1.msra.mxu0 %v4123_v18  ;;  %v4271_v61 = vld [vmem:[%s20679_s3 + $0x1a10] sm:$0xff]  ;;  %v4270_v14 = vld [vmem:[%s20679_s3 + $0x1a08] sm:$0xff]  ;;  %v4368_v18 = vld [vmem:[%s20679_s3 + $0x1d18] sm:$0xff] }
 0x30e   :  { %5057 = vmatmul.mubr.f32.vlgmr.msra.gmra.mxu1 %v15062_v35  ;;  %5091 = vmatprep.subr.mxu0 %v4117_v19  ;;  %v15197_v19 = vpop.f32.mrf.mxu1 }
 0x30f   :  { %5134 = vmatprep.subr.mxu1 %v4439_v9  ;;  %5092 = vmatpush1.msra.mxu0 %v4116_v45  ;;  %v4264_v9 = vld [vmem:[%s20679_s3 + $0x19d8] sm:$0xff]  ;;  %v4362_v45 = vld [vmem:[%s20679_s3 + $0x1ce8] sm:$0xff] }
 0x310   :  { %5135 = vmatpush1.msra.mxu1 %v4438_v22  ;;  %5198 = vmatprep.mubr.f32.mxu1 %v15073_v10  ;;  %v4263_v22 = vld [vmem:[%s20679_s3 + $0x19d0] sm:$0xff] }
 0x311   :  { %5093 = vmatprep.subr.mxu0 %v4110_v26  ;;  %5136 = vmatprep.subr.mxu1 %v4432_v38  ;;  %v4361_v26 = vld [vmem:[%s20679_s3 + $0x1ce0] sm:$0xff] }
 0x312   :  { %5094 = vmatpush1.msra.mxu0 %v4109_v59  ;;  %5137 = vmatpush1.msra.mxu1 %v4431_v29  ;;  %v4257_v38 = vld [vmem:[%s20679_s3 + $0x19a0] sm:$0xff]  ;;  %v4355_v59 = vld [vmem:[%s20679_s3 + $0x1cb0] sm:$0xff]  ;;  %v15220_v29 = vld [vmem:[%s20678_s2 + $0x8] sm:$0x1f] }
 0x313   :  { %5095 = vmatprep.subr.mxu0 %v4327_v31  ;;  %5138 = vmatprep.subr.mxu1 %v4425_v12  ;;  %v1378_v31 = vrot.slane %v15220_v29, %v14328_v56  ;;  %v4256_v12 = vld [vmem:[%s20679_s3 + $0x1998] sm:$0xff] }
 0x314   :  { %5096 = vmatpush2.msra.mxu0 %v4326_v24  ;;  %5139 = vmatpush1.msra.mxu1 %v4424_v62  ;;  %v4354_v24 = vld [vmem:[%s20679_s3 + $0x1ca8] sm:$0xff] }
 0x315   :  { %5097 = vmatprep.subr.mxu0 %v4320_v15  ;;  %5140 = vmatprep.subr.mxu1 %v4418_v25  ;;  %v2928_v15 = vpop.f32.mrf.mxu1  ;;  %v4250_v25 = vld [vmem:[%s20679_s3 + $0x1968] sm:$0xff] }
 0x316   :  { %5098 = vmatpush2.msra.mxu0 %v4319_v32  ;;  %5141 = vmatpush1.msra.mxu1 %v4417_v28  ;;  %v4348_v32 = vld [vmem:[%s20679_s3 + $0x1c78] sm:$0xff]  ;;  %v4249_v28 = vld [vmem:[%s20679_s3 + $0x1960] sm:$0xff] }
 0x317   :  { %5099 = vmatprep.subr.mxu0 %v4313_v33  ;;  %5142 = vmatprep.subr.mxu1 %v4411_v39  ;;  %v4347_v33 = vld [vmem:[%s20679_s3 + $0x1c70] sm:$0xff] }
 0x318   :  { %5100 = vmatpush2.msra.mxu0 %v4312_v4  ;;  %5143 = vmatpush1.msra.mxu1 %v4410_v11  ;;  %v4243_v39 = vld [vmem:[%s20679_s3 + $0x1930] sm:$0xff]  ;;  %v4341_v4 = vld [vmem:[%s20679_s3 + $0x1c40] sm:$0xff] }
 0x319   :  { %5101 = vmatprep.subr.mxu0 %v4306_v7  ;;  %5144 = vmatprep.subr.mxu1 %v4404_v42  ;;  %v2929_v42 = vadd.f32 %v2928_v15, %v1378_v31  ;;  %v4523_v31 = vld [vmem:[%s20679_s3 + $0x21f0] sm:$0xff]  ;;  %v4648_v15 = vld [vmem:[%s20679_s3 + $0x25d8] sm:$0xff] }
 0x31a   :  { %5102 = vmatpush2.msra.mxu0 %v4305_v43  ;;  %5145 = vmatpush1.msra.mxu1 %v4403_v48  ;;  %v4242_v43 = vld [vmem:[%s20679_s3 + $0x1928] sm:$0xff]  ;;  %v4340_v48 = vld [vmem:[%s20679_s3 + $0x1c38] sm:$0xff] }
 0x31b   :  { %5103 = vmatprep.subr.mxu0 %v4299_v17  ;;  %5146 = vmatprep.subr.mxu1 %v4397_v8  ;;  %v4236_v17 = vld [vmem:[%s20679_s3 + $0x18f8] sm:$0xff]  ;;  %v4334_v8 = vld [vmem:[%s20679_s3 + $0x1c08] sm:$0xff] }
 0x31c   :  { %5104 = vmatpush2.msra.mxu0 %v4298_v51  ;;  %5147 = vmatpush1.msra.mxu1 %v4396_v53  ;;  %v4235_v51 = vld [vmem:[%s20679_s3 + $0x18f0] sm:$0xff]  ;;  %v4333_v53 = vld [vmem:[%s20679_s3 + $0x1c00] sm:$0xff] }
 0x31d   :  { %5105 = vmatprep.subr.mxu0 %v4292_v47  ;;  %5148 = vmatprep.subr.mxu1 %v4390_v63  ;;  %v4229_v63 = vld [vmem:[%s20679_s3 + $0x18c0] sm:$0xff] }
 0x31e   :  { %5106 = vmatpush2.msra.mxu0 %v4291_v0  ;;  %5149 = vmatpush1.msra.mxu1 %v4389_v49  ;;  %v4551_v0 = vld [vmem:[%s20679_s3 + $0x22d0] sm:$0xff] }
 0x31f   :  { %5107 = vmatprep.subr.mxu0 %v4285_v58  ;;  %5150 = vmatprep.subr.mxu1 %v4383_v2  ;;  %v4228_v2 = vld [vmem:[%s20679_s3 + $0x18b8] sm:$0xff] }
 0x320   :  { %5108 = vmatpush2.msra.mxu0 %v4284_v36  ;;  %5151 = vmatpush1.msra.mxu1 %v4382_v3  ;;  %v4550_v36 = vld [vmem:[%s20679_s3 + $0x22c8] sm:$0xff] }
 0x321   :  { %5109 = vmatprep.subr.mxu0 %v4278_v60  ;;  %5152 = vmatprep.subr.mxu1 %v4376_v37  ;;  %v4222_v3 = vld [vmem:[%s20679_s3 + $0x1888] sm:$0xff]  ;;  %v4544_v60 = vld [vmem:[%s20679_s3 + $0x2298] sm:$0xff]  ;;  %v4221_v37 = vld [vmem:[%s20679_s3 + $0x1880] sm:$0xff] }
 0x322   :  { %5110 = vmatpush2.msra.mxu0 %v4277_v6  ;;  %5153 = vmatpush1.msra.mxu1 %v4375_v16  ;;  %v15250_v7 = vpop.f32.mrf.mxu1  ;;  %v4543_v6 = vld [vmem:[%s20679_s3 + $0x2290] sm:$0xff] }
 0x323   :  { %5111 = vmatprep.subr.mxu0 %v4271_v61  ;;  %5154 = vmatprep.subr.mxu1 %v4369_v30  ;;  %v4537_v61 = vld [vmem:[%s20679_s3 + $0x2260] sm:$0xff] }
 0x324   :  { %5112 = vmatpush2.msra.mxu0 %v4270_v14  ;;  %5155 = vmatpush1.msra.mxu1 %v4368_v18  ;;  %v3070_v49 = vpop.f32.mrf.mxu1  ;;  %v15300_v14 = vmax.f32 %v13993_v54, 0.0  ;;  %v4663_v18 = vld [vmem:[%s20679_s3 + $0x2650] sm:$0xff]  ;;  %v4530_v54 = vld [vmem:[%s20679_s3 + $0x2228] sm:$0xff] }
 0x325   :  { %5113 = vmatprep.subr.mxu0 %v4264_v9  ;;  %5156 = vmatprep.subr.mxu1 %v4362_v45  ;;  %v15230_v62 = vpop.f32.mrf.mxu0  ;;  %v4536_v9 = vld [vmem:[%s20679_s3 + $0x2258] sm:$0xff]  ;;  %v4662_v45 = vld [vmem:[%s20679_s3 + $0x2648] sm:$0xff] }
 0x326   :  { %5114 = vmatpush2.msra.mxu0 %v4263_v22  ;;  %5157 = vmatpush1.msra.mxu1 %v4361_v26  ;;  %v4656_v26 = vld [vmem:[%s20679_s3 + $0x2618] sm:$0xff] }
 0x327   :  { %5115 = vmatprep.subr.mxu0 %v4257_v38  ;;  %5158 = vmatprep.subr.mxu1 %v4355_v59  ;;  %v2999_v11 = vpop.f32.mrf.mxu0  ;;  %v4529_v38 = vld [vmem:[%s20679_s3 + $0x2220] sm:$0xff]  ;;  %v4655_v59 = vld [vmem:[%s20679_s3 + $0x2610] sm:$0xff] }
 0x328   :  { %5116 = vmatpush2.msra.mxu0 %v4256_v12  ;;  %5159 = vmatpush1.msra.mxu1 %v4354_v24  ;;  %v3000_v47 = vadd.f32 %v2999_v11, %v2929_v42  ;;  %v4649_v12 = vld [vmem:[%s20679_s3 + $0x25e0] sm:$0xff]  ;;  %v4522_v24 = vld [vmem:[%s20679_s3 + $0x21e8] sm:$0xff]  ;;  %v4635_v11 = vld [vmem:[%s20679_s3 + $0x2570] sm:$0xff] }
 0x329   :  { %5117 = vmatprep.subr.mxu0 %v4250_v25  ;;  %5160 = vmatprep.subr.mxu1 %v4348_v32  ;;  %v4516_v25 = vld [vmem:[%s20679_s3 + $0x21b8] sm:$0xff] }
 0x32a   :  { %5118 = vmatpush2.msra.mxu0 %v4249_v28  ;;  %5161 = vmatpush1.msra.mxu1 %v4347_v33  ;;  %v15276_v58 = vpop.f32.mrf.mxu0  ;;  %v3071_v16 = vadd.f32 %v3070_v49, %v3000_v47  ;;  %v4642_v28 = vld [vmem:[%s20679_s3 + $0x25a8] sm:$0xff]  ;;  %v4515_v33 = vld [vmem:[%s20679_s3 + $0x21b0] sm:$0xff]  ;;  %v4508_v42 = vld [vmem:[%s20679_s3 + $0x2178] sm:$0xff] }
 0x32b   :  { %5119 = vmatprep.subr.mxu0 %v4243_v39  ;;  %5162 = vmatprep.subr.mxu1 %v4341_v4  ;;  %v4641_v39 = vld [vmem:[%s20679_s3 + $0x25a0] sm:$0xff]  ;;  %v4488_v49 = vld [vmem:[%s20679_s3 + $0x20d8] sm:$0xff] }
 0x32c   :  { %5120 = vmatpush2.msra.mxu0 %v4242_v43  ;;  %5163 = vmatpush1.msra.mxu1 %v4340_v48  ;;  %v3141_v30 = vpop.f32.mrf.mxu0  ;;  %v4509_v4 = vld [vmem:[%s20679_s3 + $0x2180] sm:$0xff]  ;;  %v4634_v43 = vld [vmem:[%s20679_s3 + $0x2568] sm:$0xff] }
 0x32d   :  { %5121 = vmatprep.subr.mxu0 %v4236_v17  ;;  %5164 = vmatprep.subr.mxu1 %v4334_v8  ;;  %v3142_v22 = vadd.f32 %v3141_v30, %v3071_v16  ;;  %v4502_v48 = vld [vmem:[%s20679_s3 + $0x2148] sm:$0xff]  ;;  %v4628_v17 = vld [vmem:[%s20679_s3 + $0x2538] sm:$0xff]  ;;  %v4501_v8 = vld [vmem:[%s20679_s3 + $0x2140] sm:$0xff] }
 0x32e   :  { %5122 = vmatpush2.msra.mxu0 %v4235_v51  ;;  %5165 = vmatpush1.msra.mxu1 %v4333_v53  ;;  %v4627_v51 = vld [vmem:[%s20679_s3 + $0x2530] sm:$0xff]  ;;  %v4621_v47 = vld [vmem:[%s20679_s3 + $0x2500] sm:$0xff]  ;;  %v4606_v16 = vld [vmem:[%s20679_s3 + $0x2488] sm:$0xff] }
 0x32f   :  { %5123 = vmatprep.subr.mxu0 %v4229_v63  ;;  %5166 = vmatprep.subr.mxu1 %v4551_v0  ;;  %v15339_v32 = vmax.f32 %v3142_v22, 0.0  ;;  %v4495_v53 = vld [vmem:[%s20679_s3 + $0x2110] sm:$0xff]  ;;  %v4494_v63 = vld [vmem:[%s20679_s3 + $0x2108] sm:$0xff]  ;;  %v4620_v0 = vld [vmem:[%s20679_s3 + $0x24f8] sm:$0xff] }
 0x330   :  { %5124 = vmatpush2.msra.mxu0 %v4228_v2  ;;  %5167 = vmatpush2.msra.mxu1 %v4550_v36  ;;  %v4614_v2 = vld [vmem:[%s20679_s3 + $0x24c8] sm:$0xff]  ;;  %v4487_v36 = vld [vmem:[%s20679_s3 + $0x20d0] sm:$0xff]  ;;  %v4600_v30 = vld [vmem:[%s20679_s3 + $0x2458] sm:$0xff] }
 0x331   :  { %5125 = vmatprep.subr.mxu0 %v4222_v3  ;;  %5168 = vmatprep.subr.mxu1 %v4544_v60  ;;  %v4613_v3 = vld [vmem:[%s20679_s3 + $0x24c0] sm:$0xff] }
 0x332   :  { %5126 = vmatpush2.msra.mxu0 %v4221_v37  ;;  %5169 = vmatpush2.msra.mxu1 %v4543_v6  ;;  %v4481_v60 = vld [vmem:[%s20679_s3 + $0x20a0] sm:$0xff]  ;;  %v4607_v37 = vld [vmem:[%s20679_s3 + $0x2490] sm:$0xff]  ;;  %v4480_v6 = vld [vmem:[%s20679_s3 + $0x2098] sm:$0xff] }
 0x333   :  { %5128 = vmatmul.mubr.f32.vlgmr.msra.gmra.mxu0 %v15300_v14  ;;  %5170 = vmatprep.subr.mxu1 %v4537_v61  ;;  %v4474_v61 = vld [vmem:[%s20679_s3 + $0x2068] sm:$0xff]  ;;  %v4593_v22 = vld [vmem:[%s20679_s3 + $0x2420] sm:$0xff] }
 0x334   :  { %5205 = vmatprep.subr.mxu0 %v4663_v18  ;;  %5171 = vmatpush2.msra.mxu1 %v4536_v9  ;;  %v4473_v18 = vld [vmem:[%s20679_s3 + $0x2060] sm:$0xff]  ;;  %v4599_v9 = vld [vmem:[%s20679_s3 + $0x2450] sm:$0xff] }
 0x335   :  { %5206 = vmatpush1.msra.mxu0 %v4662_v45  ;;  %5172 = vmatprep.subr.mxu1 %v4530_v54  ;;  %v4467_v54 = vld [vmem:[%s20679_s3 + $0x2030] sm:$0xff] }
 0x336   :  { %5207 = vmatprep.subr.mxu0 %v4656_v26  ;;  %5173 = vmatpush2.msra.mxu1 %v4529_v38  ;;  %v4466_v26 = vld [vmem:[%s20679_s3 + $0x2028] sm:$0xff]  ;;  %v4592_v38 = vld [vmem:[%s20679_s3 + $0x2418] sm:$0xff] }
 0x337   :  { %5208 = vmatpush1.msra.mxu0 %v4655_v59  ;;  %5174 = vmatprep.subr.mxu1 %v4523_v31  ;;  %v4460_v59 = vld [vmem:[%s20679_s3 + $0x1ff8] sm:$0xff]  ;;  %v4586_v31 = vld [vmem:[%s20679_s3 + $0x23e8] sm:$0xff] }
 0x338   :  { %5209 = vmatprep.subr.mxu0 %v4649_v12  ;;  %5175 = vmatpush2.msra.mxu1 %v4522_v24  ;;  %v4459_v24 = vld [vmem:[%s20679_s3 + $0x1ff0] sm:$0xff] }
 0x339   :  { %5210 = vmatpush1.msra.mxu0 %v4648_v15  ;;  %5176 = vmatprep.subr.mxu1 %v4516_v25  ;;  %v4585_v15 = vld [vmem:[%s20679_s3 + $0x23e0] sm:$0xff] }
 0x33a   :  { %5211 = vmatprep.subr.mxu0 %v4642_v28  ;;  %5177 = vmatpush2.msra.mxu1 %v4515_v33  ;;  %v4453_v25 = vld [vmem:[%s20679_s3 + $0x1fc0] sm:$0xff]  ;;  %v4579_v28 = vld [vmem:[%s20679_s3 + $0x23b0] sm:$0xff] }
 0x33b   :  { %5212 = vmatpush1.msra.mxu0 %v4641_v39  ;;  %5269 = vmatprep.mubr.f32.mxu0 %v15339_v32  ;;  %v2856_v39 = vadd.f32 %v15019_v46, %v14818_v20  ;;  %v4572_v20 = vld [vmem:[%s20679_s3 + $0x2378] sm:$0xff] }
 0x33c   :  { %5178 = vmatprep.subr.mxu1 %v4509_v4  ;;  %5213 = vmatprep.subr.mxu0 %v4635_v11  ;;  %v4452_v4 = vld [vmem:[%s20679_s3 + $0x1fb8] sm:$0xff]  ;;  %v4578_v11 = vld [vmem:[%s20679_s3 + $0x23a8] sm:$0xff] }
 0x33d   :  { %5179 = vmatpush2.msra.mxu1 %v4508_v42  ;;  %5214 = vmatpush1.msra.mxu0 %v4634_v43  ;;  %v4446_v42 = vld [vmem:[%s20679_s3 + $0x1f88] sm:$0xff]  ;;  %v4445_v43 = vld [vmem:[%s20679_s3 + $0x1f80] sm:$0xff] }
 0x33e   :  { %5180 = vmatprep.subr.mxu1 %v4502_v48  ;;  %5215 = vmatprep.subr.mxu0 %v4628_v17  ;;  %v4571_v48 = vld [vmem:[%s20679_s3 + $0x2370] sm:$0xff]  ;;  %v4565_v17 = vld [vmem:[%s20679_s3 + $0x2340] sm:$0xff] }
 0x33f   :  { %5181 = vmatpush2.msra.mxu1 %v4501_v8  ;;  %5216 = vmatpush1.msra.mxu0 %v4627_v51  ;;  %v15482_v8 = vmax.f32 %v2856_v39, 0.0  ;;  %v3545_v51 = vld [vmem:[%s20679_s3 + $0x360] sm:$0xff]  ;;  %v4740_v39 = vld [vmem:[%s20679_s3 + $0x28b8] sm:$0xff] }
 0x340   :  { %5182 = vmatprep.subr.mxu1 %v4495_v53  ;;  %5217 = vmatprep.subr.mxu0 %v4621_v47  ;;  %v4564_v53 = vld [vmem:[%s20679_s3 + $0x2338] sm:$0xff] }
 0x341   :  { %5183 = vmatpush2.msra.mxu1 %v4494_v63  ;;  %5218 = vmatpush1.msra.mxu0 %v4620_v0  ;;  %v3544_v47 = vld [vmem:[%s20679_s3 + $0x358] sm:$0xff]  ;;  %v4558_v63 = vld [vmem:[%s20679_s3 + $0x2308] sm:$0xff] }
 0x342   :  { %5184 = vmatprep.subr.mxu1 %v4488_v49  ;;  %5219 = vmatprep.subr.mxu0 %v4614_v2  ;;  %v3538_v0 = vld [vmem:[%s20679_s3 + $0x328] sm:$0xff]  ;;  %v4557_v49 = vld [vmem:[%s20679_s3 + $0x2300] sm:$0xff] }
 0x343   :  { %5185 = vmatpush2.msra.mxu1 %v4487_v36  ;;  %5220 = vmatpush1.msra.mxu0 %v4613_v3  ;;  %v3537_v2 = vld [vmem:[%s20679_s3 + $0x320] sm:$0xff]  ;;  %v4775_v36 = vld [vmem:[%s20679_s3 + $0x29d0] sm:$0xff] }
 0x344   :  { %5186 = vmatprep.subr.mxu1 %v4481_v60  ;;  %5221 = vmatprep.subr.mxu0 %v4607_v37  ;;  %v15423_v45 = vpop.f32.mrf.mxu1  ;;  %v3531_v3 = vld [vmem:[%s20679_s3 + $0x2f0] sm:$0xff]  ;;  %v4774_v60 = vld [vmem:[%s20679_s3 + $0x29c8] sm:$0xff] }
 0x345   :  { %5187 = vmatpush2.msra.mxu1 %v4480_v6  ;;  %5222 = vmatpush1.msra.mxu0 %v4606_v16  ;;  %v3530_v37 = vld [vmem:[%s20679_s3 + $0x2e8] sm:$0xff]  ;;  %v4768_v6 = vld [vmem:[%s20679_s3 + $0x2998] sm:$0xff] }
 0x346   :  { %5188 = vmatprep.subr.mxu1 %v4474_v61  ;;  %5223 = vmatprep.subr.mxu0 %v4600_v30  ;;  %v15443_v12 = vpop.f32.mrf.mxu1  ;;  %v3524_v16 = vld [vmem:[%s20679_s3 + $0x2b8] sm:$0xff]  ;;  %v4767_v61 = vld [vmem:[%s20679_s3 + $0x2990] sm:$0xff] }
 0x347   :  { %5189 = vmatpush2.msra.mxu1 %v4473_v18  ;;  %5224 = vmatpush1.msra.mxu0 %v4599_v9  ;;  %v3523_v30 = vld [vmem:[%s20679_s3 + $0x2b0] sm:$0xff]  ;;  %v4761_v18 = vld [vmem:[%s20679_s3 + $0x2960] sm:$0xff] }
 0x348   :  { %5190 = vmatprep.subr.mxu1 %v4467_v54  ;;  %5225 = vmatprep.subr.mxu0 %v4593_v22  ;;  %v3517_v9 = vld [vmem:[%s20679_s3 + $0x280] sm:$0xff]  ;;  %v4760_v54 = vld [vmem:[%s20679_s3 + $0x2958] sm:$0xff] }
 0x349   :  { %5191 = vmatpush2.msra.mxu1 %v4466_v26  ;;  %5226 = vmatpush1.msra.mxu0 %v4592_v38  ;;  %v15457_v33 = vpop.f32.mrf.mxu1  ;;  %v3516_v22 = vld [vmem:[%s20679_s3 + $0x278] sm:$0xff]  ;;  %v4754_v26 = vld [vmem:[%s20679_s3 + $0x2928] sm:$0xff] }
 0x34a   :  { %5192 = vmatprep.subr.mxu1 %v4460_v59  ;;  %5227 = vmatprep.subr.mxu0 %v4586_v31  ;;  %v3510_v38 = vld [vmem:[%s20679_s3 + $0x248] sm:$0xff]  ;;  %v4753_v59 = vld [vmem:[%s20679_s3 + $0x2920] sm:$0xff] }
 0x34b   :  { %5193 = vmatpush2.msra.mxu1 %v4459_v24  ;;  %5228 = vmatpush1.msra.mxu0 %v4585_v15  ;;  %v10110_v46 = vpop.f32.mrf.mxu1  ;;  %v3509_v31 = vld [vmem:[%s20679_s3 + $0x240] sm:$0xff]  ;;  %v4747_v24 = vld [vmem:[%s20679_s3 + $0x28f0] sm:$0xff] }
 0x34c   :  { %5194 = vmatprep.subr.mxu1 %v4453_v25  ;;  %5229 = vmatprep.subr.mxu0 %v4579_v28  ;;  %v3503_v15 = vld [vmem:[%s20679_s3 + $0x210] sm:$0xff]  ;;  %v4746_v25 = vld [vmem:[%s20679_s3 + $0x28e8] sm:$0xff]  ;;  %v3489_v46 = vld [vmem:[%s20679_s3 + $0x1a0] sm:$0xff] }
 0x34d   :  { %5195 = vmatpush2.msra.mxu1 %v4452_v4  ;;  %5230 = vmatpush1.msra.mxu0 %v4578_v11  ;;  %v3502_v28 = vld [vmem:[%s20679_s3 + $0x208] sm:$0xff]  ;;  %v3496_v4 = vld [vmem:[%s20679_s3 + $0x1d8] sm:$0xff]  ;;  %v4739_v11 = vld [vmem:[%s20679_s3 + $0x28b0] sm:$0xff] }
 0x34e   :  { %5196 = vmatprep.subr.mxu1 %v4446_v42  ;;  %5231 = vmatprep.subr.mxu0 %v4572_v20  ;;  %v3495_v42 = vld [vmem:[%s20679_s3 + $0x1d0] sm:$0xff]  ;;  %v4733_v20 = vld [vmem:[%s20679_s3 + $0x2880] sm:$0xff] }
 0x34f   :  { %5197 = vmatpush2.msra.mxu1 %v4445_v43  ;;  %5232 = vmatpush1.msra.mxu0 %v4571_v48  ;;  %v4732_v43 = vld [vmem:[%s20679_s3 + $0x2878] sm:$0xff] }
 0x350   :  { %5199 = vmatmul.mubr.f32.vlgmr.msra.gmra.mxu1 %v15482_v8  ;;  %5233 = vmatprep.subr.mxu0 %v4565_v17  ;;  %v3488_v48 = vld [vmem:[%s20679_s3 + $0x198] sm:$0xff]  ;;  %v4726_v17 = vld [vmem:[%s20679_s3 + $0x2848] sm:$0xff] }
 0x351   :  { %5347 = vmatprep.subr.mxu1 %v3545_v51  ;;  %5234 = vmatpush1.msra.mxu0 %v4564_v53  ;;  %v3482_v51 = vld [vmem:[%s20679_s3 + $0x168] sm:$0xff]  ;;  %v1374_v53 = vrot.slane %v15220_v29, %v12653_v55 }
 0x352   :  { %5348 = vmatpush1.msra.mxu1 %v3544_v47  ;;  %5411 = vmatprep.mubr.f32.mxu1 %v14230_v13  ;;  %v4725_v47 = vld [vmem:[%s20679_s3 + $0x2840] sm:$0xff] }
 0x353   :  { %5235 = vmatprep.subr.mxu0 %v4558_v63  ;;  %5349 = vmatprep.subr.mxu1 %v3538_v0  ;;  %v3481_v63 = vld [vmem:[%s20679_s3 + $0x160] sm:$0xff]  ;;  %v4719_v0 = vld [vmem:[%s20679_s3 + $0x2810] sm:$0xff] }
 0x354   :  { %5236 = vmatpush1.msra.mxu0 %v4557_v49  ;;  %5350 = vmatpush1.msra.mxu1 %v3537_v2  ;;  %v3475_v49 = vld [vmem:[%s20679_s3 + $0x130] sm:$0xff]  ;;  %v9426_v2 = vpop.f32.mrf.mxu0 }
 0x355   :  { %5237 = vmatprep.subr.mxu0 %v4775_v36  ;;  %5351 = vmatprep.subr.mxu1 %v3531_v3  ;;  %v4718_v36 = vld [vmem:[%s20679_s3 + $0x2808] sm:$0xff] }
 0x356   :  { %5238 = vmatpush2.msra.mxu0 %v4774_v60  ;;  %5352 = vmatpush1.msra.mxu1 %v3530_v37  ;;  %v3474_v3 = vld [vmem:[%s20679_s3 + $0x128] sm:$0xff]  ;;  %v4712_v60 = vld [vmem:[%s20679_s3 + $0x27d8] sm:$0xff] }
 0x357   :  { %5239 = vmatprep.subr.mxu0 %v4768_v6  ;;  %5353 = vmatprep.subr.mxu1 %v3524_v16  ;;  %v3468_v37 = vld [vmem:[%s20679_s3 + $0xf8] sm:$0xff]  ;;  %v2927_v6 = vadd.f32 %v15197_v19, %v1374_v53  ;;  %v4711_v16 = vld [vmem:[%s20679_s3 + $0x27d0] sm:$0xff]  ;;  %v3461_v19 = vld [vmem:[%s20679_s3 + $0xc0] sm:$0xff] }
 0x358   :  { %5240 = vmatpush2.msra.mxu0 %v4767_v61  ;;  %5354 = vmatpush1.msra.mxu1 %v3523_v30  ;;  %v3467_v61 = vld [vmem:[%s20679_s3 + $0xf0] sm:$0xff]  ;;  %v4705_v30 = vld [vmem:[%s20679_s3 + $0x27a0] sm:$0xff]  ;;  %v4670_v53 = vld [vmem:[%s20679_s3 + $0x2688] sm:$0xff] }
 0x359   :  { %5241 = vmatprep.subr.mxu0 %v4761_v18  ;;  %5355 = vmatprep.subr.mxu1 %v3517_v9  ;;  %v2998_v18 = vadd.f32 %v15230_v62, %v2927_v6  ;;  %v9427_v9 = vpop.f32.mrf.mxu0  ;;  %v3454_v62 = vld [vmem:[%s20679_s3 + $0x88] sm:$0xff] }
 0x35a   :  { %5242 = vmatpush2.msra.mxu0 %v4760_v54  ;;  %5356 = vmatpush1.msra.mxu1 %v3516_v22  ;;  %v4704_v54 = vld [vmem:[%s20679_s3 + $0x2798] sm:$0xff] }
 0x35b   :  { %5243 = vmatprep.subr.mxu0 %v4754_v26  ;;  %5357 = vmatprep.subr.mxu1 %v3510_v38  ;;  %v3460_v22 = vld [vmem:[%s20679_s3 + $0xb8] sm:$0xff]  ;;  %v4698_v26 = vld [vmem:[%s20679_s3 + $0x2768] sm:$0xff]  ;;  %v4697_v38 = vld [vmem:[%s20679_s3 + $0x2760] sm:$0xff] }
 0x35c   :  { %5244 = vmatpush2.msra.mxu0 %v4753_v59  ;;  %5358 = vmatpush1.msra.mxu1 %v3509_v31  ;;  %v3453_v59 = vld [vmem:[%s20679_s3 + $0x80] sm:$0xff]  ;;  %v1382_v31 = vrot.slane %v15220_v29, %v13112_v23  ;;  %v3446_v29 = vld [vmem:[%s20679_s3 + $0x48] sm:$0xff] }
 0x35d   :  { %5245 = vmatprep.subr.mxu0 %v4747_v24  ;;  %5359 = vmatprep.subr.mxu1 %v3503_v15  ;;  %v9428_v24 = vadd.f32 %v9427_v9, %v9426_v2  ;;  %v4691_v15 = vld [vmem:[%s20679_s3 + $0x2730] sm:$0xff] }
 0x35e   :  { %5246 = vmatpush2.msra.mxu0 %v4746_v25  ;;  %5360 = vmatpush1.msra.mxu1 %v3502_v28  ;;  %v3447_v25 = vld [vmem:[%s20679_s3 + $0x50] sm:$0xff]  ;;  %v3069_v28 = vadd.f32 %v15250_v7, %v2998_v18  ;;  %v3440_v7 = vld [vmem:[%s20679_s3 + $0x18] sm:$0xff]  ;;  %v3629_v18 = vld [vmem:[%s20679_s3 + $0x600] sm:$0xff] }
 0x35f   :  { %5247 = vmatprep.subr.mxu0 %v4740_v39  ;;  %5361 = vmatprep.subr.mxu1 %v3496_v4  ;;  %v4690_v39 = vld [vmem:[%s20679_s3 + $0x2728] sm:$0xff]  ;;  %v4684_v4 = vld [vmem:[%s20679_s3 + $0x26f8] sm:$0xff]  ;;  %v3643_v2 = vld [vmem:[%s20679_s3 + $0x670] sm:$0xff] }
 0x360   :  { %5248 = vmatpush2.msra.mxu0 %v4739_v11  ;;  %5362 = vmatpush1.msra.mxu1 %v3495_v42  ;;  %v4683_v11 = vld [vmem:[%s20679_s3 + $0x26f0] sm:$0xff] }
 0x361   :  { %5249 = vmatprep.subr.mxu0 %v4733_v20  ;;  %5363 = vmatprep.subr.mxu1 %v3489_v46  ;;  %v3439_v42 = vld [vmem:[%s20679_s3 + $0x10] sm:$0xff]  ;;  %v3211_v20 = vadd.f32 %v9428_v24, %v1382_v31  ;;  %v9463_v46 = vadd.f32 %v15443_v12, %v15423_v45  ;;  %v3656_v45 = vld [vmem:[%s20679_s3 + $0x6d8] sm:$0xff]  ;;  %v4781_v24 = vld [vmem:[%s20679_s3 + $0x2a00] sm:$0xff] }
 0x362   :  { %5250 = vmatpush2.msra.mxu0 %v4732_v43  ;;  %5364 = vmatpush1.msra.mxu1 %v3488_v48  ;;  %v4677_v43 = vld [vmem:[%s20679_s3 + $0x26c0] sm:$0xff]  ;;  %v4795_v9 = vld [vmem:[%s20679_s3 + $0x2a70] sm:$0xff] }
 0x363   :  { %5251 = vmatprep.subr.mxu0 %v4726_v17  ;;  %5365 = vmatprep.subr.mxu1 %v3482_v51  ;;  %v3657_v48 = vld [vmem:[%s20679_s3 + $0x6e0] sm:$0xff]  ;;  %v3140_v17 = vadd.f32 %v15276_v58, %v3069_v28  ;;  %v4676_v51 = vld [vmem:[%s20679_s3 + $0x26b8] sm:$0xff]  ;;  %v3650_v58 = vld [vmem:[%s20679_s3 + $0x6a8] sm:$0xff] }
 0x364   :  { %5252 = vmatpush2.msra.mxu0 %v4725_v47  ;;  %5366 = vmatpush1.msra.mxu1 %v3481_v63  ;;  %v4669_v47 = vld [vmem:[%s20679_s3 + $0x2680] sm:$0xff]  ;;  %v3615_v31 = vld [vmem:[%s20679_s3 + $0x590] sm:$0xff]  ;;  %v3608_v28 = vld [vmem:[%s20679_s3 + $0x558] sm:$0xff] }
 0x365   :  { %5253 = vmatprep.subr.mxu0 %v4719_v0  ;;  %5367 = vmatprep.subr.mxu1 %v3475_v49  ;;  %v3649_v63 = vld [vmem:[%s20679_s3 + $0x6a0] sm:$0xff]  ;;  %v3281_v49 = vadd.f32 %v9463_v46, %v3211_v20  ;;  %v3594_v46 = vld [vmem:[%s20679_s3 + $0x4e8] sm:$0xff] }
 0x366   :  { %5254 = vmatpush2.msra.mxu0 %v4718_v36  ;;  %5368 = vmatpush1.msra.mxu1 %v3474_v3  ;;  %v15712_v3 = vmax.f32 %v3140_v17, 0.0  ;;  %v3761_v20 = vld [vmem:[%s20679_s3 + $0xa20] sm:$0xff]  ;;  %v3754_v17 = vld [vmem:[%s20679_s3 + $0x9e8] sm:$0xff] }
 0x367   :  { %5255 = vmatprep.subr.mxu0 %v4712_v60  ;;  %5369 = vmatprep.subr.mxu1 %v3468_v37  ;;  %v3642_v60 = vld [vmem:[%s20679_s3 + $0x668] sm:$0xff]  ;;  %v4803_v37 = vld [vmem:[%s20679_s3 + $0x2ab0] sm:$0xff] }
 0x368   :  { %5256 = vmatpush2.msra.mxu0 %v4711_v16  ;;  %5370 = vmatpush1.msra.mxu1 %v3467_v61  ;;  %v3636_v16 = vld [vmem:[%s20679_s3 + $0x638] sm:$0xff]  ;;  %v4802_v61 = vld [vmem:[%s20679_s3 + $0x2aa8] sm:$0xff] }
 0x369   :  { %5257 = vmatprep.subr.mxu0 %v4705_v30  ;;  %5371 = vmatprep.subr.mxu1 %v3461_v19  ;;  %v3635_v30 = vld [vmem:[%s20679_s3 + $0x630] sm:$0xff]  ;;  %v4796_v19 = vld [vmem:[%s20679_s3 + $0x2a78] sm:$0xff] }
 0x36a   :  { %5258 = vmatpush2.msra.mxu0 %v4704_v54  ;;  %5372 = vmatpush1.msra.mxu1 %v3460_v22  ;;  %v3628_v54 = vld [vmem:[%s20679_s3 + $0x5f8] sm:$0xff]  ;;  %v4789_v22 = vld [vmem:[%s20679_s3 + $0x2a40] sm:$0xff] }
 0x36b   :  { %5259 = vmatprep.subr.mxu0 %v4698_v26  ;;  %5373 = vmatprep.subr.mxu1 %v3454_v62  ;;  %v3622_v62 = vld [vmem:[%s20679_s3 + $0x5c8] sm:$0xff] }
 0x36c   :  { %5260 = vmatpush2.msra.mxu0 %v4697_v38  ;;  %5374 = vmatpush1.msra.mxu1 %v3453_v59  ;;  %v4788_v38 = vld [vmem:[%s20679_s3 + $0x2a38] sm:$0xff]  ;;  %v3621_v59 = vld [vmem:[%s20679_s3 + $0x5c0] sm:$0xff] }
 0x36d   :  { %5261 = vmatprep.subr.mxu0 %v4691_v15  ;;  %5375 = vmatprep.subr.mxu1 %v3447_v25  ;;  %v3614_v15 = vld [vmem:[%s20679_s3 + $0x588] sm:$0xff] }
 0x36e   :  { %5262 = vmatpush2.msra.mxu0 %v4690_v39  ;;  %5376 = vmatpush1.msra.mxu1 %v3446_v29  ;;  %v3769_v39 = vld [vmem:[%s20679_s3 + $0xa60] sm:$0xff]  ;;  %v3607_v29 = vld [vmem:[%s20679_s3 + $0x550] sm:$0xff] }
 0x36f   :  { %5263 = vmatprep.subr.mxu0 %v4684_v4  ;;  %5377 = vmatprep.subr.mxu1 %v3440_v7  ;;  %v9496_v12 = vpop.f32.mrf.mxu0  ;;  %v3768_v4 = vld [vmem:[%s20679_s3 + $0xa58] sm:$0xff]  ;;  %v3601_v7 = vld [vmem:[%s20679_s3 + $0x520] sm:$0xff] }
 0x370   :  { %5264 = vmatpush2.msra.mxu0 %v4683_v11  ;;  %5378 = vmatpush1.msra.mxu1 %v3439_v42  ;;  %v3762_v11 = vld [vmem:[%s20679_s3 + $0xa28] sm:$0xff]  ;;  %v3600_v42 = vld [vmem:[%s20679_s3 + $0x518] sm:$0xff] }
 0x371   :  { %5265 = vmatprep.subr.mxu0 %v4677_v43  ;;  %5379 = vmatprep.subr.mxu1 %v3657_v48  ;;  %v9497_v0 = vpop.f32.mrf.mxu0  ;;  %v3755_v43 = vld [vmem:[%s20679_s3 + $0x9f0] sm:$0xff]  ;;  %v3593_v48 = vld [vmem:[%s20679_s3 + $0x4e0] sm:$0xff] }
 0x372   :  { %5266 = vmatpush2.msra.mxu0 %v4676_v51  ;;  %5380 = vmatpush2.msra.mxu1 %v3656_v45  ;;  %v9498_v36 = vadd.f32 %v9497_v0, %v9496_v12  ;;  %v3587_v51 = vld [vmem:[%s20679_s3 + $0x4b0] sm:$0xff]  ;;  %v3748_v45 = vld [vmem:[%s20679_s3 + $0x9b8] sm:$0xff]  ;;  %v3586_v12 = vld [vmem:[%s20679_s3 + $0x4a8] sm:$0xff] }
 0x373   :  { %5267 = vmatprep.subr.mxu0 %v4670_v53  ;;  %5381 = vmatprep.subr.mxu1 %v3650_v58  ;;  %v3747_v53 = vld [vmem:[%s20679_s3 + $0x9b0] sm:$0xff]  ;;  %v3580_v58 = vld [vmem:[%s20679_s3 + $0x478] sm:$0xff] }
 0x374   :  { %5268 = vmatpush2.msra.mxu0 %v4669_v47  ;;  %5382 = vmatpush2.msra.mxu1 %v3649_v63  ;;  %v3351_v6 = vadd.f32 %v9498_v36, %v3281_v49  ;;  %v3741_v47 = vld [vmem:[%s20679_s3 + $0x980] sm:$0xff]  ;;  %v3579_v63 = vld [vmem:[%s20679_s3 + $0x470] sm:$0xff]  ;;  %v3740_v0 = vld [vmem:[%s20679_s3 + $0x978] sm:$0xff] }
 0x375   :  { %5270 = vmatmul.mubr.f32.vlgmr.msra.gmra.mxu0 %v15712_v3  ;;  %5383 = vmatprep.subr.mxu1 %v3643_v2  ;;  %v3573_v49 = vld [vmem:[%s20679_s3 + $0x440] sm:$0xff]  ;;  %v3734_v2 = vld [vmem:[%s20679_s3 + $0x948] sm:$0xff]  ;;  %v3572_v36 = vld [vmem:[%s20679_s3 + $0x438] sm:$0xff] }
 0x376   :  { %5384 = vmatpush2.msra.mxu1 %v3642_v60  ;;  %5300 = vmatprep.subr.mxu0 %v4803_v37  ;;  %v3421_v26 = vadd.f32 %v15457_v33, %v3351_v6  ;;  %v4782_v33 = vld [vmem:[%s20679_s3 + $0x2a08] sm:$0xff]  ;;  %v3733_v60 = vld [vmem:[%s20679_s3 + $0x940] sm:$0xff]  ;;  %v3727_v6 = vld [vmem:[%s20679_s3 + $0x910] sm:$0xff] }
 0x377   :  { %5385 = vmatprep.subr.mxu1 %v3636_v16  ;;  %5301 = vmatpush1.msra.mxu0 %v4802_v61  ;;  %v3566_v37 = vld [vmem:[%s20679_s3 + $0x408] sm:$0xff]  ;;  %v3565_v16 = vld [vmem:[%s20679_s3 + $0x400] sm:$0xff] }
 0x378   :  { %5386 = vmatpush2.msra.mxu1 %v3635_v30  ;;  %5302 = vmatprep.subr.mxu0 %v4796_v19  ;;  %v15767_v25 = vmax.f32 %v3421_v26, 0.0  ;;  %v3726_v61 = vld [vmem:[%s20679_s3 + $0x908] sm:$0xff]  ;;  %v3559_v30 = vld [vmem:[%s20679_s3 + $0x3d0] sm:$0xff]  ;;  %v3720_v19 = vld [vmem:[%s20679_s3 + $0x8d8] sm:$0xff] }
 0x379   :  { %5387 = vmatprep.subr.mxu1 %v3629_v18  ;;  %5303 = vmatpush1.msra.mxu0 %v4795_v9  ;;  %v3558_v18 = vld [vmem:[%s20679_s3 + $0x3c8] sm:$0xff]  ;;  %v3719_v9 = vld [vmem:[%s20679_s3 + $0x8d0] sm:$0xff] }
 0x37a   :  { %5388 = vmatpush2.msra.mxu1 %v3628_v54  ;;  %5304 = vmatprep.subr.mxu0 %v4789_v22  ;;  %v3552_v54 = vld [vmem:[%s20679_s3 + $0x398] sm:$0xff]  ;;  %v3713_v22 = vld [vmem:[%s20679_s3 + $0x8a0] sm:$0xff]  ;;  %v3551_v26 = vld [vmem:[%s20679_s3 + $0x390] sm:$0xff] }
 0x37b   :  { %5389 = vmatprep.subr.mxu1 %v3622_v62  ;;  %5305 = vmatpush1.msra.mxu0 %v4788_v38  ;;  %v3712_v62 = vld [vmem:[%s20679_s3 + $0x898] sm:$0xff]  ;;  %v3706_v38 = vld [vmem:[%s20679_s3 + $0x868] sm:$0xff] }
 0x37c   :  { %5390 = vmatpush2.msra.mxu1 %v3621_v59  ;;  %5306 = vmatprep.subr.mxu0 %v4782_v33  ;;  %v3993_v59 = vld [vmem:[%s20679_s3 + $0x1160] sm:$0xff] }
 0x37d   :  { %5391 = vmatprep.subr.mxu1 %v3615_v31  ;;  %5307 = vmatpush1.msra.mxu0 %v4781_v24  ;;  %v3705_v33 = vld [vmem:[%s20679_s3 + $0x860] sm:$0xff]  ;;  %v3992_v31 = vld [vmem:[%s20679_s3 + $0x1158] sm:$0xff]  ;;  %v3699_v24 = vld [vmem:[%s20679_s3 + $0x830] sm:$0xff] }
 0x37e   :  { %5392 = vmatpush2.msra.mxu1 %v3614_v15  ;;  %5340 = vmatprep.mubr.f32.mxu0 %v20694_v52  ;;  %v3986_v15 = vld [vmem:[%s20679_s3 + $0x1128] sm:$0xff] }
 0x37f   :  { %5393 = vmatprep.subr.mxu1 %v3608_v28  ;;  %5418 = vmatprep.subr.mxu0 %v3769_v39  ;;  %v3698_v28 = vld [vmem:[%s20679_s3 + $0x828] sm:$0xff]  ;;  %v3985_v39 = vld [vmem:[%s20679_s3 + $0x1120] sm:$0xff] }
 0x380   :  { %9375 = vmatmul.mubr.msk.f32.vlgmr.msra.gmra.mxu0 %vm4846_vm2, %v15767_v25  ;;  %5394 = vmatpush2.msra.mxu1 %v3607_v29  ;;  %v3692_v29 = vld [vmem:[%s20679_s3 + $0x7f8] sm:$0xff] }
 0x381   :  { %5419 = vmatpush1.msra.mxu0 %v3768_v4  ;;  %5395 = vmatprep.subr.mxu1 %v3601_v7  ;;  %v3979_v4 = vld [vmem:[%s20679_s3 + $0x10f0] sm:$0xff] }
 0x382   :  { %5420 = vmatprep.subr.mxu0 %v3762_v11  ;;  %5482 = vmatprep.mubr.f32.mxu0 %v14473_v27  ;;  %v3691_v7 = vld [vmem:[%s20679_s3 + $0x7f0] sm:$0xff]  ;;  %v3978_v11 = vld [vmem:[%s20679_s3 + $0x10e8] sm:$0xff] }
 0x383   :  { %5396 = vmatpush2.msra.mxu1 %v3600_v42  ;;  %5421 = vmatpush1.msra.mxu0 %v3761_v20  ;;  %v3685_v42 = vld [vmem:[%s20679_s3 + $0x7c0] sm:$0xff]  ;;  %v3972_v20 = vld [vmem:[%s20679_s3 + $0x10b8] sm:$0xff] }
 0x384   :  { %5397 = vmatprep.subr.mxu1 %v3594_v46  ;;  %5422 = vmatprep.subr.mxu0 %v3755_v43  ;;  %v3684_v46 = vld [vmem:[%s20679_s3 + $0x7b8] sm:$0xff]  ;;  %v3971_v43 = vld [vmem:[%s20679_s3 + $0x10b0] sm:$0xff] }
 0x385   :  { %5398 = vmatpush2.msra.mxu1 %v3593_v48  ;;  %5423 = vmatpush1.msra.mxu0 %v3754_v17  ;;  %v3678_v48 = vld [vmem:[%s20679_s3 + $0x788] sm:$0xff]  ;;  %v3965_v17 = vld [vmem:[%s20679_s3 + $0x1080] sm:$0xff] }
 0x386   :  { %5399 = vmatprep.subr.mxu1 %v3587_v51  ;;  %5424 = vmatprep.subr.mxu0 %v3748_v45  ;;  %v3677_v51 = vld [vmem:[%s20679_s3 + $0x780] sm:$0xff]  ;;  %v3964_v45 = vld [vmem:[%s20679_s3 + $0x1078] sm:$0xff] }
 0x387   :  { %5400 = vmatpush2.msra.mxu1 %v3586_v12  ;;  %5425 = vmatpush1.msra.mxu0 %v3747_v53  ;;  %v3671_v12 = vld [vmem:[%s20679_s3 + $0x750] sm:$0xff]  ;;  %v3958_v53 = vld [vmem:[%s20679_s3 + $0x1048] sm:$0xff] }
 0x388   :  { %5401 = vmatprep.subr.mxu1 %v3580_v58  ;;  %5426 = vmatprep.subr.mxu0 %v3741_v47  ;;  %v3670_v58 = vld [vmem:[%s20679_s3 + $0x748] sm:$0xff]  ;;  %v3957_v47 = vld [vmem:[%s20679_s3 + $0x1040] sm:$0xff] }
 0x389   :  { %5402 = vmatpush2.msra.mxu1 %v3579_v63  ;;  %5427 = vmatpush1.msra.mxu0 %v3740_v0  ;;  %v3664_v63 = vld [vmem:[%s20679_s3 + $0x718] sm:$0xff]  ;;  %v3951_v0 = vld [vmem:[%s20679_s3 + $0x1010] sm:$0xff] }
 0x38a   :  { %5403 = vmatprep.subr.mxu1 %v3573_v49  ;;  %5428 = vmatprep.subr.mxu0 %v3734_v2  ;;  %v3663_v49 = vld [vmem:[%s20679_s3 + $0x710] sm:$0xff]  ;;  %v3950_v2 = vld [vmem:[%s20679_s3 + $0x1008] sm:$0xff] }
 0x38b   :  { %5404 = vmatpush2.msra.mxu1 %v3572_v36  ;;  %5429 = vmatpush1.msra.mxu0 %v3733_v60  ;;  %v3881_v36 = vld [vmem:[%s20679_s3 + $0xde0] sm:$0xff]  ;;  %v3944_v60 = vld [vmem:[%s20679_s3 + $0xfd8] sm:$0xff] }
 0x38c   :  { %5405 = vmatprep.subr.mxu1 %v3566_v37  ;;  %5430 = vmatprep.subr.mxu0 %v3727_v6  ;;  %v3880_v37 = vld [vmem:[%s20679_s3 + $0xdd8] sm:$0xff]  ;;  %v3943_v6 = vld [vmem:[%s20679_s3 + $0xfd0] sm:$0xff] }
 0x38d   :  { %5406 = vmatpush2.msra.mxu1 %v3565_v16  ;;  %5431 = vmatpush1.msra.mxu0 %v3726_v61  ;;  %v3874_v16 = vld [vmem:[%s20679_s3 + $0xda8] sm:$0xff]  ;;  %v3937_v61 = vld [vmem:[%s20679_s3 + $0xfa0] sm:$0xff] }
 0x38e   :  { %5407 = vmatprep.subr.mxu1 %v3559_v30  ;;  %5432 = vmatprep.subr.mxu0 %v3720_v19  ;;  %v3873_v30 = vld [vmem:[%s20679_s3 + $0xda0] sm:$0xff]  ;;  %v3936_v19 = vld [vmem:[%s20679_s3 + $0xf98] sm:$0xff] }
 0x38f   :  { %5408 = vmatpush2.msra.mxu1 %v3558_v18  ;;  %5433 = vmatpush1.msra.mxu0 %v3719_v9  ;;  %v3867_v18 = vld [vmem:[%s20679_s3 + $0xd70] sm:$0xff]  ;;  %v3930_v9 = vld [vmem:[%s20679_s3 + $0xf68] sm:$0xff] }
 0x390   :  { %5409 = vmatprep.subr.mxu1 %v3552_v54  ;;  %5434 = vmatprep.subr.mxu0 %v3713_v22  ;;  %v3866_v54 = vld [vmem:[%s20679_s3 + $0xd68] sm:$0xff]  ;;  %v3929_v22 = vld [vmem:[%s20679_s3 + $0xf60] sm:$0xff] }
 0x391   :  { %5410 = vmatpush2.msra.mxu1 %v3551_v26  ;;  %5435 = vmatpush1.msra.mxu0 %v3712_v62  ;;  %v3860_v26 = vld [vmem:[%s20679_s3 + $0xd38] sm:$0xff]  ;;  %v3923_v62 = vld [vmem:[%s20679_s3 + $0xf30] sm:$0xff] }
 0x392   :  { %5412 = vmatmul.mubr.f32.vlgmr.msra.gmra.mxu1 %v14645_v34  ;;  %5436 = vmatprep.subr.mxu0 %v3706_v38  ;;  %v3859_v38 = vld [vmem:[%s20679_s3 + $0xd30] sm:$0xff] }
 0x393   :  { %5489 = vmatprep.subr.mxu1 %v3993_v59  ;;  %5437 = vmatpush1.msra.mxu0 %v3705_v33  ;;  %v3922_v59 = vld [vmem:[%s20679_s3 + $0xf28] sm:$0xff]  ;;  %v3853_v33 = vld [vmem:[%s20679_s3 + $0xd00] sm:$0xff] }
 0x394   :  { %5490 = vmatpush1.msra.mxu1 %v3992_v31  ;;  %5553 = vmatprep.mubr.f32.mxu1 %v14656_v1  ;;  %v3916_v31 = vld [vmem:[%s20679_s3 + $0xef8] sm:$0xff] }
 0x395   :  { %5438 = vmatprep.subr.mxu0 %v3699_v24  ;;  %5491 = vmatprep.subr.mxu1 %v3986_v15  ;;  %v3852_v24 = vld [vmem:[%s20679_s3 + $0xcf8] sm:$0xff]  ;;  %v3915_v15 = vld [vmem:[%s20679_s3 + $0xef0] sm:$0xff] }
 0x396   :  { %5439 = vmatpush1.msra.mxu0 %v3698_v28  ;;  %5492 = vmatpush1.msra.mxu1 %v3985_v39  ;;  %v3846_v28 = vld [vmem:[%s20679_s3 + $0xcc8] sm:$0xff]  ;;  %v3909_v39 = vld [vmem:[%s20679_s3 + $0xec0] sm:$0xff] }
 0x397   :  { %5440 = vmatprep.subr.mxu0 %v3692_v29  ;;  %5493 = vmatprep.subr.mxu1 %v3979_v4  ;;  %v4809_v29 = vld [vmem:[%s20680_s4] sm:$0x7f] }
 0x398   :  { %5441 = vmatpush1.msra.mxu0 %v3691_v7  ;;  %5494 = vmatpush1.msra.mxu1 %v3978_v11  ;;  %v3845_v4 = vld [vmem:[%s20679_s3 + $0xcc0] sm:$0xff]  ;;  %v3908_v7 = vld [vmem:[%s20679_s3 + $0xeb8] sm:$0xff]  ;;  %v3839_v11 = vld [vmem:[%s20679_s3 + $0xc90] sm:$0xff] }
 0x399   :  { %5442 = vmatprep.subr.mxu0 %v3685_v42  ;;  %5495 = vmatprep.subr.mxu1 %v3972_v20  ;;  %v3902_v42 = vld [vmem:[%s20679_s3 + $0xe88] sm:$0xff] }
 0x39a   :  { %5443 = vmatpush1.msra.mxu0 %v3684_v46  ;;  %5496 = vmatpush1.msra.mxu1 %v3971_v43  ;;  %v3838_v20 = vld [vmem:[%s20679_s3 + $0xc88] sm:$0xff]  ;;  %v3901_v46 = vld [vmem:[%s20679_s3 + $0xe80] sm:$0xff]  ;;  %v4814_v43 = vrot.slane %v4809_v29, %v11846_v44  ;;  %v19043_v44 = vld [vmem:[%s20683_s7 + $0x98] sm:$0xff] }
 0x39b   :  { %5444 = vmatprep.subr.mxu0 %v3678_v48  ;;  %5497 = vmatprep.subr.mxu1 %v3965_v17  ;;  %v3832_v48 = vld [vmem:[%s20679_s3 + $0xc58] sm:$0xff]  ;;  %v3895_v17 = vld [vmem:[%s20679_s3 + $0xe50] sm:$0xff]  ;;  %v3782_v29 = vld [vmem:[%s20679_s3 + $0xac8] sm:$0xff]  ;;  %20797 = vst [vmem:[#allocation34_spill] sm:$0xff] %v19043_v44 }
 0x39c   :  { %5445 = vmatpush1.msra.mxu0 %v3677_v51  ;;  %5498 = vmatpush1.msra.mxu1 %v3964_v45  ;;  %v4916_v51 = vpop.f32.mrf.mxu1  ;;  %v3831_v45 = vld [vmem:[%s20679_s3 + $0xc50] sm:$0xff] }
 0x39d   :  { %5446 = vmatprep.subr.mxu0 %v3671_v12  ;;  %5499 = vmatprep.subr.mxu1 %v3958_v53  ;;  %v3894_v12 = vld [vmem:[%s20679_s3 + $0xe48] sm:$0xff]  ;;  %v3825_v53 = vld [vmem:[%s20679_s3 + $0xc20] sm:$0xff] }
 0x39e   :  { %5447 = vmatpush1.msra.mxu0 %v3670_v58  ;;  %5500 = vmatpush1.msra.mxu1 %v3957_v47  ;;  %v3888_v58 = vld [vmem:[%s20679_s3 + $0xe18] sm:$0xff] }
 0x39f   :  { %5448 = vmatprep.subr.mxu0 %v3664_v63  ;;  %5501 = vmatprep.subr.mxu1 %v3951_v0  ;;  %v3824_v47 = vld [vmem:[%s20679_s3 + $0xc18] sm:$0xff]  ;;  %v3887_v63 = vld [vmem:[%s20679_s3 + $0xe10] sm:$0xff]  ;;  %v4917_v0 = vadd.f32 %v4916_v51, %v4814_v43  ;;  %v4217_v43 = vld [vmem:[%s20679_s3 + $0x1860] sm:$0xff] }
 0x3a0   :  { %5449 = vmatpush1.msra.mxu0 %v3663_v49  ;;  %5502 = vmatpush1.msra.mxu1 %v3950_v2  ;;  %v3818_v49 = vld [vmem:[%s20679_s3 + $0xbe8] sm:$0xff]  ;;  %v4105_v2 = vld [vmem:[%s20679_s3 + $0x14e0] sm:$0xff] }
 0x3a1   :  { %5450 = vmatprep.subr.mxu0 %v3881_v36  ;;  %5503 = vmatprep.subr.mxu1 %v3944_v60  ;;  %v3817_v36 = vld [vmem:[%s20679_s3 + $0xbe0] sm:$0xff]  ;;  %v4104_v60 = vld [vmem:[%s20679_s3 + $0x14d8] sm:$0xff] }
 0x3a2   :  { %5451 = vmatpush2.msra.mxu0 %v3880_v37  ;;  %5504 = vmatpush1.msra.mxu1 %v3943_v6  ;;  %v3811_v6 = vld [vmem:[%s20679_s3 + $0xbb0] sm:$0xff]  ;;  %v4049_v51 = vld [vmem:[%s20679_s3 + $0x1320] sm:$0xff] }
 0x3a3   :  { %5452 = vmatprep.subr.mxu0 %v3874_v16  ;;  %5505 = vmatprep.subr.mxu1 %v3937_v61  ;;  %v4098_v16 = vld [vmem:[%s20679_s3 + $0x14a8] sm:$0xff] }
 0x3a4   :  { %5453 = vmatpush2.msra.mxu0 %v3873_v30  ;;  %5506 = vmatpush1.msra.mxu1 %v3936_v19  ;;  %v3810_v30 = vld [vmem:[%s20679_s3 + $0xba8] sm:$0xff]  ;;  %v4097_v19 = vld [vmem:[%s20679_s3 + $0x14a0] sm:$0xff] }
 0x3a5   :  { %5454 = vmatprep.subr.mxu0 %v3867_v18  ;;  %5507 = vmatprep.subr.mxu1 %v3930_v9  ;;  %v3804_v18 = vld [vmem:[%s20679_s3 + $0xb78] sm:$0xff]  ;;  %v4091_v9 = vld [vmem:[%s20679_s3 + $0x1470] sm:$0xff] }
 0x3a6   :  { %5455 = vmatpush2.msra.mxu0 %v3866_v54  ;;  %5508 = vmatpush1.msra.mxu1 %v3929_v22  ;;  %v3803_v54 = vld [vmem:[%s20679_s3 + $0xb70] sm:$0xff]  ;;  %v4090_v22 = vld [vmem:[%s20679_s3 + $0x1468] sm:$0xff] }
 0x3a7   :  { %5456 = vmatprep.subr.mxu0 %v3860_v26  ;;  %5509 = vmatprep.subr.mxu1 %v3923_v62  ;;  %v3797_v26 = vld [vmem:[%s20679_s3 + $0xb40] sm:$0xff]  ;;  %v4084_v62 = vld [vmem:[%s20679_s3 + $0x1438] sm:$0xff] }
 0x3a8   :  { %5457 = vmatpush2.msra.mxu0 %v3859_v38  ;;  %5510 = vmatpush1.msra.mxu1 %v3922_v59  ;;  %v3796_v38 = vld [vmem:[%s20679_s3 + $0xb38] sm:$0xff]  ;;  %v4083_v59 = vld [vmem:[%s20679_s3 + $0x1430] sm:$0xff] }
 0x3a9   :  { %5458 = vmatprep.subr.mxu0 %v3853_v33  ;;  %5511 = vmatprep.subr.mxu1 %v3916_v31  ;;  %v3790_v33 = vld [vmem:[%s20679_s3 + $0xb08] sm:$0xff]  ;;  %v4077_v31 = vld [vmem:[%s20679_s3 + $0x1400] sm:$0xff] }
 0x3aa   :  { %5459 = vmatpush2.msra.mxu0 %v3852_v24  ;;  %5512 = vmatpush1.msra.mxu1 %v3915_v15  ;;  %v3789_v24 = vld [vmem:[%s20679_s3 + $0xb00] sm:$0xff]  ;;  %v4076_v15 = vld [vmem:[%s20679_s3 + $0x13f8] sm:$0xff] }
 0x3ab   :  { %5460 = vmatprep.subr.mxu0 %v3846_v28  ;;  %5513 = vmatprep.subr.mxu1 %v3909_v39  ;;  %v3783_v28 = vld [vmem:[%s20679_s3 + $0xad0] sm:$0xff]  ;;  %v4070_v39 = vld [vmem:[%s20679_s3 + $0x13c8] sm:$0xff] }
 0x3ac   :  { %5461 = vmatpush2.msra.mxu0 %v3845_v4  ;;  %5514 = vmatpush1.msra.mxu1 %v3908_v7  ;;  %v4069_v4 = vld [vmem:[%s20679_s3 + $0x13c0] sm:$0xff]  ;;  %v3776_v7 = vld [vmem:[%s20679_s3 + $0xa98] sm:$0xff] }
 0x3ad   :  { %5462 = vmatprep.subr.mxu0 %v3839_v11  ;;  %5515 = vmatprep.subr.mxu1 %v3902_v42  ;;  %v4063_v11 = vld [vmem:[%s20679_s3 + $0x1390] sm:$0xff] }
 0x3ae   :  { %5463 = vmatpush2.msra.mxu0 %v3838_v20  ;;  %5516 = vmatpush1.msra.mxu1 %v3901_v46  ;;  %v3775_v42 = vld [vmem:[%s20679_s3 + $0xa90] sm:$0xff]  ;;  %v4062_v20 = vld [vmem:[%s20679_s3 + $0x1388] sm:$0xff]  ;;  %v4056_v46 = vld [vmem:[%s20679_s3 + $0x1358] sm:$0xff] }
 0x3af   :  { %5464 = vmatprep.subr.mxu0 %v3832_v48  ;;  %5517 = vmatprep.subr.mxu1 %v3895_v17  ;;  %v4055_v48 = vld [vmem:[%s20679_s3 + $0x1350] sm:$0xff]  ;;  %v4216_v17 = vld [vmem:[%s20679_s3 + $0x1858] sm:$0xff] }
 0x3b0   :  { %5465 = vmatpush2.msra.mxu0 %v3831_v45  ;;  %5518 = vmatpush1.msra.mxu1 %v3894_v12  ;;  %v4210_v45 = vld [vmem:[%s20679_s3 + $0x1828] sm:$0xff]  ;;  %v4048_v12 = vld [vmem:[%s20679_s3 + $0x1318] sm:$0xff] }
 0x3b1   :  { %5466 = vmatprep.subr.mxu0 %v3825_v53  ;;  %5519 = vmatprep.subr.mxu1 %v3888_v58  ;;  %v4987_v37 = vpop.f32.mrf.mxu0  ;;  %v4209_v53 = vld [vmem:[%s20679_s3 + $0x1820] sm:$0xff]  ;;  %v4042_v58 = vld [vmem:[%s20679_s3 + $0x12e8] sm:$0xff] }
 0x3b2   :  { %5467 = vmatpush2.msra.mxu0 %v3824_v47  ;;  %5520 = vmatpush1.msra.mxu1 %v3887_v63  ;;  %v16097_v61 = vadd.f32 %v4987_v37, %v4917_v0  ;;  %v4203_v47 = vld [vmem:[%s20679_s3 + $0x17f0] sm:$0xff]  ;;  %v4041_v63 = vld [vmem:[%s20679_s3 + $0x12e0] sm:$0xff]  ;;  %v4202_v0 = vld [vmem:[%s20679_s3 + $0x17e8] sm:$0xff] }
 0x3b3   :  { %5468 = vmatprep.subr.mxu0 %v3818_v49  ;;  %5521 = vmatprep.subr.mxu1 %v4105_v2  ;;  %v4035_v49 = vld [vmem:[%s20679_s3 + $0x12b0] sm:$0xff]  ;;  %v4196_v2 = vld [vmem:[%s20679_s3 + $0x17b8] sm:$0xff] }
 0x3b4   :  { %5469 = vmatpush2.msra.mxu0 %v3817_v36  ;;  %5522 = vmatpush2.msra.mxu1 %v4104_v60  ;;  %v4034_v36 = vld [vmem:[%s20679_s3 + $0x12a8] sm:$0xff]  ;;  %v4195_v60 = vld [vmem:[%s20679_s3 + $0x17b0] sm:$0xff]  ;;  %v4028_v37 = vld [vmem:[%s20679_s3 + $0x1278] sm:$0xff] }
 0x3b5   :  { %5470 = vmatprep.subr.mxu0 %v3811_v6  ;;  %5523 = vmatprep.subr.mxu1 %v4098_v16  ;;  %v4189_v6 = vld [vmem:[%s20679_s3 + $0x1780] sm:$0xff]  ;;  %v4027_v16 = vld [vmem:[%s20679_s3 + $0x1270] sm:$0xff] }
 0x3b6   :  { %5471 = vmatpush2.msra.mxu0 %v3810_v30  ;;  %5524 = vmatpush2.msra.mxu1 %v4097_v19  ;;  %v4188_v30 = vld [vmem:[%s20679_s3 + $0x1778] sm:$0xff]  ;;  %v4021_v19 = vld [vmem:[%s20679_s3 + $0x1240] sm:$0xff] }
 0x3b7   :  { %5472 = vmatprep.subr.mxu0 %v3804_v18  ;;  %5525 = vmatprep.subr.mxu1 %v4091_v9  ;;  %v4182_v18 = vld [vmem:[%s20679_s3 + $0x1748] sm:$0xff]  ;;  %v4020_v9 = vld [vmem:[%s20679_s3 + $0x1238] sm:$0xff] }
 0x3b8   :  { %5473 = vmatpush2.msra.mxu0 %v3803_v54  ;;  %5526 = vmatpush2.msra.mxu1 %v4090_v22  ;;  %v4181_v54 = vld [vmem:[%s20679_s3 + $0x1740] sm:$0xff]  ;;  %v4014_v22 = vld [vmem:[%s20679_s3 + $0x1208] sm:$0xff] }
 0x3b9   :  { %5474 = vmatprep.subr.mxu0 %v3797_v26  ;;  %5527 = vmatprep.subr.mxu1 %v4084_v62  ;;  %v4175_v26 = vld [vmem:[%s20679_s3 + $0x1710] sm:$0xff]  ;;  %v16245_v62 = vpop.f32.mrf.mxu1 }
 0x3ba   :  { %5475 = vmatpush2.msra.mxu0 %v3796_v38  ;;  %5528 = vmatpush2.msra.mxu1 %v4083_v59  ;;  %v4013_v38 = vld [vmem:[%s20679_s3 + $0x1200] sm:$0xff]  ;;  %v4174_v59 = vld [vmem:[%s20679_s3 + $0x1708] sm:$0xff] }
 0x3bb   :  { %5476 = vmatprep.subr.mxu0 %v3790_v33  ;;  %5529 = vmatprep.subr.mxu1 %v4077_v31  ;;  %v4007_v33 = vld [vmem:[%s20679_s3 + $0x11d0] sm:$0xff]  ;;  %v4168_v31 = vld [vmem:[%s20679_s3 + $0x16d8] sm:$0xff] }
 0x3bc   :  { %5477 = vmatpush2.msra.mxu0 %v3789_v24  ;;  %5530 = vmatpush2.msra.mxu1 %v4076_v15  ;;  %v4006_v24 = vld [vmem:[%s20679_s3 + $0x11c8] sm:$0xff]  ;;  %v4167_v15 = vld [vmem:[%s20679_s3 + $0x16d0] sm:$0xff] }
 0x3bd   :  { %5478 = vmatprep.subr.mxu0 %v3783_v28  ;;  %5531 = vmatprep.subr.mxu1 %v4070_v39  ;;  %v4000_v39 = vld [vmem:[%s20679_s3 + $0x1198] sm:$0xff] }
 0x3be   :  { %5479 = vmatpush2.msra.mxu0 %v3782_v29  ;;  %5532 = vmatpush2.msra.mxu1 %v4069_v4  ;;  %v4161_v29 = vld [vmem:[%s20679_s3 + $0x16a0] sm:$0xff] }
 0x3bf   :  { %5480 = vmatprep.subr.mxu0 %v3776_v7  ;;  %5533 = vmatprep.subr.mxu1 %v4063_v11  ;;  %v3999_v7 = vld [vmem:[%s20679_s3 + $0x1190] sm:$0xff]  ;;  %v4160_v11 = vld [vmem:[%s20679_s3 + $0x1698] sm:$0xff] }
 0x3c0   :  { %5481 = vmatpush2.msra.mxu0 %v3775_v42  ;;  %5534 = vmatpush2.msra.mxu1 %v4062_v20  ;;  %v4154_v42 = vld [vmem:[%s20679_s3 + $0x1668] sm:$0xff]  ;;  %v4153_v20 = vld [vmem:[%s20679_s3 + $0x1660] sm:$0xff] }
 0x3c1   :  { %5483 = vmatmul.mubr.f32.vlgmr.msra.gmra.mxu0 %v14881_v50  ;;  %5535 = vmatprep.subr.mxu1 %v4056_v46  ;;  %v4440_v46 = vld [vmem:[%s20679_s3 + $0x1f58] sm:$0xff] }
 0x3c2   :  { %5560 = vmatprep.subr.mxu0 %v4217_v43  ;;  %5536 = vmatpush2.msra.mxu1 %v4055_v48  ;;  %v4147_v43 = vld [vmem:[%s20679_s3 + $0x1630] sm:$0xff]  ;;  %v4434_v48 = vld [vmem:[%s20679_s3 + $0x1f28] sm:$0xff] }
 0x3c3   :  { %5561 = vmatpush1.msra.mxu0 %v4216_v17  ;;  %5624 = vmatprep.mubr.f32.mxu0 %v14892_v57  ;;  %v4146_v17 = vld [vmem:[%s20679_s3 + $0x1628] sm:$0xff] }
 0x3c4   :  { %5537 = vmatprep.subr.mxu1 %v4049_v51  ;;  %5562 = vmatprep.subr.mxu0 %v4210_v45  ;;  %v4433_v51 = vld [vmem:[%s20679_s3 + $0x1f20] sm:$0xff]  ;;  %v4140_v45 = vld [vmem:[%s20679_s3 + $0x15f8] sm:$0xff] }
 0x3c5   :  { %5538 = vmatpush2.msra.mxu1 %v4048_v12  ;;  %5563 = vmatpush1.msra.mxu0 %v4209_v53  ;;  %v4427_v12 = vld [vmem:[%s20679_s3 + $0x1ef0] sm:$0xff] }
 0x3c6   :  { %5539 = vmatprep.subr.mxu1 %v4042_v58  ;;  %5564 = vmatprep.subr.mxu0 %v4203_v47  ;;  %v4139_v53 = vld [vmem:[%s20679_s3 + $0x15f0] sm:$0xff]  ;;  %v4426_v58 = vld [vmem:[%s20679_s3 + $0x1ee8] sm:$0xff]  ;;  %v4133_v47 = vld [vmem:[%s20679_s3 + $0x15c0] sm:$0xff] }
 0x3c7   :  { %5540 = vmatpush2.msra.mxu1 %v4041_v63  ;;  %5565 = vmatpush1.msra.mxu0 %v4202_v0  ;;  %v4420_v63 = vld [vmem:[%s20679_s3 + $0x1eb8] sm:$0xff] }
 0x3c8   :  { %5541 = vmatprep.subr.mxu1 %v4035_v49  ;;  %5566 = vmatprep.subr.mxu0 %v4196_v2  ;;  %v4132_v0 = vld [vmem:[%s20679_s3 + $0x15b8] sm:$0xff]  ;;  %v4419_v49 = vld [vmem:[%s20679_s3 + $0x1eb0] sm:$0xff]  ;;  %v4126_v2 = vld [vmem:[%s20679_s3 + $0x1588] sm:$0xff] }
 0x3c9   :  { %5542 = vmatpush2.msra.mxu1 %v4034_v36  ;;  %5567 = vmatpush1.msra.mxu0 %v4195_v60  ;;  %v4413_v36 = vld [vmem:[%s20679_s3 + $0x1e80] sm:$0xff] }
 0x3ca   :  { %5543 = vmatprep.subr.mxu1 %v4028_v37  ;;  %5568 = vmatprep.subr.mxu0 %v4189_v6  ;;  %v4125_v60 = vld [vmem:[%s20679_s3 + $0x1580] sm:$0xff]  ;;  %v4412_v37 = vld [vmem:[%s20679_s3 + $0x1e78] sm:$0xff]  ;;  %v4119_v6 = vld [vmem:[%s20679_s3 + $0x1550] sm:$0xff] }
 0x3cb   :  { %5544 = vmatpush2.msra.mxu1 %v4027_v16  ;;  %5569 = vmatpush1.msra.mxu0 %v4188_v30  ;;  %v4406_v16 = vld [vmem:[%s20679_s3 + $0x1e48] sm:$0xff] }
 0x3cc   :  { %5545 = vmatprep.subr.mxu1 %v4021_v19  ;;  %5570 = vmatprep.subr.mxu0 %v4182_v18  ;;  %v4118_v30 = vld [vmem:[%s20679_s3 + $0x1548] sm:$0xff]  ;;  %v4405_v19 = vld [vmem:[%s20679_s3 + $0x1e40] sm:$0xff]  ;;  %v4112_v18 = vld [vmem:[%s20679_s3 + $0x1518] sm:$0xff] }
 0x3cd   :  { %5546 = vmatpush2.msra.mxu1 %v4020_v9  ;;  %5571 = vmatpush1.msra.mxu0 %v4181_v54  ;;  %v4399_v9 = vld [vmem:[%s20679_s3 + $0x1e10] sm:$0xff] }
 0x3ce   :  { %5547 = vmatprep.subr.mxu1 %v4014_v22  ;;  %5572 = vmatprep.subr.mxu0 %v4175_v26  ;;  %v5058_v28 = vpop.f32.mrf.mxu1  ;;  %v4111_v54 = vld [vmem:[%s20679_s3 + $0x1510] sm:$0xff]  ;;  %v4398_v22 = vld [vmem:[%s20679_s3 + $0x1e08] sm:$0xff]  ;;  %v4329_v26 = vld [vmem:[%s20679_s3 + $0x1be0] sm:$0xff] }
 0x3cf   :  { %5548 = vmatpush2.msra.mxu1 %v4013_v38  ;;  %5573 = vmatpush1.msra.mxu0 %v4174_v59  ;;  %v16272_v4 = vadd.f32 %v5058_v28, %v16097_v61  ;;  %v4441_v61 = vld [vmem:[%s20679_s3 + $0x1f60] sm:$0xff]  ;;  %v4392_v38 = vld [vmem:[%s20679_s3 + $0x1dd8] sm:$0xff] }
 0x3d0   :  { %5549 = vmatprep.subr.mxu1 %v4007_v33  ;;  %5574 = vmatprep.subr.mxu0 %v4168_v31  ;;  %v4328_v59 = vld [vmem:[%s20679_s3 + $0x1bd8] sm:$0xff]  ;;  %v4391_v33 = vld [vmem:[%s20679_s3 + $0x1dd0] sm:$0xff]  ;;  %v4322_v31 = vld [vmem:[%s20679_s3 + $0x1ba8] sm:$0xff] }
 0x3d1   :  { %5550 = vmatpush2.msra.mxu1 %v4006_v24  ;;  %5575 = vmatpush1.msra.mxu0 %v4167_v15  ;;  %v4385_v24 = vld [vmem:[%s20679_s3 + $0x1da0] sm:$0xff]  ;;  %v4384_v28 = vld [vmem:[%s20679_s3 + $0x1d98] sm:$0xff] }
 0x3d2   :  { %5551 = vmatprep.subr.mxu1 %v4000_v39  ;;  %5576 = vmatprep.subr.mxu0 %v4161_v29  ;;  %v4321_v15 = vld [vmem:[%s20679_s3 + $0x1ba0] sm:$0xff]  ;;  %v4315_v39 = vld [vmem:[%s20679_s3 + $0x1b70] sm:$0xff]  ;;  %v4378_v29 = vld [vmem:[%s20679_s3 + $0x1d68] sm:$0xff] }
 0x3d3   :  { %5552 = vmatpush2.msra.mxu1 %v3999_v7  ;;  %5577 = vmatpush1.msra.mxu0 %v4160_v11  ;;  %v4314_v7 = vld [vmem:[%s20679_s3 + $0x1b68] sm:$0xff]  ;;  %v4377_v11 = vld [vmem:[%s20679_s3 + $0x1d60] sm:$0xff] }
 0x3d4   :  { %5554 = vmatmul.mubr.f32.vlgmr.msra.gmra.mxu1 %v15062_v35  ;;  %5578 = vmatprep.subr.mxu0 %v4154_v42  ;;  %v4308_v42 = vld [vmem:[%s20679_s3 + $0x1b38] sm:$0xff] }
 0x3d5   :  { %5631 = vmatprep.subr.mxu1 %v4441_v61  ;;  %5579 = vmatpush1.msra.mxu0 %v4153_v20  ;;  %v4371_v61 = vld [vmem:[%s20679_s3 + $0x1d30] sm:$0xff] }
 0x3d6   :  { %5632 = vmatpush1.msra.mxu1 %v4440_v46  ;;  %5695 = vmatprep.mubr.f32.mxu1 %v15073_v10  ;;  %v4307_v20 = vld [vmem:[%s20679_s3 + $0x1b30] sm:$0xff]  ;;  %v4370_v46 = vld [vmem:[%s20679_s3 + $0x1d28] sm:$0xff] }
 0x3d7   :  { %5580 = vmatprep.subr.mxu0 %v4147_v43  ;;  %5633 = vmatprep.subr.mxu1 %v4434_v48  ;;  %v4301_v43 = vld [vmem:[%s20679_s3 + $0x1b00] sm:$0xff]  ;;  %v4364_v48 = vld [vmem:[%s20679_s3 + $0x1cf8] sm:$0xff] }
 0x3d8   :  { %5581 = vmatpush1.msra.mxu0 %v4146_v17  ;;  %5634 = vmatpush1.msra.mxu1 %v4433_v51  ;;  %v4300_v17 = vld [vmem:[%s20679_s3 + $0x1af8] sm:$0xff]  ;;  %v4363_v51 = vld [vmem:[%s20679_s3 + $0x1cf0] sm:$0xff] }
 0x3d9   :  { %5582 = vmatprep.subr.mxu0 %v4140_v45  ;;  %5635 = vmatprep.subr.mxu1 %v4427_v12  ;;  %v4294_v45 = vld [vmem:[%s20679_s3 + $0x1ac8] sm:$0xff]  ;;  %v4357_v12 = vld [vmem:[%s20679_s3 + $0x1cc0] sm:$0xff] }
 0x3da   :  { %5583 = vmatpush1.msra.mxu0 %v4139_v53  ;;  %5636 = vmatpush1.msra.mxu1 %v4426_v58  ;;  %v4293_v53 = vld [vmem:[%s20679_s3 + $0x1ac0] sm:$0xff]  ;;  %v4356_v58 = vld [vmem:[%s20679_s3 + $0x1cb8] sm:$0xff] }
 0x3db   :  { %5584 = vmatprep.subr.mxu0 %v4133_v47  ;;  %5637 = vmatprep.subr.mxu1 %v4420_v63  ;;  %v4287_v47 = vld [vmem:[%s20679_s3 + $0x1a90] sm:$0xff]  ;;  %v4350_v63 = vld [vmem:[%s20679_s3 + $0x1c88] sm:$0xff] }
 0x3dc   :  { %5585 = vmatpush1.msra.mxu0 %v4132_v0  ;;  %5638 = vmatpush1.msra.mxu1 %v4419_v49  ;;  %v4286_v0 = vld [vmem:[%s20679_s3 + $0x1a88] sm:$0xff]  ;;  %v4349_v49 = vld [vmem:[%s20679_s3 + $0x1c80] sm:$0xff] }
 0x3dd   :  { %5586 = vmatprep.subr.mxu0 %v4126_v2  ;;  %5639 = vmatprep.subr.mxu1 %v4413_v36  ;;  %v4280_v2 = vld [vmem:[%s20679_s3 + $0x1a58] sm:$0xff]  ;;  %v4343_v36 = vld [vmem:[%s20679_s3 + $0x1c50] sm:$0xff] }
 0x3de   :  { %5587 = vmatpush1.msra.mxu0 %v4125_v60  ;;  %5640 = vmatpush1.msra.mxu1 %v4412_v37  ;;  %v4279_v60 = vld [vmem:[%s20679_s3 + $0x1a50] sm:$0xff]  ;;  %v4342_v37 = vld [vmem:[%s20679_s3 + $0x1c48] sm:$0xff] }
 0x3df   :  { %5588 = vmatprep.subr.mxu0 %v4119_v6  ;;  %5641 = vmatprep.subr.mxu1 %v4406_v16  ;;  %v4273_v6 = vld [vmem:[%s20679_s3 + $0x1a20] sm:$0xff]  ;;  %v4336_v16 = vld [vmem:[%s20679_s3 + $0x1c18] sm:$0xff] }
 0x3e0   :  { %5589 = vmatpush1.msra.mxu0 %v4118_v30  ;;  %5642 = vmatpush1.msra.mxu1 %v4405_v19  ;;  %v16468_v30 = vpop.f32.mrf.mxu0  ;;  %v4272_v19 = vld [vmem:[%s20679_s3 + $0x1a18] sm:$0xff] }
 0x3e1   :  { %5590 = vmatprep.subr.mxu0 %v4112_v18  ;;  %5643 = vmatprep.subr.mxu1 %v4399_v9  ;;  %v4335_v18 = vld [vmem:[%s20679_s3 + $0x1c10] sm:$0xff]  ;;  %v4266_v9 = vld [vmem:[%s20679_s3 + $0x19e8] sm:$0xff] }
 0x3e2   :  { %5591 = vmatpush1.msra.mxu0 %v4111_v54  ;;  %5644 = vmatpush1.msra.mxu1 %v4398_v22  ;;  %v4553_v54 = vld [vmem:[%s20679_s3 + $0x22e0] sm:$0xff] }
 0x3e3   :  { %5592 = vmatprep.subr.mxu0 %v4329_v26  ;;  %5645 = vmatprep.subr.mxu1 %v4392_v38  ;;  %v4265_v22 = vld [vmem:[%s20679_s3 + $0x19e0] sm:$0xff]  ;;  %v4552_v26 = vld [vmem:[%s20679_s3 + $0x22d8] sm:$0xff] }
 0x3e4   :  { %5593 = vmatpush2.msra.mxu0 %v4328_v59  ;;  %5646 = vmatpush1.msra.mxu1 %v4391_v33  ;;  %v4259_v59 = vld [vmem:[%s20679_s3 + $0x19b0] sm:$0xff]  ;;  %v4546_v33 = vld [vmem:[%s20679_s3 + $0x22a8] sm:$0xff] }
 0x3e5   :  { %5594 = vmatprep.subr.mxu0 %v4322_v31  ;;  %5647 = vmatprep.subr.mxu1 %v4385_v24  ;;  %v4258_v24 = vld [vmem:[%s20679_s3 + $0x19a8] sm:$0xff] }
 0x3e6   :  { %5595 = vmatpush2.msra.mxu0 %v4321_v15  ;;  %5648 = vmatpush1.msra.mxu1 %v4384_v28  ;;  %v4545_v15 = vld [vmem:[%s20679_s3 + $0x22a0] sm:$0xff]  ;;  %v4252_v28 = vld [vmem:[%s20679_s3 + $0x1978] sm:$0xff] }
 0x3e7   :  { %5596 = vmatprep.subr.mxu0 %v4315_v39  ;;  %5649 = vmatprep.subr.mxu1 %v4378_v29  ;;  %v4251_v39 = vld [vmem:[%s20679_s3 + $0x1970] sm:$0xff]  ;;  %v4538_v29 = vld [vmem:[%s20679_s3 + $0x2268] sm:$0xff] }
 0x3e8   :  { %5597 = vmatpush2.msra.mxu0 %v4314_v7  ;;  %5650 = vmatpush1.msra.mxu1 %v4377_v11  ;;  %v4245_v7 = vld [vmem:[%s20679_s3 + $0x1940] sm:$0xff]  ;;  %v4532_v11 = vld [vmem:[%s20679_s3 + $0x2238] sm:$0xff] }
 0x3e9   :  { %5598 = vmatprep.subr.mxu0 %v4308_v42  ;;  %5651 = vmatprep.subr.mxu1 %v4371_v61  ;;  %v4244_v42 = vld [vmem:[%s20679_s3 + $0x1938] sm:$0xff]  ;;  %v4531_v61 = vld [vmem:[%s20679_s3 + $0x2230] sm:$0xff] }
 0x3ea   :  { %5599 = vmatpush2.msra.mxu0 %v4307_v20  ;;  %5652 = vmatpush1.msra.mxu1 %v4370_v46  ;;  %v4238_v20 = vld [vmem:[%s20679_s3 + $0x1908] sm:$0xff]  ;;  %v4525_v46 = vld [vmem:[%s20679_s3 + $0x2200] sm:$0xff] }
 0x3eb   :  { %5600 = vmatprep.subr.mxu0 %v4301_v43  ;;  %5653 = vmatprep.subr.mxu1 %v4364_v48  ;;  %v4237_v43 = vld [vmem:[%s20679_s3 + $0x1900] sm:$0xff]  ;;  %v4524_v48 = vld [vmem:[%s20679_s3 + $0x21f8] sm:$0xff] }
 0x3ec   :  { %5601 = vmatpush2.msra.mxu0 %v4300_v17  ;;  %5654 = vmatpush1.msra.mxu1 %v4363_v51  ;;  %v4231_v17 = vld [vmem:[%s20679_s3 + $0x18d0] sm:$0xff]  ;;  %v4518_v51 = vld [vmem:[%s20679_s3 + $0x21c8] sm:$0xff] }
 0x3ed   :  { %5602 = vmatprep.subr.mxu0 %v4294_v45  ;;  %5655 = vmatprep.subr.mxu1 %v4357_v12  ;;  %v4230_v45 = vld [vmem:[%s20679_s3 + $0x18c8] sm:$0xff]  ;;  %v4517_v12 = vld [vmem:[%s20679_s3 + $0x21c0] sm:$0xff] }
 0x3ee   :  { %5603 = vmatpush2.msra.mxu0 %v4293_v53  ;;  %5656 = vmatpush1.msra.mxu1 %v4356_v58  ;;  %v4224_v53 = vld [vmem:[%s20679_s3 + $0x1898] sm:$0xff]  ;;  %v4511_v58 = vld [vmem:[%s20679_s3 + $0x2190] sm:$0xff] }
 0x3ef   :  { %5604 = vmatprep.subr.mxu0 %v4287_v47  ;;  %5657 = vmatprep.subr.mxu1 %v4350_v63  ;;  %v4223_v47 = vld [vmem:[%s20679_s3 + $0x1890] sm:$0xff]  ;;  %v4510_v63 = vld [vmem:[%s20679_s3 + $0x2188] sm:$0xff] }
 0x3f0   :  { %5605 = vmatpush2.msra.mxu0 %v4286_v0  ;;  %5658 = vmatpush1.msra.mxu1 %v4349_v49  ;;  %v4504_v0 = vld [vmem:[%s20679_s3 + $0x2158] sm:$0xff]  ;;  %v4665_v49 = vld [vmem:[%s20679_s3 + $0x2660] sm:$0xff] }
 0x3f1   :  { %5606 = vmatprep.subr.mxu0 %v4280_v2  ;;  %5659 = vmatprep.subr.mxu1 %v4343_v36  ;;  %v4503_v2 = vld [vmem:[%s20679_s3 + $0x2150] sm:$0xff]  ;;  %v4664_v36 = vld [vmem:[%s20679_s3 + $0x2658] sm:$0xff] }
 0x3f2   :  { %5607 = vmatpush2.msra.mxu0 %v4279_v60  ;;  %5660 = vmatpush1.msra.mxu1 %v4342_v37  ;;  %v4497_v60 = vld [vmem:[%s20679_s3 + $0x2120] sm:$0xff]  ;;  %v4658_v37 = vld [vmem:[%s20679_s3 + $0x2628] sm:$0xff] }
 0x3f3   :  { %5608 = vmatprep.subr.mxu0 %v4273_v6  ;;  %5661 = vmatprep.subr.mxu1 %v4336_v16  ;;  %v5129_v38 = vpop.f32.mrf.mxu0  ;;  %v4496_v6 = vld [vmem:[%s20679_s3 + $0x2118] sm:$0xff]  ;;  %v4657_v16 = vld [vmem:[%s20679_s3 + $0x2620] sm:$0xff] }
 0x3f4   :  { %5609 = vmatpush2.msra.mxu0 %v4272_v19  ;;  %5662 = vmatpush1.msra.mxu1 %v4335_v18  ;;  %v16495_v31 = vadd.f32 %v5129_v38, %v16272_v4  ;;  %v4539_v4 = vld [vmem:[%s20679_s3 + $0x2270] sm:$0xff]  ;;  %v4490_v19 = vld [vmem:[%s20679_s3 + $0x20e8] sm:$0xff] }
 0x3f5   :  { %5610 = vmatprep.subr.mxu0 %v4266_v9  ;;  %5663 = vmatprep.subr.mxu1 %v4553_v54  ;;  %v4651_v18 = vld [vmem:[%s20679_s3 + $0x25f0] sm:$0xff]  ;;  %v4489_v9 = vld [vmem:[%s20679_s3 + $0x20e0] sm:$0xff]  ;;  %v4650_v54 = vld [vmem:[%s20679_s3 + $0x25e8] sm:$0xff] }
 0x3f6   :  { %5611 = vmatpush2.msra.mxu0 %v4265_v22  ;;  %5664 = vmatpush2.msra.mxu1 %v4552_v26  ;;  %v4483_v22 = vld [vmem:[%s20679_s3 + $0x20b0] sm:$0xff]  ;;  %v4644_v26 = vld [vmem:[%s20679_s3 + $0x25b8] sm:$0xff]  ;;  %v4482_v38 = vld [vmem:[%s20679_s3 + $0x20a8] sm:$0xff] }
 0x3f7   :  { %5612 = vmatprep.subr.mxu0 %v4259_v59  ;;  %5665 = vmatprep.subr.mxu1 %v4546_v33  ;;  %v4643_v59 = vld [vmem:[%s20679_s3 + $0x25b0] sm:$0xff]  ;;  %v4476_v33 = vld [vmem:[%s20679_s3 + $0x2078] sm:$0xff] }
 0x3f8   :  { %5613 = vmatpush2.msra.mxu0 %v4258_v24  ;;  %5666 = vmatpush2.msra.mxu1 %v4545_v15  ;;  %v4637_v24 = vld [vmem:[%s20679_s3 + $0x2580] sm:$0xff]  ;;  %v4475_v15 = vld [vmem:[%s20679_s3 + $0x2070] sm:$0xff] }
 0x3f9   :  { %5614 = vmatprep.subr.mxu0 %v4252_v28  ;;  %5667 = vmatprep.subr.mxu1 %v4539_v4  ;;  %v4636_v28 = vld [vmem:[%s20679_s3 + $0x2578] sm:$0xff]  ;;  %v4469_v4 = vld [vmem:[%s20679_s3 + $0x2040] sm:$0xff] }
 0x3fa   :  { %5615 = vmatpush2.msra.mxu0 %v4251_v39  ;;  %5668 = vmatpush2.msra.mxu1 %v4538_v29  ;;  %v4630_v39 = vld [vmem:[%s20679_s3 + $0x2548] sm:$0xff]  ;;  %v4468_v29 = vld [vmem:[%s20679_s3 + $0x2038] sm:$0xff] }
 0x3fb   :  { %5616 = vmatprep.subr.mxu0 %v4245_v7  ;;  %5669 = vmatprep.subr.mxu1 %v4532_v11  ;;  %v4629_v7 = vld [vmem:[%s20679_s3 + $0x2540] sm:$0xff]  ;;  %v4462_v11 = vld [vmem:[%s20679_s3 + $0x2008] sm:$0xff] }
 0x3fc   :  { %5617 = vmatpush2.msra.mxu0 %v4244_v42  ;;  %5670 = vmatpush2.msra.mxu1 %v4531_v61  ;;  %v4623_v42 = vld [vmem:[%s20679_s3 + $0x2510] sm:$0xff]  ;;  %v16643_v61 = vpop.f32.mrf.mxu1 }
 0x3fd   :  { %5618 = vmatprep.subr.mxu0 %v4238_v20  ;;  %5671 = vmatprep.subr.mxu1 %v4525_v46  ;;  %v4461_v20 = vld [vmem:[%s20679_s3 + $0x2000] sm:$0xff]  ;;  %v4622_v46 = vld [vmem:[%s20679_s3 + $0x2508] sm:$0xff] }
 0x3fe   :  { %5619 = vmatpush2.msra.mxu0 %v4237_v43  ;;  %5672 = vmatpush2.msra.mxu1 %v4524_v48  ;;  %v4455_v43 = vld [vmem:[%s20679_s3 + $0x1fd0] sm:$0xff]  ;;  %v4616_v48 = vld [vmem:[%s20679_s3 + $0x24d8] sm:$0xff] }
 0x3ff   :  { %5620 = vmatprep.subr.mxu0 %v4231_v17  ;;  %5673 = vmatprep.subr.mxu1 %v4518_v51  ;;  %v4454_v17 = vld [vmem:[%s20679_s3 + $0x1fc8] sm:$0xff]  ;;  %v4615_v51 = vld [vmem:[%s20679_s3 + $0x24d0] sm:$0xff] }
 0x400   :  { %5621 = vmatpush2.msra.mxu0 %v4230_v45  ;;  %5674 = vmatpush2.msra.mxu1 %v4517_v12  ;;  %v4448_v12 = vld [vmem:[%s20679_s3 + $0x1f98] sm:$0xff] }
 0x401   :  { %5622 = vmatprep.subr.mxu0 %v4224_v53  ;;  %5675 = vmatprep.subr.mxu1 %v4511_v58  ;;  %v4609_v53 = vld [vmem:[%s20679_s3 + $0x24a0] sm:$0xff] }
 0x402   :  { %5623 = vmatpush2.msra.mxu0 %v4223_v47  ;;  %5676 = vmatpush2.msra.mxu1 %v4510_v63  ;;  %v4447_v47 = vld [vmem:[%s20679_s3 + $0x1f90] sm:$0xff]  ;;  %v4608_v63 = vld [vmem:[%s20679_s3 + $0x2498] sm:$0xff] }
 0x403   :  { %5625 = vmatmul.mubr.f32.vlgmr.msra.gmra.mxu0 %v15300_v14  ;;  %5677 = vmatprep.subr.mxu1 %v4504_v0  ;;  %v4602_v0 = vld [vmem:[%s20679_s3 + $0x2468] sm:$0xff] }
 0x404   :  { %5702 = vmatprep.subr.mxu0 %v4665_v49  ;;  %5678 = vmatpush2.msra.mxu1 %v4503_v2  ;;  %v4601_v49 = vld [vmem:[%s20679_s3 + $0x2460] sm:$0xff]  ;;  %v4804_v2 = vld [vmem:[%s20679_s3 + $0x2ab8] sm:$0xff] }
 0x405   :  { %5703 = vmatpush1.msra.mxu0 %v4664_v36  ;;  %5766 = vmatprep.mubr.f32.mxu0 %v15339_v32  ;;  %v4595_v36 = vld [vmem:[%s20679_s3 + $0x2430] sm:$0xff] }
 0x406   :  { %5679 = vmatprep.subr.mxu1 %v4497_v60  ;;  %5704 = vmatprep.subr.mxu0 %v4658_v37  ;;  %v4798_v60 = vld [vmem:[%s20679_s3 + $0x2a88] sm:$0xff] }
 0x407   :  { %5680 = vmatpush2.msra.mxu1 %v4496_v6  ;;  %5705 = vmatpush1.msra.mxu0 %v4657_v16  ;;  %v4594_v37 = vld [vmem:[%s20679_s3 + $0x2428] sm:$0xff]  ;;  %v4797_v6 = vld [vmem:[%s20679_s3 + $0x2a80] sm:$0xff]  ;;  %v4588_v16 = vld [vmem:[%s20679_s3 + $0x23f8] sm:$0xff] }
 0x408   :  { %5681 = vmatprep.subr.mxu1 %v4490_v19  ;;  %5706 = vmatprep.subr.mxu0 %v4651_v18  ;;  %v4791_v19 = vld [vmem:[%s20679_s3 + $0x2a50] sm:$0xff] }
 0x409   :  { %5682 = vmatpush2.msra.mxu1 %v4489_v9  ;;  %5707 = vmatpush1.msra.mxu0 %v4650_v54  ;;  %v4587_v18 = vld [vmem:[%s20679_s3 + $0x23f0] sm:$0xff]  ;;  %v4790_v9 = vld [vmem:[%s20679_s3 + $0x2a48] sm:$0xff]  ;;  %v4581_v54 = vld [vmem:[%s20679_s3 + $0x23c0] sm:$0xff] }
 0x40a   :  { %5683 = vmatprep.subr.mxu1 %v4483_v22  ;;  %5708 = vmatprep.subr.mxu0 %v4644_v26  ;;  %v4784_v22 = vld [vmem:[%s20679_s3 + $0x2a18] sm:$0xff] }
 0x40b   :  { %5684 = vmatpush2.msra.mxu1 %v4482_v38  ;;  %5709 = vmatpush1.msra.mxu0 %v4643_v59  ;;  %v4580_v26 = vld [vmem:[%s20679_s3 + $0x23b8] sm:$0xff]  ;;  %v4783_v38 = vld [vmem:[%s20679_s3 + $0x2a10] sm:$0xff]  ;;  %v4574_v59 = vld [vmem:[%s20679_s3 + $0x2388] sm:$0xff] }
 0x40c   :  { %5685 = vmatprep.subr.mxu1 %v4476_v33  ;;  %5710 = vmatprep.subr.mxu0 %v4637_v24  ;;  %v3547_v33 = vld [vmem:[%s20679_s3 + $0x370] sm:$0xff]  ;;  %v4573_v24 = vld [vmem:[%s20679_s3 + $0x2380] sm:$0xff] }
 0x40d   :  { %5686 = vmatpush2.msra.mxu1 %v4475_v15  ;;  %5711 = vmatpush1.msra.mxu0 %v4636_v28  ;;  %v3546_v15 = vld [vmem:[%s20679_s3 + $0x368] sm:$0xff]  ;;  %v4567_v28 = vld [vmem:[%s20679_s3 + $0x2350] sm:$0xff] }
 0x40e   :  { %5687 = vmatprep.subr.mxu1 %v4469_v4  ;;  %5712 = vmatprep.subr.mxu0 %v4630_v39  ;;  %v3540_v4 = vld [vmem:[%s20679_s3 + $0x338] sm:$0xff]  ;;  %v4566_v39 = vld [vmem:[%s20679_s3 + $0x2348] sm:$0xff] }
 0x40f   :  { %5688 = vmatpush2.msra.mxu1 %v4468_v29  ;;  %5713 = vmatpush1.msra.mxu0 %v4629_v7  ;;  %v3539_v29 = vld [vmem:[%s20679_s3 + $0x330] sm:$0xff]  ;;  %v4560_v7 = vld [vmem:[%s20679_s3 + $0x2318] sm:$0xff] }
 0x410   :  { %5689 = vmatprep.subr.mxu1 %v4462_v11  ;;  %5714 = vmatprep.subr.mxu0 %v4623_v42  ;;  %v5200_v45 = vpop.f32.mrf.mxu1  ;;  %v3533_v11 = vld [vmem:[%s20679_s3 + $0x300] sm:$0xff]  ;;  %v4559_v42 = vld [vmem:[%s20679_s3 + $0x2310] sm:$0xff] }
 0x411   :  { %5690 = vmatpush2.msra.mxu1 %v4461_v20  ;;  %5715 = vmatpush1.msra.mxu0 %v4622_v46  ;;  %v16670_v58 = vadd.f32 %v5200_v45, %v16495_v31  ;;  %v4805_v31 = vld [vmem:[%s20679_s3 + $0x2ac0] sm:$0xff]  ;;  %v3532_v20 = vld [vmem:[%s20679_s3 + $0x2f8] sm:$0xff]  ;;  %v3519_v45 = vld [vmem:[%s20679_s3 + $0x290] sm:$0xff] }
 0x412   :  { %5691 = vmatprep.subr.mxu1 %v4455_v43  ;;  %5716 = vmatprep.subr.mxu0 %v4616_v48  ;;  %v4777_v46 = vld [vmem:[%s20679_s3 + $0x29e0] sm:$0xff]  ;;  %v3526_v43 = vld [vmem:[%s20679_s3 + $0x2c8] sm:$0xff]  ;;  %v4776_v48 = vld [vmem:[%s20679_s3 + $0x29d8] sm:$0xff] }
 0x413   :  { %5692 = vmatpush2.msra.mxu1 %v4454_v17  ;;  %5717 = vmatpush1.msra.mxu0 %v4615_v51  ;;  %v3525_v17 = vld [vmem:[%s20679_s3 + $0x2c0] sm:$0xff]  ;;  %v4770_v51 = vld [vmem:[%s20679_s3 + $0x29a8] sm:$0xff] }
 0x414   :  { %5693 = vmatprep.subr.mxu1 %v4448_v12  ;;  %5718 = vmatprep.subr.mxu0 %v4609_v53  ;;  %v4769_v12 = vld [vmem:[%s20679_s3 + $0x29a0] sm:$0xff]  ;;  %v3518_v53 = vld [vmem:[%s20679_s3 + $0x288] sm:$0xff] }
 0x415   :  { %5694 = vmatpush2.msra.mxu1 %v4447_v47  ;;  %5719 = vmatpush1.msra.mxu0 %v4608_v63  ;;  %v4763_v47 = vld [vmem:[%s20679_s3 + $0x2970] sm:$0xff]  ;;  %v3512_v63 = vld [vmem:[%s20679_s3 + $0x258] sm:$0xff] }
 0x416   :  { %5696 = vmatmul.mubr.f32.vlgmr.msra.gmra.mxu1 %v15482_v8  ;;  %5720 = vmatprep.subr.mxu0 %v4602_v0  ;;  %v4762_v0 = vld [vmem:[%s20679_s3 + $0x2968] sm:$0xff] }
 0x417   :  { %5797 = vmatprep.subr.mxu1 %v4805_v31  ;;  %5721 = vmatpush1.msra.mxu0 %v4601_v49  ;;  %v3511_v31 = vld [vmem:[%s20679_s3 + $0x250] sm:$0xff]  ;;  %v4756_v49 = vld [vmem:[%s20679_s3 + $0x2938] sm:$0xff] }
 0x418   :  { %5798 = vmatpush1.msra.mxu1 %v4804_v2  ;;  %5722 = vmatprep.subr.mxu0 %v4595_v36  ;;  %v3505_v2 = vld [vmem:[%s20679_s3 + $0x220] sm:$0xff]  ;;  %v4755_v36 = vld [vmem:[%s20679_s3 + $0x2930] sm:$0xff] }
 0x419   :  { %5799 = vmatprep.subr.mxu1 %v4798_v60  ;;  %5723 = vmatpush1.msra.mxu0 %v4594_v37  ;;  %v3504_v60 = vld [vmem:[%s20679_s3 + $0x218] sm:$0xff]  ;;  %v4749_v37 = vld [vmem:[%s20679_s3 + $0x2900] sm:$0xff] }
 0x41a   :  { %5800 = vmatpush1.msra.mxu1 %v4797_v6  ;;  %5724 = vmatprep.subr.mxu0 %v4588_v16  ;;  %v3498_v6 = vld [vmem:[%s20679_s3 + $0x1e8] sm:$0xff]  ;;  %v4748_v16 = vld [vmem:[%s20679_s3 + $0x28f8] sm:$0xff] }
 0x41b   :  { %5801 = vmatprep.subr.mxu1 %v4791_v19  ;;  %5725 = vmatpush1.msra.mxu0 %v4587_v18  ;;  %v3497_v19 = vld [vmem:[%s20679_s3 + $0x1e0] sm:$0xff]  ;;  %v4742_v18 = vld [vmem:[%s20679_s3 + $0x28c8] sm:$0xff] }
 0x41c   :  { %5802 = vmatpush1.msra.mxu1 %v4790_v9  ;;  %5726 = vmatprep.subr.mxu0 %v4581_v54  ;;  %v3491_v9 = vld [vmem:[%s20679_s3 + $0x1b0] sm:$0xff]  ;;  %v4741_v54 = vld [vmem:[%s20679_s3 + $0x28c0] sm:$0xff] }
 0x41d   :  { %5803 = vmatprep.subr.mxu1 %v4784_v22  ;;  %5727 = vmatpush1.msra.mxu0 %v4580_v26  ;;  %v3490_v22 = vld [vmem:[%s20679_s3 + $0x1a8] sm:$0xff]  ;;  %v4735_v26 = vld [vmem:[%s20679_s3 + $0x2890] sm:$0xff] }
 0x41e   :  { %5804 = vmatpush1.msra.mxu1 %v4783_v38  ;;  %5837 = vmatprep.mubr.f32.mxu1 %v20694_v52  ;;  %v3484_v38 = vld [vmem:[%s20679_s3 + $0x178] sm:$0xff] }
 0x41f   :  { %5728 = vmatprep.subr.mxu0 %v4574_v59  ;;  %9376 = vmatmul.mubr.msk.f32.vlgmr.msra.gmra.mxu1 %vm4846_vm2, %v15767_v25  ;;  %v4734_v59 = vld [vmem:[%s20679_s3 + $0x2888] sm:$0xff] }
 0x420   :  { %5844 = vmatprep.subr.mxu1 %v3547_v33  ;;  %5729 = vmatpush1.msra.mxu0 %v4573_v24  ;;  %v3483_v33 = vld [vmem:[%s20679_s3 + $0x170] sm:$0xff]  ;;  %v4728_v24 = vld [vmem:[%s20679_s3 + $0x2858] sm:$0xff] }
 0x421   :  { %5845 = vmatpush1.msra.mxu1 %v3546_v15  ;;  %5908 = vmatprep.mubr.f32.mxu1 %v14230_v13  ;;  %v3477_v15 = vld [vmem:[%s20679_s3 + $0x140] sm:$0xff] }
 0x422   :  { %5730 = vmatprep.subr.mxu0 %v4567_v28  ;;  %5846 = vmatprep.subr.mxu1 %v3540_v4  ;;  %v4727_v28 = vld [vmem:[%s20679_s3 + $0x2850] sm:$0xff]  ;;  %v3476_v4 = vld [vmem:[%s20679_s3 + $0x138] sm:$0xff] }
 0x423   :  { %5731 = vmatpush1.msra.mxu0 %v4566_v39  ;;  %5847 = vmatpush1.msra.mxu1 %v3539_v29  ;;  %v16863_v39 = vpop.f32.mrf.mxu0  ;;  %v4721_v29 = vld [vmem:[%s20679_s3 + $0x2820] sm:$0xff] }
 0x424   :  { %5732 = vmatprep.subr.mxu0 %v4560_v7  ;;  %5848 = vmatprep.subr.mxu1 %v3533_v11  ;;  %v3470_v7 = vld [vmem:[%s20679_s3 + $0x108] sm:$0xff]  ;;  %v4720_v11 = vld [vmem:[%s20679_s3 + $0x2818] sm:$0xff] }
 0x425   :  { %5733 = vmatpush1.msra.mxu0 %v4559_v42  ;;  %5849 = vmatpush1.msra.mxu1 %v3532_v20  ;;  %v3469_v42 = vld [vmem:[%s20679_s3 + $0x100] sm:$0xff]  ;;  %v4714_v20 = vld [vmem:[%s20679_s3 + $0x27e8] sm:$0xff] }
 0x426   :  { %5734 = vmatprep.subr.mxu0 %v4777_v46  ;;  %5850 = vmatprep.subr.mxu1 %v3526_v43  ;;  %v3463_v46 = vld [vmem:[%s20679_s3 + $0xd0] sm:$0xff] }
 0x427   :  { %5735 = vmatpush2.msra.mxu0 %v4776_v48  ;;  %5851 = vmatpush1.msra.mxu1 %v3525_v17  ;;  %v4713_v48 = vld [vmem:[%s20679_s3 + $0x27e0] sm:$0xff]  ;;  %v3462_v17 = vld [vmem:[%s20679_s3 + $0xc8] sm:$0xff] }
 0x428   :  { %5736 = vmatprep.subr.mxu0 %v4770_v51  ;;  %5852 = vmatprep.subr.mxu1 %v3519_v45  ;;  %v4707_v45 = vld [vmem:[%s20679_s3 + $0x27b0] sm:$0xff] }
 0x429   :  { %5737 = vmatpush2.msra.mxu0 %v4769_v12  ;;  %5853 = vmatpush1.msra.mxu1 %v3518_v53  ;;  %v3456_v12 = vld [vmem:[%s20679_s3 + $0x98] sm:$0xff]  ;;  %v4706_v53 = vld [vmem:[%s20679_s3 + $0x27a8] sm:$0xff] }
 0x42a   :  { %5738 = vmatprep.subr.mxu0 %v4763_v47  ;;  %5854 = vmatprep.subr.mxu1 %v3512_v63  ;;  %v4700_v47 = vld [vmem:[%s20679_s3 + $0x2778] sm:$0xff]  ;;  %v3449_v63 = vld [vmem:[%s20679_s3 + $0x60] sm:$0xff] }
 0x42b   :  { %5739 = vmatpush2.msra.mxu0 %v4762_v0  ;;  %5855 = vmatpush1.msra.mxu1 %v3511_v31  ;;  %v4699_v0 = vld [vmem:[%s20679_s3 + $0x2770] sm:$0xff]  ;;  %v3448_v31 = vld [vmem:[%s20679_s3 + $0x58] sm:$0xff] }
 0x42c   :  { %5740 = vmatprep.subr.mxu0 %v4756_v49  ;;  %5856 = vmatprep.subr.mxu1 %v3505_v2  ;;  %v4693_v49 = vld [vmem:[%s20679_s3 + $0x2740] sm:$0xff]  ;;  %v3442_v2 = vld [vmem:[%s20679_s3 + $0x28] sm:$0xff] }
 0x42d   :  { %5741 = vmatpush2.msra.mxu0 %v4755_v36  ;;  %5857 = vmatpush1.msra.mxu1 %v3504_v60  ;;  %v4692_v36 = vld [vmem:[%s20679_s3 + $0x2738] sm:$0xff]  ;;  %v3441_v60 = vld [vmem:[%s20679_s3 + $0x20] sm:$0xff] }
 0x42e   :  { %5742 = vmatprep.subr.mxu0 %v4749_v37  ;;  %5858 = vmatprep.subr.mxu1 %v3498_v6  ;;  %v4686_v37 = vld [vmem:[%s20679_s3 + $0x2708] sm:$0xff]  ;;  %v3659_v6 = vld [vmem:[%s20679_s3 + $0x6f0] sm:$0xff] }
 0x42f   :  { %5743 = vmatpush2.msra.mxu0 %v4748_v16  ;;  %5859 = vmatpush1.msra.mxu1 %v3497_v19  ;;  %v4685_v19 = vld [vmem:[%s20679_s3 + $0x2700] sm:$0xff] }
 0x430   :  { %5744 = vmatprep.subr.mxu0 %v4742_v18  ;;  %5860 = vmatprep.subr.mxu1 %v3491_v9  ;;  %v3658_v18 = vld [vmem:[%s20679_s3 + $0x6e8] sm:$0xff]  ;;  %v4679_v9 = vld [vmem:[%s20679_s3 + $0x26d0] sm:$0xff] }
 0x431   :  { %5745 = vmatpush2.msra.mxu0 %v4741_v54  ;;  %5861 = vmatpush1.msra.mxu1 %v3490_v22  ;;  %v3652_v54 = vld [vmem:[%s20679_s3 + $0x6b8] sm:$0xff]  ;;  %v4678_v22 = vld [vmem:[%s20679_s3 + $0x26c8] sm:$0xff] }
 0x432   :  { %5746 = vmatprep.subr.mxu0 %v4735_v26  ;;  %5862 = vmatprep.subr.mxu1 %v3484_v38  ;;  %v3651_v26 = vld [vmem:[%s20679_s3 + $0x6b0] sm:$0xff] }
 0x433   :  { %5747 = vmatpush2.msra.mxu0 %v4734_v59  ;;  %5863 = vmatpush1.msra.mxu1 %v3483_v33  ;;  %v4672_v59 = vld [vmem:[%s20679_s3 + $0x2698] sm:$0xff]  ;;  %v3645_v33 = vld [vmem:[%s20679_s3 + $0x680] sm:$0xff] }
 0x434   :  { %5748 = vmatprep.subr.mxu0 %v4728_v24  ;;  %5864 = vmatprep.subr.mxu1 %v3477_v15  ;;  %v4671_v15 = vld [vmem:[%s20679_s3 + $0x2690] sm:$0xff] }
 0x435   :  { %5749 = vmatpush2.msra.mxu0 %v4727_v28  ;;  %5865 = vmatpush1.msra.mxu1 %v3476_v4  ;;  %v5271_v43 = vpop.f32.mrf.mxu0  ;;  %v3644_v28 = vld [vmem:[%s20679_s3 + $0x678] sm:$0xff]  ;;  %v3638_v4 = vld [vmem:[%s20679_s3 + $0x648] sm:$0xff] }
 0x436   :  { %5750 = vmatprep.subr.mxu0 %v4721_v29  ;;  %5866 = vmatprep.subr.mxu1 %v3470_v7  ;;  %v5272_v51 = vadd.f32 %v5271_v43, %v16670_v58  ;;  %v3455_v58 = vld [vmem:[%s20679_s3 + $0x90] sm:$0xff]  ;;  %v3637_v7 = vld [vmem:[%s20679_s3 + $0x640] sm:$0xff] }
 0x437   :  { %5751 = vmatpush2.msra.mxu0 %v4720_v11  ;;  %5867 = vmatpush1.msra.mxu1 %v3469_v42  ;;  %v16932_v16 = vpop.f32.mrf.mxu0  ;;  %v3771_v29 = vld [vmem:[%s20679_s3 + $0xa70] sm:$0xff]  ;;  %v3770_v11 = vld [vmem:[%s20679_s3 + $0xa68] sm:$0xff] }
 0x438   :  { %5752 = vmatprep.subr.mxu0 %v4714_v20  ;;  %5868 = vmatprep.subr.mxu1 %v3463_v46  ;;  %v3631_v42 = vld [vmem:[%s20679_s3 + $0x610] sm:$0xff]  ;;  %v3764_v20 = vld [vmem:[%s20679_s3 + $0xa38] sm:$0xff]  ;;  %v3630_v46 = vld [vmem:[%s20679_s3 + $0x608] sm:$0xff] }
 0x439   :  { %5753 = vmatpush2.msra.mxu0 %v4713_v48  ;;  %5869 = vmatpush1.msra.mxu1 %v3462_v17  ;;  %v3763_v43 = vld [vmem:[%s20679_s3 + $0xa30] sm:$0xff]  ;;  %v3624_v48 = vld [vmem:[%s20679_s3 + $0x5d8] sm:$0xff]  ;;  %v3757_v17 = vld [vmem:[%s20679_s3 + $0xa00] sm:$0xff] }
 0x43a   :  { %5754 = vmatprep.subr.mxu0 %v4707_v45  ;;  %5870 = vmatprep.subr.mxu1 %v3456_v12  ;;  %v3756_v45 = vld [vmem:[%s20679_s3 + $0x9f8] sm:$0xff]  ;;  %v3617_v12 = vld [vmem:[%s20679_s3 + $0x5a0] sm:$0xff] }
 0x43b   :  { %5755 = vmatpush2.msra.mxu0 %v4706_v53  ;;  %5871 = vmatpush1.msra.mxu1 %v3455_v58  ;;  %v3750_v53 = vld [vmem:[%s20679_s3 + $0x9c8] sm:$0xff]  ;;  %v3616_v58 = vld [vmem:[%s20679_s3 + $0x598] sm:$0xff] }
 0x43c   :  { %5756 = vmatprep.subr.mxu0 %v4700_v47  ;;  %5872 = vmatprep.subr.mxu1 %v3449_v63  ;;  %v3749_v47 = vld [vmem:[%s20679_s3 + $0x9c0] sm:$0xff]  ;;  %v3610_v63 = vld [vmem:[%s20679_s3 + $0x568] sm:$0xff] }
 0x43d   :  { %5757 = vmatpush2.msra.mxu0 %v4699_v0  ;;  %5873 = vmatpush1.msra.mxu1 %v3448_v31  ;;  %v3743_v0 = vld [vmem:[%s20679_s3 + $0x990] sm:$0xff]  ;;  %v3609_v31 = vld [vmem:[%s20679_s3 + $0x560] sm:$0xff] }
 0x43e   :  { %5758 = vmatprep.subr.mxu0 %v4693_v49  ;;  %5874 = vmatprep.subr.mxu1 %v3442_v2  ;;  %v3742_v49 = vld [vmem:[%s20679_s3 + $0x988] sm:$0xff]  ;;  %v3603_v2 = vld [vmem:[%s20679_s3 + $0x530] sm:$0xff] }
 0x43f   :  { %5759 = vmatpush2.msra.mxu0 %v4692_v36  ;;  %5875 = vmatpush1.msra.mxu1 %v3441_v60  ;;  %v3736_v36 = vld [vmem:[%s20679_s3 + $0x958] sm:$0xff]  ;;  %v3602_v60 = vld [vmem:[%s20679_s3 + $0x528] sm:$0xff] }
 0x440   :  { %5760 = vmatprep.subr.mxu0 %v4686_v37  ;;  %5876 = vmatprep.subr.mxu1 %v3659_v6  ;;  %v5342_v38 = vpop.f32.mrf.mxu0  ;;  %v3735_v37 = vld [vmem:[%s20679_s3 + $0x950] sm:$0xff]  ;;  %v3596_v6 = vld [vmem:[%s20679_s3 + $0x4f8] sm:$0xff] }
 0x441   :  { %5761 = vmatpush2.msra.mxu0 %v4685_v19  ;;  %5877 = vmatpush2.msra.mxu1 %v3658_v18  ;;  %v16958_v24 = vadd.f32 %v5342_v38, %v5272_v51  ;;  %v3623_v51 = vld [vmem:[%s20679_s3 + $0x5d0] sm:$0xff]  ;;  %v3729_v19 = vld [vmem:[%s20679_s3 + $0x920] sm:$0xff] }
 0x442   :  { %5762 = vmatprep.subr.mxu0 %v4679_v9  ;;  %5878 = vmatprep.subr.mxu1 %v3652_v54  ;;  %v3595_v18 = vld [vmem:[%s20679_s3 + $0x4f0] sm:$0xff]  ;;  %v3728_v9 = vld [vmem:[%s20679_s3 + $0x918] sm:$0xff]  ;;  %v3589_v54 = vld [vmem:[%s20679_s3 + $0x4c0] sm:$0xff] }
 0x443   :  { %20771 = vst [vmem:[#allocation8_spill] sm:$0xff] %v16958_v24  ;;  %5763 = vmatpush2.msra.mxu0 %v4678_v22  ;;  %5879 = vmatpush2.msra.mxu1 %v3651_v26  ;;  %v3722_v22 = vld [vmem:[%s20679_s3 + $0x8e8] sm:$0xff]  ;;  %v3588_v26 = vld [vmem:[%s20679_s3 + $0x4b8] sm:$0xff]  ;;  %v3721_v38 = vld [vmem:[%s20679_s3 + $0x8e0] sm:$0xff] }
 0x444   :  { %5764 = vmatprep.subr.mxu0 %v4672_v59  ;;  %5880 = vmatprep.subr.mxu1 %v3645_v33  ;;  %v3582_v59 = vld [vmem:[%s20679_s3 + $0x488] sm:$0xff]  ;;  %v3715_v33 = vld [vmem:[%s20679_s3 + $0x8b0] sm:$0xff] }
 0x445   :  { %5765 = vmatpush2.msra.mxu0 %v4671_v15  ;;  %5881 = vmatpush2.msra.mxu1 %v3644_v28  ;;  %v3581_v15 = vld [vmem:[%s20679_s3 + $0x480] sm:$0xff]  ;;  %v3714_v28 = vld [vmem:[%s20679_s3 + $0x8a8] sm:$0xff] }
 0x446   :  { %5767 = vmatmul.mubr.f32.vlgmr.msra.gmra.mxu0 %v15712_v3  ;;  %5882 = vmatprep.subr.mxu1 %v3638_v4  ;;  %v3575_v4 = vld [vmem:[%s20679_s3 + $0x450] sm:$0xff] }
 0x447   :  { %5915 = vmatprep.subr.mxu0 %v3771_v29  ;;  %5883 = vmatpush2.msra.mxu1 %v3637_v7  ;;  %v3708_v29 = vld [vmem:[%s20679_s3 + $0x878] sm:$0xff]  ;;  %v3574_v7 = vld [vmem:[%s20679_s3 + $0x448] sm:$0xff] }
 0x448   :  { %5916 = vmatpush1.msra.mxu0 %v3770_v11  ;;  %5979 = vmatprep.mubr.f32.mxu0 %v14473_v27  ;;  %v3707_v11 = vld [vmem:[%s20679_s3 + $0x870] sm:$0xff] }
 0x449   :  { %5884 = vmatprep.subr.mxu1 %v3631_v42  ;;  %5917 = vmatprep.subr.mxu0 %v3764_v20  ;;  %v3568_v42 = vld [vmem:[%s20679_s3 + $0x418] sm:$0xff]  ;;  %v3701_v20 = vld [vmem:[%s20679_s3 + $0x840] sm:$0xff] }
 0x44a   :  { %5885 = vmatpush2.msra.mxu1 %v3630_v46  ;;  %5918 = vmatpush1.msra.mxu0 %v3763_v43  ;;  %v3567_v46 = vld [vmem:[%s20679_s3 + $0x410] sm:$0xff]  ;;  %v3700_v43 = vld [vmem:[%s20679_s3 + $0x838] sm:$0xff] }
 0x44b   :  { %5886 = vmatprep.subr.mxu1 %v3624_v48  ;;  %5919 = vmatprep.subr.mxu0 %v3757_v17  ;;  %v3561_v48 = vld [vmem:[%s20679_s3 + $0x3e0] sm:$0xff]  ;;  %v3694_v17 = vld [vmem:[%s20679_s3 + $0x808] sm:$0xff] }
 0x44c   :  { %5887 = vmatpush2.msra.mxu1 %v3623_v51  ;;  %5920 = vmatpush1.msra.mxu0 %v3756_v45  ;;  %v3560_v51 = vld [vmem:[%s20679_s3 + $0x3d8] sm:$0xff]  ;;  %v3693_v45 = vld [vmem:[%s20679_s3 + $0x800] sm:$0xff] }
 0x44d   :  { %5888 = vmatprep.subr.mxu1 %v3617_v12  ;;  %5921 = vmatprep.subr.mxu0 %v3750_v53  ;;  %v3554_v12 = vld [vmem:[%s20679_s3 + $0x3a8] sm:$0xff]  ;;  %v3687_v53 = vld [vmem:[%s20679_s3 + $0x7d0] sm:$0xff] }
 0x44e   :  { %5889 = vmatpush2.msra.mxu1 %v3616_v58  ;;  %5922 = vmatpush1.msra.mxu0 %v3749_v47  ;;  %v3553_v58 = vld [vmem:[%s20679_s3 + $0x3a0] sm:$0xff]  ;;  %v3686_v47 = vld [vmem:[%s20679_s3 + $0x7c8] sm:$0xff] }
 0x44f   :  { %5890 = vmatprep.subr.mxu1 %v3610_v63  ;;  %5923 = vmatprep.subr.mxu0 %v3743_v0  ;;  %v3680_v63 = vld [vmem:[%s20679_s3 + $0x798] sm:$0xff]  ;;  %v3995_v0 = vld [vmem:[%s20679_s3 + $0x1170] sm:$0xff] }
 0x450   :  { %5891 = vmatpush2.msra.mxu1 %v3609_v31  ;;  %5924 = vmatpush1.msra.mxu0 %v3742_v49  ;;  %v3679_v31 = vld [vmem:[%s20679_s3 + $0x790] sm:$0xff]  ;;  %v3994_v49 = vld [vmem:[%s20679_s3 + $0x1168] sm:$0xff] }
 0x451   :  { %5892 = vmatprep.subr.mxu1 %v3603_v2  ;;  %5925 = vmatprep.subr.mxu0 %v3736_v36  ;;  %v3673_v2 = vld [vmem:[%s20679_s3 + $0x760] sm:$0xff]  ;;  %v3988_v36 = vld [vmem:[%s20679_s3 + $0x1138] sm:$0xff] }
 0x452   :  { %5893 = vmatpush2.msra.mxu1 %v3602_v60  ;;  %5926 = vmatpush1.msra.mxu0 %v3735_v37  ;;  %v3672_v60 = vld [vmem:[%s20679_s3 + $0x758] sm:$0xff]  ;;  %v3987_v37 = vld [vmem:[%s20679_s3 + $0x1130] sm:$0xff] }
 0x453   :  { %5894 = vmatprep.subr.mxu1 %v3596_v6  ;;  %5927 = vmatprep.subr.mxu0 %v3729_v19  ;;  %v3666_v6 = vld [vmem:[%s20679_s3 + $0x728] sm:$0xff]  ;;  %v3981_v19 = vld [vmem:[%s20679_s3 + $0x1100] sm:$0xff] }
 0x454   :  { %5895 = vmatpush2.msra.mxu1 %v3595_v18  ;;  %5928 = vmatpush1.msra.mxu0 %v3728_v9  ;;  %v3665_v18 = vld [vmem:[%s20679_s3 + $0x720] sm:$0xff]  ;;  %v3980_v9 = vld [vmem:[%s20679_s3 + $0x10f8] sm:$0xff] }
 0x455   :  { %5896 = vmatprep.subr.mxu1 %v3589_v54  ;;  %5929 = vmatprep.subr.mxu0 %v3722_v22  ;;  %v3883_v54 = vld [vmem:[%s20679_s3 + $0xdf0] sm:$0xff]  ;;  %v3974_v22 = vld [vmem:[%s20679_s3 + $0x10c8] sm:$0xff] }
 0x456   :  { %5897 = vmatpush2.msra.mxu1 %v3588_v26  ;;  %5930 = vmatpush1.msra.mxu0 %v3721_v38  ;;  %v3882_v26 = vld [vmem:[%s20679_s3 + $0xde8] sm:$0xff]  ;;  %v3973_v38 = vld [vmem:[%s20679_s3 + $0x10c0] sm:$0xff] }
 0x457   :  { %5898 = vmatprep.subr.mxu1 %v3582_v59  ;;  %5931 = vmatprep.subr.mxu0 %v3715_v33  ;;  %v3876_v59 = vld [vmem:[%s20679_s3 + $0xdb8] sm:$0xff]  ;;  %v3967_v33 = vld [vmem:[%s20679_s3 + $0x1090] sm:$0xff] }
 0x458   :  { %5899 = vmatpush2.msra.mxu1 %v3581_v15  ;;  %5932 = vmatpush1.msra.mxu0 %v3714_v28  ;;  %v3875_v15 = vld [vmem:[%s20679_s3 + $0xdb0] sm:$0xff]  ;;  %v3966_v28 = vld [vmem:[%s20679_s3 + $0x1088] sm:$0xff] }
 0x459   :  { %5900 = vmatprep.subr.mxu1 %v3575_v4  ;;  %5933 = vmatprep.subr.mxu0 %v3708_v29  ;;  %v3869_v4 = vld [vmem:[%s20679_s3 + $0xd80] sm:$0xff]  ;;  %v3960_v29 = vld [vmem:[%s20679_s3 + $0x1058] sm:$0xff] }
 0x45a   :  { %5901 = vmatpush2.msra.mxu1 %v3574_v7  ;;  %5934 = vmatpush1.msra.mxu0 %v3707_v11  ;;  %v3868_v7 = vld [vmem:[%s20679_s3 + $0xd78] sm:$0xff]  ;;  %v3959_v11 = vld [vmem:[%s20679_s3 + $0x1050] sm:$0xff] }
 0x45b   :  { %5902 = vmatprep.subr.mxu1 %v3568_v42  ;;  %5935 = vmatprep.subr.mxu0 %v3701_v20  ;;  %v3862_v42 = vld [vmem:[%s20679_s3 + $0xd48] sm:$0xff]  ;;  %v3953_v20 = vld [vmem:[%s20679_s3 + $0x1020] sm:$0xff] }
 0x45c   :  { %5903 = vmatpush2.msra.mxu1 %v3567_v46  ;;  %5936 = vmatpush1.msra.mxu0 %v3700_v43  ;;  %v3861_v46 = vld [vmem:[%s20679_s3 + $0xd40] sm:$0xff]  ;;  %v3952_v43 = vld [vmem:[%s20679_s3 + $0x1018] sm:$0xff] }
 0x45d   :  { %5904 = vmatprep.subr.mxu1 %v3561_v48  ;;  %5937 = vmatprep.subr.mxu0 %v3694_v17  ;;  %v3855_v48 = vld [vmem:[%s20679_s3 + $0xd10] sm:$0xff]  ;;  %v3946_v17 = vld [vmem:[%s20679_s3 + $0xfe8] sm:$0xff] }
 0x45e   :  { %5905 = vmatpush2.msra.mxu1 %v3560_v51  ;;  %5938 = vmatpush1.msra.mxu0 %v3693_v45  ;;  %v3854_v51 = vld [vmem:[%s20679_s3 + $0xd08] sm:$0xff]  ;;  %v3945_v45 = vld [vmem:[%s20679_s3 + $0xfe0] sm:$0xff] }
 0x45f   :  { %5906 = vmatprep.subr.mxu1 %v3554_v12  ;;  %5939 = vmatprep.subr.mxu0 %v3687_v53  ;;  %v3848_v12 = vld [vmem:[%s20679_s3 + $0xcd8] sm:$0xff]  ;;  %v3939_v53 = vld [vmem:[%s20679_s3 + $0xfb0] sm:$0xff] }
 0x460   :  { %5907 = vmatpush2.msra.mxu1 %v3553_v58  ;;  %5940 = vmatpush1.msra.mxu0 %v3686_v47  ;;  %v3847_v58 = vld [vmem:[%s20679_s3 + $0xcd0] sm:$0xff]  ;;  %v3938_v47 = vld [vmem:[%s20679_s3 + $0xfa8] sm:$0xff] }
 0x461   :  { %5909 = vmatmul.mubr.f32.vlgmr.msra.gmra.mxu1 %v14645_v34  ;;  %5941 = vmatprep.subr.mxu0 %v3680_v63  ;;  %v3841_v63 = vld [vmem:[%s20679_s3 + $0xca0] sm:$0xff] }
 0x462   :  { %5986 = vmatprep.subr.mxu1 %v3995_v0  ;;  %5942 = vmatpush1.msra.mxu0 %v3679_v31  ;;  %v3932_v0 = vld [vmem:[%s20679_s3 + $0xf78] sm:$0xff] }
 0x463   :  { %5987 = vmatpush1.msra.mxu1 %v3994_v49  ;;  %6050 = vmatprep.mubr.f32.mxu1 %v14656_v1  ;;  %v3840_v31 = vld [vmem:[%s20679_s3 + $0xc98] sm:$0xff]  ;;  %v3931_v49 = vld [vmem:[%s20679_s3 + $0xf70] sm:$0xff] }
 0x464   :  { %5943 = vmatprep.subr.mxu0 %v3673_v2  ;;  %5988 = vmatprep.subr.mxu1 %v3988_v36  ;;  %v3834_v2 = vld [vmem:[%s20679_s3 + $0xc68] sm:$0xff]  ;;  %v3925_v36 = vld [vmem:[%s20679_s3 + $0xf40] sm:$0xff] }
 0x465   :  { %5944 = vmatpush1.msra.mxu0 %v3672_v60  ;;  %5989 = vmatpush1.msra.mxu1 %v3987_v37  ;;  %v3833_v60 = vld [vmem:[%s20679_s3 + $0xc60] sm:$0xff]  ;;  %v3924_v37 = vld [vmem:[%s20679_s3 + $0xf38] sm:$0xff] }
 0x466   :  { %5945 = vmatprep.subr.mxu0 %v3666_v6  ;;  %5990 = vmatprep.subr.mxu1 %v3981_v19  ;;  %v3827_v6 = vld [vmem:[%s20679_s3 + $0xc30] sm:$0xff]  ;;  %v3918_v19 = vld [vmem:[%s20679_s3 + $0xf08] sm:$0xff] }
 0x467   :  { %5946 = vmatpush1.msra.mxu0 %v3665_v18  ;;  %5991 = vmatpush1.msra.mxu1 %v3980_v9  ;;  %v3826_v18 = vld [vmem:[%s20679_s3 + $0xc28] sm:$0xff]  ;;  %v3917_v9 = vld [vmem:[%s20679_s3 + $0xf00] sm:$0xff] }
 0x468   :  { %5947 = vmatprep.subr.mxu0 %v3883_v54  ;;  %5992 = vmatprep.subr.mxu1 %v3974_v22  ;;  %v3820_v54 = vld [vmem:[%s20679_s3 + $0xbf8] sm:$0xff]  ;;  %v3911_v22 = vld [vmem:[%s20679_s3 + $0xed0] sm:$0xff] }
 0x469   :  { %5948 = vmatpush2.msra.mxu0 %v3882_v26  ;;  %5993 = vmatpush1.msra.mxu1 %v3973_v38  ;;  %v3819_v26 = vld [vmem:[%s20679_s3 + $0xbf0] sm:$0xff]  ;;  %v3910_v38 = vld [vmem:[%s20679_s3 + $0xec8] sm:$0xff] }
 0x46a   :  { %5949 = vmatprep.subr.mxu0 %v3876_v59  ;;  %5994 = vmatprep.subr.mxu1 %v3967_v33  ;;  %v3813_v59 = vld [vmem:[%s20679_s3 + $0xbc0] sm:$0xff]  ;;  %v3904_v33 = vld [vmem:[%s20679_s3 + $0xe98] sm:$0xff] }
 0x46b   :  { %5950 = vmatpush2.msra.mxu0 %v3875_v15  ;;  %5995 = vmatpush1.msra.mxu1 %v3966_v28  ;;  %v3812_v15 = vld [vmem:[%s20679_s3 + $0xbb8] sm:$0xff]  ;;  %v3903_v28 = vld [vmem:[%s20679_s3 + $0xe90] sm:$0xff] }
 0x46c   :  { %5951 = vmatprep.subr.mxu0 %v3869_v4  ;;  %5996 = vmatprep.subr.mxu1 %v3960_v29  ;;  %v3806_v4 = vld [vmem:[%s20679_s3 + $0xb88] sm:$0xff]  ;;  %v3897_v29 = vld [vmem:[%s20679_s3 + $0xe60] sm:$0xff] }
 0x46d   :  { %5952 = vmatpush2.msra.mxu0 %v3868_v7  ;;  %5997 = vmatpush1.msra.mxu1 %v3959_v11  ;;  %v3805_v7 = vld [vmem:[%s20679_s3 + $0xb80] sm:$0xff]  ;;  %v3896_v11 = vld [vmem:[%s20679_s3 + $0xe58] sm:$0xff] }
 0x46e   :  { %5953 = vmatprep.subr.mxu0 %v3862_v42  ;;  %5998 = vmatprep.subr.mxu1 %v3953_v20  ;;  %v3799_v42 = vld [vmem:[%s20679_s3 + $0xb50] sm:$0xff]  ;;  %v3890_v20 = vld [vmem:[%s20679_s3 + $0xe28] sm:$0xff] }
 0x46f   :  { %5954 = vmatpush2.msra.mxu0 %v3861_v46  ;;  %5999 = vmatpush1.msra.mxu1 %v3952_v43  ;;  %v3798_v46 = vld [vmem:[%s20679_s3 + $0xb48] sm:$0xff]  ;;  %v3889_v43 = vld [vmem:[%s20679_s3 + $0xe20] sm:$0xff] }
 0x470   :  { %5955 = vmatprep.subr.mxu0 %v3855_v48  ;;  %6000 = vmatprep.subr.mxu1 %v3946_v17  ;;  %v3792_v48 = vld [vmem:[%s20679_s3 + $0xb18] sm:$0xff]  ;;  %v4107_v17 = vld [vmem:[%s20679_s3 + $0x14f0] sm:$0xff] }
 0x471   :  { %5956 = vmatpush2.msra.mxu0 %v3854_v51  ;;  %6001 = vmatpush1.msra.mxu1 %v3945_v45  ;;  %v3791_v51 = vld [vmem:[%s20679_s3 + $0xb10] sm:$0xff]  ;;  %v4106_v45 = vld [vmem:[%s20679_s3 + $0x14e8] sm:$0xff] }
 0x472   :  { %5957 = vmatprep.subr.mxu0 %v3848_v12  ;;  %6002 = vmatprep.subr.mxu1 %v3939_v53  ;;  %v3785_v12 = vld [vmem:[%s20679_s3 + $0xae0] sm:$0xff]  ;;  %v4100_v53 = vld [vmem:[%s20679_s3 + $0x14b8] sm:$0xff] }
 0x473   :  { %5958 = vmatpush2.msra.mxu0 %v3847_v58  ;;  %6003 = vmatpush1.msra.mxu1 %v3938_v47  ;;  %v3784_v58 = vld [vmem:[%s20679_s3 + $0xad8] sm:$0xff]  ;;  %v4099_v47 = vld [vmem:[%s20679_s3 + $0x14b0] sm:$0xff] }
 0x474   :  { %5959 = vmatprep.subr.mxu0 %v3841_v63  ;;  %6004 = vmatprep.subr.mxu1 %v3932_v0  ;;  %v3778_v63 = vld [vmem:[%s20679_s3 + $0xaa8] sm:$0xff]  ;;  %v4093_v0 = vld [vmem:[%s20679_s3 + $0x1480] sm:$0xff] }
 0x475   :  { %5960 = vmatpush2.msra.mxu0 %v3840_v31  ;;  %6005 = vmatpush1.msra.mxu1 %v3931_v49  ;;  %v3777_v31 = vld [vmem:[%s20679_s3 + $0xaa0] sm:$0xff]  ;;  %v4092_v49 = vld [vmem:[%s20679_s3 + $0x1478] sm:$0xff] }
 0x476   :  { %5961 = vmatprep.subr.mxu0 %v3834_v2  ;;  %6006 = vmatprep.subr.mxu1 %v3925_v36  ;;  %v4086_v2 = vld [vmem:[%s20679_s3 + $0x1448] sm:$0xff]  ;;  %v4219_v36 = vld [vmem:[%s20679_s3 + $0x1870] sm:$0xff] }
 0x477   :  { %5962 = vmatpush2.msra.mxu0 %v3833_v60  ;;  %6007 = vmatpush1.msra.mxu1 %v3924_v37  ;;  %v4085_v60 = vld [vmem:[%s20679_s3 + $0x1440] sm:$0xff]  ;;  %v4218_v37 = vld [vmem:[%s20679_s3 + $0x1868] sm:$0xff] }
 0x478   :  { %5963 = vmatprep.subr.mxu0 %v3827_v6  ;;  %6008 = vmatprep.subr.mxu1 %v3918_v19  ;;  %v4079_v6 = vld [vmem:[%s20679_s3 + $0x1410] sm:$0xff]  ;;  %v4212_v19 = vld [vmem:[%s20679_s3 + $0x1838] sm:$0xff] }
 0x479   :  { %5964 = vmatpush2.msra.mxu0 %v3826_v18  ;;  %6009 = vmatpush1.msra.mxu1 %v3917_v9  ;;  %v4078_v18 = vld [vmem:[%s20679_s3 + $0x1408] sm:$0xff]  ;;  %v4211_v9 = vld [vmem:[%s20679_s3 + $0x1830] sm:$0xff] }
 0x47a   :  { %5965 = vmatprep.subr.mxu0 %v3820_v54  ;;  %6010 = vmatprep.subr.mxu1 %v3911_v22  ;;  %v4072_v54 = vld [vmem:[%s20679_s3 + $0x13d8] sm:$0xff]  ;;  %v4205_v22 = vld [vmem:[%s20679_s3 + $0x1800] sm:$0xff] }
 0x47b   :  { %5966 = vmatpush2.msra.mxu0 %v3819_v26  ;;  %6011 = vmatpush1.msra.mxu1 %v3910_v38  ;;  %v4071_v26 = vld [vmem:[%s20679_s3 + $0x13d0] sm:$0xff]  ;;  %v4204_v38 = vld [vmem:[%s20679_s3 + $0x17f8] sm:$0xff] }
 0x47c   :  { %5967 = vmatprep.subr.mxu0 %v3813_v59  ;;  %6012 = vmatprep.subr.mxu1 %v3904_v33  ;;  %v4065_v59 = vld [vmem:[%s20679_s3 + $0x13a0] sm:$0xff]  ;;  %v4198_v33 = vld [vmem:[%s20679_s3 + $0x17c8] sm:$0xff] }
 0x47d   :  { %5968 = vmatpush2.msra.mxu0 %v3812_v15  ;;  %6013 = vmatpush1.msra.mxu1 %v3903_v28  ;;  %v4064_v15 = vld [vmem:[%s20679_s3 + $0x1398] sm:$0xff]  ;;  %v4197_v28 = vld [vmem:[%s20679_s3 + $0x17c0] sm:$0xff] }
 0x47e   :  { %5969 = vmatprep.subr.mxu0 %v3806_v4  ;;  %6014 = vmatprep.subr.mxu1 %v3897_v29  ;;  %v4058_v4 = vld [vmem:[%s20679_s3 + $0x1368] sm:$0xff]  ;;  %v4191_v29 = vld [vmem:[%s20679_s3 + $0x1790] sm:$0xff] }
 0x47f   :  { %5970 = vmatpush2.msra.mxu0 %v3805_v7  ;;  %6015 = vmatpush1.msra.mxu1 %v3896_v11  ;;  %v4057_v7 = vld [vmem:[%s20679_s3 + $0x1360] sm:$0xff]  ;;  %v4190_v11 = vld [vmem:[%s20679_s3 + $0x1788] sm:$0xff] }
 0x480   :  { %5971 = vmatprep.subr.mxu0 %v3799_v42  ;;  %6016 = vmatprep.subr.mxu1 %v3890_v20  ;;  %v4051_v42 = vld [vmem:[%s20679_s3 + $0x1330] sm:$0xff]  ;;  %v4184_v20 = vld [vmem:[%s20679_s3 + $0x1758] sm:$0xff] }
 0x481   :  { %5972 = vmatpush2.msra.mxu0 %v3798_v46  ;;  %6017 = vmatpush1.msra.mxu1 %v3889_v43  ;;  %v4050_v46 = vld [vmem:[%s20679_s3 + $0x1328] sm:$0xff]  ;;  %v4183_v43 = vld [vmem:[%s20679_s3 + $0x1750] sm:$0xff] }
 0x482   :  { %5973 = vmatprep.subr.mxu0 %v3792_v48  ;;  %6018 = vmatprep.subr.mxu1 %v4107_v17  ;;  %v4044_v48 = vld [vmem:[%s20679_s3 + $0x12f8] sm:$0xff]  ;;  %v4177_v17 = vld [vmem:[%s20679_s3 + $0x1720] sm:$0xff] }
 0x483   :  { %5974 = vmatpush2.msra.mxu0 %v3791_v51  ;;  %6019 = vmatpush2.msra.mxu1 %v4106_v45  ;;  %v4043_v51 = vld [vmem:[%s20679_s3 + $0x12f0] sm:$0xff]  ;;  %v4176_v45 = vld [vmem:[%s20679_s3 + $0x1718] sm:$0xff] }
 0x484   :  { %5975 = vmatprep.subr.mxu0 %v3785_v12  ;;  %6020 = vmatprep.subr.mxu1 %v4100_v53  ;;  %v4037_v12 = vld [vmem:[%s20679_s3 + $0x12c0] sm:$0xff]  ;;  %v4170_v53 = vld [vmem:[%s20679_s3 + $0x16e8] sm:$0xff] }
 0x485   :  { %5976 = vmatpush2.msra.mxu0 %v3784_v58  ;;  %6021 = vmatpush2.msra.mxu1 %v4099_v47  ;;  %v4036_v58 = vld [vmem:[%s20679_s3 + $0x12b8] sm:$0xff]  ;;  %v4169_v47 = vld [vmem:[%s20679_s3 + $0x16e0] sm:$0xff] }
 0x486   :  { %5977 = vmatprep.subr.mxu0 %v3778_v63  ;;  %6022 = vmatprep.subr.mxu1 %v4093_v0  ;;  %v4030_v63 = vld [vmem:[%s20679_s3 + $0x1288] sm:$0xff]  ;;  %v4163_v0 = vld [vmem:[%s20679_s3 + $0x16b0] sm:$0xff] }
 0x487   :  { %5978 = vmatpush2.msra.mxu0 %v3777_v31  ;;  %6023 = vmatpush2.msra.mxu1 %v4092_v49  ;;  %v4029_v31 = vld [vmem:[%s20679_s3 + $0x1280] sm:$0xff]  ;;  %v4162_v49 = vld [vmem:[%s20679_s3 + $0x16a8] sm:$0xff] }
 0x488   :  { %5980 = vmatmul.mubr.f32.vlgmr.msra.gmra.mxu0 %v14881_v50  ;;  %6024 = vmatprep.subr.mxu1 %v4086_v2  ;;  %v4023_v2 = vld [vmem:[%s20679_s3 + $0x1250] sm:$0xff] }
 0x489   :  { %6057 = vmatprep.subr.mxu0 %v4219_v36  ;;  %6025 = vmatpush2.msra.mxu1 %v4085_v60  ;;  %v4156_v36 = vld [vmem:[%s20679_s3 + $0x1678] sm:$0xff]  ;;  %v4022_v60 = vld [vmem:[%s20679_s3 + $0x1248] sm:$0xff] }
 0x48a   :  { %6058 = vmatpush1.msra.mxu0 %v4218_v37  ;;  %6121 = vmatprep.mubr.f32.mxu0 %v14892_v57  ;;  %v4155_v37 = vld [vmem:[%s20679_s3 + $0x1670] sm:$0xff] }
 0x48b   :  { %6026 = vmatprep.subr.mxu1 %v4079_v6  ;;  %6059 = vmatprep.subr.mxu0 %v4212_v19  ;;  %v4016_v6 = vld [vmem:[%s20679_s3 + $0x1218] sm:$0xff]  ;;  %v4149_v19 = vld [vmem:[%s20679_s3 + $0x1640] sm:$0xff] }
 0x48c   :  { %6027 = vmatpush2.msra.mxu1 %v4078_v18  ;;  %6060 = vmatpush1.msra.mxu0 %v4211_v9  ;;  %v4015_v18 = vld [vmem:[%s20679_s3 + $0x1210] sm:$0xff]  ;;  %v4148_v9 = vld [vmem:[%s20679_s3 + $0x1638] sm:$0xff] }
 0x48d   :  { %6028 = vmatprep.subr.mxu1 %v4072_v54  ;;  %6061 = vmatprep.subr.mxu0 %v4205_v22  ;;  %v4009_v54 = vld [vmem:[%s20679_s3 + $0x11e0] sm:$0xff]  ;;  %v4142_v22 = vld [vmem:[%s20679_s3 + $0x1608] sm:$0xff] }
 0x48e   :  { %6029 = vmatpush2.msra.mxu1 %v4071_v26  ;;  %6062 = vmatpush1.msra.mxu0 %v4204_v38  ;;  %v4008_v26 = vld [vmem:[%s20679_s3 + $0x11d8] sm:$0xff]  ;;  %v4141_v38 = vld [vmem:[%s20679_s3 + $0x1600] sm:$0xff] }
 0x48f   :  { %6030 = vmatprep.subr.mxu1 %v4065_v59  ;;  %6063 = vmatprep.subr.mxu0 %v4198_v33  ;;  %v4002_v59 = vld [vmem:[%s20679_s3 + $0x11a8] sm:$0xff]  ;;  %v4135_v33 = vld [vmem:[%s20679_s3 + $0x15d0] sm:$0xff] }
 0x490   :  { %6031 = vmatpush2.msra.mxu1 %v4064_v15  ;;  %6064 = vmatpush1.msra.mxu0 %v4197_v28  ;;  %v4001_v15 = vld [vmem:[%s20679_s3 + $0x11a0] sm:$0xff]  ;;  %v4134_v28 = vld [vmem:[%s20679_s3 + $0x15c8] sm:$0xff] }
 0x491   :  { %6032 = vmatprep.subr.mxu1 %v4058_v4  ;;  %6065 = vmatprep.subr.mxu0 %v4191_v29  ;;  %v4128_v4 = vld [vmem:[%s20679_s3 + $0x1598] sm:$0xff]  ;;  %v4443_v29 = vld [vmem:[%s20679_s3 + $0x1f70] sm:$0xff] }
 0x492   :  { %6033 = vmatpush2.msra.mxu1 %v4057_v7  ;;  %6066 = vmatpush1.msra.mxu0 %v4190_v11  ;;  %v4127_v7 = vld [vmem:[%s20679_s3 + $0x1590] sm:$0xff]  ;;  %v4442_v11 = vld [vmem:[%s20679_s3 + $0x1f68] sm:$0xff] }
 0x493   :  { %6034 = vmatprep.subr.mxu1 %v4051_v42  ;;  %6067 = vmatprep.subr.mxu0 %v4184_v20  ;;  %v4121_v42 = vld [vmem:[%s20679_s3 + $0x1560] sm:$0xff]  ;;  %v4436_v20 = vld [vmem:[%s20679_s3 + $0x1f38] sm:$0xff] }
 0x494   :  { %6035 = vmatpush2.msra.mxu1 %v4050_v46  ;;  %6068 = vmatpush1.msra.mxu0 %v4183_v43  ;;  %v4120_v46 = vld [vmem:[%s20679_s3 + $0x1558] sm:$0xff]  ;;  %v4435_v43 = vld [vmem:[%s20679_s3 + $0x1f30] sm:$0xff] }
 0x495   :  { %6036 = vmatprep.subr.mxu1 %v4044_v48  ;;  %6069 = vmatprep.subr.mxu0 %v4177_v17  ;;  %v4114_v48 = vld [vmem:[%s20679_s3 + $0x1528] sm:$0xff]  ;;  %v4429_v17 = vld [vmem:[%s20679_s3 + $0x1f00] sm:$0xff] }
 0x496   :  { %6037 = vmatpush2.msra.mxu1 %v4043_v51  ;;  %6070 = vmatpush1.msra.mxu0 %v4176_v45  ;;  %v4113_v51 = vld [vmem:[%s20679_s3 + $0x1520] sm:$0xff]  ;;  %v4428_v45 = vld [vmem:[%s20679_s3 + $0x1ef8] sm:$0xff] }
 0x497   :  { %6038 = vmatprep.subr.mxu1 %v4037_v12  ;;  %6071 = vmatprep.subr.mxu0 %v4170_v53  ;;  %v4331_v12 = vld [vmem:[%s20679_s3 + $0x1bf0] sm:$0xff]  ;;  %v4422_v53 = vld [vmem:[%s20679_s3 + $0x1ec8] sm:$0xff] }
 0x498   :  { %6039 = vmatpush2.msra.mxu1 %v4036_v58  ;;  %6072 = vmatpush1.msra.mxu0 %v4169_v47  ;;  %v4330_v58 = vld [vmem:[%s20679_s3 + $0x1be8] sm:$0xff]  ;;  %v4421_v47 = vld [vmem:[%s20679_s3 + $0x1ec0] sm:$0xff] }
 0x499   :  { %6040 = vmatprep.subr.mxu1 %v4030_v63  ;;  %6073 = vmatprep.subr.mxu0 %v4163_v0  ;;  %v4324_v63 = vld [vmem:[%s20679_s3 + $0x1bb8] sm:$0xff]  ;;  %v4415_v0 = vld [vmem:[%s20679_s3 + $0x1e90] sm:$0xff] }
 0x49a   :  { %6041 = vmatpush2.msra.mxu1 %v4029_v31  ;;  %6074 = vmatpush1.msra.mxu0 %v4162_v49  ;;  %v4323_v31 = vld [vmem:[%s20679_s3 + $0x1bb0] sm:$0xff]  ;;  %v4414_v49 = vld [vmem:[%s20679_s3 + $0x1e88] sm:$0xff] }
 0x49b   :  { %6042 = vmatprep.subr.mxu1 %v4023_v2  ;;  %6075 = vmatprep.subr.mxu0 %v4156_v36  ;;  %v4317_v2 = vld [vmem:[%s20679_s3 + $0x1b80] sm:$0xff]  ;;  %v4408_v36 = vld [vmem:[%s20679_s3 + $0x1e58] sm:$0xff] }
 0x49c   :  { %6043 = vmatpush2.msra.mxu1 %v4022_v60  ;;  %6076 = vmatpush1.msra.mxu0 %v4155_v37  ;;  %v4316_v60 = vld [vmem:[%s20679_s3 + $0x1b78] sm:$0xff]  ;;  %v4407_v37 = vld [vmem:[%s20679_s3 + $0x1e50] sm:$0xff] }
 0x49d   :  { %6044 = vmatprep.subr.mxu1 %v4016_v6  ;;  %6077 = vmatprep.subr.mxu0 %v4149_v19  ;;  %v4310_v6 = vld [vmem:[%s20679_s3 + $0x1b48] sm:$0xff]  ;;  %v4401_v19 = vld [vmem:[%s20679_s3 + $0x1e20] sm:$0xff] }
 0x49e   :  { %6045 = vmatpush2.msra.mxu1 %v4015_v18  ;;  %6078 = vmatpush1.msra.mxu0 %v4148_v9  ;;  %v4309_v18 = vld [vmem:[%s20679_s3 + $0x1b40] sm:$0xff]  ;;  %v4400_v9 = vld [vmem:[%s20679_s3 + $0x1e18] sm:$0xff] }
 0x49f   :  { %6046 = vmatprep.subr.mxu1 %v4009_v54  ;;  %6079 = vmatprep.subr.mxu0 %v4142_v22  ;;  %v4303_v54 = vld [vmem:[%s20679_s3 + $0x1b10] sm:$0xff]  ;;  %v4394_v22 = vld [vmem:[%s20679_s3 + $0x1de8] sm:$0xff] }
 0x4a0   :  { %6047 = vmatpush2.msra.mxu1 %v4008_v26  ;;  %6080 = vmatpush1.msra.mxu0 %v4141_v38  ;;  %v4302_v26 = vld [vmem:[%s20679_s3 + $0x1b08] sm:$0xff]  ;;  %v4393_v38 = vld [vmem:[%s20679_s3 + $0x1de0] sm:$0xff] }
 0x4a1   :  { %6048 = vmatprep.subr.mxu1 %v4002_v59  ;;  %6081 = vmatprep.subr.mxu0 %v4135_v33  ;;  %v4296_v59 = vld [vmem:[%s20679_s3 + $0x1ad8] sm:$0xff]  ;;  %v4387_v33 = vld [vmem:[%s20679_s3 + $0x1db0] sm:$0xff] }
 0x4a2   :  { %6049 = vmatpush2.msra.mxu1 %v4001_v15  ;;  %6082 = vmatpush1.msra.mxu0 %v4134_v28  ;;  %v4295_v15 = vld [vmem:[%s20679_s3 + $0x1ad0] sm:$0xff]  ;;  %v4386_v28 = vld [vmem:[%s20679_s3 + $0x1da8] sm:$0xff] }
 0x4a3   :  { %6051 = vmatmul.mubr.f32.vlgmr.msra.gmra.mxu1 %v15062_v35  ;;  %6083 = vmatprep.subr.mxu0 %v4128_v4  ;;  %v4289_v4 = vld [vmem:[%s20679_s3 + $0x1aa0] sm:$0xff] }
 0x4a4   :  { %6128 = vmatprep.subr.mxu1 %v4443_v29  ;;  %6084 = vmatpush1.msra.mxu0 %v4127_v7  ;;  %v4380_v29 = vld [vmem:[%s20679_s3 + $0x1d78] sm:$0xff] }
 0x4a5   :  { %6129 = vmatpush1.msra.mxu1 %v4442_v11  ;;  %6192 = vmatprep.mubr.f32.mxu1 %v15073_v10  ;;  %v4288_v7 = vld [vmem:[%s20679_s3 + $0x1a98] sm:$0xff]  ;;  %v4379_v11 = vld [vmem:[%s20679_s3 + $0x1d70] sm:$0xff] }
 0x4a6   :  { %6085 = vmatprep.subr.mxu0 %v4121_v42  ;;  %6130 = vmatprep.subr.mxu1 %v4436_v20  ;;  %v4282_v42 = vld [vmem:[%s20679_s3 + $0x1a68] sm:$0xff]  ;;  %v4373_v20 = vld [vmem:[%s20679_s3 + $0x1d40] sm:$0xff] }
 0x4a7   :  { %6086 = vmatpush1.msra.mxu0 %v4120_v46  ;;  %6131 = vmatpush1.msra.mxu1 %v4435_v43  ;;  %v4281_v46 = vld [vmem:[%s20679_s3 + $0x1a60] sm:$0xff]  ;;  %v4372_v43 = vld [vmem:[%s20679_s3 + $0x1d38] sm:$0xff] }
 0x4a8   :  { %6087 = vmatprep.subr.mxu0 %v4114_v48  ;;  %6132 = vmatprep.subr.mxu1 %v4429_v17  ;;  %v4275_v48 = vld [vmem:[%s20679_s3 + $0x1a30] sm:$0xff]  ;;  %v4366_v17 = vld [vmem:[%s20679_s3 + $0x1d08] sm:$0xff] }
 0x4a9   :  { %6088 = vmatpush1.msra.mxu0 %v4113_v51  ;;  %6133 = vmatpush1.msra.mxu1 %v4428_v45  ;;  %v4274_v51 = vld [vmem:[%s20679_s3 + $0x1a28] sm:$0xff]  ;;  %v4365_v45 = vld [vmem:[%s20679_s3 + $0x1d00] sm:$0xff] }
 0x4aa   :  { %6089 = vmatprep.subr.mxu0 %v4331_v12  ;;  %6134 = vmatprep.subr.mxu1 %v4422_v53  ;;  %v4268_v12 = vld [vmem:[%s20679_s3 + $0x19f8] sm:$0xff]  ;;  %v4359_v53 = vld [vmem:[%s20679_s3 + $0x1cd0] sm:$0xff] }
 0x4ab   :  { %6090 = vmatpush2.msra.mxu0 %v4330_v58  ;;  %6135 = vmatpush1.msra.mxu1 %v4421_v47  ;;  %v4267_v58 = vld [vmem:[%s20679_s3 + $0x19f0] sm:$0xff]  ;;  %v4358_v47 = vld [vmem:[%s20679_s3 + $0x1cc8] sm:$0xff] }
 0x4ac   :  { %6091 = vmatprep.subr.mxu0 %v4324_v63  ;;  %6136 = vmatprep.subr.mxu1 %v4415_v0  ;;  %v4261_v63 = vld [vmem:[%s20679_s3 + $0x19c0] sm:$0xff]  ;;  %v4352_v0 = vld [vmem:[%s20679_s3 + $0x1c98] sm:$0xff] }
 0x4ad   :  { %6092 = vmatpush2.msra.mxu0 %v4323_v31  ;;  %6137 = vmatpush1.msra.mxu1 %v4414_v49  ;;  %v4260_v31 = vld [vmem:[%s20679_s3 + $0x19b8] sm:$0xff]  ;;  %v4351_v49 = vld [vmem:[%s20679_s3 + $0x1c90] sm:$0xff] }
 0x4ae   :  { %6093 = vmatprep.subr.mxu0 %v4317_v2  ;;  %6138 = vmatprep.subr.mxu1 %v4408_v36  ;;  %v4254_v2 = vld [vmem:[%s20679_s3 + $0x1988] sm:$0xff]  ;;  %v4345_v36 = vld [vmem:[%s20679_s3 + $0x1c60] sm:$0xff] }
 0x4af   :  { %6094 = vmatpush2.msra.mxu0 %v4316_v60  ;;  %6139 = vmatpush1.msra.mxu1 %v4407_v37  ;;  %v4253_v60 = vld [vmem:[%s20679_s3 + $0x1980] sm:$0xff]  ;;  %v4344_v37 = vld [vmem:[%s20679_s3 + $0x1c58] sm:$0xff] }
 0x4b0   :  { %6095 = vmatprep.subr.mxu0 %v4310_v6  ;;  %6140 = vmatprep.subr.mxu1 %v4401_v19  ;;  %v4247_v6 = vld [vmem:[%s20679_s3 + $0x1950] sm:$0xff]  ;;  %v4338_v19 = vld [vmem:[%s20679_s3 + $0x1c28] sm:$0xff] }
 0x4b1   :  { %6096 = vmatpush2.msra.mxu0 %v4309_v18  ;;  %6141 = vmatpush1.msra.mxu1 %v4400_v9  ;;  %v4246_v18 = vld [vmem:[%s20679_s3 + $0x1948] sm:$0xff]  ;;  %v4337_v9 = vld [vmem:[%s20679_s3 + $0x1c20] sm:$0xff] }
 0x4b2   :  { %6097 = vmatprep.subr.mxu0 %v4303_v54  ;;  %6142 = vmatprep.subr.mxu1 %v4394_v22  ;;  %v4240_v54 = vld [vmem:[%s20679_s3 + $0x1918] sm:$0xff]  ;;  %v4555_v22 = vld [vmem:[%s20679_s3 + $0x22f0] sm:$0xff] }
 0x4b3   :  { %6098 = vmatpush2.msra.mxu0 %v4302_v26  ;;  %6143 = vmatpush1.msra.mxu1 %v4393_v38  ;;  %v4239_v26 = vld [vmem:[%s20679_s3 + $0x1910] sm:$0xff]  ;;  %v4554_v38 = vld [vmem:[%s20679_s3 + $0x22e8] sm:$0xff] }
 0x4b4   :  { %6099 = vmatprep.subr.mxu0 %v4296_v59  ;;  %6144 = vmatprep.subr.mxu1 %v4387_v33  ;;  %v4233_v59 = vld [vmem:[%s20679_s3 + $0x18e0] sm:$0xff]  ;;  %v4548_v33 = vld [vmem:[%s20679_s3 + $0x22b8] sm:$0xff] }
 0x4b5   :  { %6100 = vmatpush2.msra.mxu0 %v4295_v15  ;;  %6145 = vmatpush1.msra.mxu1 %v4386_v28  ;;  %v4232_v15 = vld [vmem:[%s20679_s3 + $0x18d8] sm:$0xff]  ;;  %v4547_v28 = vld [vmem:[%s20679_s3 + $0x22b0] sm:$0xff] }
 0x4b6   :  { %6101 = vmatprep.subr.mxu0 %v4289_v4  ;;  %6146 = vmatprep.subr.mxu1 %v4380_v29  ;;  %v4226_v4 = vld [vmem:[%s20679_s3 + $0x18a8] sm:$0xff]  ;;  %v4541_v29 = vld [vmem:[%s20679_s3 + $0x2280] sm:$0xff] }
 0x4b7   :  { %6102 = vmatpush2.msra.mxu0 %v4288_v7  ;;  %6147 = vmatpush1.msra.mxu1 %v4379_v11  ;;  %v4225_v7 = vld [vmem:[%s20679_s3 + $0x18a0] sm:$0xff]  ;;  %v4540_v11 = vld [vmem:[%s20679_s3 + $0x2278] sm:$0xff] }
 0x4b8   :  { %6103 = vmatprep.subr.mxu0 %v4282_v42  ;;  %6148 = vmatprep.subr.mxu1 %v4373_v20  ;;  %v4534_v42 = vld [vmem:[%s20679_s3 + $0x2248] sm:$0xff]  ;;  %v4667_v20 = vld [vmem:[%s20679_s3 + $0x2670] sm:$0xff] }
 0x4b9   :  { %6104 = vmatpush2.msra.mxu0 %v4281_v46  ;;  %6149 = vmatpush1.msra.mxu1 %v4372_v43  ;;  %v4533_v46 = vld [vmem:[%s20679_s3 + $0x2240] sm:$0xff]  ;;  %v4666_v43 = vld [vmem:[%s20679_s3 + $0x2668] sm:$0xff] }
 0x4ba   :  { %6105 = vmatprep.subr.mxu0 %v4275_v48  ;;  %6150 = vmatprep.subr.mxu1 %v4366_v17  ;;  %v4527_v48 = vld [vmem:[%s20679_s3 + $0x2210] sm:$0xff]  ;;  %v4660_v17 = vld [vmem:[%s20679_s3 + $0x2638] sm:$0xff] }
 0x4bb   :  { %6106 = vmatpush2.msra.mxu0 %v4274_v51  ;;  %6151 = vmatpush1.msra.mxu1 %v4365_v45  ;;  %v4526_v51 = vld [vmem:[%s20679_s3 + $0x2208] sm:$0xff]  ;;  %v4659_v45 = vld [vmem:[%s20679_s3 + $0x2630] sm:$0xff] }
 0x4bc   :  { %6107 = vmatprep.subr.mxu0 %v4268_v12  ;;  %6152 = vmatprep.subr.mxu1 %v4359_v53  ;;  %v4520_v12 = vld [vmem:[%s20679_s3 + $0x21d8] sm:$0xff]  ;;  %v4653_v53 = vld [vmem:[%s20679_s3 + $0x2600] sm:$0xff] }
 0x4bd   :  { %6108 = vmatpush2.msra.mxu0 %v4267_v58  ;;  %6153 = vmatpush1.msra.mxu1 %v4358_v47  ;;  %v4519_v58 = vld [vmem:[%s20679_s3 + $0x21d0] sm:$0xff]  ;;  %v4652_v47 = vld [vmem:[%s20679_s3 + $0x25f8] sm:$0xff] }
 0x4be   :  { %6109 = vmatprep.subr.mxu0 %v4261_v63  ;;  %6154 = vmatprep.subr.mxu1 %v4352_v0  ;;  %v4513_v63 = vld [vmem:[%s20679_s3 + $0x21a0] sm:$0xff]  ;;  %v4646_v0 = vld [vmem:[%s20679_s3 + $0x25c8] sm:$0xff] }
 0x4bf   :  { %6110 = vmatpush2.msra.mxu0 %v4260_v31  ;;  %6155 = vmatpush1.msra.mxu1 %v4351_v49  ;;  %v4512_v31 = vld [vmem:[%s20679_s3 + $0x2198] sm:$0xff]  ;;  %v4645_v49 = vld [vmem:[%s20679_s3 + $0x25c0] sm:$0xff] }
 0x4c0   :  { %6111 = vmatprep.subr.mxu0 %v4254_v2  ;;  %6156 = vmatprep.subr.mxu1 %v4345_v36  ;;  %v4506_v2 = vld [vmem:[%s20679_s3 + $0x2168] sm:$0xff]  ;;  %v4639_v36 = vld [vmem:[%s20679_s3 + $0x2590] sm:$0xff] }
 0x4c1   :  { %6112 = vmatpush2.msra.mxu0 %v4253_v60  ;;  %6157 = vmatpush1.msra.mxu1 %v4344_v37  ;;  %v4505_v60 = vld [vmem:[%s20679_s3 + $0x2160] sm:$0xff]  ;;  %v4638_v37 = vld [vmem:[%s20679_s3 + $0x2588] sm:$0xff] }
 0x4c2   :  { %6113 = vmatprep.subr.mxu0 %v4247_v6  ;;  %6158 = vmatprep.subr.mxu1 %v4338_v19  ;;  %v4499_v6 = vld [vmem:[%s20679_s3 + $0x2130] sm:$0xff]  ;;  %v4632_v19 = vld [vmem:[%s20679_s3 + $0x2558] sm:$0xff] }
 0x4c3   :  { %6114 = vmatpush2.msra.mxu0 %v4246_v18  ;;  %6159 = vmatpush1.msra.mxu1 %v4337_v9  ;;  %v4498_v18 = vld [vmem:[%s20679_s3 + $0x2128] sm:$0xff]  ;;  %v4631_v9 = vld [vmem:[%s20679_s3 + $0x2550] sm:$0xff] }
 0x4c4   :  { %6115 = vmatprep.subr.mxu0 %v4240_v54  ;;  %6160 = vmatprep.subr.mxu1 %v4555_v22  ;;  %v4492_v54 = vld [vmem:[%s20679_s3 + $0x20f8] sm:$0xff]  ;;  %v4625_v22 = vld [vmem:[%s20679_s3 + $0x2520] sm:$0xff] }
 0x4c5   :  { %6116 = vmatpush2.msra.mxu0 %v4239_v26  ;;  %6161 = vmatpush2.msra.mxu1 %v4554_v38  ;;  %v4491_v26 = vld [vmem:[%s20679_s3 + $0x20f0] sm:$0xff]  ;;  %v4624_v38 = vld [vmem:[%s20679_s3 + $0x2518] sm:$0xff] }
 0x4c6   :  { %6117 = vmatprep.subr.mxu0 %v4233_v59  ;;  %6162 = vmatprep.subr.mxu1 %v4548_v33  ;;  %v4485_v59 = vld [vmem:[%s20679_s3 + $0x20c0] sm:$0xff]  ;;  %v4618_v33 = vld [vmem:[%s20679_s3 + $0x24e8] sm:$0xff] }
 0x4c7   :  { %6118 = vmatpush2.msra.mxu0 %v4232_v15  ;;  %6163 = vmatpush2.msra.mxu1 %v4547_v28  ;;  %v4484_v15 = vld [vmem:[%s20679_s3 + $0x20b8] sm:$0xff]  ;;  %v4617_v28 = vld [vmem:[%s20679_s3 + $0x24e0] sm:$0xff] }
 0x4c8   :  { %6119 = vmatprep.subr.mxu0 %v4226_v4  ;;  %6164 = vmatprep.subr.mxu1 %v4541_v29  ;;  %v4478_v4 = vld [vmem:[%s20679_s3 + $0x2088] sm:$0xff]  ;;  %v4611_v29 = vld [vmem:[%s20679_s3 + $0x24b0] sm:$0xff] }
 0x4c9   :  { %6120 = vmatpush2.msra.mxu0 %v4225_v7  ;;  %6165 = vmatpush2.msra.mxu1 %v4540_v11  ;;  %v4477_v7 = vld [vmem:[%s20679_s3 + $0x2080] sm:$0xff]  ;;  %v4610_v11 = vld [vmem:[%s20679_s3 + $0x24a8] sm:$0xff] }
 0x4ca   :  { %6122 = vmatmul.mubr.f32.vlgmr.msra.gmra.mxu0 %v15300_v14  ;;  %6166 = vmatprep.subr.mxu1 %v4534_v42  ;;  %v4471_v42 = vld [vmem:[%s20679_s3 + $0x2050] sm:$0xff] }
 0x4cb   :  { %6199 = vmatprep.subr.mxu0 %v4667_v20  ;;  %6167 = vmatpush2.msra.mxu1 %v4533_v46  ;;  %v4604_v20 = vld [vmem:[%s20679_s3 + $0x2478] sm:$0xff]  ;;  %v4470_v46 = vld [vmem:[%s20679_s3 + $0x2048] sm:$0xff] }
 0x4cc   :  { %6200 = vmatpush1.msra.mxu0 %v4666_v43  ;;  %6263 = vmatprep.mubr.f32.mxu0 %v15339_v32  ;;  %v4603_v43 = vld [vmem:[%s20679_s3 + $0x2470] sm:$0xff] }
 0x4cd   :  { %6168 = vmatprep.subr.mxu1 %v4527_v48  ;;  %6201 = vmatprep.subr.mxu0 %v4660_v17  ;;  %v4464_v48 = vld [vmem:[%s20679_s3 + $0x2018] sm:$0xff]  ;;  %v4597_v17 = vld [vmem:[%s20679_s3 + $0x2440] sm:$0xff] }
 0x4ce   :  { %6169 = vmatpush2.msra.mxu1 %v4526_v51  ;;  %6202 = vmatpush1.msra.mxu0 %v4659_v45  ;;  %v4463_v51 = vld [vmem:[%s20679_s3 + $0x2010] sm:$0xff]  ;;  %v4596_v45 = vld [vmem:[%s20679_s3 + $0x2438] sm:$0xff] }
 0x4cf   :  { %6170 = vmatprep.subr.mxu1 %v4520_v12  ;;  %6203 = vmatprep.subr.mxu0 %v4653_v53  ;;  %v4457_v12 = vld [vmem:[%s20679_s3 + $0x1fe0] sm:$0xff]  ;;  %v4590_v53 = vld [vmem:[%s20679_s3 + $0x2408] sm:$0xff] }
 0x4d0   :  { %6171 = vmatpush2.msra.mxu1 %v4519_v58  ;;  %6204 = vmatpush1.msra.mxu0 %v4652_v47  ;;  %v4456_v58 = vld [vmem:[%s20679_s3 + $0x1fd8] sm:$0xff]  ;;  %v4589_v47 = vld [vmem:[%s20679_s3 + $0x2400] sm:$0xff] }
 0x4d1   :  { %6172 = vmatprep.subr.mxu1 %v4513_v63  ;;  %6205 = vmatprep.subr.mxu0 %v4646_v0  ;;  %v4450_v63 = vld [vmem:[%s20679_s3 + $0x1fa8] sm:$0xff]  ;;  %v4583_v0 = vld [vmem:[%s20679_s3 + $0x23d0] sm:$0xff] }
 0x4d2   :  { %6173 = vmatpush2.msra.mxu1 %v4512_v31  ;;  %6206 = vmatpush1.msra.mxu0 %v4645_v49  ;;  %v4449_v31 = vld [vmem:[%s20679_s3 + $0x1fa0] sm:$0xff]  ;;  %v4582_v49 = vld [vmem:[%s20679_s3 + $0x23c8] sm:$0xff] }
 0x4d3   :  { %6174 = vmatprep.subr.mxu1 %v4506_v2  ;;  %6207 = vmatprep.subr.mxu0 %v4639_v36  ;;  %v4576_v2 = vld [vmem:[%s20679_s3 + $0x2398] sm:$0xff]  ;;  %v4807_v36 = vld [vmem:[%s20679_s3 + $0x2ad0] sm:$0xff] }
 0x4d4   :  { %6175 = vmatpush2.msra.mxu1 %v4505_v60  ;;  %6208 = vmatpush1.msra.mxu0 %v4638_v37  ;;  %v4575_v60 = vld [vmem:[%s20679_s3 + $0x2390] sm:$0xff]  ;;  %v4806_v37 = vld [vmem:[%s20679_s3 + $0x2ac8] sm:$0xff] }
 0x4d5   :  { %6176 = vmatprep.subr.mxu1 %v4499_v6  ;;  %6209 = vmatprep.subr.mxu0 %v4632_v19  ;;  %v4569_v6 = vld [vmem:[%s20679_s3 + $0x2360] sm:$0xff]  ;;  %v4800_v19 = vld [vmem:[%s20679_s3 + $0x2a98] sm:$0xff] }
 0x4d6   :  { %6177 = vmatpush2.msra.mxu1 %v4498_v18  ;;  %6210 = vmatpush1.msra.mxu0 %v4631_v9  ;;  %v4568_v18 = vld [vmem:[%s20679_s3 + $0x2358] sm:$0xff]  ;;  %v4799_v9 = vld [vmem:[%s20679_s3 + $0x2a90] sm:$0xff] }
 0x4d7   :  { %6178 = vmatprep.subr.mxu1 %v4492_v54  ;;  %6211 = vmatprep.subr.mxu0 %v4625_v22  ;;  %v4562_v54 = vld [vmem:[%s20679_s3 + $0x2328] sm:$0xff]  ;;  %v4793_v22 = vld [vmem:[%s20679_s3 + $0x2a60] sm:$0xff] }
 0x4d8   :  { %6179 = vmatpush2.msra.mxu1 %v4491_v26  ;;  %6212 = vmatpush1.msra.mxu0 %v4624_v38  ;;  %v4561_v26 = vld [vmem:[%s20679_s3 + $0x2320] sm:$0xff]  ;;  %v4792_v38 = vld [vmem:[%s20679_s3 + $0x2a58] sm:$0xff] }
 0x4d9   :  { %6180 = vmatprep.subr.mxu1 %v4485_v59  ;;  %6213 = vmatprep.subr.mxu0 %v4618_v33  ;;  %v4779_v59 = vld [vmem:[%s20679_s3 + $0x29f0] sm:$0xff]  ;;  %v4786_v33 = vld [vmem:[%s20679_s3 + $0x2a28] sm:$0xff] }
 0x4da   :  { %6181 = vmatpush2.msra.mxu1 %v4484_v15  ;;  %6214 = vmatpush1.msra.mxu0 %v4617_v28  ;;  %v4778_v15 = vld [vmem:[%s20679_s3 + $0x29e8] sm:$0xff]  ;;  %v4785_v28 = vld [vmem:[%s20679_s3 + $0x2a20] sm:$0xff] }
 0x4db   :  { %6182 = vmatprep.subr.mxu1 %v4478_v4  ;;  %6215 = vmatprep.subr.mxu0 %v4611_v29  ;;  %v4772_v4 = vld [vmem:[%s20679_s3 + $0x29b8] sm:$0xff] }
 0x4dc   :  { %6183 = vmatpush2.msra.mxu1 %v4477_v7  ;;  %6216 = vmatpush1.msra.mxu0 %v4610_v11  ;;  %v3660_v29 = vld [vmem:[%s20679_s3 + $0x6f8] sm:$0xff]  ;;  %v4771_v7 = vld [vmem:[%s20679_s3 + $0x29b0] sm:$0xff] }
 0x4dd   :  { %6184 = vmatprep.subr.mxu1 %v4471_v42  ;;  %6217 = vmatprep.subr.mxu0 %v4604_v20  ;;  %v3548_v11 = vld [vmem:[%s20679_s3 + $0x378] sm:$0xff]  ;;  %v4765_v42 = vld [vmem:[%s20679_s3 + $0x2980] sm:$0xff] }
 0x4de   :  { %6185 = vmatpush2.msra.mxu1 %v4470_v46  ;;  %6218 = vmatpush1.msra.mxu0 %v4603_v43  ;;  %v3653_v20 = vld [vmem:[%s20679_s3 + $0x6c0] sm:$0xff]  ;;  %v4764_v46 = vld [vmem:[%s20679_s3 + $0x2978] sm:$0xff] }
 0x4df   :  { %6186 = vmatprep.subr.mxu1 %v4464_v48  ;;  %6219 = vmatprep.subr.mxu0 %v4597_v17  ;;  %v3541_v43 = vld [vmem:[%s20679_s3 + $0x340] sm:$0xff]  ;;  %v4758_v48 = vld [vmem:[%s20679_s3 + $0x2948] sm:$0xff] }
 0x4e0   :  { %6187 = vmatpush2.msra.mxu1 %v4463_v51  ;;  %6220 = vmatpush1.msra.mxu0 %v4596_v45  ;;  %v3646_v17 = vld [vmem:[%s20679_s3 + $0x688] sm:$0xff]  ;;  %v4757_v51 = vld [vmem:[%s20679_s3 + $0x2940] sm:$0xff] }
 0x4e1   :  { %6188 = vmatprep.subr.mxu1 %v4457_v12  ;;  %6221 = vmatprep.subr.mxu0 %v4590_v53  ;;  %v3534_v45 = vld [vmem:[%s20679_s3 + $0x308] sm:$0xff]  ;;  %v3639_v12 = vld [vmem:[%s20679_s3 + $0x650] sm:$0xff] }
 0x4e2   :  { %6189 = vmatpush2.msra.mxu1 %v4456_v58  ;;  %6222 = vmatpush1.msra.mxu0 %v4589_v47  ;;  %v4750_v53 = vld [vmem:[%s20679_s3 + $0x2908] sm:$0xff]  ;;  %v3527_v58 = vld [vmem:[%s20679_s3 + $0x2d0] sm:$0xff]  ;;  %v4744_v47 = vld [vmem:[%s20679_s3 + $0x28d8] sm:$0xff] }
 0x4e3   :  { %6190 = vmatprep.subr.mxu1 %v4450_v63  ;;  %6223 = vmatprep.subr.mxu0 %v4583_v0  ;;  %v3632_v63 = vld [vmem:[%s20679_s3 + $0x618] sm:$0xff]  ;;  %v4743_v0 = vld [vmem:[%s20679_s3 + $0x28d0] sm:$0xff] }
 0x4e4   :  { %6191 = vmatpush2.msra.mxu1 %v4449_v31  ;;  %6224 = vmatpush1.msra.mxu0 %v4582_v49  ;;  %v3520_v31 = vld [vmem:[%s20679_s3 + $0x298] sm:$0xff]  ;;  %v4737_v49 = vld [vmem:[%s20679_s3 + $0x28a0] sm:$0xff] }
 0x4e5   :  { %6193 = vmatmul.mubr.f32.vlgmr.msra.gmra.mxu1 %v15482_v8  ;;  %6225 = vmatprep.subr.mxu0 %v4576_v2  ;;  %v3625_v2 = vld [vmem:[%s20679_s3 + $0x5e0] sm:$0xff] }
 0x4e6   :  { %6294 = vmatprep.subr.mxu1 %v4807_v36  ;;  %6226 = vmatpush1.msra.mxu0 %v4575_v60  ;;  %v4736_v36 = vld [vmem:[%s20679_s3 + $0x2898] sm:$0xff]  ;;  %v3513_v60 = vld [vmem:[%s20679_s3 + $0x260] sm:$0xff] }
 0x4e7   :  { %6295 = vmatpush1.msra.mxu1 %v4806_v37  ;;  %6227 = vmatprep.subr.mxu0 %v4569_v6  ;;  %v4730_v37 = vld [vmem:[%s20679_s3 + $0x2868] sm:$0xff] }
 0x4e8   :  { %6296 = vmatprep.subr.mxu1 %v4800_v19  ;;  %6228 = vmatpush1.msra.mxu0 %v4568_v18  ;;  %v3618_v6 = vld [vmem:[%s20679_s3 + $0x5a8] sm:$0xff]  ;;  %v4729_v19 = vld [vmem:[%s20679_s3 + $0x2860] sm:$0xff] }
 0x4e9   :  { %6297 = vmatpush1.msra.mxu1 %v4799_v9  ;;  %6229 = vmatprep.subr.mxu0 %v4562_v54  ;;  %v3506_v18 = vld [vmem:[%s20679_s3 + $0x228] sm:$0xff]  ;;  %v4723_v9 = vld [vmem:[%s20679_s3 + $0x2830] sm:$0xff] }
 0x4ea   :  { %6298 = vmatprep.subr.mxu1 %v4793_v22  ;;  %6230 = vmatpush1.msra.mxu0 %v4561_v26  ;;  %v3611_v54 = vld [vmem:[%s20679_s3 + $0x570] sm:$0xff]  ;;  %v4722_v22 = vld [vmem:[%s20679_s3 + $0x2828] sm:$0xff] }
 0x4eb   :  { %6299 = vmatpush1.msra.mxu1 %v4792_v38  ;;  %6231 = vmatprep.subr.mxu0 %v4779_v59  ;;  %v3499_v26 = vld [vmem:[%s20679_s3 + $0x1f0] sm:$0xff]  ;;  %v4716_v38 = vld [vmem:[%s20679_s3 + $0x27f8] sm:$0xff] }
 0x4ec   :  { %6300 = vmatprep.subr.mxu1 %v4786_v33  ;;  %6232 = vmatpush2.msra.mxu0 %v4778_v15  ;;  %v3604_v59 = vld [vmem:[%s20679_s3 + $0x538] sm:$0xff]  ;;  %v4715_v33 = vld [vmem:[%s20679_s3 + $0x27f0] sm:$0xff] }
 0x4ed   :  { %6301 = vmatpush1.msra.mxu1 %v4785_v28  ;;  %6334 = vmatprep.mubr.f32.mxu1 %v20694_v52  ;;  %v3492_v15 = vld [vmem:[%s20679_s3 + $0x1b8] sm:$0xff]  ;;  %v4709_v28 = vld [vmem:[%s20679_s3 + $0x27c0] sm:$0xff] }
 0x4ee   :  { %6233 = vmatprep.subr.mxu0 %v4772_v4  ;;  %9377 = vmatmul.mubr.msk.f32.vlgmr.msra.gmra.mxu1 %vm4846_vm2, %v15767_v25  ;;  %v3597_v4 = vld [vmem:[%s20679_s3 + $0x500] sm:$0xff] }
 0x4ef   :  { %9502 = vmatprep.subr.mxu1 %v3660_v29  ;;  %6234 = vmatpush2.msra.mxu0 %v4771_v7  ;;  %v4708_v29 = vld [vmem:[%s20679_s3 + $0x27b8] sm:$0xff]  ;;  %v3485_v7 = vld [vmem:[%s20679_s3 + $0x180] sm:$0xff] }
 0x4f0   :  { %9503 = vmatpush3.msra.mxu1 %v3548_v11  ;;  %6405 = vmatprep.mubr.f32.mxu1 %v14230_v13  ;;  %v4751_v13 = vld [vmem:[%s20679_s3 + $0x2910] sm:$0xff]  ;;  %v4702_v11 = vld [vmem:[%s20679_s3 + $0x2788] sm:$0xff] }
 0x4f1   :  { %6235 = vmatprep.subr.mxu0 %v4765_v42  ;;  %9504 = vmatprep.subr.mxu1 %v3653_v20  ;;  %v3590_v42 = vld [vmem:[%s20679_s3 + $0x4c8] sm:$0xff]  ;;  %v4701_v20 = vld [vmem:[%s20679_s3 + $0x2780] sm:$0xff] }
 0x4f2   :  { %6236 = vmatpush2.msra.mxu0 %v4764_v46  ;;  %9505 = vmatpush3.msra.mxu1 %v3541_v43  ;;  %v3478_v46 = vld [vmem:[%s20679_s3 + $0x148] sm:$0xff]  ;;  %v4695_v43 = vld [vmem:[%s20679_s3 + $0x2750] sm:$0xff] }
 0x4f3   :  { %6237 = vmatprep.subr.mxu0 %v4758_v48  ;;  %9506 = vmatprep.subr.mxu1 %v3646_v17  ;;  %v3583_v48 = vld [vmem:[%s20679_s3 + $0x490] sm:$0xff]  ;;  %v4694_v17 = vld [vmem:[%s20679_s3 + $0x2748] sm:$0xff] }
 0x4f4   :  { %6238 = vmatpush2.msra.mxu0 %v4757_v51  ;;  %9507 = vmatpush3.msra.mxu1 %v3534_v45  ;;  %v3471_v51 = vld [vmem:[%s20679_s3 + $0x110] sm:$0xff]  ;;  %v4688_v45 = vld [vmem:[%s20679_s3 + $0x2718] sm:$0xff] }
 0x4f5   :  { %6239 = vmatprep.subr.mxu0 %v4751_v13  ;;  %9508 = vmatprep.subr.mxu1 %v3639_v12  ;;  %v3576_v13 = vld [vmem:[%s20679_s3 + $0x458] sm:$0xff]  ;;  %v4687_v12 = vld [vmem:[%s20679_s3 + $0x2710] sm:$0xff] }
 0x4f6   :  { %6240 = vmatpush2.msra.mxu0 %v4750_v53  ;;  %9509 = vmatpush3.msra.mxu1 %v3527_v58  ;;  %v3464_v53 = vld [vmem:[%s20679_s3 + $0xd8] sm:$0xff]  ;;  %v4681_v58 = vld [vmem:[%s20679_s3 + $0x26e0] sm:$0xff] }
 0x4f7   :  { %6241 = vmatprep.subr.mxu0 %v4744_v47  ;;  %9510 = vmatprep.subr.mxu1 %v3632_v63  ;;  %v3569_v47 = vld [vmem:[%s20679_s3 + $0x420] sm:$0xff]  ;;  %v4680_v63 = vld [vmem:[%s20679_s3 + $0x26d8] sm:$0xff] }
 0x4f8   :  { %6242 = vmatpush2.msra.mxu0 %v4743_v0  ;;  %9511 = vmatpush3.msra.mxu1 %v3520_v31  ;;  %v3457_v0 = vld [vmem:[%s20679_s3 + $0xa0] sm:$0xff]  ;;  %v4674_v31 = vld [vmem:[%s20679_s3 + $0x26a8] sm:$0xff] }
 0x4f9   :  { %6243 = vmatprep.subr.mxu0 %v4737_v49  ;;  %9512 = vmatprep.subr.mxu1 %v3625_v2  ;;  %v3562_v49 = vld [vmem:[%s20679_s3 + $0x3e8] sm:$0xff]  ;;  %v4673_v2 = vld [vmem:[%s20679_s3 + $0x26a0] sm:$0xff] }
 0x4fa   :  { %6244 = vmatpush2.msra.mxu0 %v4736_v36  ;;  %9513 = vmatpush3.msra.mxu1 %v3513_v60  ;;  %v3450_v36 = vld [vmem:[%s20679_s3 + $0x68] sm:$0xff]  ;;  %v3555_v60 = vld [vmem:[%s20679_s3 + $0x3b0] sm:$0xff] }
 0x4fb   :  { %6245 = vmatprep.subr.mxu0 %v4730_v37  ;;  %9514 = vmatprep.subr.mxu1 %v3618_v6  ;;  %v3884_v37 = vld [vmem:[%s20679_s3 + $0xdf8] sm:$0xff]  ;;  %v3443_v6 = vld [vmem:[%s20679_s3 + $0x30] sm:$0xff] }
 0x4fc   :  { %6246 = vmatpush2.msra.mxu0 %v4729_v19  ;;  %9515 = vmatpush3.msra.mxu1 %v3506_v18  ;;  %v3772_v19 = vld [vmem:[%s20679_s3 + $0xa78] sm:$0xff]  ;;  %v3877_v18 = vld [vmem:[%s20679_s3 + $0xdc0] sm:$0xff] }
 0x4fd   :  { %6247 = vmatprep.subr.mxu0 %v4723_v9  ;;  %9516 = vmatprep.subr.mxu1 %v3611_v54  ;;  %v4108_v9 = vld [vmem:[%s20679_s3 + $0x14f8] sm:$0xff]  ;;  %v3765_v54 = vld [vmem:[%s20679_s3 + $0xa40] sm:$0xff] }
 0x4fe   :  { %6248 = vmatpush2.msra.mxu0 %v4722_v22  ;;  %9517 = vmatpush3.msra.mxu1 %v3499_v26  ;;  %v3996_v22 = vld [vmem:[%s20679_s3 + $0x1178] sm:$0xff]  ;;  %v3870_v26 = vld [vmem:[%s20679_s3 + $0xd88] sm:$0xff] }
 0x4ff   :  { %6249 = vmatprep.subr.mxu0 %v4716_v38  ;;  %9518 = vmatprep.subr.mxu1 %v3604_v59  ;;  %v4101_v38 = vld [vmem:[%s20679_s3 + $0x14c0] sm:$0xff] }
 0x500   :  { %6250 = vmatpush2.msra.mxu0 %v4715_v33  ;;  %9519 = vmatpush3.msra.mxu1 %v3492_v15  ;;  %v3989_v59 = vld [vmem:[%s20679_s3 + $0x1140] sm:$0xff]  ;;  %v4094_v33 = vld [vmem:[%s20679_s3 + $0x1488] sm:$0xff]  ;;  %v3751_v15 = vld [vmem:[%s20679_s3 + $0x9d0] sm:$0xff] }
 0x501   :  { %6251 = vmatprep.subr.mxu0 %v4709_v28  ;;  %9520 = vmatprep.subr.mxu1 %v3597_v4  ;;  %v3982_v28 = vld [vmem:[%s20679_s3 + $0x1108] sm:$0xff]  ;;  %v4087_v4 = vld [vmem:[%s20679_s3 + $0x1450] sm:$0xff] }
 0x502   :  { %6252 = vmatpush2.msra.mxu0 %v4708_v29  ;;  %9521 = vmatpush3.msra.mxu1 %v3485_v7  ;;  %v3744_v29 = vld [vmem:[%s20679_s3 + $0x998] sm:$0xff]  ;;  %v3975_v7 = vld [vmem:[%s20679_s3 + $0x10d0] sm:$0xff] }
 0x503   :  { %6253 = vmatprep.subr.mxu0 %v4702_v11  ;;  %9522 = vmatprep.subr.mxu1 %v3590_v42  ;;  %v3849_v11 = vld [vmem:[%s20679_s3 + $0xce0] sm:$0xff]  ;;  %v4080_v42 = vld [vmem:[%s20679_s3 + $0x1418] sm:$0xff] }
 0x504   :  { %6254 = vmatpush2.msra.mxu0 %v4701_v20  ;;  %9523 = vmatpush3.msra.mxu1 %v3478_v46  ;;  %v3737_v20 = vld [vmem:[%s20679_s3 + $0x960] sm:$0xff]  ;;  %v3968_v46 = vld [vmem:[%s20679_s3 + $0x1098] sm:$0xff] }
 0x505   :  { %6255 = vmatprep.subr.mxu0 %v4695_v43  ;;  %9524 = vmatprep.subr.mxu1 %v3583_v48  ;;  %v3842_v43 = vld [vmem:[%s20679_s3 + $0xca8] sm:$0xff]  ;;  %v4073_v48 = vld [vmem:[%s20679_s3 + $0x13e0] sm:$0xff] }
 0x506   :  { %6256 = vmatpush2.msra.mxu0 %v4694_v17  ;;  %9525 = vmatpush3.msra.mxu1 %v3471_v51  ;;  %v3730_v17 = vld [vmem:[%s20679_s3 + $0x928] sm:$0xff]  ;;  %v3961_v51 = vld [vmem:[%s20679_s3 + $0x1060] sm:$0xff] }
 0x507   :  { %6257 = vmatprep.subr.mxu0 %v4688_v45  ;;  %9526 = vmatprep.subr.mxu1 %v3576_v13  ;;  %v3835_v45 = vld [vmem:[%s20679_s3 + $0xc70] sm:$0xff]  ;;  %v4066_v13 = vld [vmem:[%s20679_s3 + $0x13a8] sm:$0xff] }
 0x508   :  { %6258 = vmatpush2.msra.mxu0 %v4687_v12  ;;  %9527 = vmatpush3.msra.mxu1 %v3464_v53  ;;  %v3723_v12 = vld [vmem:[%s20679_s3 + $0x8f0] sm:$0xff]  ;;  %v3954_v53 = vld [vmem:[%s20679_s3 + $0x1028] sm:$0xff] }
 0x509   :  { %6259 = vmatprep.subr.mxu0 %v4681_v58  ;;  %9528 = vmatprep.subr.mxu1 %v3569_v47  ;;  %v3828_v58 = vld [vmem:[%s20679_s3 + $0xc38] sm:$0xff]  ;;  %v4059_v47 = vld [vmem:[%s20679_s3 + $0x1370] sm:$0xff] }
 0x50a   :  { %6260 = vmatpush2.msra.mxu0 %v4680_v63  ;;  %9529 = vmatpush3.msra.mxu1 %v3457_v0  ;;  %v3716_v63 = vld [vmem:[%s20679_s3 + $0x8b8] sm:$0xff]  ;;  %v3947_v0 = vld [vmem:[%s20679_s3 + $0xff0] sm:$0xff] }
 0x50b   :  { %6261 = vmatprep.subr.mxu0 %v4674_v31  ;;  %9530 = vmatprep.subr.mxu1 %v3562_v49  ;;  %v3821_v31 = vld [vmem:[%s20679_s3 + $0xc00] sm:$0xff]  ;;  %v4052_v49 = vld [vmem:[%s20679_s3 + $0x1338] sm:$0xff] }
 0x50c   :  { %6262 = vmatpush2.msra.mxu0 %v4673_v2  ;;  %9531 = vmatpush3.msra.mxu1 %v3450_v36  ;;  %v3709_v2 = vld [vmem:[%s20679_s3 + $0x880] sm:$0xff]  ;;  %v3940_v36 = vld [vmem:[%s20679_s3 + $0xfb8] sm:$0xff] }
 0x50d   :  { %6264 = vmatmul.mubr.f32.vlgmr.msra.gmra.mxu0 %v15712_v3  ;;  %9532 = vmatprep.subr.mxu1 %v3555_v60  ;;  %v3814_v60 = vld [vmem:[%s20679_s3 + $0xbc8] sm:$0xff] }
 0x50e   :  { %9537 = vmatprep.subr.mxu0 %v3884_v37  ;;  %9533 = vmatpush3.msra.mxu1 %v3443_v6  ;;  %v4045_v37 = vld [vmem:[%s20679_s3 + $0x1300] sm:$0xff]  ;;  %v3702_v6 = vld [vmem:[%s20679_s3 + $0x848] sm:$0xff] }
 0x50f   :  { %9538 = vmatpush3.msra.mxu0 %v3772_v19  ;;  %6475 = vmatprep.mubr.f32.mxu0 %v14473_v27  ;;  %v3758_v27 = vld [vmem:[%s20679_s3 + $0xa08] sm:$0xff]  ;;  %v3933_v19 = vld [vmem:[%s20679_s3 + $0xf80] sm:$0xff] }
 0x510   :  { %6406 = vmatmul.mubr.f32.vlgmr.msra.gmra.mxu1 %v14645_v34  ;;  %9539 = vmatprep.subr.mxu0 %v3877_v18  ;;  %v3863_v34 = vld [vmem:[%s20679_s3 + $0xd50] sm:$0xff] }
 0x511   :  { %9572 = vmatprep.subr.mxu1 %v4108_v9  ;;  %9540 = vmatpush3.msra.mxu0 %v3765_v54  ;;  %v3807_v18 = vld [vmem:[%s20679_s3 + $0xb90] sm:$0xff]  ;;  %v4038_v9 = vld [vmem:[%s20679_s3 + $0x12c8] sm:$0xff] }
 0x512   :  { %9573 = vmatpush3.msra.mxu1 %v3996_v22  ;;  %6545 = vmatprep.mubr.f32.mxu1 %v14656_v1  ;;  %v3856_v1 = vld [vmem:[%s20679_s3 + $0xd18] sm:$0xff]  ;;  %v3695_v54 = vld [vmem:[%s20679_s3 + $0x810] sm:$0xff]  ;;  %v3926_v22 = vld [vmem:[%s20679_s3 + $0xf48] sm:$0xff] }
 0x513   :  { %9541 = vmatprep.subr.mxu0 %v3870_v26  ;;  %9574 = vmatprep.subr.mxu1 %v4101_v38  ;;  %v3800_v26 = vld [vmem:[%s20679_s3 + $0xb58] sm:$0xff]  ;;  %v4031_v38 = vld [vmem:[%s20679_s3 + $0x1290] sm:$0xff] }
 0x514   :  { %9542 = vmatpush3.msra.mxu0 %v3758_v27  ;;  %9575 = vmatpush3.msra.mxu1 %v3989_v59  ;;  %v3688_v27 = vld [vmem:[%s20679_s3 + $0x7d8] sm:$0xff]  ;;  %v3919_v59 = vld [vmem:[%s20679_s3 + $0xf10] sm:$0xff] }
 0x515   :  { %9543 = vmatprep.subr.mxu0 %v3863_v34  ;;  %9576 = vmatprep.subr.mxu1 %v4094_v33  ;;  %v3793_v34 = vld [vmem:[%s20679_s3 + $0xb20] sm:$0xff]  ;;  %v4024_v33 = vld [vmem:[%s20679_s3 + $0x1258] sm:$0xff] }
 0x516   :  { %9544 = vmatpush3.msra.mxu0 %v3751_v15  ;;  %9577 = vmatpush3.msra.mxu1 %v3982_v28  ;;  %v3681_v15 = vld [vmem:[%s20679_s3 + $0x7a0] sm:$0xff]  ;;  %v3912_v28 = vld [vmem:[%s20679_s3 + $0xed8] sm:$0xff] }
 0x517   :  { %9545 = vmatprep.subr.mxu0 %v3856_v1  ;;  %9578 = vmatprep.subr.mxu1 %v4087_v4  ;;  %v3786_v1 = vld [vmem:[%s20679_s3 + $0xae8] sm:$0xff]  ;;  %v4017_v4 = vld [vmem:[%s20679_s3 + $0x1220] sm:$0xff] }
 0x518   :  { %9546 = vmatpush3.msra.mxu0 %v3744_v29  ;;  %9579 = vmatpush3.msra.mxu1 %v3975_v7  ;;  %v3674_v29 = vld [vmem:[%s20679_s3 + $0x768] sm:$0xff]  ;;  %v3905_v7 = vld [vmem:[%s20679_s3 + $0xea0] sm:$0xff] }
 0x519   :  { %9547 = vmatprep.subr.mxu0 %v3849_v11  ;;  %9580 = vmatprep.subr.mxu1 %v4080_v42  ;;  %v3779_v11 = vld [vmem:[%s20679_s3 + $0xab0] sm:$0xff]  ;;  %v4010_v42 = vld [vmem:[%s20679_s3 + $0x11e8] sm:$0xff] }
 0x51a   :  { %9548 = vmatpush3.msra.mxu0 %v3737_v20  ;;  %9581 = vmatpush3.msra.mxu1 %v3968_v46  ;;  %v3667_v20 = vld [vmem:[%s20679_s3 + $0x730] sm:$0xff]  ;;  %v3898_v46 = vld [vmem:[%s20679_s3 + $0xe68] sm:$0xff] }
 0x51b   :  { %9549 = vmatprep.subr.mxu0 %v3842_v43  ;;  %9582 = vmatprep.subr.mxu1 %v4073_v48  ;;  %v4003_v43 = vld [vmem:[%s20679_s3 + $0x11b0] sm:$0xff]  ;;  %v4332_v48 = vld [vmem:[%s20679_s3 + $0x1bf8] sm:$0xff] }
 0x51c   :  { %9550 = vmatpush3.msra.mxu0 %v3730_v17  ;;  %9583 = vmatpush3.msra.mxu1 %v3961_v51  ;;  %v3891_v17 = vld [vmem:[%s20679_s3 + $0xe30] sm:$0xff]  ;;  %v4220_v51 = vld [vmem:[%s20679_s3 + $0x1878] sm:$0xff] }
 0x51d   :  { %9551 = vmatprep.subr.mxu0 %v3835_v45  ;;  %9584 = vmatprep.subr.mxu1 %v4066_v13  ;;  %v4325_v45 = vld [vmem:[%s20679_s3 + $0x1bc0] sm:$0xff]  ;;  %v4556_v13 = vld [vmem:[%s20679_s3 + $0x22f8] sm:$0xff] }
 0x51e   :  { %9552 = vmatpush3.msra.mxu0 %v3723_v12  ;;  %9585 = vmatpush3.msra.mxu1 %v3954_v53  ;;  %v4213_v12 = vld [vmem:[%s20679_s3 + $0x1840] sm:$0xff]  ;;  %v4318_v53 = vld [vmem:[%s20679_s3 + $0x1b88] sm:$0xff] }
 0x51f   :  { %9553 = vmatprep.subr.mxu0 %v3828_v58  ;;  %9586 = vmatprep.subr.mxu1 %v4059_v47  ;;  %v4549_v58 = vld [vmem:[%s20679_s3 + $0x22c0] sm:$0xff] }
 0x520   :  { %9554 = vmatpush3.msra.mxu0 %v3716_v63  ;;  %9587 = vmatpush3.msra.mxu1 %v3947_v0  ;;  %v4437_v47 = vld [vmem:[%s20679_s3 + $0x1f40] sm:$0xff]  ;;  %v4542_v63 = vld [vmem:[%s20679_s3 + $0x2288] sm:$0xff]  ;;  %v4199_v0 = vld [vmem:[%s20679_s3 + $0x17d0] sm:$0xff] }
 0x521   :  { %9555 = vmatprep.subr.mxu0 %v3821_v31  ;;  %9588 = vmatprep.subr.mxu1 %v4052_v49  ;;  %v4430_v31 = vld [vmem:[%s20679_s3 + $0x1f08] sm:$0xff]  ;;  %v4535_v49 = vld [vmem:[%s20679_s3 + $0x2250] sm:$0xff] }
 0x522   :  { %9556 = vmatpush3.msra.mxu0 %v3709_v2  ;;  %9589 = vmatpush3.msra.mxu1 %v3940_v36  ;;  %v4192_v2 = vld [vmem:[%s20679_s3 + $0x1798] sm:$0xff]  ;;  %v4423_v36 = vld [vmem:[%s20679_s3 + $0x1ed0] sm:$0xff] }
 0x523   :  { %9557 = vmatprep.subr.mxu0 %v3814_v60  ;;  %9590 = vmatprep.subr.mxu1 %v4045_v37  ;;  %v4297_v60 = vld [vmem:[%s20679_s3 + $0x1ae0] sm:$0xff]  ;;  %v4528_v37 = vld [vmem:[%s20679_s3 + $0x2218] sm:$0xff] }
 0x524   :  { %9558 = vmatpush3.msra.mxu0 %v3702_v6  ;;  %9591 = vmatpush3.msra.mxu1 %v3933_v19  ;;  %v4185_v6 = vld [vmem:[%s20679_s3 + $0x1760] sm:$0xff]  ;;  %v4416_v19 = vld [vmem:[%s20679_s3 + $0x1e98] sm:$0xff] }
 0x525   :  { %9559 = vmatprep.subr.mxu0 %v3807_v18  ;;  %9592 = vmatprep.subr.mxu1 %v4038_v9  ;;  %v4290_v18 = vld [vmem:[%s20679_s3 + $0x1aa8] sm:$0xff]  ;;  %v4521_v9 = vld [vmem:[%s20679_s3 + $0x21e0] sm:$0xff] }
 0x526   :  { %9560 = vmatpush3.msra.mxu0 %v3695_v54  ;;  %9593 = vmatpush3.msra.mxu1 %v3926_v22  ;;  %v4178_v54 = vld [vmem:[%s20679_s3 + $0x1728] sm:$0xff]  ;;  %v4409_v22 = vld [vmem:[%s20679_s3 + $0x1e60] sm:$0xff] }
 0x527   :  { %9561 = vmatprep.subr.mxu0 %v3800_v26  ;;  %9594 = vmatprep.subr.mxu1 %v4031_v38  ;;  %v4283_v26 = vld [vmem:[%s20679_s3 + $0x1a70] sm:$0xff]  ;;  %v4514_v38 = vld [vmem:[%s20679_s3 + $0x21a8] sm:$0xff] }
 0x528   :  { %9562 = vmatpush3.msra.mxu0 %v3688_v27  ;;  %9595 = vmatpush3.msra.mxu1 %v3919_v59  ;;  %v4171_v27 = vld [vmem:[%s20679_s3 + $0x16f0] sm:$0xff]  ;;  %v4402_v59 = vld [vmem:[%s20679_s3 + $0x1e28] sm:$0xff] }
 0x529   :  { %9563 = vmatprep.subr.mxu0 %v3793_v34  ;;  %9596 = vmatprep.subr.mxu1 %v4024_v33  ;;  %v4276_v34 = vld [vmem:[%s20679_s3 + $0x1a38] sm:$0xff]  ;;  %v4507_v33 = vld [vmem:[%s20679_s3 + $0x2170] sm:$0xff] }
 0x52a   :  { %9564 = vmatpush3.msra.mxu0 %v3681_v15  ;;  %9597 = vmatpush3.msra.mxu1 %v3912_v28  ;;  %v4164_v15 = vld [vmem:[%s20679_s3 + $0x16b8] sm:$0xff]  ;;  %v4395_v28 = vld [vmem:[%s20679_s3 + $0x1df0] sm:$0xff] }
 0x52b   :  { %9565 = vmatprep.subr.mxu0 %v3786_v1  ;;  %9598 = vmatprep.subr.mxu1 %v4017_v4  ;;  %v4269_v1 = vld [vmem:[%s20679_s3 + $0x1a00] sm:$0xff]  ;;  %v4500_v4 = vld [vmem:[%s20679_s3 + $0x2138] sm:$0xff] }
 0x52c   :  { %9566 = vmatpush3.msra.mxu0 %v3674_v29  ;;  %9599 = vmatpush3.msra.mxu1 %v3905_v7  ;;  %v4157_v29 = vld [vmem:[%s20679_s3 + $0x1680] sm:$0xff]  ;;  %v4388_v7 = vld [vmem:[%s20679_s3 + $0x1db8] sm:$0xff] }
 0x52d   :  { %9567 = vmatprep.subr.mxu0 %v3779_v11  ;;  %9600 = vmatprep.subr.mxu1 %v4010_v42  ;;  %v18453_v11 = vpop.f32.mrf.mxu1  ;;  %v4262_v42 = vld [vmem:[%s20679_s3 + $0x19c8] sm:$0xff] }
 0x52e   :  { %9568 = vmatpush3.msra.mxu0 %v3667_v20  ;;  %9601 = vmatpush3.msra.mxu1 %v3898_v46  ;;  %v4493_v20 = vld [vmem:[%s20679_s3 + $0x2100] sm:$0xff]  ;;  %v4150_v46 = vld [vmem:[%s20679_s3 + $0x1648] sm:$0xff] }
 0x52f   :  { %6476 = vmatmul.mubr.f32.vlgmr.msra.gmra.mxu0 %v14881_v50  ;;  %9602 = vmatprep.subr.mxu1 %v4003_v43  ;;  %v4444_v50 = vld [vmem:[%s20679_s3 + $0x1f78] sm:$0xff]  ;;  %v4381_v43 = vld [vmem:[%s20679_s3 + $0x1d80] sm:$0xff] }
 0x530   :  { %9607 = vmatprep.subr.mxu0 %v4332_v48  ;;  %9603 = vmatpush3.msra.mxu1 %v3891_v17  ;;  %v18467_v48 = vpop.f32.mrf.mxu0  ;;  %v18469_v17 = vpop.f32.mrf.mxu1 }
 0x531   :  { %9608 = vmatpush3.msra.mxu0 %v4220_v51  ;;  %6615 = vmatprep.mubr.f32.mxu0 %v14892_v57  ;;  %v4206_v57 = vld [vmem:[%s20679_s3 + $0x1808] sm:$0xff]  ;;  %v4255_v51 = vld [vmem:[%s20679_s3 + $0x1990] sm:$0xff] }
 0x532   :  { %6546 = vmatmul.mubr.f32.vlgmr.msra.gmra.mxu1 %v15062_v35  ;;  %9609 = vmatprep.subr.mxu0 %v4325_v45  ;;  %v4311_v35 = vld [vmem:[%s20679_s3 + $0x1b50] sm:$0xff]  ;;  %v4486_v45 = vld [vmem:[%s20679_s3 + $0x20c8] sm:$0xff] }
 0x533   :  { %9642 = vmatprep.subr.mxu1 %v4556_v13  ;;  %9610 = vmatpush3.msra.mxu0 %v4213_v12  ;;  %v4143_v13 = vld [vmem:[%s20679_s3 + $0x1610] sm:$0xff]  ;;  %v4374_v12 = vld [vmem:[%s20679_s3 + $0x1d48] sm:$0xff] }
 0x534   :  { %9643 = vmatpush3.msra.mxu1 %v4444_v50  ;;  %6685 = vmatprep.mubr.f32.mxu1 %v15073_v10  ;;  %v4304_v10 = vld [vmem:[%s20679_s3 + $0x1b18] sm:$0xff]  ;;  %v18483_v50 = vpop.f32.mrf.mxu0 }
 0x535   :  { %9611 = vmatprep.subr.mxu0 %v4318_v53  ;;  %9644 = vmatprep.subr.mxu1 %v4549_v58  ;;  %v4248_v53 = vld [vmem:[%s20679_s3 + $0x1958] sm:$0xff]  ;;  %v4479_v58 = vld [vmem:[%s20679_s3 + $0x2090] sm:$0xff] }
 0x536   :  { %9612 = vmatpush3.msra.mxu0 %v4206_v57  ;;  %9645 = vmatpush3.msra.mxu1 %v4437_v47  ;;  %v4136_v57 = vld [vmem:[%s20679_s3 + $0x15d8] sm:$0xff]  ;;  %v4367_v47 = vld [vmem:[%s20679_s3 + $0x1d10] sm:$0xff] }
 0x537   :  { %9613 = vmatprep.subr.mxu0 %v4311_v35  ;;  %9646 = vmatprep.subr.mxu1 %v4542_v63  ;;  %v5415_v35 = vpop.f32.mrf.mxu1  ;;  %v4241_v63 = vld [vmem:[%s20679_s3 + $0x1920] sm:$0xff] }
 0x538   :  { %9614 = vmatpush3.msra.mxu0 %v4199_v0  ;;  %9647 = vmatpush3.msra.mxu1 %v4430_v31  ;;  %v4472_v0 = vld [vmem:[%s20679_s3 + $0x2058] sm:$0xff]  ;;  %v4129_v31 = vld [vmem:[%s20679_s3 + $0x15a0] sm:$0xff] }
 0x539   :  { %9615 = vmatprep.subr.mxu0 %v4304_v10  ;;  %9648 = vmatprep.subr.mxu1 %v4535_v49  ;;  %v4360_v10 = vld [vmem:[%s20679_s3 + $0x1cd8] sm:$0xff]  ;;  %v5486_v49 = vpop.f32.mrf.mxu0 }
 0x53a   :  { %9616 = vmatpush3.msra.mxu0 %v4192_v2  ;;  %9649 = vmatpush3.msra.mxu1 %v4423_v36  ;;  %v18509_v2 = vpop.f32.mrf.mxu1  ;;  %v4234_v36 = vld [vmem:[%s20679_s3 + $0x18e8] sm:$0xff] }
 0x53b   :  { %9617 = vmatprep.subr.mxu0 %v4297_v60  ;;  %9650 = vmatprep.subr.mxu1 %v4528_v37  ;;  %v4465_v60 = vld [vmem:[%s20679_s3 + $0x2020] sm:$0xff] }
 0x53c   :  { %9618 = vmatpush3.msra.mxu0 %v4185_v6  ;;  %9651 = vmatpush3.msra.mxu1 %v4416_v19  ;;  %v18520_v37 = vld [vmem:[%s20680_s4] sm:$0x7f]  ;;  %v4122_v19 = vld [vmem:[%s20679_s3 + $0x1568] sm:$0xff] }
 0x53d   :  { %9619 = vmatprep.subr.mxu0 %v4290_v18  ;;  %9652 = vmatprep.subr.mxu1 %v4521_v9  ;;  %20772 = vst [vmem:[#allocation9_spill] sm:$0xff] %v18520_v37  ;;  %v4826_v6 = vrot.slane %v18520_v37, %v14328_v56  ;;  %v4353_v18 = vld [vmem:[%s20679_s3 + $0x1ca0] sm:$0xff]  ;;  %v18530_v9 = vpop.f32.mrf.mxu0  ;;  %v4458_v56 = vld [vmem:[%s20679_s3 + $0x1fe8] sm:$0xff] }
 0x53e   :  { %9620 = vmatpush3.msra.mxu0 %v4178_v54  ;;  %9653 = vmatpush3.msra.mxu1 %v4409_v22  ;;  %v4227_v54 = vld [vmem:[%s20679_s3 + $0x18b0] sm:$0xff] }
 0x53f   :  { %9621 = vmatprep.subr.mxu0 %v4283_v26  ;;  %9654 = vmatprep.subr.mxu1 %v4514_v38  ;;  %v4115_v22 = vld [vmem:[%s20679_s3 + $0x1530] sm:$0xff]  ;;  %v4346_v26 = vld [vmem:[%s20679_s3 + $0x1c68] sm:$0xff]  ;;  %v5557_v38 = vpop.f32.mrf.mxu1 }
 0x540   :  { %9622 = vmatpush3.msra.mxu0 %v4171_v27  ;;  %9655 = vmatpush3.msra.mxu1 %v4402_v59  ;;  %v4451_v27 = vld [vmem:[%s20679_s3 + $0x1fb0] sm:$0xff]  ;;  %v5416_v59 = vadd.f32 %v5415_v35, %v4826_v6  ;;  %v4640_v35 = vld [vmem:[%s20679_s3 + $0x2598] sm:$0xff] }
 0x541   :  { %9623 = vmatprep.subr.mxu0 %v4276_v34  ;;  %9656 = vmatprep.subr.mxu1 %v4507_v33  ;;  %v4780_v34 = vld [vmem:[%s20679_s3 + $0x29f8] sm:$0xff]  ;;  %v4339_v33 = vld [vmem:[%s20679_s3 + $0x1c30] sm:$0xff] }
 0x542   :  { %9624 = vmatpush3.msra.mxu0 %v4164_v15  ;;  %9657 = vmatpush3.msra.mxu1 %v4395_v28  ;;  %v5628_v15 = vpop.f32.mrf.mxu0  ;;  %v18553_v28 = vpop.f32.mrf.mxu1 }
 0x543   :  { %9625 = vmatprep.subr.mxu0 %v4269_v1  ;;  %9658 = vmatprep.subr.mxu1 %v4500_v4  ;;  %v4668_v1 = vld [vmem:[%s20679_s3 + $0x2678] sm:$0xff]  ;;  %v5487_v4 = vadd.f32 %v5486_v49, %v5416_v59  ;;  %v4633_v49 = vld [vmem:[%s20679_s3 + $0x2560] sm:$0xff] }
 0x544   :  { %9626 = vmatpush3.msra.mxu0 %v4157_v29  ;;  %9659 = vmatpush3.msra.mxu1 %v4388_v7  ;;  %v4773_v29 = vld [vmem:[%s20679_s3 + $0x29c0] sm:$0xff]  ;;  %v18562_v7 = vpop.f32.mrf.mxu0 }
 0x545   :  { %9627 = vmatprep.subr.mxu0 %v4262_v42  ;;  %9660 = vmatprep.subr.mxu1 %v4493_v20  ;;  %v4661_v42 = vld [vmem:[%s20679_s3 + $0x2640] sm:$0xff]  ;;  %v5558_v20 = vadd.f32 %v5557_v38, %v5487_v4  ;;  %v18661_v38 = vld [vmem:[%s20683_s7 + $0x168] sm:$0xff]  ;;  %v4818_v4 = vrot.slane %v18520_v37, %v14117_v5 }
 0x546   :  { %9628 = vmatpush3.msra.mxu0 %v4150_v46  ;;  %9661 = vmatpush3.msra.mxu1 %v4381_v43  ;;  %v4766_v46 = vld [vmem:[%s20679_s3 + $0x2988] sm:$0xff]  ;;  %v5699_v43 = vpop.f32.mrf.mxu1  ;;  %v18670_v59 = vld [vmem:[%s20683_s7 + $0x1e0] sm:$0xff] }
 0x547   :  { %9629 = vmatprep.subr.mxu0 %v4255_v51  ;;  %9662 = vmatprep.subr.mxu1 %v4486_v45  ;;  %v4654_v51 = vld [vmem:[%s20679_s3 + $0x2608] sm:$0xff]  ;;  %v5629_v45 = vadd.f32 %v5628_v15, %v5558_v20  ;;  %v4717_v15 = vld [vmem:[%s20679_s3 + $0x2800] sm:$0xff] }
 0x548   :  { %9630 = vmatpush3.msra.mxu0 %v4143_v13  ;;  %9663 = vmatpush3.msra.mxu1 %v4374_v12  ;;  %v4759_v13 = vld [vmem:[%s20679_s3 + $0x2950] sm:$0xff]  ;;  %v5770_v12 = vpop.f32.mrf.mxu0  ;;  %v4710_v20 = vld [vmem:[%s20679_s3 + $0x27c8] sm:$0xff]  ;;  %v19037_v5 = vld [vmem:[%s20683_s7 + $0x20] sm:$0xff] }
 0x549   :  { %9631 = vmatprep.subr.mxu0 %v4248_v53  ;;  %9664 = vmatprep.subr.mxu1 %v4479_v58  ;;  %v5700_v53 = vadd.f32 %v5699_v43, %v5629_v45  ;;  %v4794_v58 = vld [vmem:[%s20679_s3 + $0x2a68] sm:$0xff]  ;;  %v18717_v43 = vld [vmem:[%s20683_s7 + $0x150] sm:$0xff]  ;;  %20796 = vst [vmem:[#allocation33_spill] sm:$0xff] %v19037_v5 }
 0x54a   :  { %9632 = vmatpush3.msra.mxu0 %v4136_v57  ;;  %9665 = vmatpush3.msra.mxu1 %v4367_v47  ;;  %v4752_v57 = vld [vmem:[%s20679_s3 + $0x2918] sm:$0xff]  ;;  %v18595_v47 = vpop.f32.mrf.mxu1  ;;  %v18726_v45 = vld [vmem:[%s20683_s7 + $0x1c8] sm:$0xff] }
 0x54b   :  { %9633 = vmatprep.subr.mxu0 %v4241_v63  ;;  %9666 = vmatprep.subr.mxu1 %v4472_v0  ;;  %v5771_v63 = vadd.f32 %v5770_v12, %v5700_v53  ;;  %v4787_v0 = vld [vmem:[%s20679_s3 + $0x2a30] sm:$0xff]  ;;  %v18736_v12 = vld [vmem:[%s20683_s7 + $0x148] sm:$0xff] }
 0x54c   :  { %9634 = vmatpush3.msra.mxu0 %v4129_v31  ;;  %9667 = vmatpush3.msra.mxu1 %v4360_v10  ;;  %v4745_v31 = vld [vmem:[%s20679_s3 + $0x28e0] sm:$0xff]  ;;  %v18611_v10 = vld [vmem:[%s20683_s7 + $0x1f8] sm:$0xff] }
 0x54d   :  { %9635 = vmatprep.subr.mxu0 %v4234_v36  ;;  %9668 = vmatprep.subr.mxu1 %v4465_v60  ;;  %v5841_v36 = vpop.f32.mrf.mxu1  ;;  %v18621_v60 = vld [vmem:[%s20683_s7 + $0x178] sm:$0xff] }
 0x54e   :  { %9636 = vmatpush3.msra.mxu0 %v4122_v19  ;;  %9669 = vmatpush3.msra.mxu1 %v4353_v18  ;;  %v18623_v6 = vadd.f32 %v5841_v36, %v5771_v63  ;;  %v4738_v19 = vld [vmem:[%s20679_s3 + $0x28a8] sm:$0xff]  ;;  %v18633_v18 = vld [vmem:[%s20683_s7 + $0x1f0] sm:$0xff]  ;;  %v18766_v63 = vld [vmem:[%s20683_s7 + $0x1b8] sm:$0xff] }
 0x54f   :  { %9637 = vmatprep.subr.mxu0 %v4227_v54  ;;  %9670 = vmatprep.subr.mxu1 %v4458_v56  ;;  %v4626_v54 = vld [vmem:[%s20679_s3 + $0x2528] sm:$0xff]  ;;  %v4731_v56 = vld [vmem:[%s20679_s3 + $0x2870] sm:$0xff] }
 0x550   :  { %9638 = vmatpush3.msra.mxu0 %v4115_v22  ;;  %9671 = vmatpush3.msra.mxu1 %v4346_v26  ;;  %v18652_v22 = vld [vmem:[%s20683_s7 + $0x1e8] sm:$0xff]  ;;  %v4619_v26 = vld [vmem:[%s20679_s3 + $0x24f0] sm:$0xff] }
 0x551   :  { %6616 = vmatmul.mubr.f32.vlgmr.msra.gmra.mxu0 %v15300_v14  ;;  %9672 = vmatprep.subr.mxu1 %v4451_v27  ;;  %v4808_v14 = vld [vmem:[%s20679_s3 + $0x2ad8] sm:$0xff]  ;;  %v4682_v36 = vld [vmem:[%s20679_s3 + $0x26e8] sm:$0xff] }
 0x552   :  { %9677 = vmatprep.subr.mxu0 %v4780_v34  ;;  %9673 = vmatpush3.msra.mxu1 %v4339_v33  ;;  %v4724_v27 = vld [vmem:[%s20679_s3 + $0x2838] sm:$0xff]  ;;  %v18679_v33 = vld [vmem:[%s20683_s7 + $0x160] sm:$0xff] }
 0x553   :  { %9678 = vmatpush3.msra.mxu0 %v4668_v1  ;;  %6755 = vmatprep.mubr.f32.mxu0 %v15339_v32  ;;  %v4801_v32 = vld [vmem:[%s20679_s3 + $0x2aa0] sm:$0xff]  ;;  %v4612_v34 = vld [vmem:[%s20679_s3 + $0x24b8] sm:$0xff] }
 0x554   :  { %6686 = vmatmul.mubr.f32.vlgmr.msra.gmra.mxu1 %v15482_v8  ;;  %9679 = vmatprep.subr.mxu0 %v4773_v29  ;;  %v4647_v8 = vld [vmem:[%s20679_s3 + $0x25d0] sm:$0xff]  ;;  %v18688_v1 = vld [vmem:[%s20683_s7 + $0x1d8] sm:$0xff]  ;;  %v4605_v29 = vld [vmem:[%s20679_s3 + $0x2480] sm:$0xff] }
 0x555   :  { %10111 = vmatprep.subr.mxu1 %v20694_v52  ;;  %9680 = vmatpush3.msra.mxu0 %v4661_v42  ;;  %v18699_v42 = vld [vmem:[%s20683_s7 + $0x158] sm:$0xff] }
 0x556   :  { %10112 = vmatpush3.msra.mxu1 %v4808_v14  ;;  %9681 = vmatprep.subr.mxu0 %v4766_v46  ;;  %v18708_v14 = vld [vmem:[%s20683_s7 + $0x1d0] sm:$0xff]  ;;  %v4598_v46 = vld [vmem:[%s20679_s3 + $0x2448] sm:$0xff] }
 0x557   :  { %10113 = vmatprep.subr.mxu1 %v20694_v52  ;;  %9682 = vmatpush3.msra.mxu0 %v4654_v51  ;;  %v4703_v51 = vld [vmem:[%s20679_s3 + $0x2790] sm:$0xff] }
 0x558   :  { %10114 = vmatpush3.msra.mxu1 %v4801_v32  ;;  %9683 = vmatprep.subr.mxu0 %v4759_v13  ;;  %v4919_v32 = vadd.f32 %v16245_v62, %v4818_v4  ;;  %v4591_v13 = vld [vmem:[%s20679_s3 + $0x2410] sm:$0xff]  ;;  %v18745_v62 = vld [vmem:[%s20683_s7 + $0x1c0] sm:$0xff] }
 0x559   :  { %10115 = vmatprep.subr.mxu1 %v20694_v52  ;;  %9684 = vmatpush3.msra.mxu0 %v4647_v8  ;;  %v4696_v8 = vld [vmem:[%s20679_s3 + $0x2758] sm:$0xff] }
 0x55a   :  { %10116 = vmatpush3.msra.mxu1 %v4794_v58  ;;  %9685 = vmatprep.subr.mxu0 %v4752_v57  ;;  %v4990_v53 = vadd.f32 %v16468_v30, %v4919_v32  ;;  %v4584_v58 = vld [vmem:[%s20679_s3 + $0x23d8] sm:$0xff]  ;;  %v18755_v57 = vld [vmem:[%s20683_s7 + $0x140] sm:$0xff]  ;;  %v18851_v32 = vld [vmem:[%s20683_s7 + $0xf0] sm:$0xff] }
 0x55b   :  { %10117 = vmatprep.subr.mxu1 %v20694_v52  ;;  %9686 = vmatpush3.msra.mxu0 %v4640_v35  ;;  %v4822_v35 = vrot.slane %v18520_v37, %v12653_v55  ;;  %v4689_v30 = vld [vmem:[%s20679_s3 + $0x2720] sm:$0xff]  ;;  %20775 = vst [vmem:[#allocation12_spill] sm:$0xff] %v18851_v32 }
 0x55c   :  { %10118 = vmatpush3.msra.mxu1 %v4787_v0  ;;  %10119 = vmatprep.mubr.msk.f32.mxu1 %vm10240_vm1, %v20694_v52  ;;  %v5061_v0 = vadd.f32 %v16643_v61, %v4990_v53  ;;  %v18785_v61 = vld [vmem:[%s20683_s7 + $0x1b0] sm:$0xff]  ;;  %v19031_v55 = vld [vmem:[%s20683_s7 + $0xa0] sm:$0xff] }
 0x55d   :  { %9687 = vmatprep.subr.mxu0 %v4745_v31  ;;  %10120 = vmatmul.mubr.msk.f32.vlgmr.msra.gmra.mxu1 %vm4846_vm2, %v15767_v25  ;;  %v18642_v25 = vld [vmem:[%s20683_s7 + $0x170] sm:$0xff]  ;;  %v4577_v31 = vld [vmem:[%s20679_s3 + $0x23a0] sm:$0xff]  ;;  %20795 = vst [vmem:[#allocation32_spill] sm:$0xff] %v19031_v55 }
 0x55e   :  { %9752 = vmatprep.subr.mxu1 %v18611_v10  ;;  %9688 = vmatpush3.msra.mxu0 %v4633_v49  ;;  %v18776_v49 = vld [vmem:[%s20683_s7 + $0x138] sm:$0xff] }
 0x55f   :  { %9753 = vmatpush3.msra.mxu1 %v18621_v60  ;;  %7066 = vmatprep.mubr.f32.mxu1 %v18623_v6 }
 0x560   :  { %9689 = vmatprep.subr.mxu0 %v4738_v19  ;;  %9754 = vmatprep.subr.mxu1 %v18633_v18  ;;  %v5132_v19 = vadd.f32 %v16863_v39, %v5061_v0  ;;  %v4675_v39 = vld [vmem:[%s20679_s3 + $0x26b0] sm:$0xff] }
 0x561   :  { %9690 = vmatpush3.msra.mxu0 %v4626_v54  ;;  %9755 = vmatpush3.msra.mxu1 %v18642_v25  ;;  %v4570_v54 = vld [vmem:[%s20679_s3 + $0x2368] sm:$0xff] }
 0x562   :  { %9691 = vmatprep.subr.mxu0 %v4731_v56  ;;  %9756 = vmatprep.subr.mxu1 %v18652_v22  ;;  %v18795_v56 = vld [vmem:[%s20683_s7 + $0x130] sm:$0xff] }
 0x563   :  { %9692 = vmatpush3.msra.mxu0 %v4619_v26  ;;  %9757 = vmatpush3.msra.mxu1 %v18661_v38  ;;  %v5414_v26 = vadd.f32 %v18469_v17, %v4822_v35  ;;  %v4563_v17 = vld [vmem:[%s20679_s3 + $0x2330] sm:$0xff] }
 0x564   :  { %9693 = vmatprep.subr.mxu0 %v4724_v27  ;;  %9758 = vmatprep.subr.mxu1 %v18670_v59  ;;  %v18805_v27 = vld [vmem:[%s20683_s7 + $0x1a8] sm:$0xff]  ;;  %v18894_v35 = vld [vmem:[%s20683_s7 + $0x110] sm:$0xff] }
 0x565   :  { %9694 = vmatpush3.msra.mxu0 %v4612_v34  ;;  %9759 = vmatpush3.msra.mxu1 %v18679_v33  ;;  %v5203_v34 = vadd.f32 %v18453_v11, %v5132_v19  ;;  %v5485_v4 = vadd.f32 %v18483_v50, %v5414_v26  ;;  %v18822_v11 = vld [vmem:[%s20683_s7 + $0xf8] sm:$0xff]  ;;  %v18931_v19 = vld [vmem:[%s20683_s7 + $0x180] sm:$0xff] }
 0x566   :  { %9695 = vmatprep.subr.mxu0 %v4717_v15  ;;  %9760 = vmatprep.subr.mxu1 %v18688_v1  ;;  %v18815_v15 = vld [vmem:[%s20683_s7 + $0x128] sm:$0xff]  ;;  %v18834_v50 = vld [vmem:[%s20683_s7 + $0x78] sm:$0xff]  ;;  %v18943_v26 = vld [vmem:[%s20683_s7 + $0x100] sm:$0xff] }
 0x567   :  { %9696 = vmatpush3.msra.mxu0 %v4605_v29  ;;  %9761 = vmatpush3.msra.mxu1 %v18699_v42  ;;  %v5274_v29 = vadd.f32 %v16932_v16, %v5203_v34  ;;  %20773 = vst [vmem:[#allocation10_spill] sm:$0xff] %v18834_v50  ;;  %v18841_v16 = vld [vmem:[%s20683_s7 + $0x120] sm:$0xff] }
 0x568   :  { %9697 = vmatprep.subr.mxu0 %v4710_v20  ;;  %9762 = vmatprep.subr.mxu1 %v18708_v14  ;;  %v18829_v20 = vld [vmem:[%s20683_s7 + $0x1a0] sm:$0xff] }
 0x569   :  { %9698 = vmatpush3.msra.mxu0 %v4598_v46  ;;  %9763 = vmatpush3.msra.mxu1 %v18717_v43  ;;  %v5556_v46 = vadd.f32 %v18509_v2, %v5485_v4  ;;  %v18856_v2 = vld [vmem:[%s20683_s7 + $0x198] sm:$0xff]  ;;  %v18967_v4 = vld [vmem:[%s20683_s7 + $0xc8] sm:$0xff] }
 0x56a   :  { %9699 = vmatprep.subr.mxu0 %v4703_v51  ;;  %9764 = vmatprep.subr.mxu1 %v18726_v45  ;;  %v18844_v51 = vadd.f32 %v18467_v48, %v5274_v29  ;;  %v18869_v48 = vld [vmem:[%s20683_s7 + $0x118] sm:$0xff]  ;;  %20785 = vst [vmem:[#allocation22_spill] sm:$0xff] %v18967_v4  ;;  %v18980_v29 = vld [vmem:[%s20683_s7 + $0xc0] sm:$0xff] }
 0x56b   :  { %9700 = vmatpush3.msra.mxu0 %v4591_v13  ;;  %9765 = vmatpush3.msra.mxu1 %v18736_v12  ;;  %v5627_v13 = vadd.f32 %v18530_v9, %v5556_v46  ;;  %v18876_v9 = vld [vmem:[%s20683_s7 + $0xe8] sm:$0xff]  ;;  %20787 = vst [vmem:[#allocation24_spill] sm:$0xff] %v18980_v29  ;;  %v18987_v46 = vld [vmem:[%s20683_s7 + $0x40] sm:$0xff] }
 0x56c   :  { %9701 = vmatprep.subr.mxu0 %v4696_v8  ;;  %9766 = vmatprep.subr.mxu1 %v18745_v62  ;;  %20774 = vst [vmem:[#allocation11_spill] sm:$0xff] %v18844_v51  ;;  %20777 = vst [vmem:[#allocation14_spill] sm:$0xff] %v18876_v9  ;;  %v18881_v8 = vld [vmem:[%s20683_s7 + $0x190] sm:$0xff] }
 0x56d   :  { %9702 = vmatpush3.msra.mxu0 %v4584_v58  ;;  %9767 = vmatpush3.msra.mxu1 %v18755_v57  ;;  %v5698_v53 = vadd.f32 %v18553_v28, %v5627_v13  ;;  %v18889_v58 = vld [vmem:[%s20683_s7 + $0x68] sm:$0xff]  ;;  %v18901_v28 = vld [vmem:[%s20683_s7 + $0xe0] sm:$0xff]  ;;  %20788 = vst [vmem:[#allocation25_spill] sm:$0xff] %v18987_v46  ;;  %v18995_v13 = vld [vmem:[%s20683_s7 + $0xb8] sm:$0xff] }
 0x56e   :  { %9703 = vmatprep.subr.mxu0 %v4689_v30  ;;  %9768 = vmatprep.subr.mxu1 %v18766_v63  ;;  %20778 = vst [vmem:[#allocation15_spill] sm:$0xff] %v18889_v58  ;;  %20779 = vst [vmem:[#allocation16_spill] sm:$0xff] %v18901_v28  ;;  %v18906_v30 = vld [vmem:[%s20683_s7 + $0x188] sm:$0xff] }
 0x56f   :  { %9704 = vmatpush3.msra.mxu0 %v4577_v31  ;;  %9769 = vmatpush3.msra.mxu1 %v18776_v49  ;;  %v5769_v0 = vadd.f32 %v18562_v7, %v5698_v53  ;;  %v18914_v31 = vld [vmem:[%s20683_s7 + $0x60] sm:$0xff]  ;;  %v18926_v7 = vld [vmem:[%s20683_s7 + $0xd8] sm:$0xff]  ;;  %20789 = vst [vmem:[#allocation26_spill] sm:$0xff] %v18995_v13 }
 0x570   :  { %9705 = vmatprep.subr.mxu0 %v4682_v36  ;;  %9770 = vmatprep.subr.mxu1 %v18785_v61  ;;  %20780 = vst [vmem:[#allocation17_spill] sm:$0xff] %v18914_v31  ;;  %v18919_v36 = vld [vmem:[%s20683_s7 + $0x108] sm:$0xff]  ;;  %20781 = vst [vmem:[#allocation18_spill] sm:$0xff] %v18926_v7  ;;  %v19001_v53 = vld [vmem:[%s20683_s7 + $0x38] sm:$0xff] }
 0x571   :  { %9706 = vmatpush3.msra.mxu0 %v4570_v54  ;;  %9771 = vmatpush3.msra.mxu1 %v18795_v56  ;;  %v18938_v54 = vld [vmem:[%s20683_s7 + $0x58] sm:$0xff]  ;;  %v18953_v34 = vadd.f32 %v18595_v47, %v5769_v0  ;;  %v18974_v47 = vld [vmem:[%s20683_s7 + $0x48] sm:$0xff]  ;;  %20790 = vst [vmem:[#allocation27_spill] sm:$0xff] %v19001_v53  ;;  %v19007_v0 = vld [vmem:[%s20683_s7 + $0xb0] sm:$0xff] }
 0x572   :  { %9707 = vmatprep.subr.mxu0 %v4675_v39  ;;  %9772 = vmatprep.subr.mxu1 %v18805_v27  ;;  %20782 = vst [vmem:[#allocation19_spill] sm:$0xff] %v18938_v54  ;;  %v18950_v39 = vld [vmem:[%s20683_s7 + $0xd0] sm:$0xff]  ;;  %20786 = vst [vmem:[#allocation23_spill] sm:$0xff] %v18974_v47 }
 0x573   :  { %9708 = vmatpush3.msra.mxu0 %v4563_v17  ;;  %9773 = vmatpush3.msra.mxu1 %v18815_v15  ;;  %20783 = vst [vmem:[#allocation20_spill] sm:$0xff] %v18950_v39  ;;  %v18960_v17 = vld [vmem:[%s20683_s7 + $0x50] sm:$0xff]  ;;  %20791 = vst [vmem:[#allocation28_spill] sm:$0xff] %v19007_v0 }
 0x574   :  { %6756 = vmatmul.mubr.f32.vlgmr.msra.gmra.mxu0 %v15712_v3  ;;  %9717 = vmatprep.subr.mxu0 %v18822_v11  ;;  %v18864_v3 = vld [vmem:[%s20683_s7 + $0x70] sm:$0xff]  ;;  %20784 = vst [vmem:[#allocation21_spill] sm:$0xff] %v18960_v17 }
 0x575   :  { %9774 = vmatprep.subr.mxu1 %v18829_v20  ;;  %9718 = vmatpush3.msra.mxu0 %v18834_v50  ;;  %20776 = vst [vmem:[#allocation13_spill] sm:$0xff] %v18864_v3 }
 0x576   :  { %6996 = vmatprep.mubr.f32.mxu0 %v18844_v51  ;;  %9775 = vmatpush3.msra.mxu1 %v18841_v16 }
 0x577   :  { %9719 = vmatprep.subr.mxu0 %v18851_v32  ;;  %9776 = vmatprep.subr.mxu1 %v18856_v2 }
 0x578   :  { %9720 = vmatpush3.msra.mxu0 %v18864_v3  ;;  %9777 = vmatpush3.msra.mxu1 %v18869_v48 }
 0x579   :  { %9721 = vmatprep.subr.mxu0 %v18876_v9  ;;  %9778 = vmatprep.subr.mxu1 %v18881_v8 }
 0x57a   :  { %9722 = vmatpush3.msra.mxu0 %v18889_v58  ;;  %9779 = vmatpush3.msra.mxu1 %v18894_v35 }
 0x57b   :  { %9723 = vmatprep.subr.mxu0 %v18901_v28  ;;  %9780 = vmatprep.subr.mxu1 %v18906_v30 }
 0x57c   :  { %9724 = vmatpush3.msra.mxu0 %v18914_v31  ;;  %9781 = vmatpush3.msra.mxu1 %v18919_v36 }
 0x57d   :  { %9725 = vmatprep.subr.mxu0 %v18926_v7  ;;  %9782 = vmatprep.subr.mxu1 %v18931_v19 }
 0x57e   :  { %9726 = vmatpush3.msra.mxu0 %v18938_v54  ;;  %9783 = vmatpush3.msra.mxu1 %v18943_v26 }
 0x57f   :  { %9727 = vmatprep.subr.mxu0 %v18950_v39  ;;  %7067 = vmatmul.mubr.f32.vlgmr.msra.gmra.mxu1 %v18953_v34 }
 0x580   :  { %9728 = vmatpush3.msra.mxu0 %v18960_v17  ;;  %10122 = vmatprep.subr.mxu1 %v20694_v52 }
 0x581   :  { %9729 = vmatprep.subr.mxu0 %v18967_v4  ;;  %10126 = vmatprep.mubr.msk.f32.mxu1 %vm10240_vm1, %v20694_v52  ;;  %v19025_v52 = vld [vmem:[%s20683_s7 + $0x28] sm:$0xff] }
 0x582   :  { %9730 = vmatpush3.msra.mxu0 %v18974_v47  ;;  %20794 = vst [vmem:[#allocation31_spill] sm:$0xff] %v19025_v52 }
 0x583   :  { %9731 = vmatprep.subr.mxu0 %v18980_v29 }
 0x584   :  { %9732 = vmatpush3.msra.mxu0 %v18987_v46 }
 0x585   :  { %9733 = vmatprep.subr.mxu0 %v18995_v13 }
 0x586   :  { %9734 = vmatpush3.msra.mxu0 %v19001_v53 }
 0x587   :  { %9735 = vmatprep.subr.mxu0 %v19007_v0  ;;  %v20838_v0 = vsub.s32 5, %v10628_v41 }
 0x588   :  { %9736 = vmatpush3.msra.mxu0 %v19013_v40  ;;  %v19049_v40 = vld [vmem:[%s20683_s7 + $0x18] sm:$0xff] }
 0x589   :  { %9737 = vmatprep.subr.mxu0 %v19019_v21  ;;  %20798 = vst [vmem:[#allocation35_spill] sm:$0xff] %v19049_v40  ;;  %v19055_v21 = vld [vmem:[%s20683_s7 + $0x90] sm:$0xff]  ;;  %v4834_v53 = vrot.slane %v18520_v37, %v20838_v0 }
 0x58a   :  { %9738 = vmatpush3.msra.mxu0 %v19025_v52  ;;  %20799 = vst [vmem:[#allocation36_spill] sm:$0xff] %v19055_v21  ;;  %v19061_v52 = vld [vmem:[%s20683_s7 + $0x10] sm:$0xff] }
 0x58b   :  { %9739 = vmatprep.subr.mxu0 %v19031_v55  ;;  %20800 = vst [vmem:[#allocation37_spill] sm:$0xff] %v19061_v52  ;;  %v19067_v55 = vld [vmem:[%s20683_s7 + $0x88] sm:$0xff] }
 0x58c   :  { %9740 = vmatpush3.msra.mxu0 %v19037_v5  ;;  %20801 = vst [vmem:[#allocation38_spill] sm:$0xff] %v19067_v55  ;;  %v19073_v5 = vld [vmem:[%s20683_s7 + $0x8] sm:$0xff] }
 0x58d   :  { %9741 = vmatprep.subr.mxu0 %v19043_v44  ;;  %20802 = vst [vmem:[#allocation39_spill] sm:$0xff] %v19073_v5  ;;  %v19079_v44 = vld [vmem:[%s20683_s7 + $0x80] sm:$0xff] }
 0x58e   :  { %9742 = vmatpush3.msra.mxu0 %v19049_v40  ;;  %20803 = vst [vmem:[#allocation40_spill] sm:$0xff] %v19079_v44  ;;  %v19085_v40 = vld [vmem:[%s20683_s7] sm:$0xff] }
 0x58f   :  { %9743 = vmatprep.subr.mxu0 %v19055_v21  ;;  %20804 = vst [vmem:[#allocation41_spill] sm:$0xff] %v19085_v40  ;;  %v19091_v21 = vld [vmem:[%s20683_s7 + $0x2f8] sm:$0xff] }
 0x590   :  { %9744 = vmatpush3.msra.mxu0 %v19061_v52  ;;  %20805 = vst [vmem:[#allocation42_spill] sm:$0xff] %v19091_v21  ;;  %v19097_v52 = vld [vmem:[%s20683_s7 + $0x278] sm:$0xff] }
 0x591   :  { %9745 = vmatprep.subr.mxu0 %v19067_v55  ;;  %20806 = vst [vmem:[#allocation43_spill] sm:$0xff] %v19097_v52  ;;  %v19103_v55 = vld [vmem:[%s20683_s7 + $0x2f0] sm:$0xff] }
 0x592   :  { %9746 = vmatpush3.msra.mxu0 %v19073_v5  ;;  %20807 = vst [vmem:[#allocation44_spill] sm:$0xff] %v19103_v55 }
 0x593   :  { %9747 = vmatprep.subr.mxu0 %v19079_v44  ;;  %v19110_v44 = vld [vmem:[%s20683_s7 + $0x270] sm:$0xff] }
 0x594   :  { %9748 = vmatpush3.msra.mxu0 %v19085_v40  ;;  %20808 = vst [vmem:[#allocation45_spill] sm:$0xff] %v19110_v44  ;;  %v19116_v40 = vld [vmem:[%s20683_s7 + $0x2e8] sm:$0xff] }
 0x595   :  { %6997 = vmatmul.mubr.f32.vlgmr.msra.gmra.mxu0 %v16958_v24  ;;  %9787 = vmatprep.subr.mxu0 %v19091_v21  ;;  %20809 = vst [vmem:[#allocation46_spill] sm:$0xff] %v19116_v40  ;;  %v19122_v24 = vld [vmem:[%s20683_s7 + $0x268] sm:$0xff]  ;;  %v19128_v21 = vld [vmem:[%s20683_s7 + $0x2e0] sm:$0xff] }
 0x596   :  { %9788 = vmatpush3.msra.mxu0 %v19097_v52  ;;  %20810 = vst [vmem:[#allocation47_spill] sm:$0xff] %v19122_v24  ;;  %20811 = vst [vmem:[#allocation48_spill] sm:$0xff] %v19128_v21  ;;  %v19134_v52 = vld [vmem:[%s20683_s7 + $0x260] sm:$0xff] }
 0x597   :  { %9789 = vmatprep.subr.mxu0 %v19103_v55  ;;  %20812 = vst [vmem:[#allocation49_spill] sm:$0xff] %v19134_v52  ;;  %v19140_v55 = vld [vmem:[%s20683_s7 + $0x2d8] sm:$0xff] }
 0x598   :  { %9790 = vmatpush3.msra.mxu0 %v19110_v44  ;;  %20813 = vst [vmem:[#allocation50_spill] sm:$0xff] %v19140_v55  ;;  %v19146_v44 = vld [vmem:[%s20683_s7 + $0x258] sm:$0xff] }
 0x599   :  { %9791 = vmatprep.subr.mxu0 %v19116_v40  ;;  %20814 = vst [vmem:[#allocation51_spill] sm:$0xff] %v19146_v44  ;;  %v19152_v40 = vld [vmem:[%s20683_s7 + $0x2d0] sm:$0xff] }
 0x59a   :  { %9792 = vmatpush3.msra.mxu0 %v19122_v24  ;;  %20815 = vst [vmem:[#allocation52_spill] sm:$0xff] %v19152_v40  ;;  %v19158_v24 = vld [vmem:[%s20683_s7 + $0x250] sm:$0xff] }
 0x59b   :  { %9793 = vmatprep.subr.mxu0 %v19128_v21  ;;  %20816 = vst [vmem:[#allocation53_spill] sm:$0xff] %v19158_v24  ;;  %v19164_v21 = vld [vmem:[%s20683_s7 + $0x2c8] sm:$0xff] }
 0x59c   :  { %9794 = vmatpush3.msra.mxu0 %v19134_v52  ;;  %20817 = vst [vmem:[#allocation54_spill] sm:$0xff] %v19164_v21  ;;  %v19170_v52 = vld [vmem:[%s20683_s7 + $0x248] sm:$0xff] }
 0x59d   :  { %9795 = vmatprep.subr.mxu0 %v19140_v55  ;;  %20818 = vst [vmem:[#allocation55_spill] sm:$0xff] %v19170_v52  ;;  %v19176_v55 = vld [vmem:[%s20683_s7 + $0x2c0] sm:$0xff] }
 0x59e   :  { %9796 = vmatpush3.msra.mxu0 %v19146_v44  ;;  %20819 = vst [vmem:[#allocation56_spill] sm:$0xff] %v19176_v55  ;;  %v19182_v44 = vld [vmem:[%s20683_s7 + $0x240] sm:$0xff] }
 0x59f   :  { %9797 = vmatprep.subr.mxu0 %v19152_v40  ;;  %20820 = vst [vmem:[#allocation57_spill] sm:$0xff] %v19182_v44  ;;  %v19188_v40 = vld [vmem:[%s20683_s7 + $0x2b8] sm:$0xff] }
 0x5a0   :  { %9798 = vmatpush3.msra.mxu0 %v19158_v24  ;;  %20821 = vst [vmem:[#allocation58_spill] sm:$0xff] %v19188_v40  ;;  %v19194_v24 = vld [vmem:[%s20683_s7 + $0x238] sm:$0xff] }
 0x5a1   :  { %9799 = vmatprep.subr.mxu0 %v19164_v21  ;;  %20822 = vst [vmem:[#allocation59_spill] sm:$0xff] %v19194_v24  ;;  %v19200_v21 = vld [vmem:[%s20683_s7 + $0x2b0] sm:$0xff] }
 0x5a2   :  { %9800 = vmatpush3.msra.mxu0 %v19170_v52  ;;  %20823 = vst [vmem:[#allocation60_spill] sm:$0xff] %v19200_v21  ;;  %v19206_v52 = vld [vmem:[%s20683_s7 + $0x230] sm:$0xff] }
 0x5a3   :  { %9801 = vmatprep.subr.mxu0 %v19176_v55  ;;  %20824 = vst [vmem:[#allocation61_spill] sm:$0xff] %v19206_v52  ;;  %v19212_v55 = vld [vmem:[%s20683_s7 + $0x2a8] sm:$0xff] }
 0x5a4   :  { %9802 = vmatpush3.msra.mxu0 %v19182_v44  ;;  %20825 = vst [vmem:[#allocation62_spill] sm:$0xff] %v19212_v55  ;;  %v19218_v44 = vld [vmem:[%s20683_s7 + $0x228] sm:$0xff] }
 0x5a5   :  { %9803 = vmatprep.subr.mxu0 %v19188_v40  ;;  %20826 = vst [vmem:[#allocation63_spill] sm:$0xff] %v19218_v44  ;;  %v19224_v40 = vld [vmem:[%s20683_s7 + $0x2a0] sm:$0xff] }
 0x5a6   :  { %9804 = vmatpush3.msra.mxu0 %v19194_v24  ;;  %20827 = vst [vmem:[#allocation64_spill] sm:$0xff] %v19224_v40  ;;  %v19230_v24 = vld [vmem:[%s20683_s7 + $0x220] sm:$0xff] }
 0x5a7   :  { %9805 = vmatprep.subr.mxu0 %v19200_v21  ;;  %20828 = vst [vmem:[#allocation65_spill] sm:$0xff] %v19230_v24  ;;  %v19236_v21 = vld [vmem:[%s20683_s7 + $0x298] sm:$0xff] }
 0x5a8   :  { %9806 = vmatpush3.msra.mxu0 %v19206_v52  ;;  %20829 = vst [vmem:[#allocation66_spill] sm:$0xff] %v19236_v21  ;;  %v19242_v52 = vld [vmem:[%s20683_s7 + $0x218] sm:$0xff] }
 0x5a9   :  { %9807 = vmatprep.subr.mxu0 %v19212_v55  ;;  %20830 = vst [vmem:[#allocation67_spill] sm:$0xff] %v19242_v52  ;;  %v19248_v55 = vld [vmem:[%s20683_s7 + $0x290] sm:$0xff] }
 0x5aa   :  { %9808 = vmatpush3.msra.mxu0 %v19218_v44  ;;  %20831 = vst [vmem:[#allocation68_spill] sm:$0xff] %v19248_v55  ;;  %v19254_v44 = vld [vmem:[%s20683_s7 + $0x210] sm:$0xff] }
 0x5ab   :  { %9809 = vmatprep.subr.mxu0 %v19224_v40  ;;  %20832 = vst [vmem:[#allocation69_spill] sm:$0xff] %v19254_v44  ;;  %v19260_v40 = vld [vmem:[%s20683_s7 + $0x288] sm:$0xff] }
 0x5ac   :  { %9810 = vmatpush3.msra.mxu0 %v19230_v24  ;;  %20833 = vst [vmem:[#allocation70_spill] sm:$0xff] %v19260_v40  ;;  %v19266_v24 = vld [vmem:[%s20683_s7 + $0x208] sm:$0xff] }
 0x5ad   :  { %9811 = vmatprep.subr.mxu0 %v19236_v21  ;;  %20834 = vst [vmem:[#allocation71_spill] sm:$0xff] %v19266_v24  ;;  %v19272_v21 = vld [vmem:[%s20683_s7 + $0x280] sm:$0xff] }
 0x5ae   :  { %9812 = vmatpush3.msra.mxu0 %v19242_v52  ;;  %20835 = vst [vmem:[#allocation72_spill] sm:$0xff] %v19272_v21  ;;  %v19278_v52 = vld [vmem:[%s20683_s7 + $0x200] sm:$0xff] }
 0x5af   :  { %9813 = vmatprep.subr.mxu0 %v19248_v55  ;;  %20836 = vst [vmem:[#allocation73_spill] sm:$0xff] %v19278_v52  ;;  %v20837_v55 = vmov 0.0  }
 0x5b0   :  { %9814 = vmatpush3.msra.mxu0 %v19254_v44  ;;  %v19287_v44 = vld [vmem:[%s20683_s7 + $0x308] sm:$0xff] }
 0x5b1   :  { %9815 = vmatprep.subr.mxu0 %v19260_v40  ;;  %10123 = vmatpush3.msra.mxu1 %v19287_v44  ;;  %v5910_v40 = vpop.f32.mrf.mxu1 }
 0x5b2   :  { %9816 = vmatpush3.msra.mxu0 %v19266_v24  ;;  %10124 = vmatprep.subr.mxu1 %v20837_v55  ;;  %v19294_v24 = vld [vmem:[%s20683_s7 + $0x300] sm:$0xff] }
 0x5b3   :  { %9817 = vmatprep.subr.mxu0 %v19272_v21  ;;  %10125 = vmatpush3.msra.mxu1 %v19294_v24  ;;  %v4830_v21 = vrot.slane %v18520_v37, %v13112_v23 }
 0x5b4   :  { %9818 = vmatpush3.msra.mxu0 %v19278_v52  ;;  %9825 = vmatprep.subr.mxu1 %v18822_v11  ;;  %v5981_v52 = vpop.f32.mrf.mxu0 }
 0x5b5   :  { %9860 = vmatprep.subr.mxu0 %v18611_v10  ;;  %v5912_v10 = vpop.f32.mrf.mxu1  ;;  %v5911_v46 = vadd.f32 %v5910_v40, %v4830_v21 }
 0x5b6   :  { %v5983_v13 = vpop.f32.mrf.mxu0  ;;  %v5913_v4 = vadd.f32 %v5912_v10, %v4834_v53  ;;  %v20858_v10 = vld [vmem:[#allocation27_spill] sm:$0xff] }
 0x5b7   :  { %v6052_v5 = vpop.f32.mrf.mxu1  ;;  %v5982_v17 = vadd.f32 %v5981_v52, %v5911_v46  ;;  %v7223_v52 = vmul.f32 %v18623_v6, %v18623_v6  ;;  %v20856_v46 = vld [vmem:[#allocation25_spill] sm:$0xff] }
 0x5b8   :  { %v6123_v47 = vpop.f32.mrf.mxu0  ;;  %v5984_v54 = vadd.f32 %v5983_v13, %v5913_v4  ;;  %v20853_v4 = vld [vmem:[#allocation22_spill] sm:$0xff] }
 0x5b9   :  { %v6054_v29 = vpop.f32.mrf.mxu1  ;;  %v6053_v7 = vadd.f32 %v6052_v5, %v5982_v17  ;;  %v7222_v5 = vmul.f32 %v18953_v34, %v18953_v34  ;;  %v20852_v17 = vld [vmem:[#allocation21_spill] sm:$0xff]  ;;  %v20857_v13 = vld [vmem:[#allocation26_spill] sm:$0xff] }
 0x5ba   :  { %v6125_v11 = vpop.f32.mrf.mxu0  ;;  %v6055_v31 = vadd.f32 %v6054_v29, %v5984_v54  ;;  %v20849_v54 = vld [vmem:[#allocation18_spill] sm:$0xff]  ;;  %v20855_v29 = vld [vmem:[#allocation24_spill] sm:$0xff] }
 0x5bb   :  { %v6194_v39 = vpop.f32.mrf.mxu1  ;;  %v6124_v28 = vadd.f32 %v6123_v47, %v6053_v7  ;;  %v20847_v7 = vld [vmem:[#allocation16_spill] sm:$0xff]  ;;  %v20854_v47 = vld [vmem:[#allocation23_spill] sm:$0xff] }
 0x5bc   :  { %v6126_v9 = vadd.f32 %v6125_v11, %v6055_v31  ;;  %v20859_v11 = vld [vmem:[#allocation28_spill] sm:$0xff] }
 0x5bd   :  { %v6196_v58 = vpop.f32.mrf.mxu1  ;;  %v6195_v23 = vadd.f32 %v6194_v39, %v6124_v28  ;;  %v20851_v39 = vld [vmem:[#allocation20_spill] sm:$0xff] }
 0x5be   :  { %v6197_v50 = vadd.f32 %v6196_v58, %v6126_v9  ;;  %v20842_v9 = vld [vmem:[#allocation10_spill] sm:$0xff]  ;;  %v20843_v58 = vld [vmem:[#allocation12_spill] sm:$0xff] }
 0x5bf   :  { %v6336_v3 = vpop.f32.mrf.mxu1 }
 0x5c1   :  { %v6338_v40 = vpop.f32.mrf.mxu1 }
 0x5cd   :  { %v6265_v32 = vpop.f32.mrf.mxu0 }
 0x5ce   :  { %v6266_v51 = vadd.f32 %v6265_v32, %v6195_v23  ;;  %v20860_v23 = vld [vmem:[#allocation29_spill] sm:$0xff] }
 0x5cf   :  { %v6267_v0 = vpop.f32.mrf.mxu0 }
 0x5d0   :  { %v6268_v37 = vadd.f32 %v6267_v0, %v6197_v50  ;;  %v19305_v53 = vadd.f32 %v6336_v3, %v6266_v51  ;;  %v20861_v0 = vld [vmem:[#allocation30_spill] sm:$0xff] }
 0x5d2   :  { %v19303_v21 = vadd.f32 %v6338_v40, %v6268_v37  ;;  %v9534_v37 = vpop.f32.mrf.mxu1  ;;  %v20862_v40 = vld [vmem:[#allocation31_spill] sm:$0xff] }
 0x5d4   :  { %7136 = vmatprep.mubr.f32.mxu0 %v19303_v21 }
 0x5d5   :  { %7137 = vmatmul.mubr.f32.vlgmr.msra.gmra.mxu0 %v19305_v53 }
 0x5d6   :  { %9861 = vmatpush3.msra.mxu0 %v18621_v60  ;;  %7364 = vmatprep.mubr.f32.mxu0 %v7223_v52  ;;  %v9535_v60 = vpop.f32.mrf.mxu1  ;;  %v20863_v52 = vld [vmem:[#allocation32_spill] sm:$0xff] }
 0x5d7   :  { %9862 = vmatprep.subr.mxu0 %v18633_v18 }
 0x5d8   :  { %9863 = vmatpush3.msra.mxu0 %v18642_v25 }
 0x5d9   :  { %9864 = vmatprep.subr.mxu0 %v18652_v22 }
 0x5da   :  { %9865 = vmatpush3.msra.mxu0 %v18661_v38 }
 0x5db   :  { %9866 = vmatprep.subr.mxu0 %v18670_v59 }
 0x5dc   :  { %9867 = vmatpush3.msra.mxu0 %v18679_v33 }
 0x5dd   :  { %9868 = vmatprep.subr.mxu0 %v18688_v1 }
 0x5de   :  { %9869 = vmatpush3.msra.mxu0 %v18699_v42 }
 0x5df   :  { %9870 = vmatprep.subr.mxu0 %v18708_v14  ;;  %v20839_v14 = vsub.s32 6, %v10628_v41  ;;  %v20841_v41 = vld [vmem:[#allocation11_spill] sm:$0xff] }
 0x5e0   :  { %9871 = vmatpush3.msra.mxu0 %v18717_v43  ;;  %v7221_v3 = vmul.f32 %v20841_v41, %v20841_v41 }
 0x5e1   :  { %9872 = vmatprep.subr.mxu0 %v18726_v45  ;;  %v9536_v45 = vadd.f32 %v9535_v60, %v9534_v37  ;;  %v20865_v60 = vld [vmem:[#allocation34_spill] sm:$0xff] }
 0x5e2   :  { %9873 = vmatpush3.msra.mxu0 %v18736_v12 }
 0x5e3   :  { %9874 = vmatprep.subr.mxu0 %v18745_v62 }
 0x5e4   :  { %9875 = vmatpush3.msra.mxu0 %v18755_v57 }
 0x5e5   :  { %9876 = vmatprep.subr.mxu0 %v18766_v63 }
 0x5e6   :  { %9877 = vmatpush3.msra.mxu0 %v18776_v49 }
 0x5e7   :  { %9878 = vmatprep.subr.mxu0 %v18785_v61 }
 0x5e8   :  { %9879 = vmatpush3.msra.mxu0 %v18795_v56 }
 0x5e9   :  { %9880 = vmatprep.subr.mxu0 %v18805_v27 }
 0x5ea   :  { %9881 = vmatpush3.msra.mxu0 %v18815_v15 }
 0x5eb   :  { %9882 = vmatprep.subr.mxu0 %v18829_v20 }
 0x5ec   :  { %9883 = vmatpush3.msra.mxu0 %v18841_v16 }
 0x5ed   :  { %9884 = vmatprep.subr.mxu0 %v18856_v2 }
 0x5ee   :  { %9885 = vmatpush3.msra.mxu0 %v18869_v48 }
 0x5ef   :  { %9886 = vmatprep.subr.mxu0 %v18881_v8  ;;  %v9569_v1 = vpop.f32.mrf.mxu0 }
 0x5f0   :  { %9887 = vmatpush3.msra.mxu0 %v18894_v35  ;;  %v20844_v35 = vld [vmem:[#allocation13_spill] sm:$0xff] }
 0x5f1   :  { %9888 = vmatprep.subr.mxu0 %v18906_v30  ;;  %v9570_v42 = vpop.f32.mrf.mxu0  ;;  %v20845_v30 = vld [vmem:[#allocation14_spill] sm:$0xff] }
 0x5f2   :  { %9889 = vmatpush3.msra.mxu0 %v18919_v36  ;;  %v9604_v18 = vpop.f32.mrf.mxu1  ;;  %v9571_v62 = vadd.f32 %v9570_v42, %v9569_v1  ;;  %v20846_v36 = vld [vmem:[#allocation15_spill] sm:$0xff] }
 0x5f3   :  { %9890 = vmatprep.subr.mxu0 %v18931_v19  ;;  %v20848_v19 = vld [vmem:[#allocation17_spill] sm:$0xff]  ;;  %v20870_v42 = vld [vmem:[#allocation39_spill] sm:$0xff] }
 0x5f4   :  { %9891 = vmatpush3.msra.mxu0 %v18943_v26  ;;  %v9605_v25 = vpop.f32.mrf.mxu1  ;;  %v20850_v26 = vld [vmem:[#allocation19_spill] sm:$0xff] }
 0x5f5   :  { %7365 = vmatmul.mubr.f32.vlgmr.msra.gmra.mxu0 %v7222_v5  ;;  %10129 = vmatprep.subr.mxu0 %v20837_v55  ;;  %v9606_v49 = vadd.f32 %v9605_v25, %v9604_v18  ;;  %v20864_v5 = vld [vmem:[#allocation33_spill] sm:$0xff]  ;;  %v20866_v18 = vld [vmem:[#allocation35_spill] sm:$0xff] }
 0x5f6   :  { %10130 = vmatpush3.msra.mxu0 %v19287_v44  ;;  %10133 = vmatprep.mubr.msk.f32.mxu0 %vm10240_vm1, %v20837_v55  ;;  %v20840_v44 = vld [vmem:[#allocation9_spill] sm:$0xff] }
 0x5f7   :  { %10131 = vmatprep.subr.mxu0 %v20837_v55  ;;  %v4838_v43 = vrot.slane %v20840_v44, %v20839_v14  ;;  %v20871_v14 = vld [vmem:[#allocation8_spill] sm:$0xff] }
 0x5f8   :  { %10132 = vmatpush3.msra.mxu0 %v19294_v24  ;;  %v7220_v44 = vmul.f32 %v20871_v14, %v20871_v14 }
 0x5f9   :  { %v6408_v57 = vadd.f32 %v9536_v45, %v4838_v43  ;;  %v20872_v43 = vld [vmem:[#allocation40_spill] sm:$0xff]  ;;  %v20873_v45 = vld [vmem:[#allocation41_spill] sm:$0xff] }
 0x5fb   :  { %v6478_v24 = vadd.f32 %v9571_v62, %v6408_v57  ;;  %v20874_v62 = vld [vmem:[#allocation42_spill] sm:$0xff]  ;;  %v20875_v57 = vld [vmem:[#allocation43_spill] sm:$0xff] }
 0x5fd   :  { %v6548_v56 = vadd.f32 %v9606_v49, %v6478_v24  ;;  %v20877_v24 = vld [vmem:[#allocation45_spill] sm:$0xff]  ;;  %v20878_v49 = vld [vmem:[#allocation46_spill] sm:$0xff] }
 0x611   :  { %v9639_v12 = vpop.f32.mrf.mxu0 }
 0x613   :  { %v9640_v63 = vpop.f32.mrf.mxu0 }
 0x614   :  { %v9674_v22 = vpop.f32.mrf.mxu1  ;;  %v9641_v61 = vadd.f32 %v9640_v63, %v9639_v12  ;;  %v7225_v12 = vmul.f32 %v19303_v21, %v19303_v21  ;;  %v20876_v63 = vld [vmem:[#allocation44_spill] sm:$0xff] }
 0x616   :  { %v9675_v38 = vpop.f32.mrf.mxu1  ;;  %v6618_v27 = vadd.f32 %v9641_v61, %v6548_v56  ;;  %v20879_v61 = vld [vmem:[#allocation47_spill] sm:$0xff]  ;;  %v20880_v56 = vld [vmem:[#allocation48_spill] sm:$0xff] }
 0x617   :  { %v9676_v15 = vadd.f32 %v9675_v38, %v9674_v22  ;;  %v20867_v22 = vld [vmem:[#allocation36_spill] sm:$0xff] }
 0x619   :  { %v6688_v16 = vadd.f32 %v9676_v15, %v6618_v27  ;;  %v20881_v27 = vld [vmem:[#allocation49_spill] sm:$0xff]  ;;  %v20882_v15 = vld [vmem:[#allocation50_spill] sm:$0xff] }
 0x61d   :  { %v6827_v59 = vpop.f32.mrf.mxu1 }
 0x61f   :  { %v10121_v33 = vpop.f32.mrf.mxu1 }
 0x620   :  { %v20869_v33 = vld [vmem:[#allocation38_spill] sm:$0xff] }
 0x634   :  { %v9709_v20 = vpop.f32.mrf.mxu0 }
 0x636   :  { %v9710_v50 = vpop.f32.mrf.mxu0 }
 0x637   :  { %v9711_v51 = vadd.f32 %v9710_v50, %v9709_v20  ;;  %v20883_v20 = vld [vmem:[#allocation51_spill] sm:$0xff]  ;;  %v20884_v50 = vld [vmem:[#allocation52_spill] sm:$0xff] }
 0x639   :  { %v6758_v32 = vadd.f32 %v9711_v51, %v6688_v16  ;;  %v20885_v16 = vld [vmem:[#allocation53_spill] sm:$0xff]  ;;  %v20886_v51 = vld [vmem:[#allocation54_spill] sm:$0xff] }
 0x63b   :  { %v19353_v2 = vadd.f32 %v6827_v59, %v6758_v32  ;;  %v20868_v59 = vld [vmem:[#allocation37_spill] sm:$0xff]  ;;  %v20887_v32 = vld [vmem:[#allocation55_spill] sm:$0xff] }
 0x63d   :  { %v7226_v48 = vmul.f32 %v19353_v2, %v19353_v2  ;;  %10127 = vmatmul.mubr.msk.f32.vlgmr.msra.gmra.mxu1 %vm1437_vm0, %v19353_v2 }
 0x63e   :  { %9826 = vmatpush3.msra.mxu1 %v20842_v9  ;;  %7294 = vmatprep.mubr.f32.mxu1 %v7221_v3  ;;  %v20888_v3 = vld [vmem:[#allocation56_spill] sm:$0xff]  ;;  %v20890_v9 = vld [vmem:[#allocation58_spill] sm:$0xff] }
 0x63f   :  { %v9784_v8 = vpop.f32.mrf.mxu1  ;;  %9827 = vmatprep.subr.mxu1 %v20843_v58  ;;  %10134 = vmatmul.mubr.msk.f32.vlgmr.msra.gmra.mxu0 %vm1437_vm0, %v7226_v48  ;;  %v20889_v48 = vld [vmem:[#allocation57_spill] sm:$0xff]  ;;  %v20892_v58 = vld [vmem:[#allocation60_spill] sm:$0xff] }
 0x640   :  { %9828 = vmatpush3.msra.mxu1 %v20844_v35  ;;  %7609 = vmatprep.mubr.f32.mxu0 %v20837_v55  ;;  %v20893_v35 = vld [vmem:[#allocation61_spill] sm:$0xff] }
 0x641   :  { %v9785_v28 = vpop.f32.mrf.mxu1  ;;  %9829 = vmatprep.subr.mxu1 %v20845_v30  ;;  %v20895_v30 = vld [vmem:[#allocation63_spill] sm:$0xff] }
 0x642   :  { %v9786_v31 = vadd.f32 %v9785_v28, %v9784_v8  ;;  %9830 = vmatpush3.msra.mxu1 %v20846_v36  ;;  %v20891_v8 = vld [vmem:[#allocation59_spill] sm:$0xff]  ;;  %v20894_v28 = vld [vmem:[#allocation62_spill] sm:$0xff]  ;;  %v20897_v36 = vld [vmem:[#allocation65_spill] sm:$0xff] }
 0x643   :  { %9831 = vmatprep.subr.mxu1 %v20847_v7  ;;  %v20898_v7 = vld [vmem:[#allocation66_spill] sm:$0xff] }
 0x644   :  { %9832 = vmatpush3.msra.mxu1 %v20848_v19  ;;  %v20899_v19 = vld [vmem:[#allocation67_spill] sm:$0xff] }
 0x645   :  { %9833 = vmatprep.subr.mxu1 %v20849_v54  ;;  %v20900_v54 = vld [vmem:[#allocation68_spill] sm:$0xff] }
 0x646   :  { %9834 = vmatpush3.msra.mxu1 %v20850_v26  ;;  %v20901_v26 = vld [vmem:[#allocation69_spill] sm:$0xff] }
 0x647   :  { %9835 = vmatprep.subr.mxu1 %v20851_v39  ;;  %v20902_v39 = vld [vmem:[#allocation70_spill] sm:$0xff] }
 0x648   :  { %9836 = vmatpush3.msra.mxu1 %v20852_v17  ;;  %v20903_v17 = vld [vmem:[#allocation71_spill] sm:$0xff] }
 0x649   :  { %9837 = vmatprep.subr.mxu1 %v20853_v4  ;;  %v7224_v4 = vmul.f32 %v19305_v53, %v19305_v53 }
 0x64a   :  { %9838 = vmatpush3.msra.mxu1 %v20854_v47  ;;  %v20904_v47 = vld [vmem:[#allocation72_spill] sm:$0xff] }
 0x64b   :  { %9839 = vmatprep.subr.mxu1 %v20855_v29  ;;  %v20905_v29 = vld [vmem:[#allocation73_spill] sm:$0xff] }
 0x64c   :  { %9840 = vmatpush3.msra.mxu1 %v20856_v46 }
 0x64d   :  { %9841 = vmatprep.subr.mxu1 %v20857_v13 }
 0x64e   :  { %9842 = vmatpush3.msra.mxu1 %v20858_v10 }
 0x64f   :  { %9843 = vmatprep.subr.mxu1 %v20859_v11 }
 0x650   :  { %9844 = vmatpush3.msra.mxu1 %v20860_v23 }
 0x651   :  { %9845 = vmatprep.subr.mxu1 %v20861_v0 }
 0x652   :  { %9846 = vmatpush3.msra.mxu1 %v20862_v40 }
 0x653   :  { %9847 = vmatprep.subr.mxu1 %v20863_v52  ;;  %v19436_v52 = vld [vmem:[%s20684_s8 + $0x60] sm:$0xff] }
 0x654   :  { %9848 = vmatpush3.msra.mxu1 %v20864_v5  ;;  %v7536_v5 = vld [vmem:[%s20684_s8 + $0x40] sm:$0xff] }
 0x655   :  { %v9749_v37 = vpop.f32.mrf.mxu0  ;;  %9849 = vmatprep.subr.mxu1 %v20865_v60  ;;  %7573 = vmatprep.subr.mxu0 %v7536_v5  ;;  %v7535_v60 = vld [vmem:[%s20684_s8 + $0x38] sm:$0xff] }
 0x656   :  { %9850 = vmatpush3.msra.mxu1 %v20866_v18  ;;  %v19453_v18 = vld [vmem:[%s20684_s8 + $0x28] sm:$0xff]  ;;  %7574 = vmatpush1.msra.mxu0 %v7535_v60 }
 0x657   :  { %v9750_v25 = vpop.f32.mrf.mxu0  ;;  %9851 = vmatprep.subr.mxu1 %v20867_v22  ;;  %v19462_v22 = vld [vmem:[%s20684_s8 + $0x20] sm:$0xff] }
 0x658   :  { %v9751_v38 = vadd.f32 %v9750_v25, %v9749_v37  ;;  %9852 = vmatpush3.msra.mxu1 %v20868_v59  ;;  %v19444_v37 = vld [vmem:[%s20684_s8 + $0x58] sm:$0xff]  ;;  %v7529_v25 = vld [vmem:[%s20684_s8 + $0x8] sm:$0xff]  ;;  %v19472_v59 = vld [vmem:[%s20684_s8 + $0x50] sm:$0xff] }
 0x659   :  { %9853 = vmatprep.subr.mxu1 %v20869_v33  ;;  %7575 = vmatprep.subr.mxu0 %v7529_v25 }
 0x65a   :  { %v7069_v1 = vadd.f32 %v9786_v31, %v9751_v38  ;;  %9854 = vmatpush3.msra.mxu1 %v20870_v42  ;;  %v20896_v31 = vld [vmem:[#allocation64_spill] sm:$0xff] }
 0x65b   :  { %9855 = vmatprep.subr.mxu1 %v20872_v43  ;;  %v7528_v38 = vld [vmem:[%s20684_s8] sm:$0xff] }
 0x65c   :  { %9856 = vmatpush3.msra.mxu1 %v20873_v45  ;;  %7576 = vmatpush1.msra.mxu0 %v7528_v38 }
 0x65d   :  { %7295 = vmatmul.mubr.f32.vlgmr.msra.gmra.mxu1 %v7220_v44  ;;  %9895 = vmatprep.subr.mxu1 %v20874_v62 }
 0x65e   :  { %9896 = vmatpush3.msra.mxu1 %v20875_v57  ;;  %7434 = vmatprep.mubr.f32.mxu1 %v7225_v12 }
 0x65f   :  { %9897 = vmatprep.subr.mxu1 %v20876_v63  ;;  %7644 = vmatprep.subr.mxu0 %v19472_v59 }
 0x660   :  { %9898 = vmatpush3.msra.mxu1 %v20877_v24 }
 0x661   :  { %9899 = vmatprep.subr.mxu1 %v20878_v49 }
 0x662   :  { %9900 = vmatpush3.msra.mxu1 %v20879_v61 }
 0x663   :  { %9901 = vmatprep.subr.mxu1 %v20880_v56 }
 0x664   :  { %9902 = vmatpush3.msra.mxu1 %v20881_v27 }
 0x665   :  { %9903 = vmatprep.subr.mxu1 %v20882_v15 }
 0x666   :  { %9904 = vmatpush3.msra.mxu1 %v20883_v20 }
 0x667   :  { %9905 = vmatprep.subr.mxu1 %v20884_v50 }
 0x668   :  { %9906 = vmatpush3.msra.mxu1 %v20885_v16 }
 0x669   :  { %9907 = vmatprep.subr.mxu1 %v20886_v51 }
 0x66a   :  { %9908 = vmatpush3.msra.mxu1 %v20887_v32 }
 0x66b   :  { %9909 = vmatprep.subr.mxu1 %v20888_v3 }
 0x66c   :  { %9910 = vmatpush3.msra.mxu1 %v20889_v48 }
 0x66d   :  { %9911 = vmatprep.subr.mxu1 %v20890_v9 }
 0x66e   :  { %9912 = vmatpush3.msra.mxu1 %v20891_v8 }
 0x66f   :  { %9913 = vmatprep.subr.mxu1 %v20892_v58 }
 0x670   :  { %9914 = vmatpush3.msra.mxu1 %v20893_v35 }
 0x671   :  { %9915 = vmatprep.subr.mxu1 %v20894_v28 }
 0x672   :  { %9916 = vmatpush3.msra.mxu1 %v20895_v30 }
 0x673   :  { %9917 = vmatprep.subr.mxu1 %v20896_v31 }
 0x674   :  { %9918 = vmatpush3.msra.mxu1 %v20897_v36 }
 0x675   :  { %9919 = vmatprep.subr.mxu1 %v20898_v7 }
 0x676   :  { %9920 = vmatpush3.msra.mxu1 %v20899_v19 }
 0x677   :  { %9921 = vmatprep.subr.mxu1 %v20900_v54  ;;  %v7521_v54 = vld [vmem:[%s20681_s5] sm:$0x1] }
 0x678   :  { %9922 = vmatpush3.msra.mxu1 %v20901_v26 }
 0x679   :  { %9923 = vmatprep.subr.mxu1 %v20902_v39 }
 0x67a   :  { %9924 = vmatpush3.msra.mxu1 %v20903_v17  ;;  %v7537_v17 = vld [vmem:[%s20684_s8 + $0x48] sm:$0xff] }
 0x67b   :  { %9925 = vmatprep.subr.mxu1 %v20904_v47  ;;  %v7525_v47 = vld [vmem:[%s20682_s6] sm:$0x1] }
 0x67c   :  { %9926 = vmatpush3.msra.mxu1 %v20905_v29  ;;  %v7530_v29 = vld [vmem:[%s20684_s8 + $0x10] sm:$0xff] }
 0x67d   :  { %7435 = vmatmul.mubr.f32.vlgmr.msra.gmra.mxu1 %v7224_v4  ;;  %7715 = vmatprep.subr.mxu1 %v19436_v52  ;;  %v7531_v4 = vld [vmem:[%s20684_s8 + $0x18] sm:$0xff] }
 0x67e   :  { %7751 = vmatprep.mubr.f32.mxu1 %v20837_v55  ;;  %7716 = vmatpush1.msra.mxu1 %v19444_v37 }
 0x67f   :  { %7717 = vmatprep.subr.mxu1 %v19453_v18 }
 0x680   :  { %7718 = vmatpush1.msra.mxu1 %v19462_v22 }
 0x681   :  { %7859 = vmatprep.subr.mxu1 %v7536_v5  ;;  %v8231_v5 = vld [vmem:[%s20685_s9 + $0x140] sm:$0xff] }
 0x695   :  { %v9819_v46 = vpop.f32.mrf.mxu0 }
 0x697   :  { %v9820_v13 = vpop.f32.mrf.mxu0 }
 0x698   :  { %v9821_v10 = vadd.f32 %v9820_v13, %v9819_v46 }
 0x69a   :  { %v7139_v11 = vadd.f32 %v9821_v10, %v7069_v1  ;;  %v7541_v10 = vld [vmem:[%s20684_s8 + $0x68] sm:$0xff] }
 0x6b5   :  { %v9892_v23 = vpop.f32.mrf.mxu0 }
 0x6b7   :  { %v9893_v0 = vpop.f32.mrf.mxu0 }
 0x6b8   :  { %v9894_v40 = vadd.f32 %v9893_v0, %v9892_v23  ;;  %v8237_v23 = vld [vmem:[%s20685_s9 + $0x170] sm:$0xff]  ;;  %v8236_v0 = vld [vmem:[%s20685_s9 + $0x168] sm:$0xff] }
 0x6fd   :  { %v7208_v33 = vpop.f32.mrf.mxu1 }
 0x6fe   :  { %v7209_v1 = vadd.f32 %v7208_v33, %v7139_v11  ;;  %v7534_v11 = vld [vmem:[%s20684_s8 + $0x30] sm:$0xff] }
 0x6ff   :  { %v10128_v42 = vpop.f32.mrf.mxu1  ;;  %v7506_v44 = vpop.f32.mrf.mxu0  ;;  %v8225_v33 = vld [vmem:[%s20685_s9 + $0x110] sm:$0xff] }
 0x700   :  { %v7213_v45 = vsel %vm7212_vm3, %v7209_v1, 0.0  ;;  %v8327_v1 = vld [vmem:[%s20685_s9 + $0x440] sm:$0xff]  ;;  %v8224_v42 = vld [vmem:[%s20685_s9 + $0x108] sm:$0xff] }
 0x701   :  { %v10135_v43 = vpop.f32.mrf.mxu0  ;;  %v7214_v62 = vrot.slane %v7213_v45, 4 }
 0x702   :  { %v8222_v43 = vld [vmem:[%s20685_s9 + $0xf8] sm:$0xff] }
 0x703   :  { %v7215_v63 = vadd.f32 %v7214_v62, %v7213_v45  ;;  %v8324_v45 = vld [vmem:[%s20685_s9 + $0x428] sm:$0xff]  ;;  %v8323_v62 = vld [vmem:[%s20685_s9 + $0x420] sm:$0xff] }
 0x705   :  { %v7216_v61 = vrot.slane %v7215_v63, 2 }
 0x707   :  { %v7217_v50 = vadd.f32 %v7216_v61, %v7215_v63  ;;  %v8321_v63 = vld [vmem:[%s20685_s9 + $0x410] sm:$0xff]  ;;  %v8216_v61 = vld [vmem:[%s20685_s9 + $0xc8] sm:$0xff] }
 0x709   :  { %v7218_v32 = vrot.slane %v7217_v50, 1 }
 0x70b   :  { %v7219_v9 = vadd.f32 %v7218_v32, %v7217_v50  ;;  %v8315_v50 = vld [vmem:[%s20685_s9 + $0x3e0] sm:$0xff]  ;;  %v8210_v32 = vld [vmem:[%s20685_s9 + $0x98] sm:$0xff] }
 0x70d   :  { %v7517_v35 = vmul.f32 0.010204081, %v7219_v9  ;;  %v8311_v9 = vld [vmem:[%s20685_s9 + $0x3c0] sm:$0xff] }
 0x70f   :  { %v7519_v31 = vmul.f32 %v7517_v35, %v7517_v35 }
 0x71d   :  { %v9857_v12 = vpop.f32.mrf.mxu1 }
 0x71f   :  { %v9858_v57 = vpop.f32.mrf.mxu1 }
 0x720   :  { %v9859_v24 = vadd.f32 %v9858_v57, %v9857_v12  ;;  %v8221_v12 = vld [vmem:[%s20685_s9 + $0xf0] sm:$0xff]  ;;  %v8219_v57 = vld [vmem:[%s20685_s9 + $0xe0] sm:$0xff] }
 0x722   :  { %v7367_v27 = vadd.f32 %v9894_v40, %v9859_v24  ;;  %v8234_v40 = vld [vmem:[%s20685_s9 + $0x158] sm:$0xff] }
 0x723   :  { %v8218_v24 = vld [vmem:[%s20685_s9 + $0xd8] sm:$0xff] }
 0x73d   :  { %v9927_v49 = vpop.f32.mrf.mxu1 }
 0x73f   :  { %v9928_v56 = vpop.f32.mrf.mxu1 }
 0x740   :  { %v9929_v15 = vadd.f32 %v9928_v56, %v9927_v49  ;;  %v8320_v49 = vld [vmem:[%s20685_s9 + $0x408] sm:$0xff]  ;;  %v8318_v56 = vld [vmem:[%s20685_s9 + $0x3f8] sm:$0xff] }
 0x742   :  { %v7437_v20 = vadd.f32 %v9929_v15, %v7367_v27  ;;  %v8215_v27 = vld [vmem:[%s20685_s9 + $0xc0] sm:$0xff]  ;;  %v8317_v15 = vld [vmem:[%s20685_s9 + $0x3f0] sm:$0xff] }
 0x744   :  { %v7507_v16 = vadd.f32 %v7506_v44, %v7437_v20  ;;  %v8326_v44 = vld [vmem:[%s20685_s9 + $0x438] sm:$0xff]  ;;  %v8213_v20 = vld [vmem:[%s20685_s9 + $0xb0] sm:$0xff] }
 0x746   :  { %v7510_v51 = vsel %vm7212_vm3, %v7507_v16, 0.0  ;;  %v8212_v16 = vld [vmem:[%s20685_s9 + $0xa8] sm:$0xff] }
 0x747   :  { %v7511_v3 = vrot.slane %v7510_v51, 4 }
 0x749   :  { %v7512_v48 = vadd.f32 %v7511_v3, %v7510_v51  ;;  %v8314_v51 = vld [vmem:[%s20685_s9 + $0x3d8] sm:$0xff]  ;;  %v8312_v3 = vld [vmem:[%s20685_s9 + $0x3c8] sm:$0xff] }
 0x74b   :  { %v7513_v8 = vrot.slane %v7512_v48, 2 }
 0x74d   :  { %v7514_v58 = vadd.f32 %v7513_v8, %v7512_v48  ;;  %v8209_v48 = vld [vmem:[%s20685_s9 + $0x90] sm:$0xff]  ;;  %v8207_v8 = vld [vmem:[%s20685_s9 + $0x80] sm:$0xff] }
 0x74f   :  { %v7515_v28 = vrot.slane %v7514_v58, 1 }
 0x751   :  { %v7516_v30 = vadd.f32 %v7515_v28, %v7514_v58  ;;  %v8309_v58 = vld [vmem:[%s20685_s9 + $0x3b0] sm:$0xff]  ;;  %v8308_v28 = vld [vmem:[%s20685_s9 + $0x3a8] sm:$0xff] }
 0x753   :  { %v7518_v36 = vmul.f32 0.010204081, %v7516_v30  ;;  %v8204_v30 = vld [vmem:[%s20685_s9 + $0x68] sm:$0xff] }
 0x755   :  { %v7520_v7 = vsub.f32 %v7518_v36, %v7519_v31  ;;  %v8306_v31 = vld [vmem:[%s20685_s9 + $0x398] sm:$0xff]  ;;  %v8203_v36 = vld [vmem:[%s20685_s9 + $0x60] sm:$0xff] }
 0x757   :  { %v7522_v19 = vadd.f32 1e-05, %v7520_v7  ;;  %v8305_v7 = vld [vmem:[%s20685_s9 + $0x390] sm:$0xff] }
 0x759   :  { %10209 = vrsqrt.f32 %v7522_v19  ;;  %v8201_v19 = vld [vmem:[%s20685_s9 + $0x50] sm:$0xff] }
 0x766   :  { %v10210_v26 = vpop.eup %10209 }
 0x767   :  { %v7524_v39 = vmul.f32 %v10210_v26, %v7521_v54  ;;  %v8303_v54 = vld [vmem:[%s20685_s9 + $0x380] sm:$0xff]  ;;  %v8200_v26 = vld [vmem:[%s20685_s9 + $0x48] sm:$0xff] }
 0x769   :  { %9381 = vmatmul.mubr.msk.f32.vlgmr.msra.gmra.mxu0 %vm1437_vm0, %v7524_v39  ;;  %9383 = vmatmul.mubr.msk.f32.vlgmr.msra.gmra.mxu1 %vm1437_vm0, %v7524_v39  ;;  %v7526_v46 = vmul.f32 %v7524_v39, %v7517_v35  ;;  %v8206_v35 = vld [vmem:[%s20685_s9 + $0x78] sm:$0xff] }
 0x76a   :  { %7860 = vmatpush1.msra.mxu1 %v7535_v60  ;;  %7645 = vmatpush1.msra.mxu0 %v7537_v17  ;;  %v8230_v60 = vld [vmem:[%s20685_s9 + $0x138] sm:$0xff] }
 0x76b   :  { %7861 = vmatprep.subr.mxu1 %v7529_v25  ;;  %7646 = vmatprep.subr.mxu0 %v7531_v4  ;;  %v7527_v13 = vsub.f32 %v7525_v47, %v7526_v46  ;;  %v8228_v25 = vld [vmem:[%s20685_s9 + $0x128] sm:$0xff]  ;;  %v8197_v47 = vld [vmem:[%s20685_s9 + $0x30] sm:$0xff]  ;;  %v8195_v46 = vld [vmem:[%s20685_s9 + $0x20] sm:$0xff] }
 0x76c   :  { %7862 = vmatpush1.msra.mxu1 %v7528_v38  ;;  %7647 = vmatpush1.msra.mxu0 %v7530_v29  ;;  %v8227_v38 = vld [vmem:[%s20685_s9 + $0x120] sm:$0xff] }
 0x76d   :  { %7680 = vmatprep.mubr.f32.mxu0 %v20837_v55  ;;  %7895 = vmatprep.mubr.f32.mxu1 %v20837_v55 }
 0x76e   :  { %9382 = vmatmul.mubr.msk.f32.vlgmr.msra.gmra.mxu0 %vm1437_vm0, %v7524_v39  ;;  %10136 = vmatprep.subr.mxu0 %v20837_v55 }
 0x76f   :  { %9385 = vmatmul.mubr.msk.f32.vlgmr.msra.gmra.mxu1 %vm1437_vm0, %v7527_v13  ;;  %8001 = vmatprep.subr.mxu1 %v19436_v52  ;;  %v8233_v52 = vld [vmem:[%s20685_s9 + $0x150] sm:$0xff] }
 0x770   :  { %10137 = vmatpush3.msra.mxu0 %v7541_v10  ;;  %8002 = vmatpush1.msra.mxu1 %v19444_v37  ;;  %v8333_v37 = vld [vmem:[%s20685_s9 + $0x470] sm:$0xff] }
 0x771   :  { %10138 = vmatprep.subr.mxu0 %v20837_v55  ;;  %8003 = vmatprep.subr.mxu1 %v19453_v18  ;;  %v8332_v18 = vld [vmem:[%s20685_s9 + $0x468] sm:$0xff] }
 0x772   :  { %10139 = vmatpush3.msra.mxu0 %v7534_v11  ;;  %10140 = vmatprep.mubr.msk.f32.mxu0 %vm10240_vm1, %v20837_v55 }
 0x773   :  { %8004 = vmatpush1.msra.mxu1 %v19462_v22  ;;  %8037 = vmatprep.mubr.f32.mxu1 %v20837_v55  ;;  %v8330_v22 = vld [vmem:[%s20685_s9 + $0x458] sm:$0xff] }
 0x774   :  { %10141 = vmatmul.mubr.msk.f32.vlgmr.msra.gmra.mxu0 %vm1437_vm0, %v7524_v39  ;;  %7930 = vmatprep.subr.mxu0 %v19472_v59  ;;  %v8329_v59 = vld [vmem:[%s20685_s9 + $0x450] sm:$0xff]  ;;  %v8302_v39 = vld [vmem:[%s20685_s9 + $0x378] sm:$0xff] }
 0x775   :  { %9387 = vmatmul.mubr.msk.f32.vlgmr.msra.gmra.mxu1 %vm1437_vm0, %v7527_v13  ;;  %7931 = vmatpush1.msra.mxu0 %v7537_v17  ;;  %v8198_v17 = vld [vmem:[%s20685_s9 + $0x38] sm:$0xff] }
 0x776   :  { %7932 = vmatprep.subr.mxu0 %v7531_v4  ;;  %7966 = vmatprep.mubr.f32.mxu0 %v20837_v55  ;;  %v8300_v4 = vld [vmem:[%s20685_s9 + $0x368] sm:$0xff] }
 0x777   :  { %7933 = vmatpush1.msra.mxu0 %v7530_v29  ;;  %8505 = vmatprep.subr.mxu1 %v8237_v23  ;;  %v8299_v29 = vld [vmem:[%s20685_s9 + $0x360] sm:$0xff]  ;;  %v8192_v23 = vld [vmem:[%s20685_s9 + $0x8] sm:$0xff] }
 0x778   :  { %9386 = vmatmul.mubr.msk.f32.vlgmr.msra.gmra.mxu0 %vm1437_vm0, %v7527_v13  ;;  %10143 = vmatprep.subr.mxu0 %v20837_v55 }
 0x779   :  { %10144 = vmatpush3.msra.mxu0 %v7541_v10  ;;  %10147 = vmatprep.mubr.msk.f32.mxu0 %vm10240_vm1, %v20837_v55  ;;  %v8194_v10 = vld [vmem:[%s20685_s9 + $0x18] sm:$0xff] }
 0x77a   :  { %10145 = vmatprep.subr.mxu0 %v20837_v55  ;;  %8506 = vmatpush1.msra.mxu1 %v8236_v0  ;;  %v8294_v0 = vld [vmem:[%s20685_s9 + $0x338] sm:$0xff] }
 0x77b   :  { %10146 = vmatpush3.msra.mxu0 %v7534_v11  ;;  %8507 = vmatprep.subr.mxu1 %v8234_v40  ;;  %v8296_v11 = vld [vmem:[%s20685_s9 + $0x348] sm:$0xff]  ;;  %v8191_v40 = vld [vmem:[%s20685_s9] sm:$0xff] }
 0x77c   :  { %10148 = vmatmul.mubr.msk.f32.vlgmr.msra.gmra.mxu0 %vm1437_vm0, %v7527_v13  ;;  %8508 = vmatpush1.msra.mxu1 %v8233_v52  ;;  %v8297_v13 = vld [vmem:[%s20685_s9 + $0x350] sm:$0xff] }
 0x77d   :  { %8509 = vmatprep.subr.mxu1 %v8231_v5  ;;  %8576 = vmatprep.subr.mxu0 %v8333_v37  ;;  %v8293_v52 = vld [vmem:[%s20685_s9 + $0x330] sm:$0xff]  ;;  %v8291_v37 = vld [vmem:[%s20685_s9 + $0x320] sm:$0xff] }
 0x77e   :  { %8510 = vmatpush1.msra.mxu1 %v8230_v60  ;;  %8577 = vmatpush1.msra.mxu0 %v8332_v18  ;;  %v8285_v5 = vld [vmem:[%s20685_s9 + $0x2f0] sm:$0xff]  ;;  %v8284_v60 = vld [vmem:[%s20685_s9 + $0x2e8] sm:$0xff]  ;;  %v8290_v18 = vld [vmem:[%s20685_s9 + $0x318] sm:$0xff] }
 0x77f   :  { %8511 = vmatprep.subr.mxu1 %v8228_v25  ;;  %8578 = vmatprep.subr.mxu0 %v8330_v22  ;;  %v8282_v25 = vld [vmem:[%s20685_s9 + $0x2d8] sm:$0xff]  ;;  %v8288_v22 = vld [vmem:[%s20685_s9 + $0x308] sm:$0xff] }
 0x780   :  { %8512 = vmatpush1.msra.mxu1 %v8227_v38  ;;  %8579 = vmatpush1.msra.mxu0 %v8329_v59  ;;  %v8281_v38 = vld [vmem:[%s20685_s9 + $0x2d0] sm:$0xff]  ;;  %v8287_v59 = vld [vmem:[%s20685_s9 + $0x300] sm:$0xff] }
 0x781   :  { %8513 = vmatprep.subr.mxu1 %v8225_v33  ;;  %8580 = vmatprep.subr.mxu0 %v8327_v1  ;;  %v8279_v33 = vld [vmem:[%s20685_s9 + $0x2c0] sm:$0xff]  ;;  %v8381_v1 = vld [vmem:[%s20685_s9 + $0x5f0] sm:$0xff] }
 0x782   :  { %8514 = vmatpush1.msra.mxu1 %v8224_v42  ;;  %8581 = vmatpush1.msra.mxu0 %v8326_v44  ;;  %v8278_v42 = vld [vmem:[%s20685_s9 + $0x2b8] sm:$0xff]  ;;  %v8380_v44 = vld [vmem:[%s20685_s9 + $0x5e8] sm:$0xff] }
 0x783   :  { %8515 = vmatprep.subr.mxu1 %v8222_v43  ;;  %8582 = vmatprep.subr.mxu0 %v8324_v45  ;;  %v8276_v43 = vld [vmem:[%s20685_s9 + $0x2a8] sm:$0xff]  ;;  %v8378_v45 = vld [vmem:[%s20685_s9 + $0x5d8] sm:$0xff] }
 0x784   :  { %8516 = vmatpush1.msra.mxu1 %v8221_v12  ;;  %8583 = vmatpush1.msra.mxu0 %v8323_v62  ;;  %v8275_v12 = vld [vmem:[%s20685_s9 + $0x2a0] sm:$0xff]  ;;  %v8377_v62 = vld [vmem:[%s20685_s9 + $0x5d0] sm:$0xff] }
 0x785   :  { %8517 = vmatprep.subr.mxu1 %v8219_v57  ;;  %8584 = vmatprep.subr.mxu0 %v8321_v63  ;;  %v8273_v57 = vld [vmem:[%s20685_s9 + $0x290] sm:$0xff]  ;;  %v8375_v63 = vld [vmem:[%s20685_s9 + $0x5c0] sm:$0xff] }
 0x786   :  { %8518 = vmatpush1.msra.mxu1 %v8218_v24  ;;  %8585 = vmatpush1.msra.mxu0 %v8320_v49  ;;  %v8272_v24 = vld [vmem:[%s20685_s9 + $0x288] sm:$0xff]  ;;  %v8374_v49 = vld [vmem:[%s20685_s9 + $0x5b8] sm:$0xff] }
 0x787   :  { %8519 = vmatprep.subr.mxu1 %v8216_v61  ;;  %8586 = vmatprep.subr.mxu0 %v8318_v56  ;;  %v8270_v61 = vld [vmem:[%s20685_s9 + $0x278] sm:$0xff]  ;;  %v8372_v56 = vld [vmem:[%s20685_s9 + $0x5a8] sm:$0xff] }
 0x788   :  { %8520 = vmatpush1.msra.mxu1 %v8215_v27  ;;  %8587 = vmatpush1.msra.mxu0 %v8317_v15  ;;  %v8269_v27 = vld [vmem:[%s20685_s9 + $0x270] sm:$0xff]  ;;  %v8371_v15 = vld [vmem:[%s20685_s9 + $0x5a0] sm:$0xff] }
 0x789   :  { %8521 = vmatprep.subr.mxu1 %v8213_v20  ;;  %8588 = vmatprep.subr.mxu0 %v8315_v50  ;;  %v8267_v20 = vld [vmem:[%s20685_s9 + $0x260] sm:$0xff]  ;;  %v8369_v50 = vld [vmem:[%s20685_s9 + $0x590] sm:$0xff] }
 0x78a   :  { %8522 = vmatpush1.msra.mxu1 %v8212_v16  ;;  %8589 = vmatpush1.msra.mxu0 %v8314_v51  ;;  %v8266_v16 = vld [vmem:[%s20685_s9 + $0x258] sm:$0xff]  ;;  %v8368_v51 = vld [vmem:[%s20685_s9 + $0x588] sm:$0xff] }
 0x78b   :  { %8523 = vmatprep.subr.mxu1 %v8210_v32  ;;  %8590 = vmatprep.subr.mxu0 %v8312_v3  ;;  %v8264_v32 = vld [vmem:[%s20685_s9 + $0x248] sm:$0xff]  ;;  %v8366_v3 = vld [vmem:[%s20685_s9 + $0x578] sm:$0xff] }
 0x78c   :  { %8524 = vmatpush1.msra.mxu1 %v8209_v48  ;;  %8591 = vmatpush1.msra.mxu0 %v8311_v9  ;;  %v8263_v48 = vld [vmem:[%s20685_s9 + $0x240] sm:$0xff]  ;;  %v8261_v9 = vld [vmem:[%s20685_s9 + $0x230] sm:$0xff] }
 0x78d   :  { %8525 = vmatprep.subr.mxu1 %v8207_v8  ;;  %8592 = vmatprep.subr.mxu0 %v8309_v58  ;;  %v8260_v8 = vld [vmem:[%s20685_s9 + $0x228] sm:$0xff]  ;;  %v8258_v58 = vld [vmem:[%s20685_s9 + $0x218] sm:$0xff] }
 0x78e   :  { %8526 = vmatpush1.msra.mxu1 %v8206_v35  ;;  %8593 = vmatpush1.msra.mxu0 %v8308_v28  ;;  %v8257_v35 = vld [vmem:[%s20685_s9 + $0x210] sm:$0xff] }
 0x78f   :  { %8527 = vmatprep.subr.mxu1 %v8204_v30  ;;  %8594 = vmatprep.subr.mxu0 %v8306_v31  ;;  %v8365_v28 = vld [vmem:[%s20685_s9 + $0x570] sm:$0xff]  ;;  %v8255_v30 = vld [vmem:[%s20685_s9 + $0x200] sm:$0xff] }
 0x790   :  { %8528 = vmatpush1.msra.mxu1 %v8203_v36  ;;  %8595 = vmatpush1.msra.mxu0 %v8305_v7  ;;  %v8363_v31 = vld [vmem:[%s20685_s9 + $0x560] sm:$0xff]  ;;  %v8254_v36 = vld [vmem:[%s20685_s9 + $0x1f8] sm:$0xff] }
 0x791   :  { %8529 = vmatprep.subr.mxu1 %v8201_v19  ;;  %8596 = vmatprep.subr.mxu0 %v8303_v54  ;;  %v8362_v7 = vld [vmem:[%s20685_s9 + $0x558] sm:$0xff]  ;;  %v8252_v19 = vld [vmem:[%s20685_s9 + $0x1e8] sm:$0xff] }
 0x792   :  { %8530 = vmatpush1.msra.mxu1 %v8200_v26  ;;  %8597 = vmatpush1.msra.mxu0 %v8302_v39  ;;  %v8360_v54 = vld [vmem:[%s20685_s9 + $0x548] sm:$0xff]  ;;  %v8251_v26 = vld [vmem:[%s20685_s9 + $0x1e0] sm:$0xff] }
 0x793   :  { %8531 = vmatprep.subr.mxu1 %v8198_v17  ;;  %8598 = vmatprep.subr.mxu0 %v8300_v4  ;;  %v8359_v39 = vld [vmem:[%s20685_s9 + $0x540] sm:$0xff]  ;;  %v8249_v17 = vld [vmem:[%s20685_s9 + $0x1d0] sm:$0xff] }
 0x794   :  { %8532 = vmatpush1.msra.mxu1 %v8197_v47  ;;  %8599 = vmatpush1.msra.mxu0 %v8299_v29  ;;  %v8357_v4 = vld [vmem:[%s20685_s9 + $0x530] sm:$0xff]  ;;  %v8248_v47 = vld [vmem:[%s20685_s9 + $0x1c8] sm:$0xff] }
 0x795   :  { %8533 = vmatprep.subr.mxu1 %v8195_v46  ;;  %8600 = vmatprep.subr.mxu0 %v8297_v13  ;;  %v8356_v29 = vld [vmem:[%s20685_s9 + $0x528] sm:$0xff]  ;;  %v8246_v46 = vld [vmem:[%s20685_s9 + $0x1b8] sm:$0xff] }
 0x796   :  { %8534 = vmatpush1.msra.mxu1 %v8194_v10  ;;  %8601 = vmatpush1.msra.mxu0 %v8296_v11  ;;  %v8354_v13 = vld [vmem:[%s20685_s9 + $0x518] sm:$0xff]  ;;  %v8245_v10 = vld [vmem:[%s20685_s9 + $0x1b0] sm:$0xff] }
 0x797   :  { %8535 = vmatprep.subr.mxu1 %v8192_v23  ;;  %8602 = vmatprep.subr.mxu0 %v8294_v0  ;;  %v8353_v11 = vld [vmem:[%s20685_s9 + $0x510] sm:$0xff]  ;;  %v8243_v23 = vld [vmem:[%s20685_s9 + $0x1a0] sm:$0xff] }
 0x798   :  { %8536 = vmatpush1.msra.mxu1 %v8191_v40  ;;  %8603 = vmatpush1.msra.mxu0 %v8293_v52  ;;  %v8351_v0 = vld [vmem:[%s20685_s9 + $0x500] sm:$0xff]  ;;  %v8242_v40 = vld [vmem:[%s20685_s9 + $0x198] sm:$0xff] }
 0x799   :  { %8537 = vmatprep.subr.mxu1 %v8285_v5  ;;  %8604 = vmatprep.subr.mxu0 %v8291_v37  ;;  %v8350_v52 = vld [vmem:[%s20685_s9 + $0x4f8] sm:$0xff]  ;;  %v8240_v5 = vld [vmem:[%s20685_s9 + $0x188] sm:$0xff] }
 0x79a   :  { %8538 = vmatpush2.msra.mxu1 %v8284_v60  ;;  %8605 = vmatpush1.msra.mxu0 %v8290_v18  ;;  %v8348_v37 = vld [vmem:[%s20685_s9 + $0x4e8] sm:$0xff]  ;;  %v8239_v60 = vld [vmem:[%s20685_s9 + $0x180] sm:$0xff] }
 0x79b   :  { %8539 = vmatprep.subr.mxu1 %v8282_v25  ;;  %8606 = vmatprep.subr.mxu0 %v8288_v22  ;;  %v8347_v18 = vld [vmem:[%s20685_s9 + $0x4e0] sm:$0xff]  ;;  %v8345_v25 = vld [vmem:[%s20685_s9 + $0x4d0] sm:$0xff] }
 0x79c   :  { %8540 = vmatpush2.msra.mxu1 %v8281_v38  ;;  %8607 = vmatpush1.msra.mxu0 %v8287_v59  ;;  %v8429_v22 = vld [vmem:[%s20685_s9 + $0x770] sm:$0xff]  ;;  %v8344_v38 = vld [vmem:[%s20685_s9 + $0x4c8] sm:$0xff]  ;;  %v8342_v59 = vld [vmem:[%s20685_s9 + $0x4b8] sm:$0xff] }
 0x79d   :  { %8541 = vmatprep.subr.mxu1 %v8279_v33  ;;  %8608 = vmatprep.subr.mxu0 %v8381_v1  ;;  %v8341_v33 = vld [vmem:[%s20685_s9 + $0x4b0] sm:$0xff]  ;;  %v8339_v1 = vld [vmem:[%s20685_s9 + $0x4a0] sm:$0xff] }
 0x79e   :  { %8542 = vmatpush2.msra.mxu1 %v8278_v42  ;;  %8609 = vmatpush2.msra.mxu0 %v8380_v44  ;;  %v8338_v42 = vld [vmem:[%s20685_s9 + $0x498] sm:$0xff]  ;;  %v8336_v44 = vld [vmem:[%s20685_s9 + $0x488] sm:$0xff] }
 0x79f   :  { %8543 = vmatprep.subr.mxu1 %v8276_v43  ;;  %8610 = vmatprep.subr.mxu0 %v8378_v45  ;;  %v8335_v43 = vld [vmem:[%s20685_s9 + $0x480] sm:$0xff] }
 0x7a0   :  { %8544 = vmatpush2.msra.mxu1 %v8275_v12  ;;  %8611 = vmatpush2.msra.mxu0 %v8377_v62  ;;  %v8483_v45 = vld [vmem:[%s20685_s9 + $0x920] sm:$0xff] }
 0x7a1   :  { %8545 = vmatprep.subr.mxu1 %v8273_v57  ;;  %8612 = vmatprep.subr.mxu0 %v8375_v63 }
 0x7a2   :  { %8546 = vmatpush2.msra.mxu1 %v8272_v24  ;;  %8613 = vmatpush2.msra.mxu0 %v8374_v49  ;;  %v20906_v24 = vld [vmem:[#allocation5_spill] sm:$0xff] }
 0x7a3   :  { %8547 = vmatprep.subr.mxu1 %v8270_v61  ;;  %8614 = vmatprep.subr.mxu0 %v8372_v56 }
 0x7a4   :  { %8548 = vmatpush2.msra.mxu1 %v8269_v27  ;;  %8615 = vmatpush2.msra.mxu0 %v8371_v15 }
 0x7a5   :  { %8549 = vmatprep.subr.mxu1 %v8267_v20  ;;  %8616 = vmatprep.subr.mxu0 %v8369_v50 }
 0x7a6   :  { %8550 = vmatpush2.msra.mxu1 %v8266_v16  ;;  %8617 = vmatpush2.msra.mxu0 %v8368_v51 }
 0x7a7   :  { %8551 = vmatprep.subr.mxu1 %v8264_v32  ;;  %8618 = vmatprep.subr.mxu0 %v8366_v3 }
 0x7a8   :  { %8552 = vmatpush2.msra.mxu1 %v8263_v48  ;;  %8619 = vmatpush2.msra.mxu0 %v8365_v28 }
 0x7a9   :  { %8553 = vmatprep.subr.mxu1 %v8261_v9  ;;  %8620 = vmatprep.subr.mxu0 %v8363_v31 }
 0x7aa   :  { %8554 = vmatpush2.msra.mxu1 %v8260_v8  ;;  %8621 = vmatpush2.msra.mxu0 %v8362_v7 }
 0x7ab   :  { %8555 = vmatprep.subr.mxu1 %v8258_v58  ;;  %8622 = vmatprep.subr.mxu0 %v8360_v54  ;;  %v8428_v54 = vld [vmem:[%s20685_s9 + $0x768] sm:$0xff] }
 0x7ac   :  { %8556 = vmatpush2.msra.mxu1 %v8257_v35  ;;  %8623 = vmatpush2.msra.mxu0 %v8359_v39 }
 0x7ad   :  { %8557 = vmatprep.subr.mxu1 %v8255_v30  ;;  %8624 = vmatprep.subr.mxu0 %v8357_v4  ;;  %v8426_v4 = vld [vmem:[%s20685_s9 + $0x758] sm:$0xff] }
 0x7ae   :  { %8558 = vmatpush2.msra.mxu1 %v8254_v36  ;;  %8625 = vmatpush2.msra.mxu0 %v8356_v29 }
 0x7af   :  { %8559 = vmatprep.subr.mxu1 %v8252_v19  ;;  %8626 = vmatprep.subr.mxu0 %v8354_v13 }
 0x7b0   :  { %8560 = vmatpush2.msra.mxu1 %v8251_v26  ;;  %8627 = vmatpush2.msra.mxu0 %v8353_v11 }
 0x7b1   :  { %8561 = vmatprep.subr.mxu1 %v8249_v17  ;;  %8628 = vmatprep.subr.mxu0 %v8351_v0 }
 0x7b2   :  { %8562 = vmatpush2.msra.mxu1 %v8248_v47  ;;  %8629 = vmatpush2.msra.mxu0 %v8350_v52 }
 0x7b3   :  { %8563 = vmatprep.subr.mxu1 %v8246_v46  ;;  %8630 = vmatprep.subr.mxu0 %v8348_v37  ;;  %v8420_v37 = vld [vmem:[%s20685_s9 + $0x728] sm:$0xff] }
 0x7b4   :  { %8564 = vmatpush2.msra.mxu1 %v8245_v10  ;;  %8631 = vmatpush2.msra.mxu0 %v8347_v18  ;;  %v8423_v10 = vld [vmem:[%s20685_s9 + $0x740] sm:$0xff] }
 0x7b5   :  { %8565 = vmatprep.subr.mxu1 %v8243_v23  ;;  %8632 = vmatprep.subr.mxu0 %v8345_v25  ;;  %v8419_v18 = vld [vmem:[%s20685_s9 + $0x720] sm:$0xff] }
 0x7b6   :  { %8566 = vmatpush2.msra.mxu1 %v8242_v40  ;;  %8633 = vmatpush2.msra.mxu0 %v8344_v38  ;;  %v8422_v40 = vld [vmem:[%s20685_s9 + $0x738] sm:$0xff] }
 0x7b7   :  { %8567 = vmatprep.subr.mxu1 %v8240_v5  ;;  %8634 = vmatprep.subr.mxu0 %v8342_v59 }
 0x7b8   :  { %8568 = vmatpush2.msra.mxu1 %v8239_v60  ;;  %8635 = vmatpush2.msra.mxu0 %v8341_v33  ;;  %v8416_v33 = vld [vmem:[%s20685_s9 + $0x708] sm:$0xff] }
 0x7b9   :  { %8647 = vmatprep.subr.mxu1 %v8429_v22  ;;  %8636 = vmatprep.subr.mxu0 %v8339_v1  ;;  %v8417_v22 = vld [vmem:[%s20685_s9 + $0x710] sm:$0xff] }
 0x7ba   :  { %8637 = vmatpush2.msra.mxu0 %v8338_v42  ;;  %v8482_v42 = vld [vmem:[%s20685_s9 + $0x918] sm:$0xff] }
 0x7bb   :  { %8638 = vmatprep.subr.mxu0 %v8336_v44  ;;  %v8414_v44 = vld [vmem:[%s20685_s9 + $0x6f8] sm:$0xff] }
 0x7bc   :  { %8639 = vmatpush2.msra.mxu0 %v8335_v43 }
 0x7bd   :  { %8746 = vmatprep.subr.mxu0 %v8483_v45  ;;  %v8413_v45 = vld [vmem:[%s20685_s9 + $0x6f0] sm:$0xff] }
 0x829   :  { %v7611_v12 = vpop.f32.mrf.mxu0  ;;  %v7753_v62 = vpop.f32.mrf.mxu1 }
 0x82a   :  { %v8117_v49 = vrot.slane %v7611_v12, %v20906_v24  ;;  %v8133_v51 = vrot.slane %v7753_v62, %v20906_v24  ;;  %v8479_v12 = vld [vmem:[%s20685_s9 + $0x900] sm:$0xff] }
 0x82b   :  { %v7613_v57 = vpop.f32.mrf.mxu0  ;;  %v7755_v63 = vpop.f32.mrf.mxu1  ;;  %v8411_v62 = vld [vmem:[%s20685_s9 + $0x6e0] sm:$0xff] }
 0x82c   :  { %v8121_v61 = vrot.slane %v7613_v57, %v20906_v24  ;;  %v8142_v50 = vmul.f32 %v8117_v49, %v20871_v14  ;;  %v8137_v9 = vrot.slane %v7755_v63, %v20906_v24  ;;  %v8146_v28 = vmul.f32 %v8133_v51, %v19305_v53  ;;  %v8286_v57 = vld [vmem:[%s20685_s9 + $0x2f8] sm:$0xff]  ;;  %v8404_v51 = vld [vmem:[%s20685_s9 + $0x6a8] sm:$0xff] }
 0x82d   :  { %v8410_v63 = vld [vmem:[%s20685_s9 + $0x6d8] sm:$0xff] }
 0x82e   :  { %v7682_v56 = vpop.f32.mrf.mxu0  ;;  %v8143_v32 = vmul.f32 %v8121_v61, %v20841_v41  ;;  %v8147_v26 = vmul.f32 %v8137_v9, %v19303_v21  ;;  %v8425_v21 = vld [vmem:[%s20685_s9 + $0x750] sm:$0xff]  ;;  %v8238_v61 = vld [vmem:[%s20685_s9 + $0x178] sm:$0xff] }
 0x82f   :  { %v7897_v27 = vpop.f32.mrf.mxu1  ;;  %v8125_v30 = vrot.slane %v7682_v56, %v20906_v24  ;;  %v8408_v56 = vld [vmem:[%s20685_s9 + $0x6c8] sm:$0xff]  ;;  %v8277_v9 = vld [vmem:[%s20685_s9 + $0x2b0] sm:$0xff] }
 0x830   :  { %v8152_v15 = vrot.slane %v7897_v27, %v20906_v24  ;;  %v7684_v20 = vpop.f32.mrf.mxu0  ;;  %v8283_v27 = vld [vmem:[%s20685_s9 + $0x2e0] sm:$0xff] }
 0x831   :  { %v7899_v16 = vpop.f32.mrf.mxu1  ;;  %v8129_v7 = vrot.slane %v7684_v20, %v20906_v24  ;;  %v8144_v29 = vmul.f32 %v8125_v30, %v18953_v34  ;;  %v8235_v20 = vld [vmem:[%s20685_s9 + $0x160] sm:$0xff]  ;;  %v8398_v30 = vld [vmem:[%s20685_s9 + $0x678] sm:$0xff] }
 0x832   :  { %v8156_v3 = vrot.slane %v7899_v16, %v20906_v24  ;;  %v19918_v48 = vadd.f32 %v8152_v15, %v8142_v50  ;;  %v8407_v15 = vld [vmem:[%s20685_s9 + $0x6c0] sm:$0xff]  ;;  %v8405_v50 = vld [vmem:[%s20685_s9 + $0x6b0] sm:$0xff]  ;;  %v8280_v16 = vld [vmem:[%s20685_s9 + $0x2c8] sm:$0xff] }
 0x833   :  { %v8145_v11 = vmul.f32 %v8129_v7, %v18623_v6  ;;  %v8395_v7 = vld [vmem:[%s20685_s9 + $0x660] sm:$0xff] }
 0x834   :  { %v19921_v8 = vadd.f32 %v8156_v3, %v8143_v32  ;;  %v7824_v58 = vpop.f32.mrf.mxu0  ;;  %v8184_v41 = vmax.f32 %v19918_v48, 0.0  ;;  %v8232_v32 = vld [vmem:[%s20685_s9 + $0x148] sm:$0xff]  ;;  %v8402_v3 = vld [vmem:[%s20685_s9 + $0x698] sm:$0xff]  ;;  %v8453_v48 = vld [vmem:[%s20685_s9 + $0x830] sm:$0xff] }
 0x835   :  { %v8039_v35 = vpop.f32.mrf.mxu1  ;;  %v8141_v23 = vrot.slane %v7824_v58, %v20906_v24  ;;  %v8229_v58 = vld [vmem:[%s20685_s9 + $0x130] sm:$0xff] }
 0x836   :  { %v8185_v14 = vmax.f32 %v19921_v8, 0.0  ;;  %v8168_v31 = vrot.slane %v8039_v35, %v20906_v24  ;;  %v10142_v36 = vpop.f32.mrf.mxu0  ;;  %v8401_v8 = vld [vmem:[%s20685_s9 + $0x690] sm:$0xff]  ;;  %v8399_v35 = vld [vmem:[%s20685_s9 + $0x680] sm:$0xff] }
 0x837   :  { %v8041_v19 = vpop.f32.mrf.mxu1  ;;  %v8148_v38 = vmul.f32 %v8141_v23, %v19353_v2  ;;  %v8480_v2 = vld [vmem:[%s20685_s9 + $0x908] sm:$0xff]  ;;  %v8271_v36 = vld [vmem:[%s20685_s9 + $0x280] sm:$0xff]  ;;  %v8214_v23 = vld [vmem:[%s20685_s9 + $0xb8] sm:$0xff] }
 0x838   :  { %v19933_v39 = vadd.f32 %v8168_v31, %v8146_v28  ;;  %v8172_v53 = vrot.slane %v8041_v19, %v20906_v24  ;;  %v7968_v17 = vpop.f32.mrf.mxu0  ;;  %8569 = vmatprep.mubr.f32.mxu1 %v8185_v14  ;;  %v8274_v28 = vld [vmem:[%s20685_s9 + $0x298] sm:$0xff]  ;;  %v8396_v31 = vld [vmem:[%s20685_s9 + $0x668] sm:$0xff]  ;;  %v8223_v19 = vld [vmem:[%s20685_s9 + $0x100] sm:$0xff] }
 0x839   :  { %v8160_v47 = vrot.slane %v7968_v17, %v20906_v24  ;;  %8570 = vmatmul.mubr.f32.vlgmr.msra.gmra.mxu1 %v8184_v41  ;;  %v8220_v17 = vld [vmem:[%s20685_s9 + $0xe8] sm:$0xff] }
 0x83a   :  { %v19948_v46 = vadd.f32 %v8172_v53, %v8147_v26  ;;  %v7970_v13 = vpop.f32.mrf.mxu0  ;;  %8648 = vmatpush1.msra.mxu1 %v8428_v54  ;;  %v8393_v54 = vld [vmem:[%s20685_s9 + $0x650] sm:$0xff]  ;;  %v8268_v26 = vld [vmem:[%s20685_s9 + $0x268] sm:$0xff] }
 0x83b   :  { %v8164_v0 = vrot.slane %v7970_v13, %v20906_v24  ;;  %8649 = vmatprep.subr.mxu1 %v8426_v4  ;;  %v19960_v52 = vadd.f32 %v8160_v47, %v8144_v29  ;;  %v8392_v53 = vld [vmem:[%s20685_s9 + $0x648] sm:$0xff]  ;;  %v8390_v4 = vld [vmem:[%s20685_s9 + $0x638] sm:$0xff]  ;;  %v8265_v47 = vld [vmem:[%s20685_s9 + $0x250] sm:$0xff] }
 0x83c   :  { %v8189_v34 = vmax.f32 %v19948_v46, 0.0  ;;  %v8110_v5 = vpop.f32.mrf.mxu0  ;;  %8650 = vmatpush1.msra.mxu1 %v8425_v21  ;;  %v8389_v21 = vld [vmem:[%s20685_s9 + $0x630] sm:$0xff]  ;;  %v8387_v13 = vld [vmem:[%s20685_s9 + $0x620] sm:$0xff] }
 0x83d   :  { %v19965_v6 = vadd.f32 %v8164_v0, %v8145_v11  ;;  %v8176_v60 = vrot.slane %v8110_v5, %v20906_v24  ;;  %8651 = vmatprep.subr.mxu1 %v8423_v10  ;;  %v8186_v1 = vmax.f32 %v19960_v52, 0.0  ;;  %v8217_v29 = vld [vmem:[%s20685_s9 + $0xd0] sm:$0xff]  ;;  %v8262_v10 = vld [vmem:[%s20685_s9 + $0x238] sm:$0xff]  ;;  %v8384_v0 = vld [vmem:[%s20685_s9 + $0x608] sm:$0xff] }
 0x83e   :  { %8711 = vmatprep.mubr.f32.mxu1 %v8189_v34  ;;  %v10149_v25 = vpop.f32.mrf.mxu0  ;;  %8652 = vmatpush1.msra.mxu1 %v8422_v40  ;;  %v8386_v11 = vld [vmem:[%s20685_s9 + $0x618] sm:$0xff]  ;;  %v8259_v40 = vld [vmem:[%s20685_s9 + $0x220] sm:$0xff] }
 0x83f   :  { %v8187_v59 = vmax.f32 %v19965_v6, 0.0  ;;  %8653 = vmatprep.subr.mxu1 %v8420_v37  ;;  %v19988_v43 = vadd.f32 %v8176_v60, %v8148_v38  ;;  %v8383_v5 = vld [vmem:[%s20685_s9 + $0x600] sm:$0xff]  ;;  %v8477_v60 = vld [vmem:[%s20685_s9 + $0x8f0] sm:$0xff]  ;;  %v8476_v25 = vld [vmem:[%s20685_s9 + $0x8e8] sm:$0xff] }
 0x840   :  { %8654 = vmatpush1.msra.mxu1 %v8419_v18  ;;  %v8211_v37 = vld [vmem:[%s20685_s9 + $0xa0] sm:$0xff]  ;;  %v8256_v18 = vld [vmem:[%s20685_s9 + $0x208] sm:$0xff]  ;;  %v8474_v38 = vld [vmem:[%s20685_s9 + $0x8d8] sm:$0xff] }
 0x841   :  { %8640 = vmatprep.mubr.f32.mxu0 %v8187_v59  ;;  %8655 = vmatprep.subr.mxu1 %v8417_v22  ;;  %v8190_v49 = vmax.f32 %v19988_v43, 0.0  ;;  %v8208_v22 = vld [vmem:[%s20685_s9 + $0x88] sm:$0xff]  ;;  %v8450_v6 = vld [vmem:[%s20685_s9 + $0x818] sm:$0xff]  ;;  %v8343_v46 = vld [vmem:[%s20685_s9 + $0x4c0] sm:$0xff] }
 0x842   :  { %8641 = vmatmul.mubr.f32.vlgmr.msra.gmra.mxu0 %v8186_v1  ;;  %8656 = vmatpush1.msra.mxu1 %v8416_v33  ;;  %v8253_v33 = vld [vmem:[%s20685_s9 + $0x1f0] sm:$0xff]  ;;  %v8406_v52 = vld [vmem:[%s20685_s9 + $0x6b8] sm:$0xff] }
 0x843   :  { %8747 = vmatpush1.msra.mxu0 %v8482_v42  ;;  %8657 = vmatprep.subr.mxu1 %v8414_v44  ;;  %v8473_v42 = vld [vmem:[%s20685_s9 + $0x8d0] sm:$0xff] }
 0x844   :  { %8748 = vmatprep.subr.mxu0 %v8480_v2  ;;  %8658 = vmatpush1.msra.mxu1 %v8413_v45  ;;  %v8205_v44 = vld [vmem:[%s20685_s9 + $0x70] sm:$0xff]  ;;  %v8471_v2 = vld [vmem:[%s20685_s9 + $0x8c0] sm:$0xff]  ;;  %v8250_v45 = vld [vmem:[%s20685_s9 + $0x1d8] sm:$0xff] }
 0x845   :  { %8749 = vmatpush1.msra.mxu0 %v8479_v12  ;;  %8659 = vmatprep.subr.mxu1 %v8411_v62  ;;  %v8470_v12 = vld [vmem:[%s20685_s9 + $0x8b8] sm:$0xff]  ;;  %v8445_v43 = vld [vmem:[%s20685_s9 + $0x7f0] sm:$0xff] }
 0x846   :  { %8782 = vmatprep.mubr.f32.mxu0 %v20837_v55  ;;  %9939 = vmatprep.subr.mxu0 %v8286_v57  ;;  %v8202_v62 = vld [vmem:[%s20685_s9 + $0x58] sm:$0xff]  ;;  %v8468_v57 = vld [vmem:[%s20685_s9 + $0x8a8] sm:$0xff] }
 0x847   :  { %8660 = vmatpush1.msra.mxu1 %v8410_v63  ;;  %9389 = vmatmul.mubr.msk.f32.vlgmr.msra.gmra.mxu0 %vm1437_vm0, %v8190_v49  ;;  %v8247_v63 = vld [vmem:[%s20685_s9 + $0x1c0] sm:$0xff] }
 0x848   :  { %9940 = vmatpush3.msra.mxu0 %v8238_v61  ;;  %8661 = vmatprep.subr.mxu1 %v8408_v56  ;;  %v8467_v61 = vld [vmem:[%s20685_s9 + $0x8a0] sm:$0xff] }
 0x849   :  { %9941 = vmatprep.subr.mxu0 %v8283_v27  ;;  %8853 = vmatprep.mubr.f32.mxu0 %v8185_v14  ;;  %v8226_v14 = vld [vmem:[%s20685_s9 + $0x118] sm:$0xff]  ;;  %v8199_v56 = vld [vmem:[%s20685_s9 + $0x40] sm:$0xff]  ;;  %v8465_v27 = vld [vmem:[%s20685_s9 + $0x890] sm:$0xff] }
 0x84a   :  { %8662 = vmatpush1.msra.mxu1 %v8407_v15  ;;  %9942 = vmatpush3.msra.mxu0 %v8235_v20  ;;  %v8244_v15 = vld [vmem:[%s20685_s9 + $0x1a8] sm:$0xff] }
 0x84b   :  { %8663 = vmatprep.subr.mxu1 %v8405_v50  ;;  %9943 = vmatprep.subr.mxu0 %v8280_v16  ;;  %v8464_v20 = vld [vmem:[%s20685_s9 + $0x888] sm:$0xff]  ;;  %v8462_v16 = vld [vmem:[%s20685_s9 + $0x878] sm:$0xff] }
 0x84c   :  { %8664 = vmatpush1.msra.mxu1 %v8404_v51  ;;  %9944 = vmatpush3.msra.mxu0 %v8232_v32  ;;  %v8196_v50 = vld [vmem:[%s20685_s9 + $0x28] sm:$0xff]  ;;  %v8241_v51 = vld [vmem:[%s20685_s9 + $0x190] sm:$0xff] }
 0x84d   :  { %8665 = vmatprep.subr.mxu1 %v8402_v3  ;;  %9945 = vmatprep.subr.mxu0 %v8277_v9  ;;  %v8461_v32 = vld [vmem:[%s20685_s9 + $0x870] sm:$0xff]  ;;  %v8459_v9 = vld [vmem:[%s20685_s9 + $0x860] sm:$0xff] }
 0x84e   :  { %8666 = vmatpush1.msra.mxu1 %v8401_v8  ;;  %9946 = vmatpush3.msra.mxu0 %v8229_v58  ;;  %v8193_v3 = vld [vmem:[%s20685_s9 + $0x10] sm:$0xff]  ;;  %v8382_v8 = vld [vmem:[%s20685_s9 + $0x5f8] sm:$0xff] }
 0x84f   :  { %8667 = vmatprep.subr.mxu1 %v8399_v35  ;;  %9947 = vmatprep.subr.mxu0 %v8274_v28  ;;  %v8458_v58 = vld [vmem:[%s20685_s9 + $0x858] sm:$0xff]  ;;  %v8456_v28 = vld [vmem:[%s20685_s9 + $0x848] sm:$0xff] }
 0x850   :  { %8668 = vmatpush1.msra.mxu1 %v8398_v30  ;;  %9948 = vmatpush3.msra.mxu0 %v8226_v14  ;;  %v8334_v35 = vld [vmem:[%s20685_s9 + $0x478] sm:$0xff]  ;;  %v8379_v30 = vld [vmem:[%s20685_s9 + $0x5e0] sm:$0xff] }
 0x851   :  { %8669 = vmatprep.subr.mxu1 %v8396_v31  ;;  %9949 = vmatprep.subr.mxu0 %v8271_v36  ;;  %v8455_v14 = vld [vmem:[%s20685_s9 + $0x840] sm:$0xff]  ;;  %v8452_v36 = vld [vmem:[%s20685_s9 + $0x828] sm:$0xff] }
 0x852   :  { %8670 = vmatpush1.msra.mxu1 %v8395_v7  ;;  %9950 = vmatpush3.msra.mxu0 %v8223_v19  ;;  %v8331_v31 = vld [vmem:[%s20685_s9 + $0x460] sm:$0xff]  ;;  %v8328_v7 = vld [vmem:[%s20685_s9 + $0x448] sm:$0xff]  ;;  %v8449_v19 = vld [vmem:[%s20685_s9 + $0x810] sm:$0xff] }
 0x853   :  { %8671 = vmatprep.subr.mxu1 %v8393_v54  ;;  %9951 = vmatprep.subr.mxu0 %v8268_v26  ;;  %v8325_v54 = vld [vmem:[%s20685_s9 + $0x430] sm:$0xff]  ;;  %v8447_v26 = vld [vmem:[%s20685_s9 + $0x800] sm:$0xff] }
 0x854   :  { %8672 = vmatpush1.msra.mxu1 %v8392_v53  ;;  %9952 = vmatpush3.msra.mxu0 %v8220_v17  ;;  %v8370_v53 = vld [vmem:[%s20685_s9 + $0x598] sm:$0xff] }
 0x855   :  { %8673 = vmatprep.subr.mxu1 %v8390_v4  ;;  %9953 = vmatprep.subr.mxu0 %v8265_v47  ;;  %v8446_v17 = vld [vmem:[%s20685_s9 + $0x7f8] sm:$0xff]  ;;  %v8444_v47 = vld [vmem:[%s20685_s9 + $0x7e8] sm:$0xff] }
 0x856   :  { %8674 = vmatpush1.msra.mxu1 %v8389_v21  ;;  %9954 = vmatpush3.msra.mxu0 %v8217_v29  ;;  %v8322_v4 = vld [vmem:[%s20685_s9 + $0x418] sm:$0xff]  ;;  %v8367_v21 = vld [vmem:[%s20685_s9 + $0x580] sm:$0xff] }
 0x857   :  { %8675 = vmatprep.subr.mxu1 %v8387_v13  ;;  %9955 = vmatprep.subr.mxu0 %v8262_v10  ;;  %v8443_v29 = vld [vmem:[%s20685_s9 + $0x7e0] sm:$0xff]  ;;  %v8441_v10 = vld [vmem:[%s20685_s9 + $0x7d0] sm:$0xff] }
 0x858   :  { %8676 = vmatpush1.msra.mxu1 %v8386_v11  ;;  %9956 = vmatpush3.msra.mxu0 %v8214_v23  ;;  %v8319_v13 = vld [vmem:[%s20685_s9 + $0x400] sm:$0xff]  ;;  %v8364_v11 = vld [vmem:[%s20685_s9 + $0x568] sm:$0xff] }
 0x859   :  { %8677 = vmatprep.subr.mxu1 %v8384_v0  ;;  %9957 = vmatprep.subr.mxu0 %v8259_v40  ;;  %v8440_v23 = vld [vmem:[%s20685_s9 + $0x7c8] sm:$0xff]  ;;  %v8438_v40 = vld [vmem:[%s20685_s9 + $0x7b8] sm:$0xff] }
 0x85a   :  { %8678 = vmatpush1.msra.mxu1 %v8383_v5  ;;  %9958 = vmatpush3.msra.mxu0 %v8211_v37  ;;  %v8316_v0 = vld [vmem:[%s20685_s9 + $0x3e8] sm:$0xff]  ;;  %v8361_v5 = vld [vmem:[%s20685_s9 + $0x550] sm:$0xff] }
 0x85b   :  { %8679 = vmatprep.subr.mxu1 %v8477_v60  ;;  %9959 = vmatprep.subr.mxu0 %v8256_v18  ;;  %v8437_v37 = vld [vmem:[%s20685_s9 + $0x7b0] sm:$0xff]  ;;  %v8435_v18 = vld [vmem:[%s20685_s9 + $0x7a0] sm:$0xff] }
 0x85c   :  { %8680 = vmatpush2.msra.mxu1 %v8476_v25  ;;  %9960 = vmatpush3.msra.mxu0 %v8208_v22  ;;  %v8313_v60 = vld [vmem:[%s20685_s9 + $0x3d0] sm:$0xff]  ;;  %v8358_v25 = vld [vmem:[%s20685_s9 + $0x538] sm:$0xff] }
 0x85d   :  { %8681 = vmatprep.subr.mxu1 %v8474_v38  ;;  %9961 = vmatprep.subr.mxu0 %v8253_v33  ;;  %v8434_v22 = vld [vmem:[%s20685_s9 + $0x798] sm:$0xff]  ;;  %v8432_v33 = vld [vmem:[%s20685_s9 + $0x788] sm:$0xff] }
 0x85e   :  { %8682 = vmatpush2.msra.mxu1 %v8473_v42  ;;  %9962 = vmatpush3.msra.mxu0 %v8205_v44  ;;  %v8310_v38 = vld [vmem:[%s20685_s9 + $0x3b8] sm:$0xff]  ;;  %v8355_v42 = vld [vmem:[%s20685_s9 + $0x520] sm:$0xff] }
 0x85f   :  { %8683 = vmatprep.subr.mxu1 %v8471_v2  ;;  %9963 = vmatprep.subr.mxu0 %v8250_v45  ;;  %v8431_v44 = vld [vmem:[%s20685_s9 + $0x780] sm:$0xff]  ;;  %v8352_v45 = vld [vmem:[%s20685_s9 + $0x508] sm:$0xff] }
 0x860   :  { %8684 = vmatpush2.msra.mxu1 %v8470_v12  ;;  %9964 = vmatpush3.msra.mxu0 %v8202_v62  ;;  %v8307_v2 = vld [vmem:[%s20685_s9 + $0x3a0] sm:$0xff]  ;;  %v8188_v12 = vmax.f32 %v19933_v39, 0.0  ;;  %v8478_v62 = vld [vmem:[%s20685_s9 + $0x8f8] sm:$0xff]  ;;  %v9101_v39 = vld [vmem:[%s20687_s11 + $0xe8] sm:$0xff] }
 0x861   :  { %8685 = vmatprep.subr.mxu1 %v8468_v57  ;;  %9965 = vmatprep.subr.mxu0 %v8247_v63  ;;  %v8304_v57 = vld [vmem:[%s20685_s9 + $0x388] sm:$0xff]  ;;  %v8430_v63 = vld [vmem:[%s20685_s9 + $0x778] sm:$0xff] }
 0x862   :  { %8686 = vmatpush2.msra.mxu1 %v8467_v61  ;;  %9966 = vmatpush3.msra.mxu0 %v8199_v56  ;;  %v8349_v61 = vld [vmem:[%s20685_s9 + $0x4f0] sm:$0xff]  ;;  %v8475_v56 = vld [vmem:[%s20685_s9 + $0x8e0] sm:$0xff] }
 0x863   :  { %8687 = vmatprep.subr.mxu1 %v8465_v27  ;;  %9967 = vmatprep.subr.mxu0 %v8244_v15  ;;  %v8301_v27 = vld [vmem:[%s20685_s9 + $0x370] sm:$0xff]  ;;  %v8427_v15 = vld [vmem:[%s20685_s9 + $0x760] sm:$0xff] }
 0x864   :  { %8688 = vmatpush2.msra.mxu1 %v8464_v20  ;;  %9968 = vmatpush3.msra.mxu0 %v8196_v50  ;;  %v8346_v20 = vld [vmem:[%s20685_s9 + $0x4d8] sm:$0xff]  ;;  %v8472_v50 = vld [vmem:[%s20685_s9 + $0x8c8] sm:$0xff] }
 0x865   :  { %8689 = vmatprep.subr.mxu1 %v8462_v16  ;;  %9969 = vmatprep.subr.mxu0 %v8241_v51  ;;  %v8298_v16 = vld [vmem:[%s20685_s9 + $0x358] sm:$0xff]  ;;  %v8424_v51 = vld [vmem:[%s20685_s9 + $0x748] sm:$0xff] }
 0x866   :  { %8690 = vmatpush2.msra.mxu1 %v8461_v32  ;;  %9970 = vmatpush3.msra.mxu0 %v8193_v3  ;;  %v8295_v32 = vld [vmem:[%s20685_s9 + $0x340] sm:$0xff]  ;;  %v8421_v3 = vld [vmem:[%s20685_s9 + $0x730] sm:$0xff] }
 0x867   :  { %8691 = vmatprep.subr.mxu1 %v8459_v9  ;;  %8854 = vmatmul.mubr.f32.vlgmr.msra.gmra.mxu0 %v8184_v41  ;;  %v8376_v41 = vld [vmem:[%s20685_s9 + $0x5c8] sm:$0xff] }
 0x868   :  { %9974 = vmatprep.subr.mxu0 %v8382_v8  ;;  %8692 = vmatpush2.msra.mxu1 %v8458_v58  ;;  %v8340_v9 = vld [vmem:[%s20685_s9 + $0x4a8] sm:$0xff]  ;;  %v8466_v8 = vld [vmem:[%s20685_s9 + $0x898] sm:$0xff] }
 0x869   :  { %9975 = vmatpush3.msra.mxu0 %v8334_v35  ;;  %8923 = vmatprep.mubr.f32.mxu0 %v8187_v59  ;;  %v8373_v59 = vld [vmem:[%s20685_s9 + $0x5b0] sm:$0xff]  ;;  %v8292_v58 = vld [vmem:[%s20685_s9 + $0x328] sm:$0xff]  ;;  %v8418_v35 = vld [vmem:[%s20685_s9 + $0x718] sm:$0xff] }
 0x86a   :  { %8693 = vmatprep.subr.mxu1 %v8456_v28  ;;  %9976 = vmatprep.subr.mxu0 %v8379_v30  ;;  %v8337_v28 = vld [vmem:[%s20685_s9 + $0x490] sm:$0xff]  ;;  %v8463_v30 = vld [vmem:[%s20685_s9 + $0x880] sm:$0xff] }
 0x86b   :  { %8694 = vmatpush2.msra.mxu1 %v8455_v14  ;;  %9977 = vmatpush3.msra.mxu0 %v8331_v31  ;;  %v8289_v14 = vld [vmem:[%s20685_s9 + $0x310] sm:$0xff]  ;;  %v8415_v31 = vld [vmem:[%s20685_s9 + $0x700] sm:$0xff] }
 0x86c   :  { %8695 = vmatprep.subr.mxu1 %v8453_v48  ;;  %9978 = vmatprep.subr.mxu0 %v8376_v41  ;;  %v8460_v48 = vld [vmem:[%s20685_s9 + $0x868] sm:$0xff] }
 0x86d   :  { %8696 = vmatpush2.msra.mxu1 %v8452_v36  ;;  %9979 = vmatpush3.msra.mxu0 %v8328_v7  ;;  %v8412_v41 = vld [vmem:[%s20685_s9 + $0x6e8] sm:$0xff]  ;;  %v8457_v7 = vld [vmem:[%s20685_s9 + $0x850] sm:$0xff] }
 0x86e   :  { %8697 = vmatprep.subr.mxu1 %v8450_v6  ;;  %9980 = vmatprep.subr.mxu0 %v8373_v59  ;;  %v8484_v36 = vld [vmem:[%s20685_s9 + $0x928] sm:$0xff]  ;;  %v8409_v6 = vld [vmem:[%s20685_s9 + $0x6d0] sm:$0xff] }
 0x86f   :  { %8698 = vmatpush2.msra.mxu1 %v8449_v19  ;;  %9981 = vmatpush3.msra.mxu0 %v8325_v54  ;;  %v8481_v59 = vld [vmem:[%s20685_s9 + $0x910] sm:$0xff]  ;;  %v8454_v19 = vld [vmem:[%s20685_s9 + $0x838] sm:$0xff]  ;;  %v8451_v54 = vld [vmem:[%s20685_s9 + $0x820] sm:$0xff] }
 0x870   :  { %8699 = vmatprep.subr.mxu1 %v8447_v26  ;;  %9982 = vmatprep.subr.mxu0 %v8370_v53  ;;  %v9087_v26 = vld [vmem:[%s20687_s11 + $0x78] sm:$0xff]  ;;  %v8403_v53 = vld [vmem:[%s20685_s9 + $0x6a0] sm:$0xff] }
 0x871   :  { %8700 = vmatpush2.msra.mxu1 %v8446_v17  ;;  %9983 = vmatpush3.msra.mxu0 %v8322_v4  ;;  %v8448_v17 = vld [vmem:[%s20685_s9 + $0x808] sm:$0xff] }
 0x872   :  { %8701 = vmatprep.subr.mxu1 %v8444_v47  ;;  %9984 = vmatprep.subr.mxu0 %v8367_v21  ;;  %v8400_v4 = vld [vmem:[%s20685_s9 + $0x688] sm:$0xff]  ;;  %v8442_v47 = vld [vmem:[%s20685_s9 + $0x7d8] sm:$0xff] }
 0x873   :  { %8702 = vmatpush2.msra.mxu1 %v8443_v29  ;;  %9985 = vmatpush3.msra.mxu0 %v8319_v13  ;;  %v8394_v21 = vld [vmem:[%s20685_s9 + $0x658] sm:$0xff]  ;;  %v8439_v29 = vld [vmem:[%s20685_s9 + $0x7c0] sm:$0xff] }
 0x874   :  { %8703 = vmatprep.subr.mxu1 %v8441_v10  ;;  %9986 = vmatprep.subr.mxu0 %v8364_v11  ;;  %v8391_v13 = vld [vmem:[%s20685_s9 + $0x640] sm:$0xff]  ;;  %v8436_v10 = vld [vmem:[%s20685_s9 + $0x7a8] sm:$0xff] }
 0x875   :  { %8704 = vmatpush2.msra.mxu1 %v8440_v23  ;;  %9987 = vmatpush3.msra.mxu0 %v8316_v0  ;;  %v8388_v11 = vld [vmem:[%s20685_s9 + $0x628] sm:$0xff]  ;;  %v8433_v23 = vld [vmem:[%s20685_s9 + $0x790] sm:$0xff] }
 0x876   :  { %8705 = vmatprep.subr.mxu1 %v8438_v40  ;;  %9988 = vmatprep.subr.mxu0 %v8361_v5  ;;  %v8385_v0 = vld [vmem:[%s20685_s9 + $0x610] sm:$0xff] }
 0x877   :  { %8706 = vmatpush2.msra.mxu1 %v8437_v37  ;;  %9989 = vmatpush3.msra.mxu0 %v8313_v60  ;;  %v9102_v40 = vld [vmem:[%s20687_s11 + $0xf0] sm:$0xff]  ;;  %v9085_v37 = vld [vmem:[%s20687_s11 + $0x68] sm:$0xff]  ;;  %v9100_v60 = vld [vmem:[%s20687_s11 + $0xe0] sm:$0xff] }
 0x878   :  { %8707 = vmatprep.subr.mxu1 %v8435_v18  ;;  %9990 = vmatprep.subr.mxu0 %v8358_v25  ;;  %v9086_v5 = vld [vmem:[%s20687_s11 + $0x70] sm:$0xff]  ;;  %v9084_v18 = vld [vmem:[%s20687_s11 + $0x60] sm:$0xff]  ;;  %v9099_v25 = vld [vmem:[%s20687_s11 + $0xd8] sm:$0xff] }
 0x879   :  { %8708 = vmatpush2.msra.mxu1 %v8434_v22  ;;  %9991 = vmatpush3.msra.mxu0 %v8310_v38  ;;  %v9083_v22 = vld [vmem:[%s20687_s11 + $0x58] sm:$0xff]  ;;  %v9098_v38 = vld [vmem:[%s20687_s11 + $0xd0] sm:$0xff] }
 0x87a   :  { %8709 = vmatprep.subr.mxu1 %v8432_v33  ;;  %9992 = vmatprep.subr.mxu0 %v8355_v42  ;;  %v9082_v33 = vld [vmem:[%s20687_s11 + $0x50] sm:$0xff]  ;;  %v9097_v42 = vld [vmem:[%s20687_s11 + $0xc8] sm:$0xff] }
 0x87b   :  { %8710 = vmatpush2.msra.mxu1 %v8431_v44  ;;  %9993 = vmatpush3.msra.mxu0 %v8307_v2  ;;  %v9081_v44 = vld [vmem:[%s20687_s11 + $0x48] sm:$0xff]  ;;  %v9096_v2 = vld [vmem:[%s20687_s11 + $0xc0] sm:$0xff] }
 0x87c   :  { %8712 = vmatmul.mubr.f32.vlgmr.msra.gmra.mxu1 %v8188_v12  ;;  %9994 = vmatprep.subr.mxu0 %v8352_v45  ;;  %v9080_v45 = vld [vmem:[%s20687_s11 + $0x40] sm:$0xff] }
 0x87d   :  { %10009 = vmatprep.subr.mxu1 %v8478_v62  ;;  %9995 = vmatpush3.msra.mxu0 %v8304_v57  ;;  %v9079_v62 = vld [vmem:[%s20687_s11 + $0x38] sm:$0xff]  ;;  %v9094_v57 = vld [vmem:[%s20687_s11 + $0xb0] sm:$0xff] }
 0x87e   :  { %10010 = vmatpush3.msra.mxu1 %v8430_v63  ;;  %8993 = vmatprep.mubr.f32.mxu1 %v8189_v34  ;;  %v8469_v34 = vld [vmem:[%s20685_s9 + $0x8b0] sm:$0xff] }
 0x87f   :  { %9996 = vmatprep.subr.mxu0 %v8349_v61  ;;  %10011 = vmatprep.subr.mxu1 %v8475_v56  ;;  %v9078_v63 = vld [vmem:[%s20687_s11 + $0x30] sm:$0xff]  ;;  %v9093_v61 = vld [vmem:[%s20687_s11 + $0xa8] sm:$0xff] }
 0x880   :  { %9997 = vmatpush3.msra.mxu0 %v8301_v27  ;;  %10012 = vmatpush3.msra.mxu1 %v8427_v15  ;;  %v9077_v56 = vld [vmem:[%s20687_s11 + $0x28] sm:$0xff]  ;;  %v9092_v27 = vld [vmem:[%s20687_s11 + $0xa0] sm:$0xff] }
 0x881   :  { %9998 = vmatprep.subr.mxu0 %v8346_v20  ;;  %10013 = vmatprep.subr.mxu1 %v8472_v50  ;;  %v9076_v15 = vld [vmem:[%s20687_s11 + $0x20] sm:$0xff]  ;;  %v9091_v20 = vld [vmem:[%s20687_s11 + $0x98] sm:$0xff] }
 0x882   :  { %9999 = vmatpush3.msra.mxu0 %v8298_v16  ;;  %10014 = vmatpush3.msra.mxu1 %v8424_v51  ;;  %v9075_v50 = vld [vmem:[%s20687_s11 + $0x18] sm:$0xff]  ;;  %v9090_v16 = vld [vmem:[%s20687_s11 + $0x90] sm:$0xff] }
 0x883   :  { %10000 = vmatprep.subr.mxu0 %v8343_v46  ;;  %10015 = vmatprep.subr.mxu1 %v8469_v34  ;;  %v9074_v51 = vld [vmem:[%s20687_s11 + $0x10] sm:$0xff]  ;;  %v9089_v46 = vld [vmem:[%s20687_s11 + $0x88] sm:$0xff] }
 0x884   :  { %10001 = vmatpush3.msra.mxu0 %v8295_v32  ;;  %10016 = vmatpush3.msra.mxu1 %v8421_v3  ;;  %v9073_v34 = vld [vmem:[%s20687_s11 + $0x8] sm:$0xff]  ;;  %v9088_v32 = vld [vmem:[%s20687_s11 + $0x80] sm:$0xff] }
 0x885   :  { %10002 = vmatprep.subr.mxu0 %v8340_v9  ;;  %10017 = vmatprep.subr.mxu1 %v8466_v8  ;;  %v9072_v3 = vld [vmem:[%s20687_s11] sm:$0xff]  ;;  %v9107_v9 = vld [vmem:[%s20687_s11 + $0x118] sm:$0xff]  ;;  %v9106_v8 = vld [vmem:[%s20687_s11 + $0x110] sm:$0xff] }
 0x886   :  { %10003 = vmatpush3.msra.mxu0 %v8292_v58  ;;  %10018 = vmatpush3.msra.mxu1 %v8418_v35  ;;  %v9105_v58 = vld [vmem:[%s20687_s11 + $0x108] sm:$0xff]  ;;  %v9104_v35 = vld [vmem:[%s20687_s11 + $0x100] sm:$0xff] }
 0x887   :  { %10004 = vmatprep.subr.mxu0 %v8337_v28  ;;  %10019 = vmatprep.subr.mxu1 %v8463_v30  ;;  %v8485_v28 = vld [vmem:[%s20686_s10] sm:$0x7] }
 0x888   :  { %10005 = vmatpush3.msra.mxu0 %v8289_v14  ;;  %10020 = vmatpush3.msra.mxu1 %v8415_v31  ;;  %v8490_v31 = vrot.slane %v8485_v28, %v20906_v24 }
 0x889   :  { %8924 = vmatmul.mubr.f32.vlgmr.msra.gmra.mxu0 %v8186_v1  ;;  %10021 = vmatprep.subr.mxu1 %v8460_v48  ;;  %v9103_v1 = vld [vmem:[%s20687_s11 + $0xf8] sm:$0xff] }
 0x88a   :  { %10150 = vmatprep.subr.mxu0 %v20837_v55  ;;  %10022 = vmatpush3.msra.mxu1 %v8412_v41  ;;  %v20907_v48 = vld [vmem:[#allocation7_spill] sm:$0xff] }
 0x88b   :  { %10151 = vmatpush3.msra.mxu0 %v8484_v36  ;;  %10023 = vmatprep.subr.mxu1 %v8457_v7  ;;  %v8494_v41 = vrot.slane %v8485_v28, %v20907_v48 }
 0x88c   :  { %10152 = vmatprep.subr.mxu0 %v20837_v55  ;;  %10024 = vmatpush3.msra.mxu1 %v8409_v6 }
 0x88d   :  { %10153 = vmatpush3.msra.mxu0 %v8481_v59  ;;  %10154 = vmatprep.mubr.msk.f32.mxu0 %vm10240_vm1, %v20837_v55 }
 0x88e   :  { %10025 = vmatprep.subr.mxu1 %v8454_v19  ;;  %10155 = vmatmul.mubr.msk.f32.vlgmr.msra.gmra.mxu0 %vm1437_vm0, %v8190_v49  ;;  %v8397_v49 = vld [vmem:[%s20685_s9 + $0x670] sm:$0xff] }
 0x88f   :  { %10026 = vmatpush3.msra.mxu1 %v8406_v52  ;;  %10047 = vmatprep.subr.mxu0 %v9103_v1 }
 0x890   :  { %10027 = vmatprep.subr.mxu1 %v8451_v54  ;;  %10048 = vmatpush3.msra.mxu0 %v9087_v26 }
 0x891   :  { %10028 = vmatpush3.msra.mxu1 %v8403_v53  ;;  %10049 = vmatprep.subr.mxu0 %v9102_v40 }
 0x892   :  { %10029 = vmatprep.subr.mxu1 %v8448_v17  ;;  %10050 = vmatpush3.msra.mxu0 %v9086_v5 }
 0x893   :  { %10030 = vmatpush3.msra.mxu1 %v8400_v4  ;;  %10051 = vmatprep.subr.mxu0 %v9101_v39 }
 0x894   :  { %10031 = vmatprep.subr.mxu1 %v8445_v43  ;;  %10052 = vmatpush3.msra.mxu0 %v9085_v37 }
 0x895   :  { %10032 = vmatpush3.msra.mxu1 %v8397_v49  ;;  %10053 = vmatprep.subr.mxu0 %v9100_v60 }
 0x896   :  { %10033 = vmatprep.subr.mxu1 %v8442_v47  ;;  %10054 = vmatpush3.msra.mxu0 %v9084_v18 }
 0x897   :  { %10034 = vmatpush3.msra.mxu1 %v8394_v21  ;;  %10055 = vmatprep.subr.mxu0 %v9099_v25 }
 0x898   :  { %10035 = vmatprep.subr.mxu1 %v8439_v29  ;;  %10056 = vmatpush3.msra.mxu0 %v9083_v22 }
 0x899   :  { %10036 = vmatpush3.msra.mxu1 %v8391_v13  ;;  %10057 = vmatprep.subr.mxu0 %v9098_v38 }
 0x89a   :  { %10037 = vmatprep.subr.mxu1 %v8436_v10  ;;  %10058 = vmatpush3.msra.mxu0 %v9082_v33 }
 0x89b   :  { %10038 = vmatpush3.msra.mxu1 %v8388_v11  ;;  %10059 = vmatprep.subr.mxu0 %v9097_v42 }
 0x89c   :  { %10039 = vmatprep.subr.mxu1 %v8433_v23  ;;  %10060 = vmatpush3.msra.mxu0 %v9081_v44  ;;  %v9274_v44 = vld [vmem:[%s20689_s13 + $0x78] sm:$0xff] }
 0x89d   :  { %10040 = vmatpush3.msra.mxu1 %v8385_v0  ;;  %10061 = vmatprep.subr.mxu0 %v9096_v2  ;;  %v20908_v0 = vld [vmem:[#allocation6_spill] sm:$0xff] }
 0x89e   :  { %8994 = vmatmul.mubr.f32.vlgmr.msra.gmra.mxu1 %v8188_v12  ;;  %10157 = vmatprep.subr.mxu1 %v20837_v55  ;;  %v9095_v12 = vld [vmem:[%s20687_s11 + $0xb8] sm:$0xff]  ;;  %v8498_v40 = vrot.slane %v8485_v28, %v20908_v0  ;;  %v9273_v2 = vld [vmem:[%s20689_s13 + $0x70] sm:$0xff] }
 0x89f   :  { %10165 = vmatprep.mubr.msk.f32.mxu1 %vm10240_vm1, %v20837_v55  ;;  %10062 = vmatpush3.msra.mxu0 %v9080_v45  ;;  %v9272_v45 = vld [vmem:[%s20689_s13 + $0x68] sm:$0xff] }
 0x8a0   :  { %10063 = vmatprep.subr.mxu0 %v9095_v12  ;;  %10158 = vmatpush3.msra.mxu1 %v9107_v9  ;;  %v9271_v12 = vld [vmem:[%s20689_s13 + $0x60] sm:$0xff] }
 0x8a1   :  { %10064 = vmatpush3.msra.mxu0 %v9079_v62  ;;  %10159 = vmatprep.subr.mxu1 %v20837_v55  ;;  %v9270_v62 = vld [vmem:[%s20689_s13 + $0x58] sm:$0xff]  ;;  %v9391_v9 = vld [vmem:[%s20688_s12] ss:$0 sm:$0xff] }
 0x8a2   :  { %10065 = vmatprep.subr.mxu0 %v9094_v57  ;;  %10160 = vmatpush3.msra.mxu1 %v9106_v8  ;;  %v9269_v57 = vld [vmem:[%s20689_s13 + $0x50] sm:$0xff] }
 0x8a3   :  { %10066 = vmatpush3.msra.mxu0 %v9078_v63  ;;  %10161 = vmatprep.subr.mxu1 %v20837_v55  ;;  %v9268_v63 = vld [vmem:[%s20689_s13 + $0x48] sm:$0xff] }
 0x8a4   :  { %10067 = vmatprep.subr.mxu0 %v9093_v61  ;;  %10162 = vmatpush3.msra.mxu1 %v9105_v58  ;;  %v9267_v61 = vld [vmem:[%s20689_s13 + $0x40] sm:$0xff] }
 0x8a5   :  { %10068 = vmatpush3.msra.mxu0 %v9077_v56  ;;  %10163 = vmatprep.subr.mxu1 %v20837_v55  ;;  %v9266_v56 = vld [vmem:[%s20689_s13 + $0x38] sm:$0xff] }
 0x8a6   :  { %10069 = vmatprep.subr.mxu0 %v9092_v27  ;;  %10164 = vmatpush3.msra.mxu1 %v9104_v35  ;;  %v9265_v27 = vld [vmem:[%s20689_s13 + $0x30] sm:$0xff] }
 0x8a7   :  { %10070 = vmatpush3.msra.mxu0 %v9076_v15  ;;  %10168 = vmatprep.subr.mxu1 %v20837_v55  ;;  %v9264_v15 = vld [vmem:[%s20689_s13 + $0x28] sm:$0xff] }
 0x8a8   :  { %10071 = vmatprep.subr.mxu0 %v9091_v20  ;;  %v9263_v20 = vld [vmem:[%s20689_s13 + $0x20] sm:$0xff] }
 0x8a9   :  { %10072 = vmatpush3.msra.mxu0 %v9075_v50  ;;  %v9262_v50 = vld [vmem:[%s20689_s13 + $0x18] sm:$0xff] }
 0x8aa   :  { %10073 = vmatprep.subr.mxu0 %v9090_v16  ;;  %v9261_v16 = vld [vmem:[%s20689_s13 + $0x10] sm:$0xff] }
 0x8ab   :  { %10074 = vmatpush3.msra.mxu0 %v9074_v51  ;;  %v9260_v51 = vld [vmem:[%s20689_s13 + $0x8] sm:$0xff] }
 0x8ac   :  { %10075 = vmatprep.subr.mxu0 %v9089_v46  ;;  %v9259_v46 = vld [vmem:[%s20689_s13] sm:$0xff]  ;;  %s9360_s13 = sshll.u32 %s10241_s1, 4  ;;  %s9361_s13 = int_to_ptr.vmem [resolvable:$true] %s9360_s13 }
 0x8ad   :  { %10076 = vmatpush3.msra.mxu0 %v9073_v34  ;;  %s10216_s5 = scalar_lea.vmem %s9361_s13, 32  ;;  %p10221_p1 = scmp.lt.s32.totalorder %s9361_s13, %s9361_s13 }
 0x8ae   :  { %10077 = vmatprep.subr.mxu0 %v9088_v32  ;;  %p10217_p0 = scmp.ne.s32.totalorder %s9361_s13, %s10216_s5  ;;  %p10222_p2 = scmp.lt.s32.totalorder %s10216_s5, %s10216_s5 }
 0x8af   :  { %10078 = vmatpush3.msra.mxu0 %v9072_v3 }
 0x8b0   :  { %p10223_p3 = por %p10222_p2, %p10221_p1 }
 0x8b2   :  { %p10224_p4 = pnand %p10223_p3, %p10217_p0 }
 0x8f9   :  { %v8571_v30 = vpop.f32.mrf.mxu1 }
 0x8fa   :  { %v8572_v6 = vadd.f32 %v8571_v30, %v8490_v31 }
 0x8fb   :  { %v8573_v36 = vpop.f32.mrf.mxu1 }
 0x8fc   :  { %v8574_v59 = vadd.f32 %v8573_v36, %v8494_v41 }
 0x902   :  { %v8642_v14 = vpop.f32.mrf.mxu0 }
 0x903   :  { %v8643_v19 = vadd.f32 %v8642_v14, %v8572_v6 }
 0x904   :  { %v8644_v7 = vpop.f32.mrf.mxu0 }
 0x905   :  { %v8645_v54 = vadd.f32 %v8644_v7, %v8574_v59 }
 0x907   :  { %v8784_v52 = vpop.f32.mrf.mxu0 }
 0x909   :  { %v8786_v4 = vpop.f32.mrf.mxu0 }
 0x927   :  { %v9971_v47 = vpop.f32.mrf.mxu0 }
 0x929   :  { %v9972_v24 = vpop.f32.mrf.mxu0 }
 0x92a   :  { %v9973_v5 = vadd.f32 %v9972_v24, %v9971_v47 }
 0x92c   :  { %v8856_v60 = vadd.f32 %v9973_v5, %v8498_v40 }
 0x93c   :  { %v8713_v1 = vpop.f32.mrf.mxu1 }
 0x93d   :  { %v8714_v26 = vadd.f32 %v8713_v1, %v8643_v19 }
 0x93e   :  { %v8715_v53 = vpop.f32.mrf.mxu1 }
 0x93f   :  { %v8716_v17 = vadd.f32 %v8715_v53, %v8645_v54  ;;  %v8785_v43 = vadd.f32 %v8784_v52, %v8714_v26 }
 0x941   :  { %v8787_v49 = vadd.f32 %v8786_v4, %v8716_v17  ;;  %v9069_v29 = vmax.f32 %v8785_v43, 0.0 }
 0x943   :  { %v9070_v21 = vmax.f32 %v8787_v49, 0.0 }
 0x945   :  { %9182 = vmatprep.mubr.f32.mxu0 %v9070_v21 }
 0x946   :  { %9183 = vmatmul.mubr.f32.vlgmr.msra.gmra.mxu0 %v9069_v29 }
 0x949   :  { %v10006_v13 = vpop.f32.mrf.mxu0 }
 0x94b   :  { %v10007_v10 = vpop.f32.mrf.mxu0 }
 0x94c   :  { %v10008_v39 = vadd.f32 %v10007_v10, %v10006_v13 }
 0x94e   :  { %v9065_v11 = vpop.f32.mrf.mxu0  ;;  %v8926_v25 = vadd.f32 %v10008_v39, %v8856_v60 }
 0x950   :  { %v10156_v23 = vpop.f32.mrf.mxu0 }
 0x95e   :  { %v10041_v37 = vpop.f32.mrf.mxu1 }
 0x960   :  { %v10042_v18 = vpop.f32.mrf.mxu1 }
 0x961   :  { %v10043_v22 = vadd.f32 %v10042_v18, %v10041_v37 }
 0x963   :  { %v8996_v38 = vadd.f32 %v10043_v22, %v8926_v25 }
 0x965   :  { %v9066_v33 = vadd.f32 %v9065_v11, %v8996_v38 }
 0x967   :  { %v9071_v42 = vmax.f32 %v9066_v33, 0.0 }
 0x969   :  { %10166 = vmatmul.mubr.msk.f32.vlgmr.msra.gmra.mxu1 %vm4846_vm2, %v9071_v42 }
 0x96a   :  { %10200 = vmatprep.mubr.msk.f32.mxu1 %vm10240_vm1, %v20837_v55  ;;  %10169 = vmatpush3.msra.mxu1 %v9274_v44 }
 0x96b   :  { %10170 = vmatprep.subr.mxu1 %v20837_v55 }
 0x96c   :  { %10171 = vmatpush3.msra.mxu1 %v9273_v2 }
 0x96d   :  { %10172 = vmatprep.subr.mxu1 %v20837_v55 }
 0x96e   :  { %10173 = vmatpush3.msra.mxu1 %v9272_v45 }
 0x96f   :  { %10174 = vmatprep.subr.mxu1 %v20837_v55 }
 0x970   :  { %10175 = vmatpush3.msra.mxu1 %v9271_v12 }
 0x971   :  { %10176 = vmatprep.subr.mxu1 %v20837_v55 }
 0x972   :  { %10177 = vmatpush3.msra.mxu1 %v9270_v62 }
 0x973   :  { %10178 = vmatprep.subr.mxu1 %v20837_v55 }
 0x974   :  { %10179 = vmatpush3.msra.mxu1 %v9269_v57 }
 0x975   :  { %10180 = vmatprep.subr.mxu1 %v20837_v55 }
 0x976   :  { %10181 = vmatpush3.msra.mxu1 %v9268_v63 }
 0x977   :  { %10182 = vmatprep.subr.mxu1 %v20837_v55 }
 0x978   :  { %10183 = vmatpush3.msra.mxu1 %v9267_v61 }
 0x979   :  { %10184 = vmatprep.subr.mxu1 %v20837_v55 }
 0x97a   :  { %10185 = vmatpush3.msra.mxu1 %v9266_v56 }
 0x97b   :  { %10186 = vmatprep.subr.mxu1 %v20837_v55 }
 0x97c   :  { %10187 = vmatpush3.msra.mxu1 %v9265_v27 }
 0x97d   :  { %10188 = vmatprep.subr.mxu1 %v20837_v55 }
 0x97e   :  { %10189 = vmatpush3.msra.mxu1 %v9264_v15 }
 0x97f   :  { %10190 = vmatprep.subr.mxu1 %v20837_v55 }
 0x980   :  { %10191 = vmatpush3.msra.mxu1 %v9263_v20 }
 0x981   :  { %10192 = vmatprep.subr.mxu1 %v20837_v55 }
 0x982   :  { %10193 = vmatpush3.msra.mxu1 %v9262_v50 }
 0x983   :  { %10194 = vmatprep.subr.mxu1 %v20837_v55 }
 0x984   :  { %10195 = vmatpush3.msra.mxu1 %v9261_v16 }
 0x985   :  { %10196 = vmatprep.subr.mxu1 %v20837_v55 }
 0x986   :  { %10197 = vmatpush3.msra.mxu1 %v9260_v51 }
 0x987   :  { %10198 = vmatprep.subr.mxu1 %v20837_v55  ;;  %v9393_v55 = vld [vmem:[%s20690_s14] ss:$0 sm:$0xff] }
 0x988   :  { %10199 = vmatpush3.msra.mxu1 %v9259_v46 }
 0xa06   :  { %v10079_v34 = vpop.f32.mrf.mxu0 }
 0xa08   :  { %v10080_v32 = vpop.f32.mrf.mxu0 }
 0xa09   :  { %v10081_v3 = vadd.f32 %v10080_v32, %v10079_v34 }
 0xa0b   :  { %v9185_v8 = vadd.f32 %v10081_v3, %v9391_v9 }
 0xa29   :  { %v9254_v58 = vpop.f32.mrf.mxu1 }
 0xa2a   :  { %v9255_v35 = vadd.f32 %v9254_v58, %v9185_v8 }
 0xa2b   :  { %v10167_v28 = vpop.f32.mrf.mxu1 }
 0xa2c   :  { %v9258_v30 = vmax.f32 %v9255_v35, 0.0 }
 0xa2e   :  { %10201 = vmatmul.mubr.f32.vlgmr.msra.gmra.mxu1 %v9258_v30 }
 0xaee   :  { %v9348_v14 = vpop.f32.mrf.mxu1 }
 0xaef   :  { %v9349_v31 = vadd.f32 %v9393_v55, %v9348_v14 }
 0xaf0   :  { %v10202_v48 = vpop.f32.mrf.mxu1 }
 0xaf1   :  { %9353 = vst.msk [vmem:[#allocation2] sm:$0x3] %vm9352_vm4, %v9349_v31 }
 0xaf2   :  { %10227 = shalt.err (!%p10224_p4)
}
 0xaf3   :  { %9363 = dma.vmem_to_hbm [thread:$0]  %s9361_s13, 32, %s20691_s15, [#allocation3]  }
 0xaf4   :  { %10236 = dma.done.wait [#allocation3], 32  }
 0xaf5   :  { %10237 = vsyncadd [#allocation3], 4294967264 }
 0xaf6   :  { %9367 = vsyncpa [#allocation3], 1 }

</bundles_post_ra>
